<compile_context>
chip_gen: v7x
topology: tpu7x:2x2x1
jax: 0.10.0
libtpu: 0.0.40
codegen_flags: <defaults>
</compile_context>

<pallas_src>
import functools

import jax
import jax.numpy as jnp
from jax.experimental import pallas as pl
from jax.experimental.pallas import tpu as pltpu


# ----------------------------------------------------------------------------
# Pallas kernel: fused  out[p] = act(A[p] @ B[p] + bias)   (batched over phase)
# ----------------------------------------------------------------------------
def _matmul_bias_act_kernel(a_ref, b_ref, bias_ref, o_ref, *, activation):
    a = a_ref[0]                                   # [tm, K]  bf16
    b = b_ref[0]                                   # [K, N]   bf16
    acc = jnp.dot(a, b, preferred_element_type=jnp.float32)   # MXU, f32 acc
    acc = acc + bias_ref[...]                      # bias: (1, N) f32 broadcast
    if activation == "relu":
        acc = jnp.maximum(acc, 0.0)
    elif activation == "sigmoid":
        acc = jax.nn.sigmoid(acc)                  # f32 epilogue (v5e-safe)
    o_ref[0] = acc.astype(o_ref.dtype)


def batched_matmul_bias_act(a, b, bias, activation, out_dtype=jnp.bfloat16):
    """a: [P, M, K] bf16, b: [P, K, N] bf16, bias: [1, N] f32
       -> act(a @ b + bias): [P, M, N].   K and N are multiples of 128."""
    P, M, K = a.shape
    Pb, Kb, N = b.shape
    assert (P, K) == (Pb, Kb), (a.shape, b.shape)
    tm = 128 if (M > 128 and M % 128 == 0) else M
    grid = (P, M // tm)
    return pl.pallas_call(
        functools.partial(_matmul_bias_act_kernel, activation=activation),
        out_shape=jax.ShapeDtypeStruct((P, M, N), out_dtype),
        grid_spec=pltpu.PrefetchScalarGridSpec(
            num_scalar_prefetch=0,
            grid=grid,
            in_specs=[
                pl.BlockSpec((1, tm, K), lambda p, i: (p, i, 0)),
                pl.BlockSpec((1, K, N), lambda p, i: (p, 0, 0)),
                pl.BlockSpec((1, N), lambda p, i: (0, 0)),
            ],
            out_specs=pl.BlockSpec((1, tm, N), lambda p, i: (p, i, 0)),
        ),
        compiler_params=pltpu.CompilerParams(
            # all blocks independent -> both v7x TensorCores usable on the
            # 4-phase decoder calls; harmless on v5e/v6e.
            dimension_semantics=("parallel", "parallel"),
        ),
    )(a, b, bias)


# ----------------------------------------------------------------------------
# Patch-extraction glue (runs inside jax.jit -> fused XLA, tiny tensors)
# ----------------------------------------------------------------------------
def _conv_patches(x, k, stride, pad):
    """x: [N, H, W, C] -> A: [N*Ho*Wo, k*k*C]  (K order = (ky, kx, c))."""
    xp = jnp.pad(x, ((0, 0), (pad, pad), (pad, pad), (0, 0)))
    n, hp, wp, c = xp.shape
    ho = (hp - k) // stride + 1
    wo = (wp - k) // stride + 1
    cols = []
    for ky in range(k):
        for kx in range(k):
            cols.append(xp[:, ky:ky + stride * ho:stride,
                           kx:kx + stride * wo:stride, :])
    patches = jnp.stack(cols, axis=3)              # [N, Ho, Wo, k*k, C]
    return patches.reshape(n * ho * wo, k * k * c), (n, ho, wo)


def _deconv_phase_patches(x):
    """x: [N, H, W, C] -> A: [4, N*H*W, 4*C].
    Phase p = py*2 + px; per-phase K order = (dy, dx, c).
    out[n, 2i+py, 2j+px] uses patch xp1[n, i+py+dy, j+px+dx, :] (xp1 = pad-1)."""
    n, h, w, c = x.shape
    xp = jnp.pad(x, ((0, 0), (1, 1), (1, 1), (0, 0)))
    phase_mats = []
    for py in range(2):
        for px in range(2):
            cols = []
            for dy in range(2):
                for dx in range(2):
                    cols.append(xp[:, py + dy:py + dy + h,
                                   px + dx:px + dx + w, :])
            p = jnp.stack(cols, axis=3).reshape(n * h * w, 4 * c)
            phase_mats.append(p)
    return jnp.stack(phase_mats, axis=0), (n, h, w)


# ----------------------------------------------------------------------------
# Layers (take channel-padded NHWC bf16 activations + pre-packed weights)
# ----------------------------------------------------------------------------
def conv2d_s2_p1(x, b_packed, bias, activation):
    """Conv2d(kernel=4, stride=2, padding=1).  x: [N,H,W,Cin_pad] bf16."""
    a, (n, ho, wo) = _conv_patches(x, 4, stride=2, pad=1)
    a = a[None].astype(jnp.bfloat16)               # [1, M, K]
    out = batched_matmul_bias_act(a, b_packed, bias, activation)
    return out[0].reshape(n, ho, wo, out.shape[-1])


def conv_transpose2d_s2_p1(x, b_packed, bias, activation):
    """ConvTranspose2d(kernel=4, stride=2, padding=1) via 4-phase decomposition.
    x: [N,H,W,Cin_pad] bf16, b_packed: [4, 4*Cin_pad, Npad] bf16."""
    a, (n, h, w) = _deconv_phase_patches(x)
    a = a.astype(jnp.bfloat16)                     # [4, M, K]
    out = batched_matmul_bias_act(a, b_packed, bias, activation)  # [4, M, Npad]
    npad = out.shape[-1]
    out = out.reshape(2, 2, n, h, w, npad)         # (py, px, n, i, j, c)
    out = jnp.transpose(out, (2, 3, 0, 4, 1, 5))   # (n, i, py, j, px, c)
    return out.reshape(n, 2 * h, 2 * w, npad)      # pixel shuffle


# ----------------------------------------------------------------------------
# Parameters: PyTorch-layout init, then one-time packing into matmul layout
# ----------------------------------------------------------------------------
ENC_CH = [(3, 64), (64, 128), (128, 256), (256, 512)]
DEC_CH = [(512, 256), (256, 128), (128, 64), (64, 3)]
_CIN0_PAD = 8                                      # pad input 3 -> 8 channels


def _round_up(v, m):
    return ((v + m - 1) // m) * m


def init_params(key):
    """Deterministic PyTorch-shaped weights (Conv2d / ConvTranspose2d)."""
    params = {"enc": [], "dec": []}
    for (cin, cout) in ENC_CH:
        key, kw_, kb_ = jax.random.split(key, 3)
        fan_in = cin * 4 * 4
        w = jax.random.normal(kw_, (cout, cin, 4, 4), jnp.float32) * (2.0 / fan_in) ** 0.5
        b = jax.random.normal(kb_, (cout,), jnp.float32) * 0.01
        params["enc"].append((w, b))
    for (cin, cout) in DEC_CH:
        key, kw_, kb_ = jax.random.split(key, 3)
        fan_in = cin * 4 * 4
        w = jax.random.normal(kw_, (cin, cout, 4, 4), jnp.float32) * (2.0 / fan_in) ** 0.5
        b = jax.random.normal(kb_, (cout,), jnp.float32) * 0.01
        params["dec"].append((w, b))
    return params


def pack_params(params):
    """One-time: pack weights into bf16 [P, K, Npad] matmul layout (flip /
    transpose / zero channel-padding done here, never in the forward pass)."""
    packed = {"enc": [], "dec": []}
    cin_pad = _CIN0_PAD
    for (w, b) in params["enc"]:                   # w: [Cout, Cin, 4, 4]
        cout, cin = w.shape[0], w.shape[1]
        n_pad = _round_up(cout, 128)
        wt = jnp.transpose(w, (2, 3, 1, 0))        # (ky, kx, cin, cout)
        wt = jnp.pad(wt, ((0, 0), (0, 0), (0, cin_pad - cin), (0, n_pad - cout)))
        bm = wt.reshape(1, 16 * cin_pad, n_pad).astype(jnp.bfloat16)
        bias = jnp.pad(b, (0, n_pad - cout)).reshape(1, n_pad).astype(jnp.float32)
        packed["enc"].append((bm, bias))
        cin_pad = n_pad
    for (w, b) in params["dec"]:                   # w: [Cin, Cout, 4, 4]
        cin, cout = w.shape[0], w.shape[1]
        n_pad = _round_up(cout, 128)
        phase_ws = []
        for py in range(2):
            for px in range(2):
                # Wphase[dy, dx] = w[:, :, 3 - py - 2*dy, 3 - px - 2*dx]
                sub = jnp.stack(
                    [jnp.stack([w[:, :, 3 - py - 2 * dy, 3 - px - 2 * dx]
                                for dx in range(2)], axis=-1)
                     for dy in range(2)], axis=-2)          # [Cin, Cout, dy, dx]
                sub = jnp.transpose(sub, (2, 3, 0, 1))       # (dy, dx, cin, cout)
                sub = jnp.pad(sub, ((0, 0), (0, 0),
                                    (0, cin_pad - cin), (0, n_pad - cout)))
                phase_ws.append(sub.reshape(4 * cin_pad, n_pad))
        bm = jnp.stack(phase_ws, axis=0).astype(jnp.bfloat16)   # [4, K, Npad]
        bias = jnp.pad(b, (0, n_pad - cout)).reshape(1, n_pad).astype(jnp.float32)
        packed["dec"].append((bm, bias))
        cin_pad = n_pad
    return packed


# ----------------------------------------------------------------------------
# Forward pass (takes / returns NCHW like the PyTorch module), fully jit'ed
# ----------------------------------------------------------------------------
@jax.jit
def autoencoder_forward(x_nchw, packed):
    x = jnp.transpose(x_nchw, (0, 2, 3, 1)).astype(jnp.bfloat16)   # NCHW->NHWC
    x = jnp.pad(x, ((0, 0), (0, 0), (0, 0), (0, _CIN0_PAD - x.shape[-1])))
    for (bm, bias) in packed["enc"]:
        x = conv2d_s2_p1(x, bm, bias, activation="relu")
    n_dec = len(packed["dec"])
    for li, (bm, bias) in enumerate(packed["dec"]):
        act = "sigmoid" if li == n_dec - 1 else "relu"
        x = conv_transpose2d_s2_p1(x, bm, bias, activation=act)
    x = x[..., :3].astype(jnp.float32)             # drop channel padding
    return jnp.transpose(x, (0, 3, 1, 2))          # NHWC -> NCHW


# ----------------------------------------------------------------------------
# Pure-XLA f32 reference (independent check of the Pallas lowering)
# ----------------------------------------------------------------------------
@jax.jit
def reference_forward(x_nchw, params):
    dn = ("NHWC", "HWIO", "NHWC")
    x = jnp.transpose(x_nchw, (0, 2, 3, 1)).astype(jnp.float32)
    for (w, b) in params["enc"]:
        w_hwio = jnp.transpose(w, (2, 3, 1, 0))
        x = jax.lax.conv_general_dilated(x, w_hwio, (2, 2), [(1, 1), (1, 1)],
                                         dimension_numbers=dn)
        x = jnp.maximum(x + b, 0.0)
    for li, (w, b) in enumerate(params["dec"]):
        wf = w[:, :, ::-1, ::-1]
        w_hwio = jnp.transpose(wf, (2, 3, 0, 1))
        x = jax.lax.conv_general_dilated(x, w_hwio, (1, 1), [(2, 2), (2, 2)],
                                         lhs_dilation=(2, 2),
                                         dimension_numbers=dn)
        x = x + b
        x = jax.nn.sigmoid(x) if li == len(params["dec"]) - 1 else jnp.maximum(x, 0.0)
    return jnp.transpose(x, (0, 3, 1, 2))


if __name__ == "__main__":
    key = jax.random.PRNGKey(0)
    kp, kx = jax.random.split(key)
    params = init_params(kp)
    packed = pack_params(params)

    # Small input consistent with the module: batch=2, 3 channels, 16x16.
    x = jax.random.uniform(kx, (2, 3, 16, 16), dtype=jnp.float32)

    y = autoencoder_forward(x, packed)
    y = jax.block_until_ready(y)

    assert y.shape == x.shape, (y.shape, x.shape)
    assert bool(jnp.all(jnp.isfinite(y)))
    assert bool(jnp.all((y >= 0.0) & (y <= 1.0)))  # sigmoid output range

    # Numerical check against the f32 XLA reference (bf16 matmul tolerance).
    y_ref = jax.block_until_ready(reference_forward(x, params))
    max_err = float(jnp.max(jnp.abs(y - y_ref)))
    assert max_err < 0.1, max_err

    print("KERNEL_OK")
</pallas_src>

<mosaic_0001>
module attributes {stable_mosaic.version = 11 : i64} {
  func.func @_matmul_bias_act_kernel(%arg0: i32, %arg1: i32, %arg2: memref<1x128x128xbf16, #tpu.memory_space<vmem>>, %arg3: memref<1x128x128xbf16, #tpu.memory_space<vmem>>, %arg4: memref<1x128xf32, #tpu.memory_space<vmem>>, %arg5: memref<1x128x128xbf16, #tpu.memory_space<vmem>>) attributes {dimension_semantics = [#tpu.dimension_semantics<parallel>, #tpu.dimension_semantics<parallel>], iteration_bounds = array<i64: 1, 1>, scalar_prefetch = 0 : i64, scratch_operands = 0 : i64, tpu.core_type = #tpu.core_type<tc>, window_params = [{transform_indices = @transform_0, window_bounds = array<i64: 1, 128, 128>}, {transform_indices = @transform_1, window_bounds = array<i64: 1, 128, 128>}, {pipeline_mode = #tpu.pipeline_mode<synchronous>, transform_indices = @transform_2, window_bounds = array<i64: 1, 128>}, {transform_indices = @transform_3, window_bounds = array<i64: 1, 128, 128>}]} {
    %c0 = arith.constant 0 : index
    %c0_0 = arith.constant 0 : index
    %c0_1 = arith.constant 0 : index
    %0 = vector.load %arg2[%c0, %c0_0, %c0_1] : memref<1x128x128xbf16, #tpu.memory_space<vmem>>, vector<1x128x128xbf16>
    %1 = vector.shape_cast %0 : vector<1x128x128xbf16> to vector<128x128xbf16>
    %c0_2 = arith.constant 0 : index
    %c0_3 = arith.constant 0 : index
    %c0_4 = arith.constant 0 : index
    %2 = vector.load %arg3[%c0_2, %c0_3, %c0_4] : memref<1x128x128xbf16, #tpu.memory_space<vmem>>, vector<1x128x128xbf16>
    %3 = vector.shape_cast %2 : vector<1x128x128xbf16> to vector<128x128xbf16>
    %cst = arith.constant dense<0.000000e+00> : vector<128x128xf32>
    %4 = tpu.matmul %1, %3, %cst {dimension_numbers = #tpu.dot_dimension_numbers<[1], [0], [0], [1], [0, 0, 1, 1], [], []>} : vector<128x128xbf16>, vector<128x128xbf16>, vector<128x128xf32> -> vector<128x128xf32>
    %c0_5 = arith.constant 0 : index
    %c0_6 = arith.constant 0 : index
    %5 = vector.load %arg4[%c0_5, %c0_6] : memref<1x128xf32, #tpu.memory_space<vmem>>, vector<1x128xf32>
    %6 = vector.broadcast %5 : vector<1x128xf32> to vector<128x128xf32>
    %7 = arith.addf %4, %6 : vector<128x128xf32>
    %cst_7 = arith.constant 0.000000e+00 : f32
    %8 = vector.broadcast %cst_7 : f32 to vector<128x128xf32>
    %9 = arith.maximumf %7, %8 : vector<128x128xf32>
    %10 = arith.truncf %9 : vector<128x128xf32> to vector<128x128xbf16>
    %c0_8 = arith.constant 0 : index
    %c0_9 = arith.constant 0 : index
    %c0_10 = arith.constant 0 : index
    %11 = vector.load %arg5[%c0_8, %c0_9, %c0_10] : memref<1x128x128xbf16, #tpu.memory_space<vmem>>, vector<1x128x128xbf16>
    %12 = vector.shape_cast %11 : vector<1x128x128xbf16> to vector<128x128xbf16>
    %13 = vector.shape_cast %10 : vector<128x128xbf16> to vector<1x128x128xbf16>
    tpu.vector_store %arg5[%c0_8, %c0_9, %c0_10], %13 {strides = array<i32>} : memref<1x128x128xbf16, #tpu.memory_space<vmem>>, vector<1x128x128xbf16>,
    return
  }
  func.func @transform_0(%arg0: i32, %arg1: i32) -> (i32, i32, i32) {
    %c0_i32 = arith.constant 0 : i32
    %c0_i32_0 = arith.constant 0 : i32
    return %arg0, %arg1, %c0_i32 : i32, i32, i32
  }
  func.func @transform_1(%arg0: i32, %arg1: i32) -> (i32, i32, i32) {
    %c0_i32 = arith.constant 0 : i32
    %c0_i32_0 = arith.constant 0 : i32
    %c0_i32_1 = arith.constant 0 : i32
    return %arg0, %c0_i32, %c0_i32_0 : i32, i32, i32
  }
  func.func @transform_2(%arg0: i32, %arg1: i32) -> (i32, i32) {
    %c0_i32 = arith.constant 0 : i32
    %c0_i32_0 = arith.constant 0 : i32
    %c0_i32_1 = arith.constant 0 : i32
    return %c0_i32, %c0_i32_0 : i32, i32
  }
  func.func @transform_3(%arg0: i32, %arg1: i32) -> (i32, i32, i32) {
    %c0_i32 = arith.constant 0 : i32
    %c0_i32_0 = arith.constant 0 : i32
    return %arg0, %arg1, %c0_i32 : i32, i32, i32
  }
}

module attributes {stable_mosaic.version = 11 : i64} {
  func.func @_matmul_bias_act_kernel(%arg0: i32, %arg1: i32, %arg2: memref<1x32x2048xbf16, #tpu.memory_space<vmem>>, %arg3: memref<1x2048x128xbf16, #tpu.memory_space<vmem>>, %arg4: memref<1x128xf32, #tpu.memory_space<vmem>>, %arg5: memref<1x32x128xbf16, #tpu.memory_space<vmem>>) attributes {dimension_semantics = [#tpu.dimension_semantics<parallel>, #tpu.dimension_semantics<parallel>], iteration_bounds = array<i64: 1, 1>, scalar_prefetch = 0 : i64, scratch_operands = 0 : i64, tpu.core_type = #tpu.core_type<tc>, window_params = [{transform_indices = @transform_0, window_bounds = array<i64: 1, 32, 2048>}, {transform_indices = @transform_1, window_bounds = array<i64: 1, 2048, 128>}, {pipeline_mode = #tpu.pipeline_mode<synchronous>, transform_indices = @transform_2, window_bounds = array<i64: 1, 128>}, {transform_indices = @transform_3, window_bounds = array<i64: 1, 32, 128>}]} {
    %c0 = arith.constant 0 : index
    %c0_0 = arith.constant 0 : index
    %c0_1 = arith.constant 0 : index
    %0 = vector.load %arg2[%c0, %c0_0, %c0_1] : memref<1x32x2048xbf16, #tpu.memory_space<vmem>>, vector<1x32x2048xbf16>
    %1 = vector.shape_cast %0 : vector<1x32x2048xbf16> to vector<32x2048xbf16>
    %c0_2 = arith.constant 0 : index
    %c0_3 = arith.constant 0 : index
    %c0_4 = arith.constant 0 : index
    %2 = vector.load %arg3[%c0_2, %c0_3, %c0_4] : memref<1x2048x128xbf16, #tpu.memory_space<vmem>>, vector<1x2048x128xbf16>
    %3 = vector.shape_cast %2 : vector<1x2048x128xbf16> to vector<2048x128xbf16>
    %cst = arith.constant dense<0.000000e+00> : vector<32x128xf32>
    %4 = tpu.matmul %1, %3, %cst {dimension_numbers = #tpu.dot_dimension_numbers<[1], [0], [0], [1], [0, 0, 1, 1], [], []>} : vector<32x2048xbf16>, vector<2048x128xbf16>, vector<32x128xf32> -> vector<32x128xf32>
    %c0_5 = arith.constant 0 : index
    %c0_6 = arith.constant 0 : index
    %5 = vector.load %arg4[%c0_5, %c0_6] : memref<1x128xf32, #tpu.memory_space<vmem>>, vector<1x128xf32>
    %6 = vector.broadcast %5 : vector<1x128xf32> to vector<32x128xf32>
    %7 = arith.addf %4, %6 : vector<32x128xf32>
    %cst_7 = arith.constant 0.000000e+00 : f32
    %8 = vector.broadcast %cst_7 : f32 to vector<32x128xf32>
    %9 = arith.maximumf %7, %8 : vector<32x128xf32>
    %10 = arith.truncf %9 : vector<32x128xf32> to vector<32x128xbf16>
    %c0_8 = arith.constant 0 : index
    %c0_9 = arith.constant 0 : index
    %c0_10 = arith.constant 0 : index
    %11 = vector.load %arg5[%c0_8, %c0_9, %c0_10] : memref<1x32x128xbf16, #tpu.memory_space<vmem>>, vector<1x32x128xbf16>
    %12 = vector.shape_cast %11 : vector<1x32x128xbf16> to vector<32x128xbf16>
    %13 = vector.shape_cast %10 : vector<32x128xbf16> to vector<1x32x128xbf16>
    tpu.vector_store %arg5[%c0_8, %c0_9, %c0_10], %13 {strides = array<i32>} : memref<1x32x128xbf16, #tpu.memory_space<vmem>>, vector<1x32x128xbf16>,
    return
  }
  func.func @transform_0(%arg0: i32, %arg1: i32) -> (i32, i32, i32) {
    %c0_i32 = arith.constant 0 : i32
    %c0_i32_0 = arith.constant 0 : i32
    return %arg0, %arg1, %c0_i32 : i32, i32, i32
  }
  func.func @transform_1(%arg0: i32, %arg1: i32) -> (i32, i32, i32) {
    %c0_i32 = arith.constant 0 : i32
    %c0_i32_0 = arith.constant 0 : i32
    %c0_i32_1 = arith.constant 0 : i32
    return %arg0, %c0_i32, %c0_i32_0 : i32, i32, i32
  }
  func.func @transform_2(%arg0: i32, %arg1: i32) -> (i32, i32) {
    %c0_i32 = arith.constant 0 : i32
    %c0_i32_0 = arith.constant 0 : i32
    %c0_i32_1 = arith.constant 0 : i32
    return %c0_i32, %c0_i32_0 : i32, i32
  }
  func.func @transform_3(%arg0: i32, %arg1: i32) -> (i32, i32, i32) {
    %c0_i32 = arith.constant 0 : i32
    %c0_i32_0 = arith.constant 0 : i32
    return %arg0, %arg1, %c0_i32 : i32, i32, i32
  }
}

module attributes {stable_mosaic.version = 11 : i64} {
  func.func @_matmul_bias_act_kernel(%arg0: i32, %arg1: i32, %arg2: memref<1x2x4096xbf16, #tpu.memory_space<vmem>>, %arg3: memref<1x4096x512xbf16, #tpu.memory_space<vmem>>, %arg4: memref<1x512xf32, #tpu.memory_space<vmem>>, %arg5: memref<1x2x512xbf16, #tpu.memory_space<vmem>>) attributes {dimension_semantics = [#tpu.dimension_semantics<parallel>, #tpu.dimension_semantics<parallel>], iteration_bounds = array<i64: 1, 1>, scalar_prefetch = 0 : i64, scratch_operands = 0 : i64, tpu.core_type = #tpu.core_type<tc>, window_params = [{transform_indices = @transform_0, window_bounds = array<i64: 1, 2, 4096>}, {transform_indices = @transform_1, window_bounds = array<i64: 1, 4096, 512>}, {pipeline_mode = #tpu.pipeline_mode<synchronous>, transform_indices = @transform_2, window_bounds = array<i64: 1, 512>}, {transform_indices = @transform_3, window_bounds = array<i64: 1, 2, 512>}]} {
    %c0 = arith.constant 0 : index
    %c0_0 = arith.constant 0 : index
    %c0_1 = arith.constant 0 : index
    %0 = vector.load %arg2[%c0, %c0_0, %c0_1] : memref<1x2x4096xbf16, #tpu.memory_space<vmem>>, vector<1x2x4096xbf16>
    %1 = vector.shape_cast %0 : vector<1x2x4096xbf16> to vector<2x4096xbf16>
    %c0_2 = arith.constant 0 : index
    %c0_3 = arith.constant 0 : index
    %c0_4 = arith.constant 0 : index
    %2 = vector.load %arg3[%c0_2, %c0_3, %c0_4] : memref<1x4096x512xbf16, #tpu.memory_space<vmem>>, vector<1x4096x512xbf16>
    %3 = vector.shape_cast %2 : vector<1x4096x512xbf16> to vector<4096x512xbf16>
    %cst = arith.constant dense<0.000000e+00> : vector<2x512xf32>
    %4 = tpu.matmul %1, %3, %cst {dimension_numbers = #tpu.dot_dimension_numbers<[1], [0], [0], [1], [0, 0, 1, 1], [], []>} : vector<2x4096xbf16>, vector<4096x512xbf16>, vector<2x512xf32> -> vector<2x512xf32>
    %c0_5 = arith.constant 0 : index
    %c0_6 = arith.constant 0 : index
    %5 = vector.load %arg4[%c0_5, %c0_6] : memref<1x512xf32, #tpu.memory_space<vmem>>, vector<1x512xf32>
    %6 = vector.broadcast %5 : vector<1x512xf32> to vector<2x512xf32>
    %7 = arith.addf %4, %6 : vector<2x512xf32>
    %cst_7 = arith.constant 0.000000e+00 : f32
    %8 = vector.broadcast %cst_7 : f32 to vector<2x512xf32>
    %9 = arith.maximumf %7, %8 : vector<2x512xf32>
    %10 = arith.truncf %9 : vector<2x512xf32> to vector<2x512xbf16>
    %c0_8 = arith.constant 0 : index
    %c0_9 = arith.constant 0 : index
    %c0_10 = arith.constant 0 : index
    %11 = vector.load %arg5[%c0_8, %c0_9, %c0_10] : memref<1x2x512xbf16, #tpu.memory_space<vmem>>, vector<1x2x512xbf16>
    %12 = vector.shape_cast %11 : vector<1x2x512xbf16> to vector<2x512xbf16>
    %13 = vector.shape_cast %10 : vector<2x512xbf16> to vector<1x2x512xbf16>
    tpu.vector_store %arg5[%c0_8, %c0_9, %c0_10], %13 {strides = array<i32>} : memref<1x2x512xbf16, #tpu.memory_space<vmem>>, vector<1x2x512xbf16>,
    return
  }
  func.func @transform_0(%arg0: i32, %arg1: i32) -> (i32, i32, i32) {
    %c0_i32 = arith.constant 0 : i32
    %c0_i32_0 = arith.constant 0 : i32
    return %arg0, %arg1, %c0_i32 : i32, i32, i32
  }
  func.func @transform_1(%arg0: i32, %arg1: i32) -> (i32, i32, i32) {
    %c0_i32 = arith.constant 0 : i32
    %c0_i32_0 = arith.constant 0 : i32
    %c0_i32_1 = arith.constant 0 : i32
    return %arg0, %c0_i32, %c0_i32_0 : i32, i32, i32
  }
  func.func @transform_2(%arg0: i32, %arg1: i32) -> (i32, i32) {
    %c0_i32 = arith.constant 0 : i32
    %c0_i32_0 = arith.constant 0 : i32
    %c0_i32_1 = arith.constant 0 : i32
    return %c0_i32, %c0_i32_0 : i32, i32
  }
  func.func @transform_3(%arg0: i32, %arg1: i32) -> (i32, i32, i32) {
    %c0_i32 = arith.constant 0 : i32
    %c0_i32_0 = arith.constant 0 : i32
    return %arg0, %arg1, %c0_i32 : i32, i32, i32
  }
}

module attributes {stable_mosaic.version = 11 : i64} {
  func.func @_matmul_bias_act_kernel(%arg0: i32, %arg1: i32, %arg2: memref<1x8x2048xbf16, #tpu.memory_space<vmem>>, %arg3: memref<1x2048x256xbf16, #tpu.memory_space<vmem>>, %arg4: memref<1x256xf32, #tpu.memory_space<vmem>>, %arg5: memref<1x8x256xbf16, #tpu.memory_space<vmem>>) attributes {dimension_semantics = [#tpu.dimension_semantics<parallel>, #tpu.dimension_semantics<parallel>], iteration_bounds = array<i64: 1, 1>, scalar_prefetch = 0 : i64, scratch_operands = 0 : i64, tpu.core_type = #tpu.core_type<tc>, window_params = [{transform_indices = @transform_0, window_bounds = array<i64: 1, 8, 2048>}, {transform_indices = @transform_1, window_bounds = array<i64: 1, 2048, 256>}, {pipeline_mode = #tpu.pipeline_mode<synchronous>, transform_indices = @transform_2, window_bounds = array<i64: 1, 256>}, {transform_indices = @transform_3, window_bounds = array<i64: 1, 8, 256>}]} {
    %c0 = arith.constant 0 : index
    %c0_0 = arith.constant 0 : index
    %c0_1 = arith.constant 0 : index
    %0 = vector.load %arg2[%c0, %c0_0, %c0_1] : memref<1x8x2048xbf16, #tpu.memory_space<vmem>>, vector<1x8x2048xbf16>
    %1 = vector.shape_cast %0 : vector<1x8x2048xbf16> to vector<8x2048xbf16>
    %c0_2 = arith.constant 0 : index
    %c0_3 = arith.constant 0 : index
    %c0_4 = arith.constant 0 : index
    %2 = vector.load %arg3[%c0_2, %c0_3, %c0_4] : memref<1x2048x256xbf16, #tpu.memory_space<vmem>>, vector<1x2048x256xbf16>
    %3 = vector.shape_cast %2 : vector<1x2048x256xbf16> to vector<2048x256xbf16>
    %cst = arith.constant dense<0.000000e+00> : vector<8x256xf32>
    %4 = tpu.matmul %1, %3, %cst {dimension_numbers = #tpu.dot_dimension_numbers<[1], [0], [0], [1], [0, 0, 1, 1], [], []>} : vector<8x2048xbf16>, vector<2048x256xbf16>, vector<8x256xf32> -> vector<8x256xf32>
    %c0_5 = arith.constant 0 : index
    %c0_6 = arith.constant 0 : index
    %5 = vector.load %arg4[%c0_5, %c0_6] : memref<1x256xf32, #tpu.memory_space<vmem>>, vector<1x256xf32>
    %6 = vector.broadcast %5 : vector<1x256xf32> to vector<8x256xf32>
    %7 = arith.addf %4, %6 : vector<8x256xf32>
    %cst_7 = arith.constant 0.000000e+00 : f32
    %8 = vector.broadcast %cst_7 : f32 to vector<8x256xf32>
    %9 = arith.maximumf %7, %8 : vector<8x256xf32>
    %10 = arith.truncf %9 : vector<8x256xf32> to vector<8x256xbf16>
    %c0_8 = arith.constant 0 : index
    %c0_9 = arith.constant 0 : index
    %c0_10 = arith.constant 0 : index
    %11 = vector.load %arg5[%c0_8, %c0_9, %c0_10] : memref<1x8x256xbf16, #tpu.memory_space<vmem>>, vector<1x8x256xbf16>
    %12 = vector.shape_cast %11 : vector<1x8x256xbf16> to vector<8x256xbf16>
    %13 = vector.shape_cast %10 : vector<8x256xbf16> to vector<1x8x256xbf16>
    tpu.vector_store %arg5[%c0_8, %c0_9, %c0_10], %13 {strides = array<i32>} : memref<1x8x256xbf16, #tpu.memory_space<vmem>>, vector<1x8x256xbf16>,
    return
  }
  func.func @transform_0(%arg0: i32, %arg1: i32) -> (i32, i32, i32) {
    %c0_i32 = arith.constant 0 : i32
    %c0_i32_0 = arith.constant 0 : i32
    return %arg0, %arg1, %c0_i32 : i32, i32, i32
  }
  func.func @transform_1(%arg0: i32, %arg1: i32) -> (i32, i32, i32) {
    %c0_i32 = arith.constant 0 : i32
    %c0_i32_0 = arith.constant 0 : i32
    %c0_i32_1 = arith.constant 0 : i32
    return %arg0, %c0_i32, %c0_i32_0 : i32, i32, i32
  }
  func.func @transform_2(%arg0: i32, %arg1: i32) -> (i32, i32) {
    %c0_i32 = arith.constant 0 : i32
    %c0_i32_0 = arith.constant 0 : i32
    %c0_i32_1 = arith.constant 0 : i32
    return %c0_i32, %c0_i32_0 : i32, i32
  }
  func.func @transform_3(%arg0: i32, %arg1: i32) -> (i32, i32, i32) {
    %c0_i32 = arith.constant 0 : i32
    %c0_i32_0 = arith.constant 0 : i32
    return %arg0, %arg1, %c0_i32 : i32, i32, i32
  }
}

module attributes {stable_mosaic.version = 11 : i64} {
  func.func @_matmul_bias_act_kernel(%arg0: i32, %arg1: i32, %arg2: memref<1x8x1024xbf16, #tpu.memory_space<vmem>>, %arg3: memref<1x1024x128xbf16, #tpu.memory_space<vmem>>, %arg4: memref<1x128xf32, #tpu.memory_space<vmem>>, %arg5: memref<1x8x128xbf16, #tpu.memory_space<vmem>>) attributes {dimension_semantics = [#tpu.dimension_semantics<parallel>, #tpu.dimension_semantics<parallel>], iteration_bounds = array<i64: 4, 1>, scalar_prefetch = 0 : i64, scratch_operands = 0 : i64, tpu.core_type = #tpu.core_type<tc>, window_params = [{transform_indices = @transform_0, window_bounds = array<i64: 1, 8, 1024>}, {transform_indices = @transform_1, window_bounds = array<i64: 1, 1024, 128>}, {pipeline_mode = #tpu.pipeline_mode<synchronous>, transform_indices = @transform_2, window_bounds = array<i64: 1, 128>}, {transform_indices = @transform_3, window_bounds = array<i64: 1, 8, 128>}]} {
    %c0 = arith.constant 0 : index
    %c0_0 = arith.constant 0 : index
    %c0_1 = arith.constant 0 : index
    %0 = vector.load %arg2[%c0, %c0_0, %c0_1] : memref<1x8x1024xbf16, #tpu.memory_space<vmem>>, vector<1x8x1024xbf16>
    %1 = vector.shape_cast %0 : vector<1x8x1024xbf16> to vector<8x1024xbf16>
    %c0_2 = arith.constant 0 : index
    %c0_3 = arith.constant 0 : index
    %c0_4 = arith.constant 0 : index
    %2 = vector.load %arg3[%c0_2, %c0_3, %c0_4] : memref<1x1024x128xbf16, #tpu.memory_space<vmem>>, vector<1x1024x128xbf16>
    %3 = vector.shape_cast %2 : vector<1x1024x128xbf16> to vector<1024x128xbf16>
    %cst = arith.constant dense<0.000000e+00> : vector<8x128xf32>
    %4 = tpu.matmul %1, %3, %cst {dimension_numbers = #tpu.dot_dimension_numbers<[1], [0], [0], [1], [0, 0, 1, 1], [], []>} : vector<8x1024xbf16>, vector<1024x128xbf16>, vector<8x128xf32> -> vector<8x128xf32>
    %c0_5 = arith.constant 0 : index
    %c0_6 = arith.constant 0 : index
    %5 = vector.load %arg4[%c0_5, %c0_6] : memref<1x128xf32, #tpu.memory_space<vmem>>, vector<1x128xf32>
    %6 = vector.broadcast %5 : vector<1x128xf32> to vector<8x128xf32>
    %7 = arith.addf %4, %6 : vector<8x128xf32>
    %cst_7 = arith.constant 0.000000e+00 : f32
    %8 = vector.broadcast %cst_7 : f32 to vector<8x128xf32>
    %9 = arith.maximumf %7, %8 : vector<8x128xf32>
    %10 = arith.truncf %9 : vector<8x128xf32> to vector<8x128xbf16>
    %c0_8 = arith.constant 0 : index
    %c0_9 = arith.constant 0 : index
    %c0_10 = arith.constant 0 : index
    %11 = vector.load %arg5[%c0_8, %c0_9, %c0_10] : memref<1x8x128xbf16, #tpu.memory_space<vmem>>, vector<1x8x128xbf16>
    %12 = vector.shape_cast %11 : vector<1x8x128xbf16> to vector<8x128xbf16>
    %13 = vector.shape_cast %10 : vector<8x128xbf16> to vector<1x8x128xbf16>
    tpu.vector_store %arg5[%c0_8, %c0_9, %c0_10], %13 {strides = array<i32>} : memref<1x8x128xbf16, #tpu.memory_space<vmem>>, vector<1x8x128xbf16>,
    return
  }
  func.func @transform_0(%arg0: i32, %arg1: i32) -> (i32, i32, i32) {
    %c0_i32 = arith.constant 0 : i32
    %c0_i32_0 = arith.constant 0 : i32
    return %arg0, %arg1, %c0_i32 : i32, i32, i32
  }
  func.func @transform_1(%arg0: i32, %arg1: i32) -> (i32, i32, i32) {
    %c0_i32 = arith.constant 0 : i32
    %c0_i32_0 = arith.constant 0 : i32
    %c0_i32_1 = arith.constant 0 : i32
    return %arg0, %c0_i32, %c0_i32_0 : i32, i32, i32
  }
  func.func @transform_2(%arg0: i32, %arg1: i32) -> (i32, i32) {
    %c0_i32 = arith.constant 0 : i32
    %c0_i32_0 = arith.constant 0 : i32
    %c0_i32_1 = arith.constant 0 : i32
    return %c0_i32, %c0_i32_0 : i32, i32
  }
  func.func @transform_3(%arg0: i32, %arg1: i32) -> (i32, i32, i32) {
    %c0_i32 = arith.constant 0 : i32
    %c0_i32_0 = arith.constant 0 : i32
    return %arg0, %arg1, %c0_i32 : i32, i32, i32
  }
}

module attributes {stable_mosaic.version = 11 : i64} {
  func.func @_matmul_bias_act_kernel(%arg0: i32, %arg1: i32, %arg2: memref<1x2x2048xbf16, #tpu.memory_space<vmem>>, %arg3: memref<1x2048x256xbf16, #tpu.memory_space<vmem>>, %arg4: memref<1x256xf32, #tpu.memory_space<vmem>>, %arg5: memref<1x2x256xbf16, #tpu.memory_space<vmem>>) attributes {dimension_semantics = [#tpu.dimension_semantics<parallel>, #tpu.dimension_semantics<parallel>], iteration_bounds = array<i64: 4, 1>, scalar_prefetch = 0 : i64, scratch_operands = 0 : i64, tpu.core_type = #tpu.core_type<tc>, window_params = [{transform_indices = @transform_0, window_bounds = array<i64: 1, 2, 2048>}, {transform_indices = @transform_1, window_bounds = array<i64: 1, 2048, 256>}, {pipeline_mode = #tpu.pipeline_mode<synchronous>, transform_indices = @transform_2, window_bounds = array<i64: 1, 256>}, {transform_indices = @transform_3, window_bounds = array<i64: 1, 2, 256>}]} {
    %c0 = arith.constant 0 : index
    %c0_0 = arith.constant 0 : index
    %c0_1 = arith.constant 0 : index
    %0 = vector.load %arg2[%c0, %c0_0, %c0_1] : memref<1x2x2048xbf16, #tpu.memory_space<vmem>>, vector<1x2x2048xbf16>
    %1 = vector.shape_cast %0 : vector<1x2x2048xbf16> to vector<2x2048xbf16>
    %c0_2 = arith.constant 0 : index
    %c0_3 = arith.constant 0 : index
    %c0_4 = arith.constant 0 : index
    %2 = vector.load %arg3[%c0_2, %c0_3, %c0_4] : memref<1x2048x256xbf16, #tpu.memory_space<vmem>>, vector<1x2048x256xbf16>
    %3 = vector.shape_cast %2 : vector<1x2048x256xbf16> to vector<2048x256xbf16>
    %cst = arith.constant dense<0.000000e+00> : vector<2x256xf32>
    %4 = tpu.matmul %1, %3, %cst {dimension_numbers = #tpu.dot_dimension_numbers<[1], [0], [0], [1], [0, 0, 1, 1], [], []>} : vector<2x2048xbf16>, vector<2048x256xbf16>, vector<2x256xf32> -> vector<2x256xf32>
    %c0_5 = arith.constant 0 : index
    %c0_6 = arith.constant 0 : index
    %5 = vector.load %arg4[%c0_5, %c0_6] : memref<1x256xf32, #tpu.memory_space<vmem>>, vector<1x256xf32>
    %6 = vector.broadcast %5 : vector<1x256xf32> to vector<2x256xf32>
    %7 = arith.addf %4, %6 : vector<2x256xf32>
    %cst_7 = arith.constant 0.000000e+00 : f32
    %8 = vector.broadcast %cst_7 : f32 to vector<2x256xf32>
    %9 = arith.maximumf %7, %8 : vector<2x256xf32>
    %10 = arith.truncf %9 : vector<2x256xf32> to vector<2x256xbf16>
    %c0_8 = arith.constant 0 : index
    %c0_9 = arith.constant 0 : index
    %c0_10 = arith.constant 0 : index
    %11 = vector.load %arg5[%c0_8, %c0_9, %c0_10] : memref<1x2x256xbf16, #tpu.memory_space<vmem>>, vector<1x2x256xbf16>
    %12 = vector.shape_cast %11 : vector<1x2x256xbf16> to vector<2x256xbf16>
    %13 = vector.shape_cast %10 : vector<2x256xbf16> to vector<1x2x256xbf16>
    tpu.vector_store %arg5[%c0_8, %c0_9, %c0_10], %13 {strides = array<i32>} : memref<1x2x256xbf16, #tpu.memory_space<vmem>>, vector<1x2x256xbf16>,
    return
  }
  func.func @transform_0(%arg0: i32, %arg1: i32) -> (i32, i32, i32) {
    %c0_i32 = arith.constant 0 : i32
    %c0_i32_0 = arith.constant 0 : i32
    return %arg0, %arg1, %c0_i32 : i32, i32, i32
  }
  func.func @transform_1(%arg0: i32, %arg1: i32) -> (i32, i32, i32) {
    %c0_i32 = arith.constant 0 : i32
    %c0_i32_0 = arith.constant 0 : i32
    %c0_i32_1 = arith.constant 0 : i32
    return %arg0, %c0_i32, %c0_i32_0 : i32, i32, i32
  }
  func.func @transform_2(%arg0: i32, %arg1: i32) -> (i32, i32) {
    %c0_i32 = arith.constant 0 : i32
    %c0_i32_0 = arith.constant 0 : i32
    %c0_i32_1 = arith.constant 0 : i32
    return %c0_i32, %c0_i32_0 : i32, i32
  }
  func.func @transform_3(%arg0: i32, %arg1: i32) -> (i32, i32, i32) {
    %c0_i32 = arith.constant 0 : i32
    %c0_i32_0 = arith.constant 0 : i32
    return %arg0, %arg1, %c0_i32 : i32, i32, i32
  }
}

module attributes {stable_mosaic.version = 11 : i64} {
  func.func @_matmul_bias_act_kernel(%arg0: i32, %arg1: i32, %arg2: memref<1x32x512xbf16, #tpu.memory_space<vmem>>, %arg3: memref<1x512x128xbf16, #tpu.memory_space<vmem>>, %arg4: memref<1x128xf32, #tpu.memory_space<vmem>>, %arg5: memref<1x32x128xbf16, #tpu.memory_space<vmem>>) attributes {dimension_semantics = [#tpu.dimension_semantics<parallel>, #tpu.dimension_semantics<parallel>], iteration_bounds = array<i64: 4, 1>, scalar_prefetch = 0 : i64, scratch_operands = 0 : i64, tpu.core_type = #tpu.core_type<tc>, window_params = [{transform_indices = @transform_0, window_bounds = array<i64: 1, 32, 512>}, {transform_indices = @transform_1, window_bounds = array<i64: 1, 512, 128>}, {pipeline_mode = #tpu.pipeline_mode<synchronous>, transform_indices = @transform_2, window_bounds = array<i64: 1, 128>}, {transform_indices = @transform_3, window_bounds = array<i64: 1, 32, 128>}]} {
    %c0 = arith.constant 0 : index
    %c0_0 = arith.constant 0 : index
    %c0_1 = arith.constant 0 : index
    %0 = vector.load %arg2[%c0, %c0_0, %c0_1] : memref<1x32x512xbf16, #tpu.memory_space<vmem>>, vector<1x32x512xbf16>
    %1 = vector.shape_cast %0 : vector<1x32x512xbf16> to vector<32x512xbf16>
    %c0_2 = arith.constant 0 : index
    %c0_3 = arith.constant 0 : index
    %c0_4 = arith.constant 0 : index
    %2 = vector.load %arg3[%c0_2, %c0_3, %c0_4] : memref<1x512x128xbf16, #tpu.memory_space<vmem>>, vector<1x512x128xbf16>
    %3 = vector.shape_cast %2 : vector<1x512x128xbf16> to vector<512x128xbf16>
    %cst = arith.constant dense<0.000000e+00> : vector<32x128xf32>
    %4 = tpu.matmul %1, %3, %cst {dimension_numbers = #tpu.dot_dimension_numbers<[1], [0], [0], [1], [0, 0, 1, 1], [], []>} : vector<32x512xbf16>, vector<512x128xbf16>, vector<32x128xf32> -> vector<32x128xf32>
    %c0_5 = arith.constant 0 : index
    %c0_6 = arith.constant 0 : index
    %5 = vector.load %arg4[%c0_5, %c0_6] : memref<1x128xf32, #tpu.memory_space<vmem>>, vector<1x128xf32>
    %6 = vector.broadcast %5 : vector<1x128xf32> to vector<32x128xf32>
    %7 = arith.addf %4, %6 : vector<32x128xf32>
    %cst_7 = arith.constant 0.000000e+00 : f32
    %8 = vector.broadcast %cst_7 : f32 to vector<32x128xf32>
    %9 = arith.maximumf %7, %8 : vector<32x128xf32>
    %10 = arith.truncf %9 : vector<32x128xf32> to vector<32x128xbf16>
    %c0_8 = arith.constant 0 : index
    %c0_9 = arith.constant 0 : index
    %c0_10 = arith.constant 0 : index
    %11 = vector.load %arg5[%c0_8, %c0_9, %c0_10] : memref<1x32x128xbf16, #tpu.memory_space<vmem>>, vector<1x32x128xbf16>
    %12 = vector.shape_cast %11 : vector<1x32x128xbf16> to vector<32x128xbf16>
    %13 = vector.shape_cast %10 : vector<32x128xbf16> to vector<1x32x128xbf16>
    tpu.vector_store %arg5[%c0_8, %c0_9, %c0_10], %13 {strides = array<i32>} : memref<1x32x128xbf16, #tpu.memory_space<vmem>>, vector<1x32x128xbf16>,
    return
  }
  func.func @transform_0(%arg0: i32, %arg1: i32) -> (i32, i32, i32) {
    %c0_i32 = arith.constant 0 : i32
    %c0_i32_0 = arith.constant 0 : i32
    return %arg0, %arg1, %c0_i32 : i32, i32, i32
  }
  func.func @transform_1(%arg0: i32, %arg1: i32) -> (i32, i32, i32) {
    %c0_i32 = arith.constant 0 : i32
    %c0_i32_0 = arith.constant 0 : i32
    %c0_i32_1 = arith.constant 0 : i32
    return %arg0, %c0_i32, %c0_i32_0 : i32, i32, i32
  }
  func.func @transform_2(%arg0: i32, %arg1: i32) -> (i32, i32) {
    %c0_i32 = arith.constant 0 : i32
    %c0_i32_0 = arith.constant 0 : i32
    %c0_i32_1 = arith.constant 0 : i32
    return %c0_i32, %c0_i32_0 : i32, i32
  }
  func.func @transform_3(%arg0: i32, %arg1: i32) -> (i32, i32, i32) {
    %c0_i32 = arith.constant 0 : i32
    %c0_i32_0 = arith.constant 0 : i32
    return %arg0, %arg1, %c0_i32 : i32, i32, i32
  }
}

module attributes {stable_mosaic.version = 11 : i64} {
  func.func @_matmul_bias_act_kernel(%arg0: i32, %arg1: i32, %arg2: memref<1x128x512xbf16, #tpu.memory_space<vmem>>, %arg3: memref<1x512x128xbf16, #tpu.memory_space<vmem>>, %arg4: memref<1x128xf32, #tpu.memory_space<vmem>>, %arg5: memref<1x128x128xbf16, #tpu.memory_space<vmem>>) attributes {dimension_semantics = [#tpu.dimension_semantics<parallel>, #tpu.dimension_semantics<parallel>], iteration_bounds = array<i64: 4, 1>, scalar_prefetch = 0 : i64, scratch_operands = 0 : i64, tpu.core_type = #tpu.core_type<tc>, window_params = [{transform_indices = @transform_0, window_bounds = array<i64: 1, 128, 512>}, {transform_indices = @transform_1, window_bounds = array<i64: 1, 512, 128>}, {pipeline_mode = #tpu.pipeline_mode<synchronous>, transform_indices = @transform_2, window_bounds = array<i64: 1, 128>}, {transform_indices = @transform_3, window_bounds = array<i64: 1, 128, 128>}]} {
    %c0 = arith.constant 0 : index
    %c0_0 = arith.constant 0 : index
    %c0_1 = arith.constant 0 : index
    %0 = vector.load %arg2[%c0, %c0_0, %c0_1] : memref<1x128x512xbf16, #tpu.memory_space<vmem>>, vector<1x128x512xbf16>
    %1 = vector.shape_cast %0 : vector<1x128x512xbf16> to vector<128x512xbf16>
    %c0_2 = arith.constant 0 : index
    %c0_3 = arith.constant 0 : index
    %c0_4 = arith.constant 0 : index
    %2 = vector.load %arg3[%c0_2, %c0_3, %c0_4] : memref<1x512x128xbf16, #tpu.memory_space<vmem>>, vector<1x512x128xbf16>
    %3 = vector.shape_cast %2 : vector<1x512x128xbf16> to vector<512x128xbf16>
    %cst = arith.constant dense<0.000000e+00> : vector<128x128xf32>
    %4 = tpu.matmul %1, %3, %cst {dimension_numbers = #tpu.dot_dimension_numbers<[1], [0], [0], [1], [0, 0, 1, 1], [], []>} : vector<128x512xbf16>, vector<512x128xbf16>, vector<128x128xf32> -> vector<128x128xf32>
    %c0_5 = arith.constant 0 : index
    %c0_6 = arith.constant 0 : index
    %5 = vector.load %arg4[%c0_5, %c0_6] : memref<1x128xf32, #tpu.memory_space<vmem>>, vector<1x128xf32>
    %6 = vector.broadcast %5 : vector<1x128xf32> to vector<128x128xf32>
    %7 = arith.addf %4, %6 : vector<128x128xf32>
    %8 = arith.negf %7 : vector<128x128xf32>
    %9 = math.exp %8 : vector<128x128xf32>
    %cst_7 = arith.constant 1.000000e+00 : f32
    %10 = vector.broadcast %cst_7 : f32 to vector<128x128xf32>
    %11 = arith.addf %10, %9 : vector<128x128xf32>
    %12 = arith.divf %10, %11 : vector<128x128xf32>
    %13 = arith.truncf %12 : vector<128x128xf32> to vector<128x128xbf16>
    %c0_8 = arith.constant 0 : index
    %c0_9 = arith.constant 0 : index
    %c0_10 = arith.constant 0 : index
    %14 = vector.load %arg5[%c0_8, %c0_9, %c0_10] : memref<1x128x128xbf16, #tpu.memory_space<vmem>>, vector<1x128x128xbf16>
    %15 = vector.shape_cast %14 : vector<1x128x128xbf16> to vector<128x128xbf16>
    %16 = vector.shape_cast %13 : vector<128x128xbf16> to vector<1x128x128xbf16>
    tpu.vector_store %arg5[%c0_8, %c0_9, %c0_10], %16 {strides = array<i32>} : memref<1x128x128xbf16, #tpu.memory_space<vmem>>, vector<1x128x128xbf16>,
    return
  }
  func.func @transform_0(%arg0: i32, %arg1: i32) -> (i32, i32, i32) {
    %c0_i32 = arith.constant 0 : i32
    %c0_i32_0 = arith.constant 0 : i32
    return %arg0, %arg1, %c0_i32 : i32, i32, i32
  }
  func.func @transform_1(%arg0: i32, %arg1: i32) -> (i32, i32, i32) {
    %c0_i32 = arith.constant 0 : i32
    %c0_i32_0 = arith.constant 0 : i32
    %c0_i32_1 = arith.constant 0 : i32
    return %arg0, %c0_i32, %c0_i32_0 : i32, i32, i32
  }
  func.func @transform_2(%arg0: i32, %arg1: i32) -> (i32, i32) {
    %c0_i32 = arith.constant 0 : i32
    %c0_i32_0 = arith.constant 0 : i32
    %c0_i32_1 = arith.constant 0 : i32
    return %c0_i32, %c0_i32_0 : i32, i32
  }
  func.func @transform_3(%arg0: i32, %arg1: i32) -> (i32, i32, i32) {
    %c0_i32 = arith.constant 0 : i32
    %c0_i32_0 = arith.constant 0 : i32
    return %arg0, %arg1, %c0_i32 : i32, i32, i32
  }
}

</mosaic_0001>

<bundles_post_ra>
// kernel: autoencoder_forward.8
= control target key start
LH: loop header
LB: loop body
LE: loop exit
PB: predicated region body
PF: predicated region fallthrough
CT: control target
= control target key end

     0   :  { %8 = vsyncpa [#allocation3], 0  ;;  %s699_s0 = inlined_call_operand.vmem [shape: bf16[1,128,128], index: 0, kind: input, shape index: {}]   ;;  %s700_s1 = inlined_call_operand.hbm [shape: bf16[1,128,128], index: 1, kind: input, shape index: {}]   ;;  %s701_s2 = inlined_call_operand.hbm [shape: f32[1,128], index: 2, kind: input, shape index: {}]   ;;  %s702_s3 = inlined_call_operand.vmem [shape: bf16[1,128,128], index: 3, kind: output, shape index: {}]  }
   0x1   :  { %9 = vsyncpa [#allocation5], 0  ;;  %s603_s12 = smov [#allocation2]   ;;  %s555_s16 = scalar_lea.hbm %s700_s1, 1024 }
   0x2   :  { %s17_s13 = sshll.u32 %s603_s12, 4  ;;  %p556_p0 = scmp.ne.s32.totalorder %s700_s1, %s555_s16  ;;  %s18_s13 = int_to_ptr.vmem [resolvable:$true] %s17_s13 }
   0x3   :  { %p559_p1 = scmp.lt.u32.totalorder %s555_s16, %s700_s1 }
   0x5   :  { %p561_p2 = pnand %p559_p1, %p556_p0 }
   0x7   :  { %564 = shalt.err (!%p561_p2)
}
   0x8   :  { %s565_s21 = scalar_lea.vmem %s18_s13, 1024  ;;  %p570_p4 = scmp.lt.s32.totalorder %s18_s13, %s18_s13 }
   0x9   :  { %p566_p3 = scmp.ne.s32.totalorder %s18_s13, %s565_s21  ;;  %p571_p5 = scmp.lt.s32.totalorder %s565_s21, %s565_s21 }
   0xb   :  { %p572_p6 = por %p571_p5, %p570_p4 }
   0xd   :  { %p573_p7 = pnand %p572_p6, %p566_p3 }
   0xf   :  { %576 = shalt.err (!%p573_p7)
}
  0x10   :  { %s604_s22 = smov 64   ;;  %s605_s23 = smov 4  }
  0x11   :  { %23 = dma.hbm_to_vmem [thread:$0]  %s700_s1, 1024, %s18_s13, [#allocation3], %s604_s22, %s604_s22, %s605_s23  }
  0x12   :  { %s606_s26 = smov [#allocation4]   ;;  %s577_s30 = scalar_lea.hbm %s701_s2, 16 }
  0x13   :  { %s30_s27 = sshll.u32 %s606_s26, 4  ;;  %p578_p8 = scmp.ne.s32.totalorder %s701_s2, %s577_s30  ;;  %s31_s27 = int_to_ptr.vmem [resolvable:$true] %s30_s27 }
  0x14   :  { %p581_p9 = scmp.lt.u32.totalorder %s577_s30, %s701_s2 }
  0x16   :  { %p583_p10 = pnand %p581_p9, %p578_p8 }
  0x18   :  { %586 = shalt.err (!%p583_p10)
}
  0x19   :  { %s587_s8 = scalar_lea.vmem %s31_s27, 16  ;;  %s591_s1 = scalar_lea.vmem %s31_s27, 32 }
  0x1a   :  { %p588_p11 = scmp.ne.s32.totalorder %s31_s27, %s587_s8  ;;  %p592_p12 = scmp.lt.s32.totalorder %s31_s27, %s31_s27 }
  0x1b   :  { %p593_p13 = scmp.lt.s32.totalorder %s591_s1, %s587_s8 }
  0x1d   :  { %p594_p0 = por %p593_p13, %p592_p12 }
  0x1f   :  { %p595_p1 = pnand %p594_p0, %p588_p11 }
  0x21   :  { %598 = shalt.err (!%p595_p1)
}
  0x22   :  { %33 = dma.hbm_to_vmem [thread:$0]  %s701_s2, 16, %s31_s27, [#allocation5]  }
  0x23   :  { %599 = dma.done.wait [#allocation3], 1024  }
  0x24   :  { %600 = vsyncadd [#allocation3], 4294966272 }
  0x25   :  { %601 = dma.done.wait [#allocation5], 16  }
  0x26   :  { %602 = vsyncadd [#allocation5], 4294967280  ;;  %v539_v0 = vld [vmem:[#allocation2] sm:$0xff]   ;;  %v540_v1 = vld [vmem:[#allocation2 + $0x8] sm:$0xff]  }
  0x27   :  { %487 = vmatprep.subr.bf16.mxu0 %v539_v0  ;;  %519 = vmatprep.subr.bf16.mxu1 %v539_v0  ;;  %v541_v2 = vld [vmem:[#allocation2 + $0x10] sm:$0xff]   ;;  %v542_v3 = vld [vmem:[#allocation2 + $0x18] sm:$0xff]   ;;  %v547_v4 = vld [vmem:[%s699_s0] sm:$0xff]  }
  0x28   :  { %488 = vmatpush3.bf16.msra.mxu0 %v539_v0  ;;  %527 = vmatpush3.bf16.msra.mxu1 %v539_v0  ;;  %v548_v5 = vld [vmem:[%s699_s0 + $0x20] sm:$0xff]   ;;  %v544_v7 = vld [vmem:[#allocation2 + $0x28] sm:$0xff]   ;;  %v545_v8 = vld [vmem:[#allocation2 + $0x30] sm:$0xff]  }
  0x29   :  { %489 = vmatprep.subr.bf16.mxu0 %v540_v1  ;;  %520 = vmatprep.subr.bf16.mxu1 %v540_v1  ;;  %v543_v6 = vld [vmem:[#allocation2 + $0x20] sm:$0xff]   ;;  %v546_v9 = vld [vmem:[#allocation2 + $0x38] sm:$0xff]   ;;  %v549_v10 = vld [vmem:[%s699_s0 + $0x8] sm:$0xff]  }
  0x2a   :  { %503 = vmatprep.mubr.bf16.mxu0 %v547_v4  ;;  %511 = vmatprep.mubr.bf16.mxu1 %v548_v5  ;;  %v550_v11 = vld [vmem:[%s699_s0 + $0x28] sm:$0xff]   ;;  %v551_v12 = vld [vmem:[%s699_s0 + $0x10] sm:$0xff]   ;;  %v553_v14 = vld [vmem:[%s699_s0 + $0x18] sm:$0xff]  }
  0x2b   :  { %v552_v13 = vld [vmem:[%s699_s0 + $0x30] sm:$0xff]   ;;  %v554_v15 = vld [vmem:[%s699_s0 + $0x38] sm:$0xff]   ;;  %v375_v16 = vld [vmem:[#allocation4] ss:$0 sm:$0xff] }
  0x2c   :  { %490 = vmatpush3.bf16.msra.mxu0 %v540_v1  ;;  %528 = vmatpush3.bf16.msra.mxu1 %v540_v1 }
  0x2d   :  { %491 = vmatprep.subr.bf16.mxu0 %v541_v2  ;;  %521 = vmatprep.subr.bf16.mxu1 %v541_v2 }
  0x30   :  { %492 = vmatpush3.bf16.msra.mxu0 %v541_v2  ;;  %529 = vmatpush3.bf16.msra.mxu1 %v541_v2 }
  0x31   :  { %493 = vmatprep.subr.bf16.mxu0 %v542_v3  ;;  %522 = vmatprep.subr.bf16.mxu1 %v542_v3 }
  0x34   :  { %494 = vmatpush3.bf16.msra.mxu0 %v542_v3  ;;  %530 = vmatpush3.bf16.msra.mxu1 %v542_v3 }
  0x35   :  { %495 = vmatprep.subr.bf16.mxu0 %v543_v6  ;;  %523 = vmatprep.subr.bf16.mxu1 %v543_v6 }
  0x38   :  { %496 = vmatpush3.bf16.msra.mxu0 %v543_v6  ;;  %531 = vmatpush3.bf16.msra.mxu1 %v543_v6 }
  0x39   :  { %497 = vmatprep.subr.bf16.mxu0 %v544_v7  ;;  %524 = vmatprep.subr.bf16.mxu1 %v544_v7 }
  0x3c   :  { %498 = vmatpush3.bf16.msra.mxu0 %v544_v7  ;;  %532 = vmatpush3.bf16.msra.mxu1 %v544_v7 }
  0x3d   :  { %499 = vmatprep.subr.bf16.mxu0 %v545_v8  ;;  %525 = vmatprep.subr.bf16.mxu1 %v545_v8 }
  0x40   :  { %500 = vmatpush3.bf16.msra.mxu0 %v545_v8  ;;  %533 = vmatpush3.bf16.msra.mxu1 %v545_v8 }
  0x41   :  { %501 = vmatprep.subr.bf16.mxu0 %v546_v9  ;;  %526 = vmatprep.subr.bf16.mxu1 %v546_v9 }
  0x44   :  { %502 = vmatpush3.bf16.msra.mxu0 %v546_v9  ;;  %534 = vmatpush3.bf16.msra.mxu1 %v546_v9 }
  0x47   :  { %504 = vmatmul.mubr.bf16.vlgmr.msra.gmra.mrb[0].mxu0 %v549_v10  ;;  %512 = vmatmul.mubr.bf16.vlgmr.msra.gmra.mrb[0].mxu1 %v550_v11 }
  0x48   :  { %507 = vmatprep.mubr.bf16.mxu0 %v551_v12  ;;  %515 = vmatprep.mubr.bf16.mxu1 %v552_v13 }
  0x4f   :  { %508 = vmatmul.mubr.bf16.gmra.mrb[4].mxu0 %v553_v14  ;;  %516 = vmatmul.mubr.bf16.gmra.mrb[4].mxu1 %v554_v15 }
 0x11a   :  { %v505_v17 = vpop.f32.mrb[0].mxu0  ;;  %v513_v18 = vpop.f32.mrb[0].mxu1 }
 0x11b   :  { %v219_v19 = vadd.f32 %v505_v17, %v375_v16  ;;  %v251_v20 = vadd.f32 %v513_v18, %v375_v16  ;;  %v210_v21 = vpop.f32.mrb[1].mxu0  ;;  %v242_v22 = vpop.f32.mrb[1].mxu1 }
 0x11c   :  { %v211_v23 = vadd.f32 %v375_v16, %v210_v21  ;;  %v243_v24 = vadd.f32 %v375_v16, %v242_v22  ;;  %v506_v25 = vpop.f32.mrb[2].mxu0  ;;  %v514_v26 = vpop.f32.mrb[2].mxu1 }
 0x11d   :  { %v222_v27 = vadd.f32 %v506_v25, %v375_v16  ;;  %v254_v28 = vadd.f32 %v514_v26, %v375_v16  ;;  %v213_v29 = vpop.f32.mrb[3].mxu0  ;;  %v245_v30 = vpop.f32.mrb[3].mxu1  ;;  %v275_v33 = vmax.f32 %v219_v19, 0.0  ;;  %v283_v34 = vmax.f32 %v251_v20, 0.0 }
 0x11e   :  { %v214_v31 = vadd.f32 %v375_v16, %v213_v29  ;;  %v246_v32 = vadd.f32 %v375_v16, %v245_v30  ;;  %v273_v37 = vmax.f32 %v211_v23, 0.0  ;;  %v281_v38 = vmax.f32 %v243_v24, 0.0 }
 0x11f   :  { %v276_v35 = vmax.f32 %v222_v27, 0.0  ;;  %v284_v36 = vmax.f32 %v254_v28, 0.0 }
 0x120   :  { %v274_v39 = vmax.f32 %v214_v31, 0.0  ;;  %v282_v40 = vmax.f32 %v246_v32, 0.0 }
 0x121   :  { %v432_v41 = vpack.c.bf16 %v276_v35, %v275_v33  ;;  %v452_v42 = vpack.c.bf16 %v284_v36, %v283_v34 }
 0x122   :  { %v427_v43 = vpack.c.bf16 %v274_v39, %v273_v37  ;;  %v447_v44 = vpack.c.bf16 %v282_v40, %v281_v38  ;;  %v509_v45 = vpop.f32.mrb[4].mxu0  ;;  %v517_v46 = vpop.f32.mrb[4].mxu1 }
 0x123   :  { %464 = vst [vmem:[%s702_s3 + $0x8] sm:$0xff] %v432_v41   ;;  %468 = vst [vmem:[%s702_s3 + $0x28] sm:$0xff] %v452_v42   ;;  %v235_v47 = vadd.f32 %v509_v45, %v375_v16  ;;  %v267_v48 = vadd.f32 %v517_v46, %v375_v16  ;;  %v226_v49 = vpop.f32.mrb[5].mxu0  ;;  %v258_v50 = vpop.f32.mrb[5].mxu1 }
 0x124   :  { %428 = vst [vmem:[%s702_s3] sm:$0xff] %v427_v43   ;;  %467 = vst [vmem:[%s702_s3 + $0x20] sm:$0xff] %v447_v44   ;;  %v227_v51 = vadd.f32 %v375_v16, %v226_v49  ;;  %v259_v52 = vadd.f32 %v375_v16, %v258_v50  ;;  %v510_v53 = vpop.f32.mrb[6].mxu0  ;;  %v518_v54 = vpop.f32.mrb[6].mxu1 }
 0x125   :  { %v238_v55 = vadd.f32 %v510_v53, %v375_v16  ;;  %v270_v56 = vadd.f32 %v518_v54, %v375_v16  ;;  %v229_v57 = vpop.f32.mrb[7].mxu0  ;;  %v261_v58 = vpop.f32.mrb[7].mxu1  ;;  %v279_v61 = vmax.f32 %v235_v47, 0.0  ;;  %v287_v62 = vmax.f32 %v267_v48, 0.0 }
 0x126   :  { %v230_v59 = vadd.f32 %v375_v16, %v229_v57  ;;  %v262_v60 = vadd.f32 %v375_v16, %v261_v58  ;;  %v277_v1 = vmax.f32 %v227_v51, 0.0  ;;  %v285_v2 = vmax.f32 %v259_v52, 0.0 }
 0x127   :  { %v280_v63 = vmax.f32 %v238_v55, 0.0  ;;  %v288_v0 = vmax.f32 %v270_v56, 0.0 }
 0x128   :  { %v278_v3 = vmax.f32 %v230_v59, 0.0  ;;  %v286_v4 = vmax.f32 %v262_v60, 0.0 }
 0x129   :  { %v442_v5 = vpack.c.bf16 %v280_v63, %v279_v61  ;;  %v462_v6 = vpack.c.bf16 %v288_v0, %v287_v62 }
 0x12a   :  { %v437_v7 = vpack.c.bf16 %v278_v3, %v277_v1  ;;  %v457_v8 = vpack.c.bf16 %v286_v4, %v285_v2 }
 0x12b   :  { %466 = vst [vmem:[%s702_s3 + $0x18] sm:$0xff] %v442_v5   ;;  %470 = vst [vmem:[%s702_s3 + $0x38] sm:$0xff] %v462_v6  }
 0x12c   :  { %465 = vst [vmem:[%s702_s3 + $0x10] sm:$0xff] %v437_v7   ;;  %469 = vst [vmem:[%s702_s3 + $0x30] sm:$0xff] %v457_v8  }
 0x12d   :  { %373 = vsyncpa [#allocation3], 1 }
 0x12e   :  { %374 = vsyncpa [#allocation5], 1 }

// kernel: autoencoder_forward.9
= control target key start
LH: loop header
LB: loop body
LE: loop exit
PB: predicated region body
PF: predicated region fallthrough
CT: control target
= control target key end

     0   :  { %s2699_s1 = inlined_call_operand.vmem [shape: bf16[1,2048,128], index: 1, kind: input, shape index: {}]   ;;  %s2700_s0 = inlined_call_operand.vmem [shape: bf16[1,32,2048], index: 0, kind: input, shape index: {}]   ;;  %s2701_s2 = inlined_call_operand.vmem [shape: f32[1,128], index: 2, kind: input, shape index: {}]   ;;  %s2702_s3 = inlined_call_operand.vmem [shape: bf16[1,32,128], index: 3, kind: output, shape index: {}]  }
   0x1   :  { %v2062_v0 = vld [vmem:[%s2699_s1 + $0x40] sm:$0xff]   ;;  %v2066_v4 = vld [vmem:[%s2699_s1 + $0x48] sm:$0xff]   ;;  %v2070_v8 = vld [vmem:[%s2699_s1 + $0x50] sm:$0xff]  }
   0x2   :  { %v2063_v1 = vld [vmem:[%s2699_s1 + $0xc0] sm:$0xff]   ;;  %1838 = vmatprep.subr.bf16.mxu0 %v2062_v0  ;;  %v2067_v5 = vld [vmem:[%s2699_s1 + $0xc8] sm:$0xff]   ;;  %v2071_v9 = vld [vmem:[%s2699_s1 + $0xd0] sm:$0xff]  }
   0x3   :  { %v2064_v2 = vld [vmem:[%s2699_s1] sm:$0xff]   ;;  %1866 = vmatprep.subr.bf16.mxu1 %v2063_v1  ;;  %v2068_v6 = vld [vmem:[%s2699_s1 + $0x8] sm:$0xff]   ;;  %v2072_v10 = vld [vmem:[%s2699_s1 + $0x10] sm:$0xff]  }
   0x4   :  { %v2065_v3 = vld [vmem:[%s2699_s1 + $0x80] sm:$0xff]   ;;  %1839 = vmatpush3.bf16.msra.mxu0 %v2064_v2  ;;  %v2069_v7 = vld [vmem:[%s2699_s1 + $0x88] sm:$0xff]   ;;  %v2073_v11 = vld [vmem:[%s2699_s1 + $0x90] sm:$0xff]  }
   0x5   :  { %1867 = vmatpush3.bf16.msra.mxu1 %v2065_v3  ;;  %1840 = vmatprep.subr.bf16.mxu0 %v2066_v4  ;;  %v2074_v12 = vld [vmem:[%s2699_s1 + $0x58] sm:$0xff]   ;;  %v2078_v16 = vld [vmem:[%s2699_s1 + $0x60] sm:$0xff]   ;;  %v2082_v20 = vld [vmem:[%s2699_s1 + $0x68] sm:$0xff]  }
   0x6   :  { %1868 = vmatprep.subr.bf16.mxu1 %v2067_v5  ;;  %v2075_v13 = vld [vmem:[%s2699_s1 + $0xd8] sm:$0xff]   ;;  %v2079_v17 = vld [vmem:[%s2699_s1 + $0xe0] sm:$0xff]   ;;  %v2083_v21 = vld [vmem:[%s2699_s1 + $0xe8] sm:$0xff]  }
   0x7   :  { %v2076_v14 = vld [vmem:[%s2699_s1 + $0x18] sm:$0xff]   ;;  %v2080_v18 = vld [vmem:[%s2699_s1 + $0x20] sm:$0xff]   ;;  %v2084_v22 = vld [vmem:[%s2699_s1 + $0x28] sm:$0xff]  }
   0x8   :  { %1841 = vmatpush3.bf16.msra.mxu0 %v2068_v6  ;;  %v2077_v15 = vld [vmem:[%s2699_s1 + $0x98] sm:$0xff]   ;;  %v2081_v19 = vld [vmem:[%s2699_s1 + $0xa0] sm:$0xff]   ;;  %v2085_v23 = vld [vmem:[%s2699_s1 + $0xa8] sm:$0xff]  }
   0x9   :  { %1869 = vmatpush3.bf16.msra.mxu1 %v2069_v7  ;;  %1842 = vmatprep.subr.bf16.mxu0 %v2070_v8  ;;  %v2086_v24 = vld [vmem:[%s2699_s1 + $0x70] sm:$0xff]   ;;  %v2090_v28 = vld [vmem:[%s2699_s1 + $0x78] sm:$0xff]   ;;  %v15_v32 = vld [vmem:[%s2700_s0] sm:$0xff] }
   0xa   :  { %1870 = vmatprep.subr.bf16.mxu1 %v2071_v9  ;;  %v2087_v25 = vld [vmem:[%s2699_s1 + $0xf0] sm:$0xff]   ;;  %v2091_v29 = vld [vmem:[%s2699_s1 + $0xf8] sm:$0xff]   ;;  %v23_v33 = vld [vmem:[%s2700_s0 + $0x40] sm:$0xff] }
   0xb   :  { %v2088_v26 = vld [vmem:[%s2699_s1 + $0x30] sm:$0xff]   ;;  %v2092_v30 = vld [vmem:[%s2699_s1 + $0x38] sm:$0xff]   ;;  %v16_v34 = vld [vmem:[%s2700_s0 + $0x8] sm:$0xff]  ;;  %v1659_v35 = vcombine.low %v15_v32, %v23_v33  ;;  %v1660_v36 = vcombine.high %v15_v32, %v23_v33 }
   0xc   :  { %1843 = vmatpush3.bf16.msra.mxu0 %v2072_v10  ;;  %v2089_v27 = vld [vmem:[%s2699_s1 + $0xb0] sm:$0xff]   ;;  %v2093_v31 = vld [vmem:[%s2699_s1 + $0xb8] sm:$0xff]   ;;  %v24_v37 = vld [vmem:[%s2700_s0 + $0x48] sm:$0xff] }
   0xd   :  { %1871 = vmatpush3.bf16.msra.mxu1 %v2073_v11  ;;  %1844 = vmatprep.subr.bf16.mxu0 %v2074_v12  ;;  %v1661_v38 = vcombine.low %v16_v34, %v24_v37  ;;  %v1662_v39 = vcombine.high %v16_v34, %v24_v37  ;;  %v2094_v40 = vld [vmem:[%s2699_s1 + $0x140] sm:$0xff]   ;;  %v2098_v44 = vld [vmem:[%s2699_s1 + $0x148] sm:$0xff]   ;;  %v2102_v48 = vld [vmem:[%s2699_s1 + $0x150] sm:$0xff]  }
   0xe   :  { %1872 = vmatprep.subr.bf16.mxu1 %v2075_v13  ;;  %1270 = vmatprep.mubr.bf16.mxu0 %v1660_v36  ;;  %v2095_v41 = vld [vmem:[%s2699_s1 + $0x1c0] sm:$0xff]   ;;  %v2099_v45 = vld [vmem:[%s2699_s1 + $0x1c8] sm:$0xff]   ;;  %v2103_v49 = vld [vmem:[%s2699_s1 + $0x1d0] sm:$0xff]  }
   0xf   :  { %1319 = vmatprep.mubr.bf16.mxu1 %v1662_v39  ;;  %v2096_v42 = vld [vmem:[%s2699_s1 + $0x100] sm:$0xff]   ;;  %v2100_v46 = vld [vmem:[%s2699_s1 + $0x108] sm:$0xff]   ;;  %v2104_v50 = vld [vmem:[%s2699_s1 + $0x110] sm:$0xff]  }
  0x10   :  { %1845 = vmatpush3.bf16.msra.mxu0 %v2076_v14  ;;  %v2097_v43 = vld [vmem:[%s2699_s1 + $0x180] sm:$0xff]   ;;  %v2101_v47 = vld [vmem:[%s2699_s1 + $0x188] sm:$0xff]   ;;  %v2105_v51 = vld [vmem:[%s2699_s1 + $0x190] sm:$0xff]  }
  0x11   :  { %1873 = vmatpush3.bf16.msra.mxu1 %v2077_v15  ;;  %1846 = vmatprep.subr.bf16.mxu0 %v2078_v16  ;;  %v2106_v52 = vld [vmem:[%s2699_s1 + $0x158] sm:$0xff]   ;;  %v2110_v56 = vld [vmem:[%s2699_s1 + $0x160] sm:$0xff]   ;;  %v2114_v60 = vld [vmem:[%s2699_s1 + $0x168] sm:$0xff]  }
  0x12   :  { %1874 = vmatprep.subr.bf16.mxu1 %v2079_v17  ;;  %v2107_v53 = vld [vmem:[%s2699_s1 + $0x1d8] sm:$0xff]   ;;  %v2111_v57 = vld [vmem:[%s2699_s1 + $0x1e0] sm:$0xff]   ;;  %v2115_v61 = vld [vmem:[%s2699_s1 + $0x1e8] sm:$0xff]  }
  0x13   :  { %v2108_v54 = vld [vmem:[%s2699_s1 + $0x118] sm:$0xff]   ;;  %v2112_v58 = vld [vmem:[%s2699_s1 + $0x120] sm:$0xff]   ;;  %v2116_v1 = vld [vmem:[%s2699_s1 + $0x128] sm:$0xff]  }
  0x14   :  { %1847 = vmatpush3.bf16.msra.mxu0 %v2080_v18  ;;  %v2109_v55 = vld [vmem:[%s2699_s1 + $0x198] sm:$0xff]   ;;  %v2113_v59 = vld [vmem:[%s2699_s1 + $0x1a0] sm:$0xff]   ;;  %v2117_v3 = vld [vmem:[%s2699_s1 + $0x1a8] sm:$0xff]  }
  0x15   :  { %1875 = vmatpush3.bf16.msra.mxu1 %v2081_v19  ;;  %1848 = vmatprep.subr.bf16.mxu0 %v2082_v20  ;;  %v31_v62 = vld [vmem:[%s2700_s0 + $0x80] sm:$0xff]  ;;  %v32_v4 = vld [vmem:[%s2700_s0 + $0x88] sm:$0xff]  ;;  %v2118_v8 = vld [vmem:[%s2699_s1 + $0x170] sm:$0xff]  }
  0x16   :  { %1876 = vmatprep.subr.bf16.mxu1 %v2083_v21  ;;  %v39_v63 = vld [vmem:[%s2700_s0 + $0xc0] sm:$0xff]  ;;  %v40_v5 = vld [vmem:[%s2700_s0 + $0xc8] sm:$0xff]  ;;  %v2119_v9 = vld [vmem:[%s2699_s1 + $0x1f0] sm:$0xff]  }
  0x17   :  { %v1676_v0 = vcombine.high %v31_v62, %v39_v63  ;;  %v1675_v2 = vcombine.low %v31_v62, %v39_v63  ;;  %v1678_v6 = vcombine.high %v32_v4, %v40_v5  ;;  %v1677_v7 = vcombine.low %v32_v4, %v40_v5  ;;  %v2120_v10 = vld [vmem:[%s2699_s1 + $0x130] sm:$0xff]   ;;  %v2122_v12 = vld [vmem:[%s2699_s1 + $0x178] sm:$0xff]   ;;  %v20_v4 = vld [vmem:[%s2700_s0 + $0x28] sm:$0xff] }
  0x18   :  { %1849 = vmatpush3.bf16.msra.mxu0 %v2084_v22  ;;  %v2121_v11 = vld [vmem:[%s2699_s1 + $0x1b0] sm:$0xff]   ;;  %v2123_v13 = vld [vmem:[%s2699_s1 + $0x1f8] sm:$0xff]   ;;  %v28_v5 = vld [vmem:[%s2700_s0 + $0x68] sm:$0xff] }
  0x19   :  { %1877 = vmatpush3.bf16.msra.mxu1 %v2085_v23  ;;  %1850 = vmatprep.subr.bf16.mxu0 %v2086_v24  ;;  %v2124_v14 = vld [vmem:[%s2699_s1 + $0x138] sm:$0xff]   ;;  %v17_v16 = vld [vmem:[%s2700_s0 + $0x10] sm:$0xff]  ;;  %v2126_v24 = vld [vmem:[%s2699_s1 + $0x240] sm:$0xff]  }
  0x1a   :  { %1878 = vmatprep.subr.bf16.mxu1 %v2087_v25  ;;  %v2125_v15 = vld [vmem:[%s2699_s1 + $0x1b8] sm:$0xff]   ;;  %v25_v17 = vld [vmem:[%s2700_s0 + $0x50] sm:$0xff]  ;;  %v2127_v25 = vld [vmem:[%s2699_s1 + $0x2c0] sm:$0xff]  }
  0x1b   :  { %v18_v18 = vld [vmem:[%s2700_s0 + $0x18] sm:$0xff]  ;;  %v1663_v20 = vcombine.low %v17_v16, %v25_v17  ;;  %v1664_v21 = vcombine.high %v17_v16, %v25_v17  ;;  %v33_v32 = vld [vmem:[%s2700_s0 + $0x90] sm:$0xff]  ;;  %v35_v16 = vld [vmem:[%s2700_s0 + $0xa0] sm:$0xff] }
  0x1c   :  { %1851 = vmatpush3.bf16.msra.mxu0 %v2088_v26  ;;  %v26_v19 = vld [vmem:[%s2700_s0 + $0x58] sm:$0xff]  ;;  %v2128_v26 = vld [vmem:[%s2699_s1 + $0x200] sm:$0xff]   ;;  %v41_v33 = vld [vmem:[%s2700_s0 + $0xd0] sm:$0xff] }
  0x1d   :  { %1879 = vmatpush3.bf16.msra.mxu1 %v2089_v27  ;;  %1852 = vmatprep.subr.bf16.mxu0 %v2090_v28  ;;  %v1665_v22 = vcombine.low %v18_v18, %v26_v19  ;;  %v1666_v23 = vcombine.high %v18_v18, %v26_v19  ;;  %v2129_v27 = vld [vmem:[%s2699_s1 + $0x280] sm:$0xff]   ;;  %v2130_v28 = vld [vmem:[%s2699_s1 + $0x248] sm:$0xff]   ;;  %v1680_v34 = vcombine.high %v33_v32, %v41_v33  ;;  %v2134_v36 = vld [vmem:[%s2699_s1 + $0x250] sm:$0xff]  }
  0x1e   :  { %1880 = vmatprep.subr.bf16.mxu1 %v2091_v29  ;;  %v2131_v29 = vld [vmem:[%s2699_s1 + $0x2c8] sm:$0xff]   ;;  %v2135_v37 = vld [vmem:[%s2699_s1 + $0x2d0] sm:$0xff]   ;;  %v42_v39 = vld [vmem:[%s2700_s0 + $0xd8] sm:$0xff] }
  0x1f   :  { %v2156_v62 = vld [vmem:[%s2699_s1 + $0x238] sm:$0xff]   ;;  %v43_v17 = vld [vmem:[%s2700_s0 + $0xe0] sm:$0xff] }
  0x20   :  { %1853 = vmatpush3.bf16.msra.mxu0 %v2092_v30  ;;  %v2132_v30 = vld [vmem:[%s2699_s1 + $0x208] sm:$0xff]   ;;  %v2157_v63 = vld [vmem:[%s2699_s1 + $0x2b8] sm:$0xff]   ;;  %v1684_v18 = vcombine.high %v35_v16, %v43_v17  ;;  %v1683_v19 = vcombine.low %v35_v16, %v43_v17 }
  0x21   :  { %1881 = vmatpush3.bf16.msra.mxu1 %v2093_v31  ;;  %1894 = vmatprep.subr.bf16.mxu0 %v2094_v40  ;;  %v2133_v31 = vld [vmem:[%s2699_s1 + $0x288] sm:$0xff]  }
  0x22   :  { %1922 = vmatprep.subr.bf16.mxu1 %v2095_v41  ;;  %v2136_v41 = vld [vmem:[%s2699_s1 + $0x210] sm:$0xff]  }
  0x23   :  { %1271 = vmatmul.mubr.bf16.vlgmr.msra.gmra.mrb[0].mxu0 %v1659_v35  ;;  %v1679_v35 = vcombine.low %v33_v32, %v41_v33  ;;  %v2174_v32 = vld [vmem:[%s2699_s1 + $0x360] sm:$0xff]  }
  0x24   :  { %1320 = vmatmul.mubr.bf16.vlgmr.msra.gmra.mrb[0].mxu1 %v1661_v38  ;;  %1895 = vmatpush3.bf16.msra.mxu0 %v2096_v42  ;;  %v34_v38 = vld [vmem:[%s2700_s0 + $0x98] sm:$0xff]  ;;  %v2175_v33 = vld [vmem:[%s2699_s1 + $0x3e0] sm:$0xff]  }
  0x25   :  { %1923 = vmatpush3.bf16.msra.mxu1 %v2097_v43  ;;  %1896 = vmatprep.subr.bf16.mxu0 %v2098_v44  ;;  %v1682_v40 = vcombine.high %v34_v38, %v42_v39  ;;  %v1681_v42 = vcombine.low %v34_v38, %v42_v39  ;;  %v2137_v43 = vld [vmem:[%s2699_s1 + $0x290] sm:$0xff]   ;;  %v2138_v44 = vld [vmem:[%s2699_s1 + $0x258] sm:$0xff]   ;;  %v2180_v38 = vld [vmem:[%s2699_s1 + $0x328] sm:$0xff]  }
  0x26   :  { %1924 = vmatprep.subr.bf16.mxu1 %v2099_v45  ;;  %1278 = vmatprep.mubr.bf16.mxu0 %v1676_v0  ;;  %v2139_v45 = vld [vmem:[%s2699_s1 + $0x2d8] sm:$0xff]   ;;  %v19_v0 = vld [vmem:[%s2700_s0 + $0x20] sm:$0xff]  ;;  %v2181_v39 = vld [vmem:[%s2699_s1 + $0x3a8] sm:$0xff]  }
  0x27   :  { %1327 = vmatprep.mubr.bf16.mxu1 %v1678_v6  ;;  %v1669_v6 = vcombine.low %v20_v4, %v28_v5 }
  0x28   :  { %1897 = vmatpush3.bf16.msra.mxu0 %v2100_v46  ;;  %v2140_v46 = vld [vmem:[%s2699_s1 + $0x218] sm:$0xff]  }
  0x29   :  { %1925 = vmatpush3.bf16.msra.mxu1 %v2101_v47  ;;  %1898 = vmatprep.subr.bf16.mxu0 %v2102_v48  ;;  %v2141_v47 = vld [vmem:[%s2699_s1 + $0x298] sm:$0xff]   ;;  %v2142_v48 = vld [vmem:[%s2699_s1 + $0x260] sm:$0xff]  }
  0x2a   :  { %1926 = vmatprep.subr.bf16.mxu1 %v2103_v49  ;;  %v2143_v49 = vld [vmem:[%s2699_s1 + $0x2e0] sm:$0xff]  }
  0x2b   :  { %1279 = vmatmul.mubr.bf16.gmra.mrb[4].mxu0 %v1675_v2 }
  0x2c   :  { %1899 = vmatpush3.bf16.msra.mxu0 %v2104_v50  ;;  %1328 = vmatmul.mubr.bf16.gmra.mrb[4].mxu1 %v1677_v7  ;;  %v2144_v50 = vld [vmem:[%s2699_s1 + $0x220] sm:$0xff]   ;;  %v1670_v7 = vcombine.high %v20_v4, %v28_v5 }
  0x2d   :  { %1927 = vmatpush3.bf16.msra.mxu1 %v2105_v51  ;;  %1900 = vmatprep.subr.bf16.mxu0 %v2106_v52  ;;  %v2145_v51 = vld [vmem:[%s2699_s1 + $0x2a0] sm:$0xff]   ;;  %v2146_v52 = vld [vmem:[%s2699_s1 + $0x268] sm:$0xff]  }
  0x2e   :  { %1928 = vmatprep.subr.bf16.mxu1 %v2107_v53  ;;  %1368 = vmatprep.mubr.bf16.mxu0 %v1664_v21  ;;  %v2147_v53 = vld [vmem:[%s2699_s1 + $0x2e8] sm:$0xff]   ;;  %v2167_v21 = vld [vmem:[%s2699_s1 + $0x3d0] sm:$0xff]  }
  0x2f   :  { %1417 = vmatprep.mubr.bf16.mxu1 %v1666_v23  ;;  %v44_v23 = vld [vmem:[%s2700_s0 + $0xe8] sm:$0xff] }
  0x30   :  { %1901 = vmatpush3.bf16.msra.mxu0 %v2108_v54  ;;  %v2148_v54 = vld [vmem:[%s2699_s1 + $0x228] sm:$0xff]  }
  0x31   :  { %1929 = vmatpush3.bf16.msra.mxu1 %v2109_v55  ;;  %1902 = vmatprep.subr.bf16.mxu0 %v2110_v56  ;;  %v2149_v55 = vld [vmem:[%s2699_s1 + $0x2a8] sm:$0xff]   ;;  %v2150_v56 = vld [vmem:[%s2699_s1 + $0x270] sm:$0xff]  }
  0x32   :  { %1930 = vmatprep.subr.bf16.mxu1 %v2111_v57  ;;  %v2151_v57 = vld [vmem:[%s2699_s1 + $0x2f0] sm:$0xff]  }
  0x34   :  { %1903 = vmatpush3.bf16.msra.mxu0 %v2112_v58  ;;  %v2152_v58 = vld [vmem:[%s2699_s1 + $0x230] sm:$0xff]  }
  0x35   :  { %1931 = vmatpush3.bf16.msra.mxu1 %v2113_v59  ;;  %1904 = vmatprep.subr.bf16.mxu0 %v2114_v60  ;;  %v2153_v59 = vld [vmem:[%s2699_s1 + $0x2b0] sm:$0xff]   ;;  %v2154_v60 = vld [vmem:[%s2699_s1 + $0x278] sm:$0xff]  }
  0x36   :  { %1932 = vmatprep.subr.bf16.mxu1 %v2115_v61  ;;  %v2155_v61 = vld [vmem:[%s2699_s1 + $0x2f8] sm:$0xff]  }
  0x38   :  { %1905 = vmatpush3.bf16.msra.mxu0 %v2116_v1  ;;  %v27_v1 = vld [vmem:[%s2700_s0 + $0x60] sm:$0xff] }
  0x39   :  { %1933 = vmatpush3.bf16.msra.mxu1 %v2117_v3  ;;  %1906 = vmatprep.subr.bf16.mxu0 %v2118_v8  ;;  %v1667_v2 = vcombine.low %v19_v0, %v27_v1  ;;  %v1668_v3 = vcombine.high %v19_v0, %v27_v1  ;;  %v2158_v8 = vld [vmem:[%s2699_s1 + $0x340] sm:$0xff]  }
  0x3a   :  { %1934 = vmatprep.subr.bf16.mxu1 %v2119_v9  ;;  %v2159_v9 = vld [vmem:[%s2699_s1 + $0x3c0] sm:$0xff]  }
  0x3c   :  { %1907 = vmatpush3.bf16.msra.mxu0 %v2120_v10  ;;  %v2160_v10 = vld [vmem:[%s2699_s1 + $0x300] sm:$0xff]  }
  0x3d   :  { %1935 = vmatpush3.bf16.msra.mxu1 %v2121_v11  ;;  %1908 = vmatprep.subr.bf16.mxu0 %v2122_v12  ;;  %v2161_v11 = vld [vmem:[%s2699_s1 + $0x380] sm:$0xff]   ;;  %v2162_v12 = vld [vmem:[%s2699_s1 + $0x348] sm:$0xff]  }
  0x3e   :  { %1936 = vmatprep.subr.bf16.mxu1 %v2123_v13  ;;  %v2163_v13 = vld [vmem:[%s2699_s1 + $0x3c8] sm:$0xff]  }
  0x40   :  { %1909 = vmatpush3.bf16.msra.mxu0 %v2124_v14  ;;  %v2164_v14 = vld [vmem:[%s2699_s1 + $0x308] sm:$0xff]  }
  0x41   :  { %1937 = vmatpush3.bf16.msra.mxu1 %v2125_v15  ;;  %1950 = vmatprep.subr.bf16.mxu0 %v2126_v24  ;;  %v2165_v15 = vld [vmem:[%s2699_s1 + $0x388] sm:$0xff]  }
  0x42   :  { %1978 = vmatprep.subr.bf16.mxu1 %v2127_v25  ;;  %v2168_v25 = vld [vmem:[%s2699_s1 + $0x310] sm:$0xff]  }
  0x43   :  { %1369 = vmatmul.mubr.bf16.vlgmr.msra.gmra.mrb[8].mxu0 %v1663_v20  ;;  %v2166_v20 = vld [vmem:[%s2699_s1 + $0x350] sm:$0xff]  }
  0x44   :  { %1418 = vmatmul.mubr.bf16.vlgmr.msra.gmra.mrb[8].mxu1 %v1665_v22  ;;  %1951 = vmatpush3.bf16.msra.mxu0 %v2128_v26  ;;  %v36_v22 = vld [vmem:[%s2700_s0 + $0xa8] sm:$0xff] }
  0x45   :  { %1979 = vmatpush3.bf16.msra.mxu1 %v2129_v27  ;;  %1952 = vmatprep.subr.bf16.mxu0 %v2130_v28  ;;  %v1686_v24 = vcombine.high %v36_v22, %v44_v23  ;;  %v1685_v26 = vcombine.low %v36_v22, %v44_v23  ;;  %v2169_v27 = vld [vmem:[%s2699_s1 + $0x390] sm:$0xff]   ;;  %v2170_v28 = vld [vmem:[%s2699_s1 + $0x358] sm:$0xff]  }
  0x46   :  { %1980 = vmatprep.subr.bf16.mxu1 %v2131_v29  ;;  %1376 = vmatprep.mubr.bf16.mxu0 %v1680_v34  ;;  %v2171_v29 = vld [vmem:[%s2699_s1 + $0x3d8] sm:$0xff]   ;;  %v2176_v34 = vld [vmem:[%s2699_s1 + $0x320] sm:$0xff]  }
  0x47   :  { %1425 = vmatprep.mubr.bf16.mxu1 %v1682_v40  ;;  %v2182_v40 = vld [vmem:[%s2699_s1 + $0x370] sm:$0xff]  }
  0x48   :  { %1953 = vmatpush3.bf16.msra.mxu0 %v2132_v30  ;;  %v2172_v30 = vld [vmem:[%s2699_s1 + $0x318] sm:$0xff]  }
  0x49   :  { %1981 = vmatpush3.bf16.msra.mxu1 %v2133_v31  ;;  %1954 = vmatprep.subr.bf16.mxu0 %v2134_v36  ;;  %v2173_v31 = vld [vmem:[%s2699_s1 + $0x398] sm:$0xff]   ;;  %v2178_v36 = vld [vmem:[%s2699_s1 + $0x368] sm:$0xff]  }
  0x4a   :  { %1982 = vmatprep.subr.bf16.mxu1 %v2135_v37  ;;  %v2179_v37 = vld [vmem:[%s2699_s1 + $0x3e8] sm:$0xff]  }
  0x4b   :  { %1377 = vmatmul.mubr.bf16.gmra.mrb[12].mxu0 %v1679_v35  ;;  %v2177_v35 = vld [vmem:[%s2699_s1 + $0x3a0] sm:$0xff]  }
  0x4c   :  { %1955 = vmatpush3.bf16.msra.mxu0 %v2136_v41  ;;  %1426 = vmatmul.mubr.bf16.gmra.mrb[12].mxu1 %v1681_v42  ;;  %v2183_v41 = vld [vmem:[%s2699_s1 + $0x3f0] sm:$0xff]  }
  0x4d   :  { %1983 = vmatpush3.bf16.msra.mxu1 %v2137_v43  ;;  %1956 = vmatprep.subr.bf16.mxu0 %v2138_v44  ;;  %v2184_v42 = vld [vmem:[%s2699_s1 + $0x330] sm:$0xff]   ;;  %v2186_v44 = vld [vmem:[%s2699_s1 + $0x378] sm:$0xff]  }
  0x4e   :  { %1984 = vmatprep.subr.bf16.mxu1 %v2139_v45  ;;  %1466 = vmatprep.mubr.bf16.mxu0 %v1668_v3  ;;  %v2185_v43 = vld [vmem:[%s2699_s1 + $0x3b0] sm:$0xff]   ;;  %v2187_v45 = vld [vmem:[%s2699_s1 + $0x3f8] sm:$0xff]  }
  0x4f   :  { %1515 = vmatprep.mubr.bf16.mxu1 %v1670_v7 }
  0x50   :  { %1957 = vmatpush3.bf16.msra.mxu0 %v2140_v46  ;;  %v2188_v46 = vld [vmem:[%s2699_s1 + $0x338] sm:$0xff]  }
  0x51   :  { %1985 = vmatpush3.bf16.msra.mxu1 %v2141_v47  ;;  %1958 = vmatprep.subr.bf16.mxu0 %v2142_v48  ;;  %v2189_v47 = vld [vmem:[%s2699_s1 + $0x3b8] sm:$0xff]   ;;  %v21_v48 = vld [vmem:[%s2700_s0 + $0x30] sm:$0xff] }
  0x52   :  { %1986 = vmatprep.subr.bf16.mxu1 %v2143_v49  ;;  %v29_v49 = vld [vmem:[%s2700_s0 + $0x70] sm:$0xff] }
  0x54   :  { %1959 = vmatpush3.bf16.msra.mxu0 %v2144_v50  ;;  %v22_v50 = vld [vmem:[%s2700_s0 + $0x38] sm:$0xff] }
  0x55   :  { %1987 = vmatpush3.bf16.msra.mxu1 %v2145_v51  ;;  %1960 = vmatprep.subr.bf16.mxu0 %v2146_v52  ;;  %v1671_v51 = vcombine.low %v21_v48, %v29_v49  ;;  %v1672_v52 = vcombine.high %v21_v48, %v29_v49 }
  0x56   :  { %1988 = vmatprep.subr.bf16.mxu1 %v2147_v53  ;;  %v30_v53 = vld [vmem:[%s2700_s0 + $0x78] sm:$0xff] }
  0x58   :  { %1961 = vmatpush3.bf16.msra.mxu0 %v2148_v54  ;;  %v37_v54 = vld [vmem:[%s2700_s0 + $0xb0] sm:$0xff] }
  0x59   :  { %1989 = vmatpush3.bf16.msra.mxu1 %v2149_v55  ;;  %1962 = vmatprep.subr.bf16.mxu0 %v2150_v56  ;;  %v45_v55 = vld [vmem:[%s2700_s0 + $0xf0] sm:$0xff]  ;;  %v1673_v56 = vcombine.low %v22_v50, %v30_v53 }
  0x5a   :  { %1990 = vmatprep.subr.bf16.mxu1 %v2151_v57  ;;  %v1674_v57 = vcombine.high %v22_v50, %v30_v53 }
  0x5c   :  { %1963 = vmatpush3.bf16.msra.mxu0 %v2152_v58  ;;  %v1688_v58 = vcombine.high %v37_v54, %v45_v55 }
  0x5d   :  { %1991 = vmatpush3.bf16.msra.mxu1 %v2153_v59  ;;  %1964 = vmatprep.subr.bf16.mxu0 %v2154_v60  ;;  %v38_v59 = vld [vmem:[%s2700_s0 + $0xb8] sm:$0xff] }
  0x5e   :  { %1992 = vmatprep.subr.bf16.mxu1 %v2155_v61  ;;  %v46_v60 = vld [vmem:[%s2700_s0 + $0xf8] sm:$0xff] }
  0x5f   :  { %v1690_v61 = vcombine.high %v38_v59, %v46_v60 }
  0x60   :  { %1965 = vmatpush3.bf16.msra.mxu0 %v2156_v62  ;;  %v1687_v62 = vcombine.low %v37_v54, %v45_v55 }
  0x61   :  { %1993 = vmatpush3.bf16.msra.mxu1 %v2157_v63  ;;  %2006 = vmatprep.subr.bf16.mxu0 %v2158_v8  ;;  %v1689_v63 = vcombine.low %v38_v59, %v46_v60 }
  0x62   :  { %2034 = vmatprep.subr.bf16.mxu1 %v2159_v9 }
  0x63   :  { %1467 = vmatmul.mubr.bf16.vlgmr.msra.gmra.mrb[16].mxu0 %v1667_v2  ;;  %v1658_v2 = vld [vmem:[%s2701_s2] ss:$0 sm:$0xff] }
  0x64   :  { %1516 = vmatmul.mubr.bf16.vlgmr.msra.gmra.mrb[16].mxu1 %v1669_v6  ;;  %2007 = vmatpush3.bf16.msra.mxu0 %v2160_v10 }
  0x65   :  { %2035 = vmatpush3.bf16.msra.mxu1 %v2161_v11  ;;  %2008 = vmatprep.subr.bf16.mxu0 %v2162_v12 }
  0x66   :  { %2036 = vmatprep.subr.bf16.mxu1 %v2163_v13  ;;  %1474 = vmatprep.mubr.bf16.mxu0 %v1684_v18 }
  0x67   :  { %1523 = vmatprep.mubr.bf16.mxu1 %v1686_v24 }
  0x68   :  { %2009 = vmatpush3.bf16.msra.mxu0 %v2164_v14 }
  0x69   :  { %2037 = vmatpush3.bf16.msra.mxu1 %v2165_v15  ;;  %2010 = vmatprep.subr.bf16.mxu0 %v2166_v20 }
  0x6a   :  { %2038 = vmatprep.subr.bf16.mxu1 %v2167_v21 }
  0x6b   :  { %1475 = vmatmul.mubr.bf16.gmra.mrb[20].mxu0 %v1683_v19 }
  0x6c   :  { %2011 = vmatpush3.bf16.msra.mxu0 %v2168_v25  ;;  %1524 = vmatmul.mubr.bf16.gmra.mrb[20].mxu1 %v1685_v26 }
  0x6d   :  { %2039 = vmatpush3.bf16.msra.mxu1 %v2169_v27  ;;  %2012 = vmatprep.subr.bf16.mxu0 %v2170_v28 }
  0x6e   :  { %2040 = vmatprep.subr.bf16.mxu1 %v2171_v29  ;;  %1564 = vmatprep.mubr.bf16.mxu0 %v1672_v52 }
  0x6f   :  { %1613 = vmatprep.mubr.bf16.mxu1 %v1674_v57 }
  0x70   :  { %2013 = vmatpush3.bf16.msra.mxu0 %v2172_v30 }
  0x71   :  { %2041 = vmatpush3.bf16.msra.mxu1 %v2173_v31  ;;  %2014 = vmatprep.subr.bf16.mxu0 %v2174_v32 }
  0x72   :  { %2042 = vmatprep.subr.bf16.mxu1 %v2175_v33 }
  0x74   :  { %2015 = vmatpush3.bf16.msra.mxu0 %v2176_v34 }
  0x75   :  { %2043 = vmatpush3.bf16.msra.mxu1 %v2177_v35  ;;  %2016 = vmatprep.subr.bf16.mxu0 %v2178_v36 }
  0x76   :  { %2044 = vmatprep.subr.bf16.mxu1 %v2179_v37 }
  0x78   :  { %2017 = vmatpush3.bf16.msra.mxu0 %v2180_v38 }
  0x79   :  { %2045 = vmatpush3.bf16.msra.mxu1 %v2181_v39  ;;  %2018 = vmatprep.subr.bf16.mxu0 %v2182_v40 }
  0x7a   :  { %2046 = vmatprep.subr.bf16.mxu1 %v2183_v41 }
  0x7c   :  { %2019 = vmatpush3.bf16.msra.mxu0 %v2184_v42 }
  0x7d   :  { %2047 = vmatpush3.bf16.msra.mxu1 %v2185_v43  ;;  %2020 = vmatprep.subr.bf16.mxu0 %v2186_v44 }
  0x7e   :  { %2048 = vmatprep.subr.bf16.mxu1 %v2187_v45 }
  0x80   :  { %2021 = vmatpush3.bf16.msra.mxu0 %v2188_v46 }
  0x81   :  { %2049 = vmatpush3.bf16.msra.mxu1 %v2189_v47 }
  0x83   :  { %1565 = vmatmul.mubr.bf16.vlgmr.msra.gmra.mrb[24].mxu0 %v1671_v51 }
  0x84   :  { %1614 = vmatmul.mubr.bf16.vlgmr.msra.gmra.mrb[24].mxu1 %v1673_v56  ;;  %1572 = vmatprep.mubr.bf16.mxu0 %v1688_v58 }
  0x85   :  { %1621 = vmatprep.mubr.bf16.mxu1 %v1690_v61 }
  0x8b   :  { %1573 = vmatmul.mubr.bf16.gmra.mrb[28].mxu0 %v1687_v62 }
  0x8c   :  { %1622 = vmatmul.mubr.bf16.gmra.mrb[28].mxu1 %v1689_v63 }
  0xf6   :  { %v1854_v0 = vpop.f32.mrb[0].mxu0 }
  0xf7   :  { %v1882_v1 = vpop.f32.mrb[0].mxu1  ;;  %v1855_v3 = vpop.f32.mrb[1].mxu0 }
  0xf8   :  { %v1856_v4 = vadd.f32 %v1855_v3, %v1854_v0  ;;  %v1883_v5 = vpop.f32.mrb[1].mxu1  ;;  %v1857_v6 = vpop.f32.mrb[2].mxu0 }
  0xf9   :  { %v1884_v7 = vadd.f32 %v1883_v5, %v1882_v1  ;;  %v1885_v8 = vpop.f32.mrb[2].mxu1  ;;  %v1858_v9 = vpop.f32.mrb[3].mxu0 }
  0xfa   :  { %v1273_v10 = vadd.f32 %v1856_v4, %v1658_v2  ;;  %v1859_v11 = vadd.f32 %v1858_v9, %v1857_v6  ;;  %v1886_v12 = vpop.f32.mrb[3].mxu1 }
  0xfb   :  { %v1887_v13 = vadd.f32 %v1886_v12, %v1885_v8 }
  0xfc   :  { %v1322_v14 = vadd.f32 %v1884_v7, %v1273_v10  ;;  %v1276_v15 = vadd.f32 %v1859_v11, %v1658_v2 }
  0xfe   :  { %v1325_v16 = vadd.f32 %v1887_v13, %v1276_v15  ;;  %v1860_v17 = vpop.f32.mrb[4].mxu0 }
  0xff   :  { %v1861_v18 = vpop.f32.mrb[5].mxu0  ;;  %v1888_v21 = vpop.f32.mrb[4].mxu1 }
 0x100   :  { %v1862_v19 = vadd.f32 %v1861_v18, %v1860_v17  ;;  %v1863_v20 = vpop.f32.mrb[6].mxu0  ;;  %v1889_v25 = vpop.f32.mrb[5].mxu1 }
 0x101   :  { %v1864_v22 = vpop.f32.mrb[7].mxu0  ;;  %v1890_v26 = vadd.f32 %v1889_v25, %v1888_v21  ;;  %v1891_v27 = vpop.f32.mrb[6].mxu1 }
 0x102   :  { %v1281_v23 = vadd.f32 %v1862_v19, %v1658_v2  ;;  %v1865_v24 = vadd.f32 %v1864_v22, %v1863_v20  ;;  %v1892_v29 = vpop.f32.mrb[7].mxu1 }
 0x103   :  { %v1893_v31 = vadd.f32 %v1892_v29, %v1891_v27 }
 0x104   :  { %v1284_v28 = vadd.f32 %v1865_v24, %v1658_v2  ;;  %v1330_v30 = vadd.f32 %v1890_v26, %v1281_v23 }
 0x106   :  { %v1333_v32 = vadd.f32 %v1893_v31, %v1284_v28 }
 0x116   :  { %v1910_v33 = vpop.f32.mrb[8].mxu0 }
 0x117   :  { %v1938_v34 = vpop.f32.mrb[8].mxu1  ;;  %v1911_v35 = vpop.f32.mrb[9].mxu0 }
 0x118   :  { %v1939_v36 = vpop.f32.mrb[9].mxu1  ;;  %v1912_v37 = vadd.f32 %v1911_v35, %v1910_v33  ;;  %v1913_v39 = vpop.f32.mrb[10].mxu0 }
 0x119   :  { %v1940_v38 = vadd.f32 %v1939_v36, %v1938_v34  ;;  %v1941_v40 = vpop.f32.mrb[10].mxu1  ;;  %v1914_v41 = vpop.f32.mrb[11].mxu0 }
 0x11a   :  { %v1942_v42 = vpop.f32.mrb[11].mxu1  ;;  %v1371_v43 = vadd.f32 %v1912_v37, %v1322_v14  ;;  %v1915_v44 = vadd.f32 %v1914_v41, %v1913_v39 }
 0x11b   :  { %v1943_v45 = vadd.f32 %v1942_v42, %v1941_v40 }
 0x11c   :  { %v1420_v46 = vadd.f32 %v1940_v38, %v1371_v43  ;;  %v1374_v47 = vadd.f32 %v1915_v44, %v1325_v16 }
 0x11e   :  { %v1423_v48 = vadd.f32 %v1943_v45, %v1374_v47  ;;  %v1916_v49 = vpop.f32.mrb[12].mxu0 }
 0x11f   :  { %v1917_v50 = vpop.f32.mrb[13].mxu0  ;;  %v1944_v55 = vpop.f32.mrb[12].mxu1 }
 0x120   :  { %v1918_v51 = vadd.f32 %v1917_v50, %v1916_v49  ;;  %v1919_v52 = vpop.f32.mrb[14].mxu0  ;;  %v1945_v57 = vpop.f32.mrb[13].mxu1 }
 0x121   :  { %v1920_v53 = vpop.f32.mrb[15].mxu0  ;;  %v1946_v59 = vadd.f32 %v1945_v57, %v1944_v55  ;;  %v1947_v60 = vpop.f32.mrb[14].mxu1 }
 0x122   :  { %v1379_v54 = vadd.f32 %v1918_v51, %v1330_v30  ;;  %v1921_v56 = vadd.f32 %v1920_v53, %v1919_v52  ;;  %v1948_v61 = vpop.f32.mrb[15].mxu1 }
 0x123   :  { %v1949_v63 = vadd.f32 %v1948_v61, %v1947_v60 }
 0x124   :  { %v1382_v58 = vadd.f32 %v1921_v56, %v1333_v32  ;;  %v1428_v62 = vadd.f32 %v1946_v59, %v1379_v54 }
 0x126   :  { %v1431_v0 = vadd.f32 %v1949_v63, %v1382_v58 }
 0x136   :  { %v1966_v1 = vpop.f32.mrb[16].mxu0 }
 0x137   :  { %v1994_v2 = vpop.f32.mrb[16].mxu1  ;;  %v1967_v3 = vpop.f32.mrb[17].mxu0 }
 0x138   :  { %v1968_v4 = vadd.f32 %v1967_v3, %v1966_v1  ;;  %v1995_v5 = vpop.f32.mrb[17].mxu1  ;;  %v1969_v6 = vpop.f32.mrb[18].mxu0 }
 0x139   :  { %v1996_v7 = vadd.f32 %v1995_v5, %v1994_v2  ;;  %v1997_v8 = vpop.f32.mrb[18].mxu1  ;;  %v1970_v9 = vpop.f32.mrb[19].mxu0 }
 0x13a   :  { %v1469_v10 = vadd.f32 %v1968_v4, %v1420_v46  ;;  %v1971_v11 = vadd.f32 %v1970_v9, %v1969_v6  ;;  %v1998_v12 = vpop.f32.mrb[19].mxu1 }
 0x13b   :  { %v1999_v13 = vadd.f32 %v1998_v12, %v1997_v8 }
 0x13c   :  { %v1518_v14 = vadd.f32 %v1996_v7, %v1469_v10  ;;  %v1472_v15 = vadd.f32 %v1971_v11, %v1423_v48 }
 0x13e   :  { %v1521_v16 = vadd.f32 %v1999_v13, %v1472_v15  ;;  %v1972_v17 = vpop.f32.mrb[20].mxu0 }
 0x13f   :  { %v1973_v18 = vpop.f32.mrb[21].mxu0  ;;  %v2000_v21 = vpop.f32.mrb[20].mxu1 }
 0x140   :  { %v1974_v19 = vadd.f32 %v1973_v18, %v1972_v17  ;;  %v1975_v20 = vpop.f32.mrb[22].mxu0  ;;  %v2001_v25 = vpop.f32.mrb[21].mxu1 }
 0x141   :  { %v1976_v22 = vpop.f32.mrb[23].mxu0  ;;  %v2002_v26 = vadd.f32 %v2001_v25, %v2000_v21  ;;  %v2003_v27 = vpop.f32.mrb[22].mxu1 }
 0x142   :  { %v1477_v23 = vadd.f32 %v1974_v19, %v1428_v62  ;;  %v1977_v24 = vadd.f32 %v1976_v22, %v1975_v20  ;;  %v2004_v29 = vpop.f32.mrb[23].mxu1 }
 0x143   :  { %v2005_v31 = vadd.f32 %v2004_v29, %v2003_v27 }
 0x144   :  { %v1480_v28 = vadd.f32 %v1977_v24, %v1431_v0  ;;  %v1526_v30 = vadd.f32 %v2002_v26, %v1477_v23 }
 0x146   :  { %v1529_v32 = vadd.f32 %v2005_v31, %v1480_v28 }
 0x156   :  { %v2022_v33 = vpop.f32.mrb[24].mxu0 }
 0x157   :  { %v2050_v34 = vpop.f32.mrb[24].mxu1  ;;  %v2023_v35 = vpop.f32.mrb[25].mxu0 }
 0x158   :  { %v2024_v36 = vadd.f32 %v2023_v35, %v2022_v33  ;;  %v2051_v37 = vpop.f32.mrb[25].mxu1  ;;  %v2025_v38 = vpop.f32.mrb[26].mxu0 }
 0x159   :  { %v2052_v39 = vadd.f32 %v2051_v37, %v2050_v34  ;;  %v2053_v40 = vpop.f32.mrb[26].mxu1  ;;  %v2026_v41 = vpop.f32.mrb[27].mxu0 }
 0x15a   :  { %v1567_v42 = vadd.f32 %v2024_v36, %v1518_v14  ;;  %v2027_v43 = vadd.f32 %v2026_v41, %v2025_v38  ;;  %v2054_v44 = vpop.f32.mrb[27].mxu1 }
 0x15b   :  { %v2055_v45 = vadd.f32 %v2054_v44, %v2053_v40 }
 0x15c   :  { %v1616_v46 = vadd.f32 %v2052_v39, %v1567_v42  ;;  %v1570_v47 = vadd.f32 %v2027_v43, %v1521_v16 }
 0x15e   :  { %v1619_v48 = vadd.f32 %v2055_v45, %v1570_v47  ;;  %v2028_v49 = vpop.f32.mrb[28].mxu0  ;;  %v1630_v52 = vmax.f32 %v1616_v46, 0.0 }
 0x15f   :  { %v2056_v50 = vpop.f32.mrb[28].mxu1  ;;  %v2029_v51 = vpop.f32.mrb[29].mxu0 }
 0x160   :  { %v1631_v53 = vmax.f32 %v1619_v48, 0.0  ;;  %v2030_v54 = vadd.f32 %v2029_v51, %v2028_v49  ;;  %v2057_v55 = vpop.f32.mrb[29].mxu1  ;;  %v2031_v56 = vpop.f32.mrb[30].mxu0 }
 0x161   :  { %v2058_v57 = vadd.f32 %v2057_v55, %v2056_v50  ;;  %v2059_v58 = vpop.f32.mrb[30].mxu1  ;;  %v2032_v59 = vpop.f32.mrb[31].mxu0 }
 0x162   :  { %v1830_v60 = vpack.c.bf16 %v1631_v53, %v1630_v52  ;;  %v1575_v61 = vadd.f32 %v2030_v54, %v1526_v30  ;;  %v2033_v62 = vadd.f32 %v2032_v59, %v2031_v56  ;;  %v2060_v63 = vpop.f32.mrb[31].mxu1 }
 0x163   :  { %v2061_v0 = vadd.f32 %v2060_v63, %v2059_v58 }
 0x164   :  { %1831 = vst [vmem:[%s2702_s3] sm:$0xff] %v1830_v60   ;;  %v1624_v1 = vadd.f32 %v2058_v57, %v1575_v61  ;;  %v1578_v2 = vadd.f32 %v2033_v62, %v1529_v32 }
 0x166   :  { %v1627_v3 = vadd.f32 %v2061_v0, %v1578_v2  ;;  %v1632_v4 = vmax.f32 %v1624_v1, 0.0 }
 0x168   :  { %v1633_v5 = vmax.f32 %v1627_v3, 0.0 }
 0x16a   :  { %v1835_v6 = vpack.c.bf16 %v1633_v5, %v1632_v4 }
 0x16c   :  { %1837 = vst [vmem:[%s2702_s3 + $0x8] sm:$0xff] %v1835_v6  }

// kernel: squeeze.6
= control target key start
LH: loop header
LB: loop body
LE: loop exit
PB: predicated region body
PF: predicated region fallthrough
CT: control target
= control target key end

     0   :  { %v126_v6 = vmov 0.0   ;;  %s164_s0 = inlined_call_operand.vmem [shape: bf16[1,8,256], index: 0, kind: input, shape index: {}]   ;;  %s165_s1 = inlined_call_operand.vmem [shape: bf16[2,2,2,256], index: 1, kind: output, shape index: {}]  }
   0x1   :  { %v122_v0 = vld [vmem:[%s164_s0] sm:$0xff]  }
   0x2   :  { %v123_v1 = vunpack.c.l.bf16 %v122_v0  ;;  %v124_v2 = vunpack.c.h.bf16 %v122_v0 }
   0x4   :  { %34 = vst [vmem:[#allocation0] ss:$46 sps:$4 sm:$0xc3] %v123_v1   ;;  %36 = vst [vmem:[#allocation0 + $0xe] ss:$18 sps:$4 sm:$0x3c] %v123_v1  }
   0x5   :  { %44 = vst [vmem:[#allocation0 + $0x8] ss:$46 sps:$4 sm:$0xc3] %v124_v2   ;;  %46 = vst [vmem:[#allocation0 + $0x16] ss:$18 sps:$4 sm:$0x3c] %v124_v2  }
   0xb   :  { %v55_v3 = vld [vmem:[#allocation0] sm:$0x3]  ;;  %v66_v5 = vld [vmem:[#allocation0 + $0x10] sm:$0x3] }
   0xc   :  { %v60_v4 = vld [vmem:[#allocation0 + $0x8] sm:$0x3]  ;;  %v56_v7 = vpack.c.bf16 %v126_v6, %v55_v3  ;;  %v67_v9 = vpack.c.bf16 %v126_v6, %v66_v5  ;;  %v73_v10 = vld [vmem:[#allocation0 + $0x18] sm:$0x3]  ;;  %v80_v11 = vld [vmem:[#allocation0 + $0x20] sm:$0x3] }
   0xd   :  { %v61_v8 = vpack.c.bf16 %v126_v6, %v60_v4  ;;  %v87_v12 = vld [vmem:[#allocation0 + $0x28] sm:$0x3]  ;;  %v74_v13 = vpack.c.bf16 %v126_v6, %v73_v10  ;;  %v81_v14 = vpack.c.bf16 %v126_v6, %v80_v11  ;;  %v94_v16 = vld [vmem:[#allocation0 + $0x30] sm:$0x3]  ;;  %v101_v17 = vld [vmem:[#allocation0 + $0x38] sm:$0x3] }
   0xe   :  { %v88_v15 = vpack.c.bf16 %v126_v6, %v87_v12  ;;  %58 = vst [vmem:[%s165_s1] sm:$0x1] %v56_v7  ;;  %115 = vst [vmem:[%s165_s1 + $0x2] sm:$0x1] %v67_v9  ;;  %v95_v18 = vpack.c.bf16 %v126_v6, %v94_v16  ;;  %v102_v19 = vpack.c.bf16 %v126_v6, %v101_v17 }
   0xf   :  { %114 = vst [vmem:[%s165_s1 + $0x1] sm:$0x1] %v61_v8  ;;  %116 = vst [vmem:[%s165_s1 + $0x3] sm:$0x1] %v74_v13 }
  0x10   :  { %117 = vst [vmem:[%s165_s1 + $0x4] sm:$0x1] %v81_v14  ;;  %118 = vst [vmem:[%s165_s1 + $0x5] sm:$0x1] %v88_v15 }
  0x11   :  { %119 = vst [vmem:[%s165_s1 + $0x6] sm:$0x1] %v95_v18  ;;  %120 = vst [vmem:[%s165_s1 + $0x7] sm:$0x1] %v102_v19 }

// kernel: autoencoder_forward.13
= control target key start
LH: loop header
LB: loop body
LE: loop exit
PB: predicated region body
PF: predicated region fallthrough
CT: control target
= control target key end

     0   :  { %s1345_s12 = smov 0   ;;  %s1347_s13 = smov 0   ;;  %s1461_s0 = inlined_call_operand.vmem [shape: bf16[4,8,1024], index: 0, kind: input, shape index: {}]   ;;  %s1462_s1 = inlined_call_operand.vmem [shape: bf16[4,1024,128], index: 1, kind: input, shape index: {}]   ;;  %s1463_s2 = inlined_call_operand.vmem [shape: f32[1,128], index: 2, kind: input, shape index: {}]   ;;  %s1464_s3 = inlined_call_operand.vmem [shape: bf16[4,8,128], index: 3, kind: output, shape index: {}]  }
   0x1   :  { %s1349_s14 = smov 0  }
   0x2 LB: > { %s25_s15 = sadd.s32 1, %s1319_s13  ;;  %p1034_p0 = scmp.ge.s32.totalorder %s1323_s14, 1  ;;  %s1323_s14 = sphi %s1349_s14, %s13_s14   ;;  %s1319_s13 = sphi %s1347_s13, %s1466_s13   ;;  %s1315_s12 = sphi %s1345_s12, %s1465_s12  }
   0x3   : > { %p27_p1 = scmp.ge.s32.totalorder %s25_s15, 4  ;;  %p167_p2 = scmp.lt.s32.totalorder %s1323_s14, 5 }
   0x5   : > { %s1468_s15 = smov (%p27_p1, %s25_s15), 0  ;;  %p168_p3 = pnand %p1034_p0, %p167_p2 }
   0x6   : > { %p202_p4 = scmp.lt.s32.totalorder (!%p168_p3), %s1315_s12, 3 }
   0x7   : > { %171 = sbr.rel (%p168_p3) target bundleno = 307 (0x133), region = 32 }
   0xe   : > { %s1470_s12 = smov (!%p202_p4, %s1315_s12), 3 }
   0xf   : > { %s1116_s16 = sshll.u32 %s1470_s12, 9  ;;  %s1115_s20 = sshll.u32 %s1470_s12, 5 }
  0x10   : > { %s1369_s19 = scalar_lea.vmem %s1462_s1, %s1116_s16  ;;  %s1405_s23 = scalar_lea.vmem %s1461_s0, %s1115_s20 }
  0x11   : > { %v1229_v0 = vld [vmem:[%s1369_s19 + $0x40] sm:$0xff]   ;;  %v1233_v4 = vld [vmem:[%s1369_s19 + $0x48] sm:$0xff]   ;;  %v1237_v8 = vld [vmem:[%s1369_s19 + $0x50] sm:$0xff]   ;;  %s1039_s26 = sshll.u32 %s1470_s12, 2 }
  0x12   : > { %v1230_v1 = vld [vmem:[%s1369_s19 + $0xc0] sm:$0xff]   ;;  %1117 = vmatprep.subr.bf16.mxu0 %v1229_v0  ;;  %v1234_v5 = vld [vmem:[%s1369_s19 + $0xc8] sm:$0xff]   ;;  %v1238_v9 = vld [vmem:[%s1369_s19 + $0xd0] sm:$0xff]   ;;  %s222_s29 = scalar_lea.vmem %s1464_s3, %s1039_s26 }
  0x13   : > { %v1231_v2 = vld [vmem:[%s1369_s19] sm:$0xff]   ;;  %1139 = vmatprep.subr.bf16.mxu1 %v1230_v1  ;;  %v1235_v6 = vld [vmem:[%s1369_s19 + $0x8] sm:$0xff]   ;;  %v1239_v10 = vld [vmem:[%s1369_s19 + $0x10] sm:$0xff]  }
  0x14   : > { %v1232_v3 = vld [vmem:[%s1369_s19 + $0x80] sm:$0xff]   ;;  %1118 = vmatpush3.bf16.msra.mxu0 %v1231_v2  ;;  %v1236_v7 = vld [vmem:[%s1369_s19 + $0x88] sm:$0xff]   ;;  %v1240_v11 = vld [vmem:[%s1369_s19 + $0x90] sm:$0xff]  }
  0x15   : > { %1140 = vmatpush3.bf16.msra.mxu1 %v1232_v3  ;;  %1119 = vmatprep.subr.bf16.mxu0 %v1233_v4  ;;  %v1241_v12 = vld [vmem:[%s1369_s19 + $0x58] sm:$0xff]   ;;  %v1245_v16 = vld [vmem:[%s1369_s19 + $0x60] sm:$0xff]   ;;  %v1249_v20 = vld [vmem:[%s1369_s19 + $0x68] sm:$0xff]  }
  0x16   : > { %1141 = vmatprep.subr.bf16.mxu1 %v1234_v5  ;;  %v1242_v13 = vld [vmem:[%s1369_s19 + $0xd8] sm:$0xff]   ;;  %v1246_v17 = vld [vmem:[%s1369_s19 + $0xe0] sm:$0xff]   ;;  %v1250_v21 = vld [vmem:[%s1369_s19 + $0xe8] sm:$0xff]  }
  0x17   : > { %v1243_v14 = vld [vmem:[%s1369_s19 + $0x18] sm:$0xff]   ;;  %v1247_v18 = vld [vmem:[%s1369_s19 + $0x20] sm:$0xff]   ;;  %v1251_v22 = vld [vmem:[%s1369_s19 + $0x28] sm:$0xff]  }
  0x18   : > { %1120 = vmatpush3.bf16.msra.mxu0 %v1235_v6  ;;  %v1244_v15 = vld [vmem:[%s1369_s19 + $0x98] sm:$0xff]   ;;  %v1248_v19 = vld [vmem:[%s1369_s19 + $0xa0] sm:$0xff]   ;;  %v1252_v23 = vld [vmem:[%s1369_s19 + $0xa8] sm:$0xff]  }
  0x19   : > { %1142 = vmatpush3.bf16.msra.mxu1 %v1236_v7  ;;  %1121 = vmatprep.subr.bf16.mxu0 %v1237_v8  ;;  %v1253_v24 = vld [vmem:[%s1369_s19 + $0x70] sm:$0xff]   ;;  %v1257_v28 = vld [vmem:[%s1369_s19 + $0x78] sm:$0xff]   ;;  %v224_v32 = vld [vmem:[%s1405_s23] sm:$0xff] }
  0x1a   : > { %1143 = vmatprep.subr.bf16.mxu1 %v1238_v9  ;;  %v1254_v25 = vld [vmem:[%s1369_s19 + $0xf0] sm:$0xff]   ;;  %v1258_v29 = vld [vmem:[%s1369_s19 + $0xf8] sm:$0xff]   ;;  %v225_v33 = vld [vmem:[%s1405_s23 + $0x8] sm:$0xff]  ;;  %v1041_v34 = vcombine.low %v224_v32, %v224_v32  ;;  %v1042_v35 = vcombine.high %v224_v32, %v224_v32 }
  0x1b   : > { %v1255_v26 = vld [vmem:[%s1369_s19 + $0x30] sm:$0xff]   ;;  %v1259_v30 = vld [vmem:[%s1369_s19 + $0x38] sm:$0xff]   ;;  %v1043_v36 = vcombine.low %v225_v33, %v225_v33  ;;  %v1044_v37 = vcombine.high %v225_v33, %v225_v33  ;;  %v1265_v38 = vld [vmem:[%s1369_s19 + $0x140] sm:$0xff]  }
  0x1c   : > { %1122 = vmatpush3.bf16.msra.mxu0 %v1239_v10  ;;  %v1256_v27 = vld [vmem:[%s1369_s19 + $0xb0] sm:$0xff]   ;;  %v1260_v31 = vld [vmem:[%s1369_s19 + $0xb8] sm:$0xff]   ;;  %v1266_v39 = vld [vmem:[%s1369_s19 + $0x1c0] sm:$0xff]   ;;  %807 = vmatprep.mubr.bf16.mxu0 %v1042_v35 }
  0x1d   : > { %1144 = vmatpush3.bf16.msra.mxu1 %v1240_v11  ;;  %1123 = vmatprep.subr.bf16.mxu0 %v1241_v12  ;;  %v1267_v40 = vld [vmem:[%s1369_s19 + $0x100] sm:$0xff]   ;;  %v1269_v42 = vld [vmem:[%s1369_s19 + $0x148] sm:$0xff]   ;;  %v1273_v46 = vld [vmem:[%s1369_s19 + $0x150] sm:$0xff]  }
  0x1e   : > { %1145 = vmatprep.subr.bf16.mxu1 %v1242_v13  ;;  %847 = vmatprep.mubr.bf16.mxu1 %v1044_v37  ;;  %v1268_v41 = vld [vmem:[%s1369_s19 + $0x180] sm:$0xff]   ;;  %v1270_v43 = vld [vmem:[%s1369_s19 + $0x1c8] sm:$0xff]   ;;  %v1274_v47 = vld [vmem:[%s1369_s19 + $0x1d0] sm:$0xff]  }
  0x1f   : > { %v1271_v44 = vld [vmem:[%s1369_s19 + $0x108] sm:$0xff]   ;;  %v1275_v48 = vld [vmem:[%s1369_s19 + $0x110] sm:$0xff]   ;;  %v1277_v50 = vld [vmem:[%s1369_s19 + $0x158] sm:$0xff]  }
  0x20   : > { %1124 = vmatpush3.bf16.msra.mxu0 %v1243_v14  ;;  %v1272_v45 = vld [vmem:[%s1369_s19 + $0x188] sm:$0xff]   ;;  %v1276_v49 = vld [vmem:[%s1369_s19 + $0x190] sm:$0xff]   ;;  %v1278_v51 = vld [vmem:[%s1369_s19 + $0x1d8] sm:$0xff]  }
  0x21   : > { %1146 = vmatpush3.bf16.msra.mxu1 %v1244_v15  ;;  %1125 = vmatprep.subr.bf16.mxu0 %v1245_v16  ;;  %v1279_v52 = vld [vmem:[%s1369_s19 + $0x118] sm:$0xff]   ;;  %v1281_v54 = vld [vmem:[%s1369_s19 + $0x160] sm:$0xff]   ;;  %v1285_v58 = vld [vmem:[%s1369_s19 + $0x168] sm:$0xff]  }
  0x22   : > { %1147 = vmatprep.subr.bf16.mxu1 %v1246_v17  ;;  %v1280_v53 = vld [vmem:[%s1369_s19 + $0x198] sm:$0xff]   ;;  %v1282_v55 = vld [vmem:[%s1369_s19 + $0x1e0] sm:$0xff]   ;;  %v1286_v59 = vld [vmem:[%s1369_s19 + $0x1e8] sm:$0xff]  }
  0x23   : > { %v1283_v56 = vld [vmem:[%s1369_s19 + $0x120] sm:$0xff]   ;;  %v1287_v60 = vld [vmem:[%s1369_s19 + $0x128] sm:$0xff]   ;;  %v1289_v62 = vld [vmem:[%s1369_s19 + $0x170] sm:$0xff]  }
  0x24   : > { %1126 = vmatpush3.bf16.msra.mxu0 %v1247_v18  ;;  %v1284_v57 = vld [vmem:[%s1369_s19 + $0x1a0] sm:$0xff]   ;;  %v1288_v61 = vld [vmem:[%s1369_s19 + $0x1a8] sm:$0xff]   ;;  %v1290_v63 = vld [vmem:[%s1369_s19 + $0x1f0] sm:$0xff]  }
  0x25   : > { %1148 = vmatpush3.bf16.msra.mxu1 %v1248_v19  ;;  %1127 = vmatprep.subr.bf16.mxu0 %v1249_v20  ;;  %v1291_v0 = vld [vmem:[%s1369_s19 + $0x130] sm:$0xff]   ;;  %v1293_v2 = vld [vmem:[%s1369_s19 + $0x178] sm:$0xff]   ;;  %v1040_v14 = vld [vmem:[%s1463_s2] ss:$0 sm:$0xff] }
  0x26   : > { %1149 = vmatprep.subr.bf16.mxu1 %v1250_v21  ;;  %v1292_v1 = vld [vmem:[%s1369_s19 + $0x1b0] sm:$0xff]   ;;  %v1294_v3 = vld [vmem:[%s1369_s19 + $0x1f8] sm:$0xff]  }
  0x27   : > { %v1295_v4 = vld [vmem:[%s1369_s19 + $0x138] sm:$0xff]   ;;  %v226_v6 = vld [vmem:[%s1405_s23 + $0x10] sm:$0xff] }
  0x28   : > { %1128 = vmatpush3.bf16.msra.mxu0 %v1251_v22  ;;  %v1296_v5 = vld [vmem:[%s1369_s19 + $0x1b8] sm:$0xff]   ;;  %v1045_v7 = vcombine.low %v226_v6, %v226_v6  ;;  %v1046_v8 = vcombine.high %v226_v6, %v226_v6 }
  0x29   : > { %1150 = vmatpush3.bf16.msra.mxu1 %v1252_v23  ;;  %1129 = vmatprep.subr.bf16.mxu0 %v1253_v24  ;;  %v227_v9 = vld [vmem:[%s1405_s23 + $0x18] sm:$0xff] }
  0x2a   : > { %1151 = vmatprep.subr.bf16.mxu1 %v1254_v25  ;;  %v1047_v10 = vcombine.low %v227_v9, %v227_v9  ;;  %v1048_v11 = vcombine.high %v227_v9, %v227_v9 }
  0x2c   : > { %1130 = vmatpush3.bf16.msra.mxu0 %v1255_v26 }
  0x2d   : > { %1152 = vmatpush3.bf16.msra.mxu1 %v1256_v27  ;;  %1131 = vmatprep.subr.bf16.mxu0 %v1257_v28 }
  0x2e   : > { %1153 = vmatprep.subr.bf16.mxu1 %v1258_v29 }
  0x30   : > { %1132 = vmatpush3.bf16.msra.mxu0 %v1259_v30 }
  0x31   : > { %1154 = vmatpush3.bf16.msra.mxu1 %v1260_v31  ;;  %1161 = vmatprep.subr.bf16.mxu0 %v1265_v38 }
  0x32   : > { %1183 = vmatprep.subr.bf16.mxu1 %v1266_v39 }
  0x33   : > { %808 = vmatmul.mubr.bf16.vlgmr.msra.gmra.mrb[0].mxu0 %v1041_v34 }
  0x34   : > { %848 = vmatmul.mubr.bf16.vlgmr.msra.gmra.mrb[0].mxu1 %v1043_v36  ;;  %1162 = vmatpush3.bf16.msra.mxu0 %v1267_v40 }
  0x35   : > { %1184 = vmatpush3.bf16.msra.mxu1 %v1268_v41  ;;  %1163 = vmatprep.subr.bf16.mxu0 %v1269_v42 }
  0x36   : > { %1185 = vmatprep.subr.bf16.mxu1 %v1270_v43  ;;  %887 = vmatprep.mubr.bf16.mxu0 %v1046_v8 }
  0x37   : > { %927 = vmatprep.mubr.bf16.mxu1 %v1048_v11 }
  0x38   : > { %1164 = vmatpush3.bf16.msra.mxu0 %v1271_v44 }
  0x39   : > { %1186 = vmatpush3.bf16.msra.mxu1 %v1272_v45  ;;  %1165 = vmatprep.subr.bf16.mxu0 %v1273_v46 }
  0x3a   : > { %1187 = vmatprep.subr.bf16.mxu1 %v1274_v47 }
  0x3c   : > { %1166 = vmatpush3.bf16.msra.mxu0 %v1275_v48 }
  0x3d   : > { %1188 = vmatpush3.bf16.msra.mxu1 %v1276_v49  ;;  %1167 = vmatprep.subr.bf16.mxu0 %v1277_v50 }
  0x3e   : > { %1189 = vmatprep.subr.bf16.mxu1 %v1278_v51 }
  0x40   : > { %1168 = vmatpush3.bf16.msra.mxu0 %v1279_v52 }
  0x41   : > { %1190 = vmatpush3.bf16.msra.mxu1 %v1280_v53  ;;  %1169 = vmatprep.subr.bf16.mxu0 %v1281_v54 }
  0x42   : > { %1191 = vmatprep.subr.bf16.mxu1 %v1282_v55 }
  0x44   : > { %1170 = vmatpush3.bf16.msra.mxu0 %v1283_v56 }
  0x45   : > { %1192 = vmatpush3.bf16.msra.mxu1 %v1284_v57  ;;  %1171 = vmatprep.subr.bf16.mxu0 %v1285_v58 }
  0x46   : > { %1193 = vmatprep.subr.bf16.mxu1 %v1286_v59 }
  0x48   : > { %1172 = vmatpush3.bf16.msra.mxu0 %v1287_v60 }
  0x49   : > { %1194 = vmatpush3.bf16.msra.mxu1 %v1288_v61  ;;  %1173 = vmatprep.subr.bf16.mxu0 %v1289_v62 }
  0x4a   : > { %1195 = vmatprep.subr.bf16.mxu1 %v1290_v63 }
  0x4c   : > { %1174 = vmatpush3.bf16.msra.mxu0 %v1291_v0 }
  0x4d   : > { %1196 = vmatpush3.bf16.msra.mxu1 %v1292_v1  ;;  %1175 = vmatprep.subr.bf16.mxu0 %v1293_v2 }
  0x4e   : > { %1197 = vmatprep.subr.bf16.mxu1 %v1294_v3 }
  0x50   : > { %1176 = vmatpush3.bf16.msra.mxu0 %v1295_v4 }
  0x51   : > { %1198 = vmatpush3.bf16.msra.mxu1 %v1296_v5 }
  0x53   : > { %888 = vmatmul.mubr.bf16.vlgmr.msra.gmra.mrb[4].mxu0 %v1045_v7 }
  0x54   : > { %928 = vmatmul.mubr.bf16.vlgmr.msra.gmra.mrb[4].mxu1 %v1047_v10 }
 0x106   : > { %v1133_v12 = vpop.f32.mrb[0].mxu0 }
 0x107   : > { %v1155_v13 = vpop.f32.mrb[0].mxu1  ;;  %v1134_v15 = vpop.f32.mrb[1].mxu0 }
 0x108   : > { %v1156_v16 = vpop.f32.mrb[1].mxu1  ;;  %v1135_v17 = vadd.f32 %v1134_v15, %v1133_v12  ;;  %v1136_v19 = vpop.f32.mrb[2].mxu0 }
 0x109   : > { %v1157_v18 = vadd.f32 %v1156_v16, %v1155_v13  ;;  %v1158_v20 = vpop.f32.mrb[2].mxu1  ;;  %v1137_v21 = vpop.f32.mrb[3].mxu0 }
 0x10a   : > { %v1159_v22 = vpop.f32.mrb[3].mxu1  ;;  %v810_v23 = vadd.f32 %v1135_v17, %v1040_v14 }
 0x10c   : > { %v850_v24 = vadd.f32 %v1157_v18, %v810_v23 }
 0x126   : > { %v1177_v25 = vpop.f32.mrb[4].mxu0 }
 0x127   : > { %v1199_v26 = vpop.f32.mrb[4].mxu1  ;;  %v1178_v27 = vpop.f32.mrb[5].mxu0 }
 0x128   : > { %v1200_v28 = vpop.f32.mrb[5].mxu1  ;;  %v1179_v29 = vadd.f32 %v1178_v27, %v1177_v25  ;;  %v1180_v31 = vpop.f32.mrb[6].mxu0 }
 0x129   : > { %v1201_v30 = vadd.f32 %v1200_v28, %v1199_v26  ;;  %v1202_v32 = vpop.f32.mrb[6].mxu1  ;;  %v1181_v33 = vpop.f32.mrb[7].mxu0 }
 0x12a   : > { %v1203_v34 = vpop.f32.mrb[7].mxu1  ;;  %v890_v35 = vadd.f32 %v1179_v29, %v850_v24 }
 0x12c   : > { %v930_v36 = vadd.f32 %v1201_v30, %v890_v35 }
 0x12e   : > { %v935_v37 = vmax.f32 %v930_v36, 0.0 }
 0x130   : > { %v936_v38 = vpack.c.bf16 %v935_v37, %v935_v37 }
 0x132   : > { %937 = vst [vmem:[%s222_s29] sm:$0xf] %v936_v38 }
 0x133 PF: > { %s13_s14 = sadd.s32 1, %s1323_s14   ;;  %s1465_s12 = smov %s1319_s13 }
 0x134   : > { %p10_p5 = scmp.ge.s32.totalorder %s13_s14, 6   ;;  %s1466_s13 = smov %s1468_s15 }
 0x136   :  { %12 = sbr.rel (!%p10_p5) target bundleno = 2 (0x2), region = 65 }

// kernel: autoencoder_forward.10
= control target key start
LH: loop header
LB: loop body
LE: loop exit
PB: predicated region body
PF: predicated region fallthrough
CT: control target
= control target key end

     0   :  { %s3525_s1 = inlined_call_operand.vmem [shape: bf16[1,2048,256], index: 1, kind: input, shape index: {}]   ;;  %s3526_s0 = inlined_call_operand.vmem [shape: bf16[1,8,2048], index: 0, kind: input, shape index: {}]   ;;  %s3527_s2 = inlined_call_operand.vmem [shape: f32[1,256], index: 2, kind: input, shape index: {}]   ;;  %s3528_s3 = inlined_call_operand.vmem [shape: bf16[1,8,256], index: 3, kind: output, shape index: {}]  }
   0x1   :  { %v2271_v0 = vld [vmem:[%s3525_s1 + $0x4] ss:$8 sps:$4 sm:$0xff]   ;;  %v2275_v2 = vld [vmem:[%s3525_s1] ss:$8 sps:$4 sm:$0xff]   ;;  %v2277_v4 = vld [vmem:[%s3525_s1 + $0x14] ss:$8 sps:$4 sm:$0xff]  }
   0x2   :  { %v2273_v1 = vld [vmem:[%s3525_s1 + $0x404] ss:$8 sps:$4 sm:$0xff]   ;;  %1626 = vmatprep.subr.bf16.mxu1 %v2271_v0  ;;  %v2276_v3 = vld [vmem:[%s3525_s1 + $0x400] ss:$8 sps:$4 sm:$0xff]   ;;  %v2279_v5 = vld [vmem:[%s3525_s1 + $0x414] ss:$8 sps:$4 sm:$0xff]  }
   0x3   :  { %1790 = vmatprep.subr.bf16.mxu0 %v2273_v1  ;;  %1627 = vmatpush1.bf16.msra.mxu1 %v2275_v2  ;;  %v2281_v6 = vld [vmem:[%s3525_s1 + $0x10] ss:$8 sps:$4 sm:$0xff]   ;;  %v2283_v8 = vld [vmem:[%s3525_s1 + $0x24] ss:$8 sps:$4 sm:$0xff]   ;;  %v2287_v10 = vld [vmem:[%s3525_s1 + $0x20] ss:$8 sps:$4 sm:$0xff]  }
   0x4   :  { %1791 = vmatpush1.bf16.msra.mxu0 %v2276_v3  ;;  %1628 = vmatprep.subr.bf16.mxu1 %v2277_v4  ;;  %v2282_v7 = vld [vmem:[%s3525_s1 + $0x410] ss:$8 sps:$4 sm:$0xff]   ;;  %v2285_v9 = vld [vmem:[%s3525_s1 + $0x424] ss:$8 sps:$4 sm:$0xff]   ;;  %v2288_v11 = vld [vmem:[%s3525_s1 + $0x420] ss:$8 sps:$4 sm:$0xff]  }
   0x5   :  { %1792 = vmatprep.subr.bf16.mxu0 %v2279_v5  ;;  %v2289_v12 = vld [vmem:[%s3525_s1 + $0x34] ss:$8 sps:$4 sm:$0xff]   ;;  %v2293_v14 = vld [vmem:[%s3525_s1 + $0x30] ss:$8 sps:$4 sm:$0xff]   ;;  %v2295_v16 = vld [vmem:[%s3525_s1 + $0x44] ss:$8 sps:$4 sm:$0xff]  }
   0x6   :  { %v2291_v13 = vld [vmem:[%s3525_s1 + $0x434] ss:$8 sps:$4 sm:$0xff]   ;;  %v2294_v15 = vld [vmem:[%s3525_s1 + $0x430] ss:$8 sps:$4 sm:$0xff]   ;;  %v2297_v17 = vld [vmem:[%s3525_s1 + $0x444] ss:$8 sps:$4 sm:$0xff]  }
   0x7   :  { %1629 = vmatpush1.bf16.msra.mxu1 %v2281_v6  ;;  %v2299_v18 = vld [vmem:[%s3525_s1 + $0x40] ss:$8 sps:$4 sm:$0xff]   ;;  %v2301_v20 = vld [vmem:[%s3525_s1 + $0x54] ss:$8 sps:$4 sm:$0xff]   ;;  %v2305_v22 = vld [vmem:[%s3525_s1 + $0x50] ss:$8 sps:$4 sm:$0xff]  }
   0x8   :  { %1793 = vmatpush1.bf16.msra.mxu0 %v2282_v7  ;;  %1630 = vmatprep.subr.bf16.mxu1 %v2283_v8  ;;  %v2300_v19 = vld [vmem:[%s3525_s1 + $0x440] ss:$8 sps:$4 sm:$0xff]   ;;  %v2303_v21 = vld [vmem:[%s3525_s1 + $0x454] ss:$8 sps:$4 sm:$0xff]   ;;  %v2306_v23 = vld [vmem:[%s3525_s1 + $0x450] ss:$8 sps:$4 sm:$0xff]  }
   0x9   :  { %1794 = vmatprep.subr.bf16.mxu0 %v2285_v9  ;;  %v2307_v24 = vld [vmem:[%s3525_s1 + $0x64] ss:$8 sps:$4 sm:$0xff]   ;;  %v2311_v26 = vld [vmem:[%s3525_s1 + $0x60] ss:$8 sps:$4 sm:$0xff]   ;;  %v2313_v28 = vld [vmem:[%s3525_s1 + $0x74] ss:$8 sps:$4 sm:$0xff]  }
   0xa   :  { %v2309_v25 = vld [vmem:[%s3525_s1 + $0x464] ss:$8 sps:$4 sm:$0xff]   ;;  %v2312_v27 = vld [vmem:[%s3525_s1 + $0x460] ss:$8 sps:$4 sm:$0xff]   ;;  %v2315_v29 = vld [vmem:[%s3525_s1 + $0x474] ss:$8 sps:$4 sm:$0xff]  }
   0xb   :  { %1631 = vmatpush1.bf16.msra.mxu1 %v2287_v10  ;;  %v2317_v30 = vld [vmem:[%s3525_s1 + $0x70] ss:$8 sps:$4 sm:$0xff]   ;;  %v2319_v32 = vld [vmem:[%s3525_s1 + $0x84] ss:$8 sps:$4 sm:$0xff]   ;;  %v2323_v34 = vld [vmem:[%s3525_s1 + $0x80] ss:$8 sps:$4 sm:$0xff]  }
   0xc   :  { %1795 = vmatpush1.bf16.msra.mxu0 %v2288_v11  ;;  %1632 = vmatprep.subr.bf16.mxu1 %v2289_v12  ;;  %v2318_v31 = vld [vmem:[%s3525_s1 + $0x470] ss:$8 sps:$4 sm:$0xff]   ;;  %v2321_v33 = vld [vmem:[%s3525_s1 + $0x484] ss:$8 sps:$4 sm:$0xff]   ;;  %v2324_v35 = vld [vmem:[%s3525_s1 + $0x480] ss:$8 sps:$4 sm:$0xff]  }
   0xd   :  { %1796 = vmatprep.subr.bf16.mxu0 %v2291_v13  ;;  %v2325_v36 = vld [vmem:[%s3525_s1 + $0x94] ss:$8 sps:$4 sm:$0xff]   ;;  %v2329_v38 = vld [vmem:[%s3525_s1 + $0x90] ss:$8 sps:$4 sm:$0xff]   ;;  %v2331_v40 = vld [vmem:[%s3525_s1 + $0xa4] ss:$8 sps:$4 sm:$0xff]  }
   0xe   :  { %v2327_v37 = vld [vmem:[%s3525_s1 + $0x494] ss:$8 sps:$4 sm:$0xff]   ;;  %v2330_v39 = vld [vmem:[%s3525_s1 + $0x490] ss:$8 sps:$4 sm:$0xff]   ;;  %v2333_v41 = vld [vmem:[%s3525_s1 + $0x4a4] ss:$8 sps:$4 sm:$0xff]  }
   0xf   :  { %1633 = vmatpush1.bf16.msra.mxu1 %v2293_v14  ;;  %v2335_v42 = vld [vmem:[%s3525_s1 + $0xa0] ss:$8 sps:$4 sm:$0xff]   ;;  %v2337_v44 = vld [vmem:[%s3525_s1 + $0xb4] ss:$8 sps:$4 sm:$0xff]   ;;  %v2341_v47 = vld [vmem:[%s3525_s1 + $0xb0] ss:$8 sps:$4 sm:$0xff]  }
  0x10   :  { %1797 = vmatpush1.bf16.msra.mxu0 %v2294_v15  ;;  %1634 = vmatprep.subr.bf16.mxu1 %v2295_v16  ;;  %v2336_v43 = vld [vmem:[%s3525_s1 + $0x4a0] ss:$8 sps:$4 sm:$0xff]   ;;  %v2339_v45 = vld [vmem:[%s3525_s1 + $0x4b4] ss:$8 sps:$4 sm:$0xff]   ;;  %v2342_v49 = vld [vmem:[%s3525_s1 + $0x4b0] ss:$8 sps:$4 sm:$0xff]  }
  0x11   :  { %1798 = vmatprep.subr.bf16.mxu0 %v2297_v17  ;;  %v14_v46 = vld [vmem:[%s3526_s0] sm:$0xff]  ;;  %v2349_v56 = vld [vmem:[%s3525_s1 + $0xd4] ss:$8 sps:$4 sm:$0xff]   ;;  %v2353_v58 = vld [vmem:[%s3525_s1 + $0xd0] ss:$8 sps:$4 sm:$0xff]  }
  0x12   :  { %v1970_v48 = vcombine.high %v14_v46, %v14_v46  ;;  %v18_v50 = vld [vmem:[%s3526_s0 + $0x20] sm:$0xff]  ;;  %v2351_v57 = vld [vmem:[%s3525_s1 + $0x4d4] ss:$8 sps:$4 sm:$0xff]   ;;  %v2354_v59 = vld [vmem:[%s3525_s1 + $0x4d0] ss:$8 sps:$4 sm:$0xff]   ;;  %v1969_v6 = vcombine.low %v14_v46, %v14_v46 }
  0x13   :  { %1635 = vmatpush1.bf16.msra.mxu1 %v2299_v18  ;;  %v2343_v51 = vld [vmem:[%s3525_s1 + $0xc4] ss:$8 sps:$4 sm:$0xff]   ;;  %v1978_v53 = vcombine.high %v18_v50, %v18_v50  ;;  %v2347_v54 = vld [vmem:[%s3525_s1 + $0xc0] ss:$8 sps:$4 sm:$0xff]   ;;  %v2361_v0 = vld [vmem:[%s3525_s1 + $0xf4] ss:$8 sps:$4 sm:$0xff]   ;;  %v1977_v7 = vcombine.low %v18_v50, %v18_v50 }
  0x14   :  { %1799 = vmatpush1.bf16.msra.mxu0 %v2300_v19  ;;  %1636 = vmatprep.subr.bf16.mxu1 %v2301_v20  ;;  %v2345_v52 = vld [vmem:[%s3525_s1 + $0x4c4] ss:$8 sps:$4 sm:$0xff]   ;;  %v2348_v55 = vld [vmem:[%s3525_s1 + $0x4c0] ss:$8 sps:$4 sm:$0xff]   ;;  %v2363_v1 = vld [vmem:[%s3525_s1 + $0x4f4] ss:$8 sps:$4 sm:$0xff]  }
  0x15   :  { %1800 = vmatprep.subr.bf16.mxu0 %v2303_v21  ;;  %1658 = vmatprep.mubr.bf16.mxu1 %v1970_v48  ;;  %v2355_v60 = vld [vmem:[%s3525_s1 + $0xe4] ss:$8 sps:$4 sm:$0xff]   ;;  %v2359_v62 = vld [vmem:[%s3525_s1 + $0xe0] ss:$8 sps:$4 sm:$0xff]   ;;  %v2365_v2 = vld [vmem:[%s3525_s1 + $0xf0] ss:$8 sps:$4 sm:$0xff]  }
  0x16   :  { %1822 = vmatprep.mubr.bf16.mxu0 %v1978_v53  ;;  %v2357_v61 = vld [vmem:[%s3525_s1 + $0x4e4] ss:$8 sps:$4 sm:$0xff]   ;;  %v2360_v63 = vld [vmem:[%s3525_s1 + $0x4e0] ss:$8 sps:$4 sm:$0xff]   ;;  %v2366_v3 = vld [vmem:[%s3525_s1 + $0x4f0] ss:$8 sps:$4 sm:$0xff]  }
  0x17   :  { %1637 = vmatpush1.bf16.msra.mxu1 %v2305_v22  ;;  %v2371_v4 = vld [vmem:[%s3525_s1 + $0x104] ss:$8 sps:$4 sm:$0xff]   ;;  %v2369_v8 = vld [vmem:[%s3525_s1 + $0x100] ss:$8 sps:$4 sm:$0xff]   ;;  %v2379_v10 = vld [vmem:[%s3525_s1 + $0x114] ss:$8 sps:$4 sm:$0xff]  }
  0x18   :  { %1801 = vmatpush1.bf16.msra.mxu0 %v2306_v23  ;;  %1638 = vmatprep.subr.bf16.mxu1 %v2307_v24  ;;  %v2376_v5 = vld [vmem:[%s3525_s1 + $0x504] ss:$8 sps:$4 sm:$0xff]   ;;  %v2374_v9 = vld [vmem:[%s3525_s1 + $0x500] ss:$8 sps:$4 sm:$0xff]   ;;  %v2382_v11 = vld [vmem:[%s3525_s1 + $0x514] ss:$8 sps:$4 sm:$0xff]  }
  0x19   :  { %1802 = vmatprep.subr.bf16.mxu0 %v2309_v25  ;;  %v2377_v12 = vld [vmem:[%s3525_s1 + $0x110] ss:$8 sps:$4 sm:$0xff]   ;;  %v2385_v14 = vld [vmem:[%s3525_s1 + $0x124] ss:$8 sps:$4 sm:$0xff]   ;;  %v2383_v16 = vld [vmem:[%s3525_s1 + $0x120] ss:$8 sps:$4 sm:$0xff]  }
  0x1a   :  { %v2380_v13 = vld [vmem:[%s3525_s1 + $0x510] ss:$8 sps:$4 sm:$0xff]   ;;  %v2388_v15 = vld [vmem:[%s3525_s1 + $0x524] ss:$8 sps:$4 sm:$0xff]   ;;  %v2386_v17 = vld [vmem:[%s3525_s1 + $0x520] ss:$8 sps:$4 sm:$0xff]  }
  0x1b   :  { %1639 = vmatpush1.bf16.msra.mxu1 %v2311_v26  ;;  %v2391_v18 = vld [vmem:[%s3525_s1 + $0x134] ss:$8 sps:$4 sm:$0xff]   ;;  %v2389_v20 = vld [vmem:[%s3525_s1 + $0x130] ss:$8 sps:$4 sm:$0xff]   ;;  %v2397_v22 = vld [vmem:[%s3525_s1 + $0x144] ss:$8 sps:$4 sm:$0xff]  }
  0x1c   :  { %1803 = vmatpush1.bf16.msra.mxu0 %v2312_v27  ;;  %1640 = vmatprep.subr.bf16.mxu1 %v2313_v28  ;;  %v2394_v19 = vld [vmem:[%s3525_s1 + $0x534] ss:$8 sps:$4 sm:$0xff]   ;;  %v2392_v21 = vld [vmem:[%s3525_s1 + $0x530] ss:$8 sps:$4 sm:$0xff]   ;;  %v2400_v23 = vld [vmem:[%s3525_s1 + $0x544] ss:$8 sps:$4 sm:$0xff]  }
  0x1d   :  { %1804 = vmatprep.subr.bf16.mxu0 %v2315_v29  ;;  %v2395_v24 = vld [vmem:[%s3525_s1 + $0x140] ss:$8 sps:$4 sm:$0xff]   ;;  %v2403_v26 = vld [vmem:[%s3525_s1 + $0x154] ss:$8 sps:$4 sm:$0xff]   ;;  %v2401_v28 = vld [vmem:[%s3525_s1 + $0x150] ss:$8 sps:$4 sm:$0xff]  }
  0x1e   :  { %v2398_v25 = vld [vmem:[%s3525_s1 + $0x540] ss:$8 sps:$4 sm:$0xff]   ;;  %v2406_v27 = vld [vmem:[%s3525_s1 + $0x554] ss:$8 sps:$4 sm:$0xff]   ;;  %v2404_v29 = vld [vmem:[%s3525_s1 + $0x550] ss:$8 sps:$4 sm:$0xff]  }
  0x1f   :  { %1641 = vmatpush1.bf16.msra.mxu1 %v2317_v30  ;;  %v2409_v30 = vld [vmem:[%s3525_s1 + $0x164] ss:$8 sps:$4 sm:$0xff]   ;;  %v2427_v46 = vld [vmem:[%s3525_s1 + $0x194] ss:$8 sps:$4 sm:$0xff]   ;;  %v2425_v48 = vld [vmem:[%s3525_s1 + $0x190] ss:$8 sps:$4 sm:$0xff]  }
  0x20   :  { %1805 = vmatpush1.bf16.msra.mxu0 %v2318_v31  ;;  %1642 = vmatprep.subr.bf16.mxu1 %v2319_v32  ;;  %v2412_v31 = vld [vmem:[%s3525_s1 + $0x564] ss:$8 sps:$4 sm:$0xff]   ;;  %v2434_v53 = vld [vmem:[%s3525_s1 + $0x5a0] ss:$8 sps:$4 sm:$0xff]  }
  0x21   :  { %1806 = vmatprep.subr.bf16.mxu0 %v2321_v33  ;;  %v2970_v32 = vld [vmem:[%s3526_s0 + $0x8] sm:$0xff] }
  0x22   :  { %v2407_v33 = vld [vmem:[%s3525_s1 + $0x160] ss:$8 sps:$4 sm:$0xff]   ;;  %v2433_v50 = vld [vmem:[%s3525_s1 + $0x1a4] ss:$8 sps:$4 sm:$0xff]  }
  0x23   :  { %1643 = vmatpush1.bf16.msra.mxu1 %v2323_v34  ;;  %v2410_v34 = vld [vmem:[%s3525_s1 + $0x560] ss:$8 sps:$4 sm:$0xff]  }
  0x24   :  { %1807 = vmatpush1.bf16.msra.mxu0 %v2324_v35  ;;  %1644 = vmatprep.subr.bf16.mxu1 %v2325_v36  ;;  %v1972_v35 = vcombine.high %v2970_v32, %v2970_v32  ;;  %v2983_v36 = vld [vmem:[%s3526_s0 + $0x28] sm:$0xff] }
  0x25   :  { %1808 = vmatprep.subr.bf16.mxu0 %v2327_v37  ;;  %v2415_v37 = vld [vmem:[%s3525_s1 + $0x174] ss:$8 sps:$4 sm:$0xff]  }
  0x27   :  { %1645 = vmatpush1.bf16.msra.mxu1 %v2329_v38  ;;  %v1980_v38 = vcombine.high %v2983_v36, %v2983_v36 }
  0x28   :  { %1809 = vmatpush1.bf16.msra.mxu0 %v2330_v39  ;;  %1646 = vmatprep.subr.bf16.mxu1 %v2331_v40  ;;  %v2418_v39 = vld [vmem:[%s3525_s1 + $0x574] ss:$8 sps:$4 sm:$0xff]   ;;  %v2413_v40 = vld [vmem:[%s3525_s1 + $0x170] ss:$8 sps:$4 sm:$0xff]  }
  0x29   :  { %1810 = vmatprep.subr.bf16.mxu0 %v2333_v41  ;;  %v2416_v41 = vld [vmem:[%s3525_s1 + $0x570] ss:$8 sps:$4 sm:$0xff]  }
  0x2b   :  { %1647 = vmatpush1.bf16.msra.mxu1 %v2335_v42  ;;  %v2421_v42 = vld [vmem:[%s3525_s1 + $0x184] ss:$8 sps:$4 sm:$0xff]  }
  0x2c   :  { %1811 = vmatpush1.bf16.msra.mxu0 %v2336_v43  ;;  %1648 = vmatprep.subr.bf16.mxu1 %v2337_v44  ;;  %v2424_v43 = vld [vmem:[%s3525_s1 + $0x584] ss:$8 sps:$4 sm:$0xff]   ;;  %v2419_v44 = vld [vmem:[%s3525_s1 + $0x180] ss:$8 sps:$4 sm:$0xff]  }
  0x2d   :  { %1812 = vmatprep.subr.bf16.mxu0 %v2339_v45  ;;  %v2422_v45 = vld [vmem:[%s3525_s1 + $0x580] ss:$8 sps:$4 sm:$0xff]  }
  0x2f   :  { %1649 = vmatpush1.bf16.msra.mxu1 %v2341_v47  ;;  %v2430_v47 = vld [vmem:[%s3525_s1 + $0x594] ss:$8 sps:$4 sm:$0xff]  }
  0x30   :  { %1813 = vmatpush1.bf16.msra.mxu0 %v2342_v49  ;;  %1650 = vmatprep.subr.bf16.mxu1 %v2343_v51  ;;  %v2428_v49 = vld [vmem:[%s3525_s1 + $0x590] ss:$8 sps:$4 sm:$0xff]   ;;  %v2436_v51 = vld [vmem:[%s3525_s1 + $0x5a4] ss:$8 sps:$4 sm:$0xff]  }
  0x31   :  { %1814 = vmatprep.subr.bf16.mxu0 %v2345_v52  ;;  %v2431_v52 = vld [vmem:[%s3525_s1 + $0x1a0] ss:$8 sps:$4 sm:$0xff]  }
  0x33   :  { %1651 = vmatpush1.bf16.msra.mxu1 %v2347_v54  ;;  %v2439_v54 = vld [vmem:[%s3525_s1 + $0x1b4] ss:$8 sps:$4 sm:$0xff]  }
  0x34   :  { %1815 = vmatpush1.bf16.msra.mxu0 %v2348_v55  ;;  %1652 = vmatprep.subr.bf16.mxu1 %v2349_v56  ;;  %v2442_v55 = vld [vmem:[%s3525_s1 + $0x5b4] ss:$8 sps:$4 sm:$0xff]   ;;  %v2437_v56 = vld [vmem:[%s3525_s1 + $0x1b0] ss:$8 sps:$4 sm:$0xff]  }
  0x35   :  { %1816 = vmatprep.subr.bf16.mxu0 %v2351_v57  ;;  %v2440_v57 = vld [vmem:[%s3525_s1 + $0x5b0] ss:$8 sps:$4 sm:$0xff]  }
  0x37   :  { %1653 = vmatpush1.bf16.msra.mxu1 %v2353_v58  ;;  %v2445_v58 = vld [vmem:[%s3525_s1 + $0x1c4] ss:$8 sps:$4 sm:$0xff]  }
  0x38   :  { %1817 = vmatpush1.bf16.msra.mxu0 %v2354_v59  ;;  %1654 = vmatprep.subr.bf16.mxu1 %v2355_v60  ;;  %v2448_v59 = vld [vmem:[%s3525_s1 + $0x5c4] ss:$8 sps:$4 sm:$0xff]   ;;  %v2443_v60 = vld [vmem:[%s3525_s1 + $0x1c0] ss:$8 sps:$4 sm:$0xff]  }
  0x39   :  { %1818 = vmatprep.subr.bf16.mxu0 %v2357_v61  ;;  %v2446_v61 = vld [vmem:[%s3525_s1 + $0x5c0] ss:$8 sps:$4 sm:$0xff]  }
  0x3b   :  { %1655 = vmatpush1.bf16.msra.mxu1 %v2359_v62  ;;  %v2451_v62 = vld [vmem:[%s3525_s1 + $0x1d4] ss:$8 sps:$4 sm:$0xff]  }
  0x3c   :  { %1819 = vmatpush1.bf16.msra.mxu0 %v2360_v63  ;;  %1656 = vmatprep.subr.bf16.mxu1 %v2361_v0  ;;  %v2454_v63 = vld [vmem:[%s3525_s1 + $0x5d4] ss:$8 sps:$4 sm:$0xff]   ;;  %v2449_v0 = vld [vmem:[%s3525_s1 + $0x1d0] ss:$8 sps:$4 sm:$0xff]  }
  0x3d   :  { %1820 = vmatprep.subr.bf16.mxu0 %v2363_v1  ;;  %v2452_v1 = vld [vmem:[%s3525_s1 + $0x5d0] ss:$8 sps:$4 sm:$0xff]  }
  0x3f   :  { %1657 = vmatpush1.bf16.msra.mxu1 %v2365_v2  ;;  %v2457_v2 = vld [vmem:[%s3525_s1 + $0x1e4] ss:$8 sps:$4 sm:$0xff]  }
  0x40   :  { %1821 = vmatpush1.bf16.msra.mxu0 %v2366_v3  ;;  %1667 = vmatprep.subr.bf16.mxu1 %v2371_v4  ;;  %v2460_v3 = vld [vmem:[%s3525_s1 + $0x5e4] ss:$8 sps:$4 sm:$0xff]   ;;  %v2455_v4 = vld [vmem:[%s3525_s1 + $0x1e0] ss:$8 sps:$4 sm:$0xff]  }
  0x41   :  { %1831 = vmatprep.subr.bf16.mxu0 %v2376_v5  ;;  %v2458_v5 = vld [vmem:[%s3525_s1 + $0x5e0] ss:$8 sps:$4 sm:$0xff]  }
  0x42   :  { %1659 = vmatmul.mubr.bf16.vlgmr.msra.gmra.mrb[0].mxu1 %v1969_v6  ;;  %v2463_v6 = vld [vmem:[%s3525_s1 + $0x1f4] ss:$8 sps:$4 sm:$0xff]  }
  0x43   :  { %1823 = vmatmul.mubr.bf16.vlgmr.msra.gmra.mrb[0].mxu0 %v1977_v7  ;;  %1668 = vmatpush1.bf16.msra.mxu1 %v2369_v8  ;;  %v2466_v7 = vld [vmem:[%s3525_s1 + $0x5f4] ss:$8 sps:$4 sm:$0xff]   ;;  %v2461_v8 = vld [vmem:[%s3525_s1 + $0x1f0] ss:$8 sps:$4 sm:$0xff]  }
  0x44   :  { %1832 = vmatpush1.bf16.msra.mxu0 %v2374_v9  ;;  %1669 = vmatprep.subr.bf16.mxu1 %v2379_v10  ;;  %v2464_v9 = vld [vmem:[%s3525_s1 + $0x5f0] ss:$8 sps:$4 sm:$0xff]   ;;  %v2471_v10 = vld [vmem:[%s3525_s1 + $0x204] ss:$8 sps:$4 sm:$0xff]  }
  0x45   :  { %1833 = vmatprep.subr.bf16.mxu0 %v2382_v11  ;;  %1699 = vmatprep.mubr.bf16.mxu1 %v1972_v35  ;;  %v2476_v11 = vld [vmem:[%s3525_s1 + $0x604] ss:$8 sps:$4 sm:$0xff]   ;;  %v2498_v35 = vld [vmem:[%s3525_s1 + $0x640] ss:$8 sps:$4 sm:$0xff]  }
  0x46   :  { %1863 = vmatprep.mubr.bf16.mxu0 %v1980_v38  ;;  %v2501_v38 = vld [vmem:[%s3525_s1 + $0x250] ss:$8 sps:$4 sm:$0xff]  }
  0x47   :  { %1670 = vmatpush1.bf16.msra.mxu1 %v2377_v12  ;;  %v1971_v12 = vcombine.low %v2970_v32, %v2970_v32  ;;  %v2497_v32 = vld [vmem:[%s3525_s1 + $0x244] ss:$8 sps:$4 sm:$0xff]  }
  0x48   :  { %1834 = vmatpush1.bf16.msra.mxu0 %v2380_v13  ;;  %1671 = vmatprep.subr.bf16.mxu1 %v2385_v14  ;;  %v2469_v13 = vld [vmem:[%s3525_s1 + $0x200] ss:$8 sps:$4 sm:$0xff]   ;;  %v1979_v14 = vcombine.low %v2983_v36, %v2983_v36  ;;  %v2503_v36 = vld [vmem:[%s3525_s1 + $0x254] ss:$8 sps:$4 sm:$0xff]  }
  0x49   :  { %1835 = vmatprep.subr.bf16.mxu0 %v2388_v15  ;;  %v2474_v15 = vld [vmem:[%s3525_s1 + $0x600] ss:$8 sps:$4 sm:$0xff]  }
  0x4b   :  { %1672 = vmatpush1.bf16.msra.mxu1 %v2383_v16  ;;  %v2479_v16 = vld [vmem:[%s3525_s1 + $0x214] ss:$8 sps:$4 sm:$0xff]  }
  0x4c   :  { %1836 = vmatpush1.bf16.msra.mxu0 %v2386_v17  ;;  %1673 = vmatprep.subr.bf16.mxu1 %v2391_v18  ;;  %v2482_v17 = vld [vmem:[%s3525_s1 + $0x614] ss:$8 sps:$4 sm:$0xff]  }
  0x4d   :  { %1837 = vmatprep.subr.bf16.mxu0 %v2394_v19  ;;  %v3120_v18 = vld [vmem:[%s3526_s0 + $0x10] sm:$0xff] }
  0x4e   :  { %v1974_v19 = vcombine.high %v3120_v18, %v3120_v18 }
  0x4f   :  { %1674 = vmatpush1.bf16.msra.mxu1 %v2389_v20  ;;  %v3127_v20 = vld [vmem:[%s3526_s0 + $0x30] sm:$0xff] }
  0x50   :  { %1838 = vmatpush1.bf16.msra.mxu0 %v2392_v21  ;;  %1675 = vmatprep.subr.bf16.mxu1 %v2397_v22  ;;  %v2477_v21 = vld [vmem:[%s3525_s1 + $0x210] ss:$8 sps:$4 sm:$0xff]  }
  0x51   :  { %1839 = vmatprep.subr.bf16.mxu0 %v2400_v23  ;;  %v2480_v22 = vld [vmem:[%s3525_s1 + $0x610] ss:$8 sps:$4 sm:$0xff]   ;;  %v1982_v23 = vcombine.high %v3127_v20, %v3127_v20 }
  0x53   :  { %1676 = vmatpush1.bf16.msra.mxu1 %v2395_v24  ;;  %v2485_v24 = vld [vmem:[%s3525_s1 + $0x224] ss:$8 sps:$4 sm:$0xff]  }
  0x54   :  { %1840 = vmatpush1.bf16.msra.mxu0 %v2398_v25  ;;  %1677 = vmatprep.subr.bf16.mxu1 %v2403_v26  ;;  %v2488_v25 = vld [vmem:[%s3525_s1 + $0x624] ss:$8 sps:$4 sm:$0xff]   ;;  %v2483_v26 = vld [vmem:[%s3525_s1 + $0x220] ss:$8 sps:$4 sm:$0xff]  }
  0x55   :  { %1841 = vmatprep.subr.bf16.mxu0 %v2406_v27  ;;  %v2486_v27 = vld [vmem:[%s3525_s1 + $0x620] ss:$8 sps:$4 sm:$0xff]  }
  0x57   :  { %1678 = vmatpush1.bf16.msra.mxu1 %v2401_v28  ;;  %v2491_v28 = vld [vmem:[%s3525_s1 + $0x234] ss:$8 sps:$4 sm:$0xff]  }
  0x58   :  { %1842 = vmatpush1.bf16.msra.mxu0 %v2404_v29  ;;  %1679 = vmatprep.subr.bf16.mxu1 %v2409_v30  ;;  %v2494_v29 = vld [vmem:[%s3525_s1 + $0x634] ss:$8 sps:$4 sm:$0xff]   ;;  %v2489_v30 = vld [vmem:[%s3525_s1 + $0x230] ss:$8 sps:$4 sm:$0xff]  }
  0x59   :  { %1843 = vmatprep.subr.bf16.mxu0 %v2412_v31  ;;  %v2492_v31 = vld [vmem:[%s3525_s1 + $0x630] ss:$8 sps:$4 sm:$0xff]  }
  0x5b   :  { %1680 = vmatpush1.bf16.msra.mxu1 %v2407_v33  ;;  %v2500_v33 = vld [vmem:[%s3525_s1 + $0x644] ss:$8 sps:$4 sm:$0xff]  }
  0x5c   :  { %1844 = vmatpush1.bf16.msra.mxu0 %v2410_v34  ;;  %1681 = vmatprep.subr.bf16.mxu1 %v2415_v37  ;;  %v2495_v34 = vld [vmem:[%s3525_s1 + $0x240] ss:$8 sps:$4 sm:$0xff]   ;;  %v2506_v37 = vld [vmem:[%s3525_s1 + $0x654] ss:$8 sps:$4 sm:$0xff]  }
  0x5d   :  { %1845 = vmatprep.subr.bf16.mxu0 %v2418_v39  ;;  %v2504_v39 = vld [vmem:[%s3525_s1 + $0x650] ss:$8 sps:$4 sm:$0xff]  }
  0x5f   :  { %1682 = vmatpush1.bf16.msra.mxu1 %v2413_v40  ;;  %v2509_v40 = vld [vmem:[%s3525_s1 + $0x264] ss:$8 sps:$4 sm:$0xff]  }
  0x60   :  { %1846 = vmatpush1.bf16.msra.mxu0 %v2416_v41  ;;  %1683 = vmatprep.subr.bf16.mxu1 %v2421_v42  ;;  %v2512_v41 = vld [vmem:[%s3525_s1 + $0x664] ss:$8 sps:$4 sm:$0xff]   ;;  %v2507_v42 = vld [vmem:[%s3525_s1 + $0x260] ss:$8 sps:$4 sm:$0xff]  }
  0x61   :  { %1847 = vmatprep.subr.bf16.mxu0 %v2424_v43  ;;  %v2510_v43 = vld [vmem:[%s3525_s1 + $0x660] ss:$8 sps:$4 sm:$0xff]  }
  0x63   :  { %1684 = vmatpush1.bf16.msra.mxu1 %v2419_v44  ;;  %v2515_v44 = vld [vmem:[%s3525_s1 + $0x274] ss:$8 sps:$4 sm:$0xff]  }
  0x64   :  { %1848 = vmatpush1.bf16.msra.mxu0 %v2422_v45  ;;  %1685 = vmatprep.subr.bf16.mxu1 %v2427_v46  ;;  %v2518_v45 = vld [vmem:[%s3525_s1 + $0x674] ss:$8 sps:$4 sm:$0xff]   ;;  %v2513_v46 = vld [vmem:[%s3525_s1 + $0x270] ss:$8 sps:$4 sm:$0xff]  }
  0x65   :  { %1849 = vmatprep.subr.bf16.mxu0 %v2430_v47  ;;  %v2516_v47 = vld [vmem:[%s3525_s1 + $0x670] ss:$8 sps:$4 sm:$0xff]  }
  0x67   :  { %1686 = vmatpush1.bf16.msra.mxu1 %v2425_v48  ;;  %v2521_v48 = vld [vmem:[%s3525_s1 + $0x284] ss:$8 sps:$4 sm:$0xff]  }
  0x68   :  { %1850 = vmatpush1.bf16.msra.mxu0 %v2428_v49  ;;  %1687 = vmatprep.subr.bf16.mxu1 %v2433_v50  ;;  %v2524_v49 = vld [vmem:[%s3525_s1 + $0x684] ss:$8 sps:$4 sm:$0xff]   ;;  %v2519_v50 = vld [vmem:[%s3525_s1 + $0x280] ss:$8 sps:$4 sm:$0xff]  }
  0x69   :  { %1851 = vmatprep.subr.bf16.mxu0 %v2436_v51  ;;  %v2522_v51 = vld [vmem:[%s3525_s1 + $0x680] ss:$8 sps:$4 sm:$0xff]  }
  0x6b   :  { %1688 = vmatpush1.bf16.msra.mxu1 %v2431_v52  ;;  %v2527_v52 = vld [vmem:[%s3525_s1 + $0x294] ss:$8 sps:$4 sm:$0xff]  }
  0x6c   :  { %1852 = vmatpush1.bf16.msra.mxu0 %v2434_v53  ;;  %1689 = vmatprep.subr.bf16.mxu1 %v2439_v54  ;;  %v2530_v53 = vld [vmem:[%s3525_s1 + $0x694] ss:$8 sps:$4 sm:$0xff]   ;;  %v2525_v54 = vld [vmem:[%s3525_s1 + $0x290] ss:$8 sps:$4 sm:$0xff]  }
  0x6d   :  { %1853 = vmatprep.subr.bf16.mxu0 %v2442_v55  ;;  %v2528_v55 = vld [vmem:[%s3525_s1 + $0x690] ss:$8 sps:$4 sm:$0xff]  }
  0x6f   :  { %1690 = vmatpush1.bf16.msra.mxu1 %v2437_v56  ;;  %v2533_v56 = vld [vmem:[%s3525_s1 + $0x2a4] ss:$8 sps:$4 sm:$0xff]  }
  0x70   :  { %1854 = vmatpush1.bf16.msra.mxu0 %v2440_v57  ;;  %1691 = vmatprep.subr.bf16.mxu1 %v2445_v58  ;;  %v2536_v57 = vld [vmem:[%s3525_s1 + $0x6a4] ss:$8 sps:$4 sm:$0xff]   ;;  %v2531_v58 = vld [vmem:[%s3525_s1 + $0x2a0] ss:$8 sps:$4 sm:$0xff]  }
  0x71   :  { %1855 = vmatprep.subr.bf16.mxu0 %v2448_v59  ;;  %v2534_v59 = vld [vmem:[%s3525_s1 + $0x6a0] ss:$8 sps:$4 sm:$0xff]  }
  0x73   :  { %1692 = vmatpush1.bf16.msra.mxu1 %v2443_v60  ;;  %v2539_v60 = vld [vmem:[%s3525_s1 + $0x2b4] ss:$8 sps:$4 sm:$0xff]  }
  0x74   :  { %1856 = vmatpush1.bf16.msra.mxu0 %v2446_v61  ;;  %1693 = vmatprep.subr.bf16.mxu1 %v2451_v62  ;;  %v2542_v61 = vld [vmem:[%s3525_s1 + $0x6b4] ss:$8 sps:$4 sm:$0xff]   ;;  %v2537_v62 = vld [vmem:[%s3525_s1 + $0x2b0] ss:$8 sps:$4 sm:$0xff]  }
  0x75   :  { %1857 = vmatprep.subr.bf16.mxu0 %v2454_v63  ;;  %v2540_v63 = vld [vmem:[%s3525_s1 + $0x6b0] ss:$8 sps:$4 sm:$0xff]  }
  0x77   :  { %1694 = vmatpush1.bf16.msra.mxu1 %v2449_v0  ;;  %v2545_v0 = vld [vmem:[%s3525_s1 + $0x2c4] ss:$8 sps:$4 sm:$0xff]  }
  0x78   :  { %1858 = vmatpush1.bf16.msra.mxu0 %v2452_v1  ;;  %1695 = vmatprep.subr.bf16.mxu1 %v2457_v2  ;;  %v2548_v1 = vld [vmem:[%s3525_s1 + $0x6c4] ss:$8 sps:$4 sm:$0xff]   ;;  %v2543_v2 = vld [vmem:[%s3525_s1 + $0x2c0] ss:$8 sps:$4 sm:$0xff]  }
  0x79   :  { %1859 = vmatprep.subr.bf16.mxu0 %v2460_v3  ;;  %v2546_v3 = vld [vmem:[%s3525_s1 + $0x6c0] ss:$8 sps:$4 sm:$0xff]  }
  0x7b   :  { %1696 = vmatpush1.bf16.msra.mxu1 %v2455_v4  ;;  %v2551_v4 = vld [vmem:[%s3525_s1 + $0x2d4] ss:$8 sps:$4 sm:$0xff]  }
  0x7c   :  { %1860 = vmatpush1.bf16.msra.mxu0 %v2458_v5  ;;  %1697 = vmatprep.subr.bf16.mxu1 %v2463_v6  ;;  %v2554_v5 = vld [vmem:[%s3525_s1 + $0x6d4] ss:$8 sps:$4 sm:$0xff]   ;;  %v2549_v6 = vld [vmem:[%s3525_s1 + $0x2d0] ss:$8 sps:$4 sm:$0xff]  }
  0x7d   :  { %1861 = vmatprep.subr.bf16.mxu0 %v2466_v7  ;;  %v2552_v7 = vld [vmem:[%s3525_s1 + $0x6d0] ss:$8 sps:$4 sm:$0xff]  }
  0x7f   :  { %1698 = vmatpush1.bf16.msra.mxu1 %v2461_v8  ;;  %v2557_v8 = vld [vmem:[%s3525_s1 + $0x2e4] ss:$8 sps:$4 sm:$0xff]  }
  0x80   :  { %1862 = vmatpush1.bf16.msra.mxu0 %v2464_v9  ;;  %1708 = vmatprep.subr.bf16.mxu1 %v2471_v10  ;;  %v2560_v9 = vld [vmem:[%s3525_s1 + $0x6e4] ss:$8 sps:$4 sm:$0xff]   ;;  %v2555_v10 = vld [vmem:[%s3525_s1 + $0x2e0] ss:$8 sps:$4 sm:$0xff]  }
  0x81   :  { %1872 = vmatprep.subr.bf16.mxu0 %v2476_v11  ;;  %v2558_v11 = vld [vmem:[%s3525_s1 + $0x6e0] ss:$8 sps:$4 sm:$0xff]  }
  0x82   :  { %1700 = vmatmul.mubr.bf16.vlgmr.msra.gmra.mrb[0].mxu1 %v1971_v12  ;;  %v2563_v12 = vld [vmem:[%s3525_s1 + $0x2f4] ss:$8 sps:$4 sm:$0xff]  }
  0x83   :  { %1864 = vmatmul.mubr.bf16.vlgmr.msra.gmra.mrb[0].mxu0 %v1979_v14  ;;  %1709 = vmatpush1.bf16.msra.mxu1 %v2469_v13  ;;  %v2566_v13 = vld [vmem:[%s3525_s1 + $0x6f4] ss:$8 sps:$4 sm:$0xff]   ;;  %v2561_v14 = vld [vmem:[%s3525_s1 + $0x2f0] ss:$8 sps:$4 sm:$0xff]  }
  0x84   :  { %1873 = vmatpush1.bf16.msra.mxu0 %v2474_v15  ;;  %1710 = vmatprep.subr.bf16.mxu1 %v2479_v16  ;;  %v2564_v15 = vld [vmem:[%s3525_s1 + $0x6f0] ss:$8 sps:$4 sm:$0xff]   ;;  %v2571_v16 = vld [vmem:[%s3525_s1 + $0x304] ss:$8 sps:$4 sm:$0xff]  }
  0x85   :  { %1874 = vmatprep.subr.bf16.mxu0 %v2482_v17  ;;  %1740 = vmatprep.mubr.bf16.mxu1 %v1974_v19  ;;  %v2576_v17 = vld [vmem:[%s3525_s1 + $0x704] ss:$8 sps:$4 sm:$0xff]   ;;  %v1973_v19 = vcombine.low %v3120_v18, %v3120_v18  ;;  %v2574_v18 = vld [vmem:[%s3525_s1 + $0x700] ss:$8 sps:$4 sm:$0xff]  }
  0x86   :  { %1904 = vmatprep.mubr.bf16.mxu0 %v1982_v23  ;;  %v3323_v23 = vld [vmem:[%s3526_s0 + $0x38] sm:$0xff] }
  0x87   :  { %1711 = vmatpush1.bf16.msra.mxu1 %v2477_v21  ;;  %v1981_v21 = vcombine.low %v3127_v20, %v3127_v20  ;;  %v2579_v20 = vld [vmem:[%s3525_s1 + $0x314] ss:$8 sps:$4 sm:$0xff]  }
  0x88   :  { %1875 = vmatpush1.bf16.msra.mxu0 %v2480_v22  ;;  %1712 = vmatprep.subr.bf16.mxu1 %v2485_v24  ;;  %v3318_v22 = vld [vmem:[%s3526_s0 + $0x18] sm:$0xff]  ;;  %v2569_v24 = vld [vmem:[%s3525_s1 + $0x300] ss:$8 sps:$4 sm:$0xff]  }
  0x89   :  { %1876 = vmatprep.subr.bf16.mxu0 %v2488_v25  ;;  %v2582_v25 = vld [vmem:[%s3525_s1 + $0x714] ss:$8 sps:$4 sm:$0xff]  }
  0x8b   :  { %1713 = vmatpush1.bf16.msra.mxu1 %v2483_v26  ;;  %v1976_v26 = vcombine.high %v3318_v22, %v3318_v22 }
  0x8c   :  { %1877 = vmatpush1.bf16.msra.mxu0 %v2486_v27  ;;  %1714 = vmatprep.subr.bf16.mxu1 %v2491_v28  ;;  %v1984_v27 = vcombine.high %v3323_v23, %v3323_v23  ;;  %v2577_v28 = vld [vmem:[%s3525_s1 + $0x310] ss:$8 sps:$4 sm:$0xff]  }
  0x8d   :  { %1878 = vmatprep.subr.bf16.mxu0 %v2494_v29  ;;  %v2580_v29 = vld [vmem:[%s3525_s1 + $0x710] ss:$8 sps:$4 sm:$0xff]  }
  0x8f   :  { %1715 = vmatpush1.bf16.msra.mxu1 %v2489_v30  ;;  %v2585_v30 = vld [vmem:[%s3525_s1 + $0x324] ss:$8 sps:$4 sm:$0xff]  }
  0x90   :  { %1879 = vmatpush1.bf16.msra.mxu0 %v2492_v31  ;;  %1716 = vmatprep.subr.bf16.mxu1 %v2497_v32  ;;  %v2588_v31 = vld [vmem:[%s3525_s1 + $0x724] ss:$8 sps:$4 sm:$0xff]   ;;  %v2583_v32 = vld [vmem:[%s3525_s1 + $0x320] ss:$8 sps:$4 sm:$0xff]  }
  0x91   :  { %1880 = vmatprep.subr.bf16.mxu0 %v2500_v33  ;;  %v2586_v33 = vld [vmem:[%s3525_s1 + $0x720] ss:$8 sps:$4 sm:$0xff]  }
  0x93   :  { %1717 = vmatpush1.bf16.msra.mxu1 %v2495_v34  ;;  %v2591_v34 = vld [vmem:[%s3525_s1 + $0x334] ss:$8 sps:$4 sm:$0xff]  }
  0x94   :  { %1881 = vmatpush1.bf16.msra.mxu0 %v2498_v35  ;;  %1718 = vmatprep.subr.bf16.mxu1 %v2503_v36  ;;  %v2594_v35 = vld [vmem:[%s3525_s1 + $0x734] ss:$8 sps:$4 sm:$0xff]   ;;  %v2589_v36 = vld [vmem:[%s3525_s1 + $0x330] ss:$8 sps:$4 sm:$0xff]  }
  0x95   :  { %1882 = vmatprep.subr.bf16.mxu0 %v2506_v37  ;;  %v2592_v37 = vld [vmem:[%s3525_s1 + $0x730] ss:$8 sps:$4 sm:$0xff]  }
  0x97   :  { %1719 = vmatpush1.bf16.msra.mxu1 %v2501_v38  ;;  %v2597_v38 = vld [vmem:[%s3525_s1 + $0x344] ss:$8 sps:$4 sm:$0xff]  }
  0x98   :  { %1883 = vmatpush1.bf16.msra.mxu0 %v2504_v39  ;;  %1720 = vmatprep.subr.bf16.mxu1 %v2509_v40  ;;  %v2600_v39 = vld [vmem:[%s3525_s1 + $0x744] ss:$8 sps:$4 sm:$0xff]   ;;  %v2595_v40 = vld [vmem:[%s3525_s1 + $0x340] ss:$8 sps:$4 sm:$0xff]  }
  0x99   :  { %1884 = vmatprep.subr.bf16.mxu0 %v2512_v41  ;;  %v2598_v41 = vld [vmem:[%s3525_s1 + $0x740] ss:$8 sps:$4 sm:$0xff]  }
  0x9b   :  { %1721 = vmatpush1.bf16.msra.mxu1 %v2507_v42  ;;  %v2603_v42 = vld [vmem:[%s3525_s1 + $0x354] ss:$8 sps:$4 sm:$0xff]  }
  0x9c   :  { %1885 = vmatpush1.bf16.msra.mxu0 %v2510_v43  ;;  %1722 = vmatprep.subr.bf16.mxu1 %v2515_v44  ;;  %v2606_v43 = vld [vmem:[%s3525_s1 + $0x754] ss:$8 sps:$4 sm:$0xff]   ;;  %v2601_v44 = vld [vmem:[%s3525_s1 + $0x350] ss:$8 sps:$4 sm:$0xff]  }
  0x9d   :  { %1886 = vmatprep.subr.bf16.mxu0 %v2518_v45  ;;  %v2604_v45 = vld [vmem:[%s3525_s1 + $0x750] ss:$8 sps:$4 sm:$0xff]  }
  0x9f   :  { %1723 = vmatpush1.bf16.msra.mxu1 %v2513_v46  ;;  %v2609_v46 = vld [vmem:[%s3525_s1 + $0x364] ss:$8 sps:$4 sm:$0xff]  }
  0xa0   :  { %1887 = vmatpush1.bf16.msra.mxu0 %v2516_v47  ;;  %1724 = vmatprep.subr.bf16.mxu1 %v2521_v48  ;;  %v2612_v47 = vld [vmem:[%s3525_s1 + $0x764] ss:$8 sps:$4 sm:$0xff]   ;;  %v2607_v48 = vld [vmem:[%s3525_s1 + $0x360] ss:$8 sps:$4 sm:$0xff]  }
  0xa1   :  { %1888 = vmatprep.subr.bf16.mxu0 %v2524_v49  ;;  %v2610_v49 = vld [vmem:[%s3525_s1 + $0x760] ss:$8 sps:$4 sm:$0xff]  }
  0xa3   :  { %1725 = vmatpush1.bf16.msra.mxu1 %v2519_v50  ;;  %v2615_v50 = vld [vmem:[%s3525_s1 + $0x374] ss:$8 sps:$4 sm:$0xff]  }
  0xa4   :  { %1889 = vmatpush1.bf16.msra.mxu0 %v2522_v51  ;;  %1726 = vmatprep.subr.bf16.mxu1 %v2527_v52  ;;  %v2618_v51 = vld [vmem:[%s3525_s1 + $0x774] ss:$8 sps:$4 sm:$0xff]   ;;  %v2613_v52 = vld [vmem:[%s3525_s1 + $0x370] ss:$8 sps:$4 sm:$0xff]  }
  0xa5   :  { %1890 = vmatprep.subr.bf16.mxu0 %v2530_v53  ;;  %v2616_v53 = vld [vmem:[%s3525_s1 + $0x770] ss:$8 sps:$4 sm:$0xff]  }
  0xa7   :  { %1727 = vmatpush1.bf16.msra.mxu1 %v2525_v54  ;;  %v2621_v54 = vld [vmem:[%s3525_s1 + $0x384] ss:$8 sps:$4 sm:$0xff]  }
  0xa8   :  { %1891 = vmatpush1.bf16.msra.mxu0 %v2528_v55  ;;  %1728 = vmatprep.subr.bf16.mxu1 %v2533_v56  ;;  %v2624_v55 = vld [vmem:[%s3525_s1 + $0x784] ss:$8 sps:$4 sm:$0xff]   ;;  %v2619_v56 = vld [vmem:[%s3525_s1 + $0x380] ss:$8 sps:$4 sm:$0xff]  }
  0xa9   :  { %1892 = vmatprep.subr.bf16.mxu0 %v2536_v57  ;;  %v2622_v57 = vld [vmem:[%s3525_s1 + $0x780] ss:$8 sps:$4 sm:$0xff]  }
  0xab   :  { %1729 = vmatpush1.bf16.msra.mxu1 %v2531_v58  ;;  %v2627_v58 = vld [vmem:[%s3525_s1 + $0x394] ss:$8 sps:$4 sm:$0xff]  }
  0xac   :  { %1893 = vmatpush1.bf16.msra.mxu0 %v2534_v59  ;;  %1730 = vmatprep.subr.bf16.mxu1 %v2539_v60  ;;  %v2630_v59 = vld [vmem:[%s3525_s1 + $0x794] ss:$8 sps:$4 sm:$0xff]   ;;  %v2625_v60 = vld [vmem:[%s3525_s1 + $0x390] ss:$8 sps:$4 sm:$0xff]  }
  0xad   :  { %1894 = vmatprep.subr.bf16.mxu0 %v2542_v61  ;;  %v2628_v61 = vld [vmem:[%s3525_s1 + $0x790] ss:$8 sps:$4 sm:$0xff]  }
  0xaf   :  { %1731 = vmatpush1.bf16.msra.mxu1 %v2537_v62  ;;  %v2633_v62 = vld [vmem:[%s3525_s1 + $0x3a4] ss:$8 sps:$4 sm:$0xff]  }
  0xb0   :  { %1895 = vmatpush1.bf16.msra.mxu0 %v2540_v63  ;;  %1732 = vmatprep.subr.bf16.mxu1 %v2545_v0  ;;  %v2636_v63 = vld [vmem:[%s3525_s1 + $0x7a4] ss:$8 sps:$4 sm:$0xff]   ;;  %v2631_v0 = vld [vmem:[%s3525_s1 + $0x3a0] ss:$8 sps:$4 sm:$0xff]  }
  0xb1   :  { %1896 = vmatprep.subr.bf16.mxu0 %v2548_v1  ;;  %v2634_v1 = vld [vmem:[%s3525_s1 + $0x7a0] ss:$8 sps:$4 sm:$0xff]  }
  0xb3   :  { %1733 = vmatpush1.bf16.msra.mxu1 %v2543_v2  ;;  %v2639_v2 = vld [vmem:[%s3525_s1 + $0x3b4] ss:$8 sps:$4 sm:$0xff]  }
  0xb4   :  { %1897 = vmatpush1.bf16.msra.mxu0 %v2546_v3  ;;  %1734 = vmatprep.subr.bf16.mxu1 %v2551_v4  ;;  %v2642_v3 = vld [vmem:[%s3525_s1 + $0x7b4] ss:$8 sps:$4 sm:$0xff]   ;;  %v2637_v4 = vld [vmem:[%s3525_s1 + $0x3b0] ss:$8 sps:$4 sm:$0xff]  }
  0xb5   :  { %1898 = vmatprep.subr.bf16.mxu0 %v2554_v5  ;;  %v2640_v5 = vld [vmem:[%s3525_s1 + $0x7b0] ss:$8 sps:$4 sm:$0xff]  }
  0xb7   :  { %1735 = vmatpush1.bf16.msra.mxu1 %v2549_v6  ;;  %v2645_v6 = vld [vmem:[%s3525_s1 + $0x3c4] ss:$8 sps:$4 sm:$0xff]  }
  0xb8   :  { %1899 = vmatpush1.bf16.msra.mxu0 %v2552_v7  ;;  %1736 = vmatprep.subr.bf16.mxu1 %v2557_v8  ;;  %v2648_v7 = vld [vmem:[%s3525_s1 + $0x7c4] ss:$8 sps:$4 sm:$0xff]   ;;  %v2643_v8 = vld [vmem:[%s3525_s1 + $0x3c0] ss:$8 sps:$4 sm:$0xff]  }
  0xb9   :  { %1900 = vmatprep.subr.bf16.mxu0 %v2560_v9  ;;  %v2646_v9 = vld [vmem:[%s3525_s1 + $0x7c0] ss:$8 sps:$4 sm:$0xff]  }
  0xbb   :  { %1737 = vmatpush1.bf16.msra.mxu1 %v2555_v10  ;;  %v2651_v10 = vld [vmem:[%s3525_s1 + $0x3d4] ss:$8 sps:$4 sm:$0xff]  }
  0xbc   :  { %1901 = vmatpush1.bf16.msra.mxu0 %v2558_v11  ;;  %1738 = vmatprep.subr.bf16.mxu1 %v2563_v12  ;;  %v2654_v11 = vld [vmem:[%s3525_s1 + $0x7d4] ss:$8 sps:$4 sm:$0xff]   ;;  %v2649_v12 = vld [vmem:[%s3525_s1 + $0x3d0] ss:$8 sps:$4 sm:$0xff]  }
  0xbd   :  { %1902 = vmatprep.subr.bf16.mxu0 %v2566_v13  ;;  %v2652_v13 = vld [vmem:[%s3525_s1 + $0x7d0] ss:$8 sps:$4 sm:$0xff]  }
  0xbf   :  { %1739 = vmatpush1.bf16.msra.mxu1 %v2561_v14  ;;  %v2657_v14 = vld [vmem:[%s3525_s1 + $0x3e4] ss:$8 sps:$4 sm:$0xff]  }
  0xc0   :  { %1903 = vmatpush1.bf16.msra.mxu0 %v2564_v15  ;;  %1749 = vmatprep.subr.bf16.mxu1 %v2571_v16  ;;  %v2660_v15 = vld [vmem:[%s3525_s1 + $0x7e4] ss:$8 sps:$4 sm:$0xff]   ;;  %v2655_v16 = vld [vmem:[%s3525_s1 + $0x3e0] ss:$8 sps:$4 sm:$0xff]  }
  0xc1   :  { %1913 = vmatprep.subr.bf16.mxu0 %v2576_v17  ;;  %v2658_v17 = vld [vmem:[%s3525_s1 + $0x7e0] ss:$8 sps:$4 sm:$0xff]  }
  0xc2   :  { %1741 = vmatmul.mubr.bf16.vlgmr.msra.gmra.mrb[0].mxu1 %v1973_v19  ;;  %v2663_v19 = vld [vmem:[%s3525_s1 + $0x3f4] ss:$8 sps:$4 sm:$0xff]  }
  0xc3   :  { %1905 = vmatmul.mubr.bf16.vlgmr.msra.gmra.mrb[0].mxu0 %v1981_v21  ;;  %1750 = vmatpush1.bf16.msra.mxu1 %v2569_v24  ;;  %v2666_v21 = vld [vmem:[%s3525_s1 + $0x7f4] ss:$8 sps:$4 sm:$0xff]   ;;  %v2661_v24 = vld [vmem:[%s3525_s1 + $0x3f0] ss:$8 sps:$4 sm:$0xff]  }
  0xc4   :  { %1914 = vmatpush1.bf16.msra.mxu0 %v2574_v18  ;;  %1751 = vmatprep.subr.bf16.mxu1 %v2579_v20  ;;  %v2664_v18 = vld [vmem:[%s3525_s1 + $0x7f0] ss:$8 sps:$4 sm:$0xff]   ;;  %v1975_v20 = vcombine.low %v3318_v22, %v3318_v22 }
  0xc5   :  { %1915 = vmatprep.subr.bf16.mxu0 %v2582_v25  ;;  %1781 = vmatprep.mubr.bf16.mxu1 %v1976_v26  ;;  %v1983_v25 = vcombine.low %v3323_v23, %v3323_v23  ;;  %v280_v26 = vlaneseq }
  0xc6   :  { %1945 = vmatprep.mubr.bf16.mxu0 %v1984_v27 }
  0xc7   :  { %1752 = vmatpush1.bf16.msra.mxu1 %v2577_v28  ;;  %v281_v27 = vshrl.u32 %v280_v26, 7 }
  0xc8   :  { %1916 = vmatpush1.bf16.msra.mxu0 %v2580_v29  ;;  %1753 = vmatprep.subr.bf16.mxu1 %v2585_v30  ;;  %v278_v29 = vld [vmem:[%s3527_s2] sm:$0x3] }
  0xc9   :  { %1917 = vmatprep.subr.bf16.mxu0 %v2588_v31  ;;  %v282_v28 = vsub.s32 0, %v281_v27  ;;  %v286_v30 = vsub.s32 1, %v281_v27 }
  0xcb   :  { %1754 = vmatpush1.bf16.msra.mxu1 %v2583_v32  ;;  %v283_v31 = vrot.slane %v278_v29, %v282_v28  ;;  %v287_v32 = vrot.slane %v278_v29, %v286_v30 }
  0xcc   :  { %1918 = vmatpush1.bf16.msra.mxu0 %v2586_v33  ;;  %1755 = vmatprep.subr.bf16.mxu1 %v2591_v34 }
  0xcd   :  { %1919 = vmatprep.subr.bf16.mxu0 %v2594_v35 }
  0xcf   :  { %1756 = vmatpush1.bf16.msra.mxu1 %v2589_v36 }
  0xd0   :  { %1920 = vmatpush1.bf16.msra.mxu0 %v2592_v37  ;;  %1757 = vmatprep.subr.bf16.mxu1 %v2597_v38 }
  0xd1   :  { %1921 = vmatprep.subr.bf16.mxu0 %v2600_v39 }
  0xd3   :  { %1758 = vmatpush1.bf16.msra.mxu1 %v2595_v40 }
  0xd4   :  { %1922 = vmatpush1.bf16.msra.mxu0 %v2598_v41  ;;  %1759 = vmatprep.subr.bf16.mxu1 %v2603_v42 }
  0xd5   :  { %1923 = vmatprep.subr.bf16.mxu0 %v2606_v43 }
  0xd7   :  { %1760 = vmatpush1.bf16.msra.mxu1 %v2601_v44 }
  0xd8   :  { %1924 = vmatpush1.bf16.msra.mxu0 %v2604_v45  ;;  %1761 = vmatprep.subr.bf16.mxu1 %v2609_v46 }
  0xd9   :  { %1925 = vmatprep.subr.bf16.mxu0 %v2612_v47 }
  0xdb   :  { %1762 = vmatpush1.bf16.msra.mxu1 %v2607_v48 }
  0xdc   :  { %1926 = vmatpush1.bf16.msra.mxu0 %v2610_v49  ;;  %1763 = vmatprep.subr.bf16.mxu1 %v2615_v50 }
  0xdd   :  { %1927 = vmatprep.subr.bf16.mxu0 %v2618_v51 }
  0xdf   :  { %1764 = vmatpush1.bf16.msra.mxu1 %v2613_v52 }
  0xe0   :  { %1928 = vmatpush1.bf16.msra.mxu0 %v2616_v53  ;;  %1765 = vmatprep.subr.bf16.mxu1 %v2621_v54 }
  0xe1   :  { %1929 = vmatprep.subr.bf16.mxu0 %v2624_v55 }
  0xe3   :  { %1766 = vmatpush1.bf16.msra.mxu1 %v2619_v56 }
  0xe4   :  { %1930 = vmatpush1.bf16.msra.mxu0 %v2622_v57  ;;  %1767 = vmatprep.subr.bf16.mxu1 %v2627_v58 }
  0xe5   :  { %1931 = vmatprep.subr.bf16.mxu0 %v2630_v59 }
  0xe7   :  { %1768 = vmatpush1.bf16.msra.mxu1 %v2625_v60 }
  0xe8   :  { %1932 = vmatpush1.bf16.msra.mxu0 %v2628_v61  ;;  %1769 = vmatprep.subr.bf16.mxu1 %v2633_v62 }
  0xe9   :  { %1933 = vmatprep.subr.bf16.mxu0 %v2636_v63 }
  0xeb   :  { %1770 = vmatpush1.bf16.msra.mxu1 %v2631_v0 }
  0xec   :  { %1934 = vmatpush1.bf16.msra.mxu0 %v2634_v1  ;;  %1771 = vmatprep.subr.bf16.mxu1 %v2639_v2 }
  0xed   :  { %1935 = vmatprep.subr.bf16.mxu0 %v2642_v3 }
  0xef   :  { %1772 = vmatpush1.bf16.msra.mxu1 %v2637_v4 }
  0xf0   :  { %1936 = vmatpush1.bf16.msra.mxu0 %v2640_v5  ;;  %1773 = vmatprep.subr.bf16.mxu1 %v2645_v6 }
  0xf1   :  { %1937 = vmatprep.subr.bf16.mxu0 %v2648_v7 }
  0xf3   :  { %1774 = vmatpush1.bf16.msra.mxu1 %v2643_v8 }
  0xf4   :  { %1938 = vmatpush1.bf16.msra.mxu0 %v2646_v9  ;;  %1775 = vmatprep.subr.bf16.mxu1 %v2651_v10 }
  0xf5   :  { %1939 = vmatprep.subr.bf16.mxu0 %v2654_v11 }
  0xf7   :  { %1776 = vmatpush1.bf16.msra.mxu1 %v2649_v12 }
  0xf8   :  { %1940 = vmatpush1.bf16.msra.mxu0 %v2652_v13  ;;  %1777 = vmatprep.subr.bf16.mxu1 %v2657_v14 }
  0xf9   :  { %1941 = vmatprep.subr.bf16.mxu0 %v2660_v15 }
  0xfb   :  { %1778 = vmatpush1.bf16.msra.mxu1 %v2655_v16 }
  0xfc   :  { %1942 = vmatpush1.bf16.msra.mxu0 %v2658_v17  ;;  %1779 = vmatprep.subr.bf16.mxu1 %v2663_v19 }
  0xfd   :  { %1943 = vmatprep.subr.bf16.mxu0 %v2666_v21 }
  0xff   :  { %1780 = vmatpush1.bf16.msra.mxu1 %v2661_v24 }
 0x100   :  { %1944 = vmatpush1.bf16.msra.mxu0 %v2664_v18 }
 0x102   :  { %1782 = vmatmul.mubr.bf16.vlgmr.msra.gmra.mrb[0].mxu1 %v1975_v20 }
 0x103   :  { %1946 = vmatmul.mubr.bf16.vlgmr.msra.gmra.mrb[0].mxu0 %v1983_v25 }
 0x1d5   :  { %v1783_v33 = vpop.f32.mrb[0].mxu1 }
 0x1d6   :  { %v1947_v34 = vpop.f32.mrb[0].mxu0  ;;  %v2243_v22 = vadd.f32 %v1783_v33, %v283_v31  ;;  %v1785_v35 = vpop.f32.mrb[1].mxu1 }
 0x1d7   :  { %v1949_v36 = vpop.f32.mrb[1].mxu0  ;;  %v2245_v23 = vadd.f32 %v1785_v35, %v287_v32  ;;  %v1787_v37 = vpop.f32.mrb[2].mxu1 }
 0x1d8   :  { %v1951_v38 = vpop.f32.mrb[2].mxu0  ;;  %v2244_v39 = vadd.f32 %v2243_v22, %v1947_v34  ;;  %v1788_v40 = vpop.f32.mrb[3].mxu1 }
 0x1d9   :  { %v1952_v41 = vpop.f32.mrb[3].mxu0  ;;  %v2246_v42 = vadd.f32 %v2245_v23, %v1949_v36 }
 0x1da   :  { %v1954_v43 = vmax.f32 %v2244_v39, 0.0 }
 0x1db   :  { %v1955_v44 = vmax.f32 %v2246_v42, 0.0 }
 0x1dd   :  { %v2242_v45 = vpack.c.bf16 %v1955_v44, %v1954_v43 }
 0x1df   :  { %1964 = vst [vmem:[%s3528_s3] sm:$0xff] %v2242_v45 }

// kernel: autoencoder_forward.12
= control target key start
LH: loop header
LB: loop body
LE: loop exit
PB: predicated region body
PF: predicated region fallthrough
CT: control target
= control target key end

     0   :  { %s3088_s12 = smov 0   ;;  %s3090_s13 = smov 0   ;;  %s3460_s0 = inlined_call_operand.vmem [shape: bf16[4,2,2048], index: 0, kind: input, shape index: {}]   ;;  %s3461_s1 = inlined_call_operand.vmem [shape: bf16[4,2048,256], index: 1, kind: input, shape index: {}]   ;;  %s3462_s2 = inlined_call_operand.vmem [shape: f32[1,256], index: 2, kind: input, shape index: {}]   ;;  %s3463_s3 = inlined_call_operand.vmem [shape: bf16[4,2,256], index: 3, kind: output, shape index: {}]  }
   0x1   :  { %s3092_s14 = smov 0  }
   0x2 LB: > { %s25_s15 = sadd.s32 1, %s3061_s13  ;;  %p2338_p0 = scmp.ge.s32.totalorder %s3065_s14, 1  ;;  %s3065_s14 = sphi %s3092_s14, %s13_s14   ;;  %s3061_s13 = sphi %s3090_s13, %s3465_s13   ;;  %s3057_s12 = sphi %s3088_s12, %s3464_s12  }
   0x3   : > { %p27_p1 = scmp.ge.s32.totalorder %s25_s15, 4  ;;  %p166_p2 = scmp.lt.s32.totalorder %s3065_s14, 5 }
   0x5   : > { %s3467_s15 = smov (%p27_p1, %s25_s15), 0  ;;  %p167_p3 = pnand %p2338_p0, %p166_p2 }
   0x6   : > { %p201_p4 = scmp.lt.s32.totalorder (!%p167_p3), %s3057_s12, 3  ;;  %v482_v36 = vlaneseq (!%p167_p3)  ;;  %v3067_v37 = vmov (!%p167_p3), 1966171168  }
   0x7   : > { %170 = sbr.rel (%p167_p3) target bundleno = 498 (0x1f2), region = 32  ;;  %v496_v38 = vunpack.c.l.s4 (!%p167_p3), %v3067_v37 }
   0x8   : > { %v3153_v42 = vshrl.u32 (!%p167_p3), %v482_v36, 7 }
   0x9   : > { %v497_v43 = vunpack.c.0.s8 (!%p167_p3), %v496_v38 }
   0xb   : > { %v3165_v49 = vsub.s32 (!%p167_p3), %v497_v43, %v3153_v42 }
   0xe   : > { %s3469_s12 = smov (!%p201_p4, %s3057_s12), 3 }
   0xf   : > { %s2603_s16 = sshll.u32 %s3469_s12, 11  ;;  %s2339_s20 = sshll.u32 %s3469_s12, 4 }
  0x10   : > { %s3112_s19 = scalar_lea.vmem %s3461_s1, %s2603_s16  ;;  %s208_s23 = scalar_lea.vmem %s3460_s0, %s2339_s20 }
  0x11   : > { %v2657_v0 = vld [vmem:[%s3112_s19 + $0x4] ss:$8 sps:$4 sm:$0xff]   ;;  %v2661_v2 = vld [vmem:[%s3112_s19] ss:$8 sps:$4 sm:$0xff]   ;;  %v2663_v4 = vld [vmem:[%s3112_s19 + $0x14] ss:$8 sps:$4 sm:$0xff]  }
  0x12   : > { %v2659_v1 = vld [vmem:[%s3112_s19 + $0x404] ss:$8 sps:$4 sm:$0xff]   ;;  %1888 = vmatprep.subr.bf16.mxu1 %v2657_v0  ;;  %v2662_v3 = vld [vmem:[%s3112_s19 + $0x400] ss:$8 sps:$4 sm:$0xff]   ;;  %v2665_v5 = vld [vmem:[%s3112_s19 + $0x414] ss:$8 sps:$4 sm:$0xff]  }
  0x13   : > { %2052 = vmatprep.subr.bf16.mxu0 %v2659_v1  ;;  %1889 = vmatpush1.bf16.msra.mxu1 %v2661_v2  ;;  %v2667_v6 = vld [vmem:[%s3112_s19 + $0x10] ss:$8 sps:$4 sm:$0xff]   ;;  %v2669_v8 = vld [vmem:[%s3112_s19 + $0x24] ss:$8 sps:$4 sm:$0xff]   ;;  %v2673_v10 = vld [vmem:[%s3112_s19 + $0x20] ss:$8 sps:$4 sm:$0xff]  }
  0x14   : > { %2053 = vmatpush1.bf16.msra.mxu0 %v2662_v3  ;;  %1890 = vmatprep.subr.bf16.mxu1 %v2663_v4  ;;  %v2668_v7 = vld [vmem:[%s3112_s19 + $0x410] ss:$8 sps:$4 sm:$0xff]   ;;  %v2671_v9 = vld [vmem:[%s3112_s19 + $0x424] ss:$8 sps:$4 sm:$0xff]   ;;  %v2674_v11 = vld [vmem:[%s3112_s19 + $0x420] ss:$8 sps:$4 sm:$0xff]  }
  0x15   : > { %2054 = vmatprep.subr.bf16.mxu0 %v2665_v5  ;;  %v2675_v12 = vld [vmem:[%s3112_s19 + $0x34] ss:$8 sps:$4 sm:$0xff]   ;;  %v2679_v14 = vld [vmem:[%s3112_s19 + $0x30] ss:$8 sps:$4 sm:$0xff]   ;;  %v2681_v16 = vld [vmem:[%s3112_s19 + $0x44] ss:$8 sps:$4 sm:$0xff]  }
  0x16   : > { %v2677_v13 = vld [vmem:[%s3112_s19 + $0x434] ss:$8 sps:$4 sm:$0xff]   ;;  %v2680_v15 = vld [vmem:[%s3112_s19 + $0x430] ss:$8 sps:$4 sm:$0xff]   ;;  %v2683_v17 = vld [vmem:[%s3112_s19 + $0x444] ss:$8 sps:$4 sm:$0xff]  }
  0x17   : > { %1891 = vmatpush1.bf16.msra.mxu1 %v2667_v6  ;;  %v2685_v18 = vld [vmem:[%s3112_s19 + $0x40] ss:$8 sps:$4 sm:$0xff]   ;;  %v2687_v20 = vld [vmem:[%s3112_s19 + $0x54] ss:$8 sps:$4 sm:$0xff]   ;;  %v2691_v22 = vld [vmem:[%s3112_s19 + $0x50] ss:$8 sps:$4 sm:$0xff]  }
  0x18   : > { %2055 = vmatpush1.bf16.msra.mxu0 %v2668_v7  ;;  %1892 = vmatprep.subr.bf16.mxu1 %v2669_v8  ;;  %v2686_v19 = vld [vmem:[%s3112_s19 + $0x440] ss:$8 sps:$4 sm:$0xff]   ;;  %v2689_v21 = vld [vmem:[%s3112_s19 + $0x454] ss:$8 sps:$4 sm:$0xff]   ;;  %v2692_v23 = vld [vmem:[%s3112_s19 + $0x450] ss:$8 sps:$4 sm:$0xff]  }
  0x19   : > { %2056 = vmatprep.subr.bf16.mxu0 %v2671_v9  ;;  %v2693_v24 = vld [vmem:[%s3112_s19 + $0x64] ss:$8 sps:$4 sm:$0xff]   ;;  %v2697_v26 = vld [vmem:[%s3112_s19 + $0x60] ss:$8 sps:$4 sm:$0xff]   ;;  %v2699_v28 = vld [vmem:[%s3112_s19 + $0x74] ss:$8 sps:$4 sm:$0xff]  }
  0x1a   : > { %v2695_v25 = vld [vmem:[%s3112_s19 + $0x464] ss:$8 sps:$4 sm:$0xff]   ;;  %v2698_v27 = vld [vmem:[%s3112_s19 + $0x460] ss:$8 sps:$4 sm:$0xff]   ;;  %v2701_v29 = vld [vmem:[%s3112_s19 + $0x474] ss:$8 sps:$4 sm:$0xff]  }
  0x1b   : > { %1893 = vmatpush1.bf16.msra.mxu1 %v2673_v10  ;;  %v2703_v30 = vld [vmem:[%s3112_s19 + $0x70] ss:$8 sps:$4 sm:$0xff]   ;;  %v2705_v32 = vld [vmem:[%s3112_s19 + $0x84] ss:$8 sps:$4 sm:$0xff]   ;;  %v2709_v34 = vld [vmem:[%s3112_s19 + $0x80] ss:$8 sps:$4 sm:$0xff]  }
  0x1c   : > { %2057 = vmatpush1.bf16.msra.mxu0 %v2674_v11  ;;  %1894 = vmatprep.subr.bf16.mxu1 %v2675_v12  ;;  %v2704_v31 = vld [vmem:[%s3112_s19 + $0x470] ss:$8 sps:$4 sm:$0xff]   ;;  %v2707_v33 = vld [vmem:[%s3112_s19 + $0x484] ss:$8 sps:$4 sm:$0xff]   ;;  %v2710_v35 = vld [vmem:[%s3112_s19 + $0x480] ss:$8 sps:$4 sm:$0xff]  }
  0x1d   : > { %2058 = vmatprep.subr.bf16.mxu0 %v2677_v13  ;;  %v2711_v39 = vld [vmem:[%s3112_s19 + $0x94] ss:$8 sps:$4 sm:$0xff]   ;;  %v2715_v41 = vld [vmem:[%s3112_s19 + $0x90] ss:$8 sps:$4 sm:$0xff]   ;;  %v2717_v45 = vld [vmem:[%s3112_s19 + $0xa4] ss:$8 sps:$4 sm:$0xff]  }
  0x1e   : > { %v2713_v40 = vld [vmem:[%s3112_s19 + $0x494] ss:$8 sps:$4 sm:$0xff]   ;;  %v2716_v44 = vld [vmem:[%s3112_s19 + $0x490] ss:$8 sps:$4 sm:$0xff]   ;;  %v2719_v46 = vld [vmem:[%s3112_s19 + $0x4a4] ss:$8 sps:$4 sm:$0xff]  }
  0x1f   : > { %1895 = vmatpush1.bf16.msra.mxu1 %v2679_v14  ;;  %v2721_v47 = vld [vmem:[%s3112_s19 + $0xa0] ss:$8 sps:$4 sm:$0xff]   ;;  %v2723_v50 = vld [vmem:[%s3112_s19 + $0xb4] ss:$8 sps:$4 sm:$0xff]   ;;  %v2727_v53 = vld [vmem:[%s3112_s19 + $0xb0] ss:$8 sps:$4 sm:$0xff]  }
  0x20   : > { %2059 = vmatpush1.bf16.msra.mxu0 %v2680_v15  ;;  %1896 = vmatprep.subr.bf16.mxu1 %v2681_v16  ;;  %v2722_v48 = vld [vmem:[%s3112_s19 + $0x4a0] ss:$8 sps:$4 sm:$0xff]   ;;  %v2725_v51 = vld [vmem:[%s3112_s19 + $0x4b4] ss:$8 sps:$4 sm:$0xff]   ;;  %v2728_v55 = vld [vmem:[%s3112_s19 + $0x4b0] ss:$8 sps:$4 sm:$0xff]  }
  0x21   : > { %2060 = vmatprep.subr.bf16.mxu0 %v2683_v17  ;;  %v3169_v52 = vld [vmem:[%s208_s23] sm:$0xff]  ;;  %v3175_v56 = vld [vmem:[%s208_s23 + $0x8] sm:$0xff]  ;;  %v2735_v1 = vld [vmem:[%s3112_s19 + $0xd4] ss:$8 sps:$4 sm:$0xff]   ;;  %s2342_s26 = sshll.u32 %s3469_s12, 1 }
  0x22   : > { %v501_v54 = vrot.slane %v3169_v52, %v3165_v49  ;;  %v2729_v57 = vld [vmem:[%s3112_s19 + $0xc4] ss:$8 sps:$4 sm:$0xff]   ;;  %v550_v60 = vrot.slane %v3175_v56, %v3165_v49  ;;  %v2733_v63 = vld [vmem:[%s3112_s19 + $0xc0] ss:$8 sps:$4 sm:$0xff]   ;;  %v2737_v2 = vld [vmem:[%s3112_s19 + $0x4d4] ss:$8 sps:$4 sm:$0xff]   ;;  %s221_s29 = scalar_lea.vmem %s3463_s3, %s2342_s26 }
  0x23   : > { %1897 = vmatpush1.bf16.msra.mxu1 %v2685_v18  ;;  %v2731_v58 = vld [vmem:[%s3112_s19 + $0x4c4] ss:$8 sps:$4 sm:$0xff]   ;;  %v2734_v0 = vld [vmem:[%s3112_s19 + $0x4c0] ss:$8 sps:$4 sm:$0xff]   ;;  %v2739_v4 = vld [vmem:[%s3112_s19 + $0xd0] ss:$8 sps:$4 sm:$0xff]  }
  0x24   : > { %2061 = vmatpush1.bf16.msra.mxu0 %v2686_v19  ;;  %1898 = vmatprep.subr.bf16.mxu1 %v2687_v20  ;;  %v509_v59 = vcombine.high %v501_v54, %v501_v54  ;;  %v558_v62 = vcombine.high %v550_v60, %v550_v60  ;;  %v2740_v5 = vld [vmem:[%s3112_s19 + $0x4d0] ss:$8 sps:$4 sm:$0xff]   ;;  %v2741_v6 = vld [vmem:[%s3112_s19 + $0xe4] ss:$8 sps:$4 sm:$0xff]   ;;  %v2745_v8 = vld [vmem:[%s3112_s19 + $0xe0] ss:$8 sps:$4 sm:$0xff]   ;;  %v3200_v16 = vrot.slane %v501_v54, %v3165_v49 }
  0x25   : > { %2062 = vmatprep.subr.bf16.mxu0 %v2689_v21  ;;  %v2743_v7 = vld [vmem:[%s3112_s19 + $0x4e4] ss:$8 sps:$4 sm:$0xff]   ;;  %v2746_v9 = vld [vmem:[%s3112_s19 + $0x4e0] ss:$8 sps:$4 sm:$0xff]   ;;  %v2747_v10 = vld [vmem:[%s3112_s19 + $0xf4] ss:$8 sps:$4 sm:$0xff]   ;;  %v3203_v17 = vrot.slane %v550_v60, %v3165_v49 }
  0x26   : > { %v531_v61 = vrot.slane %v509_v59, %v3165_v49  ;;  %v580_v3 = vrot.slane %v558_v62, %v3165_v49  ;;  %v2749_v11 = vld [vmem:[%s3112_s19 + $0x4f4] ss:$8 sps:$4 sm:$0xff]   ;;  %v2751_v12 = vld [vmem:[%s3112_s19 + $0xf0] ss:$8 sps:$4 sm:$0xff]   ;;  %v2756_v14 = vld [vmem:[%s3112_s19 + $0x104] ss:$8 sps:$4 sm:$0xff]  }
  0x27   : > { %1899 = vmatpush1.bf16.msra.mxu1 %v2691_v22  ;;  %v2752_v13 = vld [vmem:[%s3112_s19 + $0x4f0] ss:$8 sps:$4 sm:$0xff]   ;;  %v2760_v15 = vld [vmem:[%s3112_s19 + $0x504] ss:$8 sps:$4 sm:$0xff]   ;;  %v2754_v18 = vld [vmem:[%s3112_s19 + $0x100] ss:$8 sps:$4 sm:$0xff]  }
  0x28   : > { %2063 = vmatpush1.bf16.msra.mxu0 %v2692_v23  ;;  %1900 = vmatprep.subr.bf16.mxu1 %v2693_v24  ;;  %v2758_v19 = vld [vmem:[%s3112_s19 + $0x500] ss:$8 sps:$4 sm:$0xff]   ;;  %v2763_v20 = vld [vmem:[%s3112_s19 + $0x114] ss:$8 sps:$4 sm:$0xff]   ;;  %v541_v22 = vcombine.high %v531_v61, %v531_v61  ;;  %v590_v23 = vcombine.high %v580_v3, %v580_v3  ;;  %v2761_v24 = vld [vmem:[%s3112_s19 + $0x110] ss:$8 sps:$4 sm:$0xff]  }
  0x29   : > { %2064 = vmatprep.subr.bf16.mxu0 %v2695_v25  ;;  %1920 = vmatprep.mubr.bf16.mxu1 %v531_v61  ;;  %v2766_v21 = vld [vmem:[%s3112_s19 + $0x514] ss:$8 sps:$4 sm:$0xff]   ;;  %v2764_v25 = vld [vmem:[%s3112_s19 + $0x510] ss:$8 sps:$4 sm:$0xff]   ;;  %v2779_v36 = vld [vmem:[%s3112_s19 + $0x140] ss:$8 sps:$4 sm:$0xff]  }
  0x2a   : > { %2084 = vmatprep.mubr.bf16.mxu0 %v580_v3  ;;  %v2782_v37 = vld [vmem:[%s3112_s19 + $0x540] ss:$8 sps:$4 sm:$0xff]   ;;  %v2787_v38 = vld [vmem:[%s3112_s19 + $0x154] ss:$8 sps:$4 sm:$0xff]   ;;  %v2793_v43 = vld [vmem:[%s3112_s19 + $0x164] ss:$8 sps:$4 sm:$0xff]  }
  0x2b   : > { %1901 = vmatpush1.bf16.msra.mxu1 %v2697_v26  ;;  %v2769_v26 = vld [vmem:[%s3112_s19 + $0x124] ss:$8 sps:$4 sm:$0xff]   ;;  %v2814_v59 = vld [vmem:[%s3112_s19 + $0x594] ss:$8 sps:$4 sm:$0xff]   ;;  %v2809_v60 = vld [vmem:[%s3112_s19 + $0x190] ss:$8 sps:$4 sm:$0xff]  }
  0x2c   : > { %2065 = vmatpush1.bf16.msra.mxu0 %v2698_v27  ;;  %1902 = vmatprep.subr.bf16.mxu1 %v2699_v28  ;;  %v2772_v27 = vld [vmem:[%s3112_s19 + $0x524] ss:$8 sps:$4 sm:$0xff]   ;;  %v2767_v28 = vld [vmem:[%s3112_s19 + $0x120] ss:$8 sps:$4 sm:$0xff]   ;;  %v2812_v61 = vld [vmem:[%s3112_s19 + $0x590] ss:$8 sps:$4 sm:$0xff]  }
  0x2d   : > { %2066 = vmatprep.subr.bf16.mxu0 %v2701_v29  ;;  %v2770_v29 = vld [vmem:[%s3112_s19 + $0x520] ss:$8 sps:$4 sm:$0xff]   ;;  %v2808_v54 = vld [vmem:[%s3112_s19 + $0x584] ss:$8 sps:$4 sm:$0xff]   ;;  %v2826_v3 = vld [vmem:[%s3112_s19 + $0x5b4] ss:$8 sps:$4 sm:$0xff]  }
  0x2e   : > { %v2817_v62 = vld [vmem:[%s3112_s19 + $0x1a4] ss:$8 sps:$4 sm:$0xff]  }
  0x2f   : > { %1903 = vmatpush1.bf16.msra.mxu1 %v2703_v30  ;;  %v2775_v30 = vld [vmem:[%s3112_s19 + $0x134] ss:$8 sps:$4 sm:$0xff]  }
  0x30   : > { %2067 = vmatpush1.bf16.msra.mxu0 %v2704_v31  ;;  %1904 = vmatprep.subr.bf16.mxu1 %v2705_v32  ;;  %v2778_v31 = vld [vmem:[%s3112_s19 + $0x534] ss:$8 sps:$4 sm:$0xff]   ;;  %v2773_v32 = vld [vmem:[%s3112_s19 + $0x130] ss:$8 sps:$4 sm:$0xff]  }
  0x31   : > { %2068 = vmatprep.subr.bf16.mxu0 %v2707_v33  ;;  %v2776_v33 = vld [vmem:[%s3112_s19 + $0x530] ss:$8 sps:$4 sm:$0xff]  }
  0x33   : > { %1905 = vmatpush1.bf16.msra.mxu1 %v2709_v34  ;;  %v2781_v34 = vld [vmem:[%s3112_s19 + $0x144] ss:$8 sps:$4 sm:$0xff]  }
  0x34   : > { %2069 = vmatpush1.bf16.msra.mxu0 %v2710_v35  ;;  %1906 = vmatprep.subr.bf16.mxu1 %v2711_v39  ;;  %v2784_v35 = vld [vmem:[%s3112_s19 + $0x544] ss:$8 sps:$4 sm:$0xff]   ;;  %v2790_v39 = vld [vmem:[%s3112_s19 + $0x554] ss:$8 sps:$4 sm:$0xff]  }
  0x35   : > { %2070 = vmatprep.subr.bf16.mxu0 %v2713_v40  ;;  %v2785_v40 = vld [vmem:[%s3112_s19 + $0x150] ss:$8 sps:$4 sm:$0xff]  }
  0x37   : > { %1907 = vmatpush1.bf16.msra.mxu1 %v2715_v41  ;;  %v2788_v41 = vld [vmem:[%s3112_s19 + $0x550] ss:$8 sps:$4 sm:$0xff]  }
  0x38   : > { %2071 = vmatpush1.bf16.msra.mxu0 %v2716_v44  ;;  %1908 = vmatprep.subr.bf16.mxu1 %v2717_v45  ;;  %v2796_v44 = vld [vmem:[%s3112_s19 + $0x564] ss:$8 sps:$4 sm:$0xff]   ;;  %v2791_v45 = vld [vmem:[%s3112_s19 + $0x160] ss:$8 sps:$4 sm:$0xff]  }
  0x39   : > { %2072 = vmatprep.subr.bf16.mxu0 %v2719_v46  ;;  %v2794_v46 = vld [vmem:[%s3112_s19 + $0x560] ss:$8 sps:$4 sm:$0xff]  }
  0x3b   : > { %1909 = vmatpush1.bf16.msra.mxu1 %v2721_v47  ;;  %v2799_v47 = vld [vmem:[%s3112_s19 + $0x174] ss:$8 sps:$4 sm:$0xff]  }
  0x3c   : > { %2073 = vmatpush1.bf16.msra.mxu0 %v2722_v48  ;;  %1910 = vmatprep.subr.bf16.mxu1 %v2723_v50  ;;  %v2802_v48 = vld [vmem:[%s3112_s19 + $0x574] ss:$8 sps:$4 sm:$0xff]   ;;  %v2797_v50 = vld [vmem:[%s3112_s19 + $0x170] ss:$8 sps:$4 sm:$0xff]  }
  0x3d   : > { %2074 = vmatprep.subr.bf16.mxu0 %v2725_v51  ;;  %v2800_v51 = vld [vmem:[%s3112_s19 + $0x570] ss:$8 sps:$4 sm:$0xff]  }
  0x3f   : > { %1911 = vmatpush1.bf16.msra.mxu1 %v2727_v53  ;;  %v2805_v53 = vld [vmem:[%s3112_s19 + $0x184] ss:$8 sps:$4 sm:$0xff]  }
  0x40   : > { %2075 = vmatpush1.bf16.msra.mxu0 %v2728_v55  ;;  %1912 = vmatprep.subr.bf16.mxu1 %v2729_v57  ;;  %v2803_v55 = vld [vmem:[%s3112_s19 + $0x180] ss:$8 sps:$4 sm:$0xff]  }
  0x41   : > { %2076 = vmatprep.subr.bf16.mxu0 %v2731_v58  ;;  %v2806_v57 = vld [vmem:[%s3112_s19 + $0x580] ss:$8 sps:$4 sm:$0xff]   ;;  %v2811_v58 = vld [vmem:[%s3112_s19 + $0x194] ss:$8 sps:$4 sm:$0xff]  }
  0x43   : > { %1913 = vmatpush1.bf16.msra.mxu1 %v2733_v63  ;;  %v2820_v63 = vld [vmem:[%s3112_s19 + $0x5a4] ss:$8 sps:$4 sm:$0xff]  }
  0x44   : > { %2077 = vmatpush1.bf16.msra.mxu0 %v2734_v0  ;;  %1914 = vmatprep.subr.bf16.mxu1 %v2735_v1  ;;  %v2815_v0 = vld [vmem:[%s3112_s19 + $0x1a0] ss:$8 sps:$4 sm:$0xff]  }
  0x45   : > { %2078 = vmatprep.subr.bf16.mxu0 %v2737_v2  ;;  %v2818_v1 = vld [vmem:[%s3112_s19 + $0x5a0] ss:$8 sps:$4 sm:$0xff]   ;;  %v2823_v2 = vld [vmem:[%s3112_s19 + $0x1b4] ss:$8 sps:$4 sm:$0xff]  }
  0x47   : > { %1915 = vmatpush1.bf16.msra.mxu1 %v2739_v4  ;;  %v2821_v4 = vld [vmem:[%s3112_s19 + $0x1b0] ss:$8 sps:$4 sm:$0xff]  }
  0x48   : > { %2079 = vmatpush1.bf16.msra.mxu0 %v2740_v5  ;;  %1916 = vmatprep.subr.bf16.mxu1 %v2741_v6  ;;  %v2824_v5 = vld [vmem:[%s3112_s19 + $0x5b0] ss:$8 sps:$4 sm:$0xff]   ;;  %v2829_v6 = vld [vmem:[%s3112_s19 + $0x1c4] ss:$8 sps:$4 sm:$0xff]  }
  0x49   : > { %2080 = vmatprep.subr.bf16.mxu0 %v2743_v7  ;;  %v2832_v7 = vld [vmem:[%s3112_s19 + $0x5c4] ss:$8 sps:$4 sm:$0xff]  }
  0x4b   : > { %1917 = vmatpush1.bf16.msra.mxu1 %v2745_v8  ;;  %v2827_v8 = vld [vmem:[%s3112_s19 + $0x1c0] ss:$8 sps:$4 sm:$0xff]  }
  0x4c   : > { %2081 = vmatpush1.bf16.msra.mxu0 %v2746_v9  ;;  %1918 = vmatprep.subr.bf16.mxu1 %v2747_v10  ;;  %v2830_v9 = vld [vmem:[%s3112_s19 + $0x5c0] ss:$8 sps:$4 sm:$0xff]   ;;  %v2835_v10 = vld [vmem:[%s3112_s19 + $0x1d4] ss:$8 sps:$4 sm:$0xff]  }
  0x4d   : > { %2082 = vmatprep.subr.bf16.mxu0 %v2749_v11  ;;  %v2838_v11 = vld [vmem:[%s3112_s19 + $0x5d4] ss:$8 sps:$4 sm:$0xff]  }
  0x4f   : > { %1919 = vmatpush1.bf16.msra.mxu1 %v2751_v12  ;;  %v2833_v12 = vld [vmem:[%s3112_s19 + $0x1d0] ss:$8 sps:$4 sm:$0xff]  }
  0x50   : > { %2083 = vmatpush1.bf16.msra.mxu0 %v2752_v13  ;;  %1929 = vmatprep.subr.bf16.mxu1 %v2756_v14  ;;  %v2836_v13 = vld [vmem:[%s3112_s19 + $0x5d0] ss:$8 sps:$4 sm:$0xff]   ;;  %v2841_v14 = vld [vmem:[%s3112_s19 + $0x1e4] ss:$8 sps:$4 sm:$0xff]  }
  0x51   : > { %2093 = vmatprep.subr.bf16.mxu0 %v2760_v15  ;;  %v2844_v15 = vld [vmem:[%s3112_s19 + $0x5e4] ss:$8 sps:$4 sm:$0xff]  }
  0x52   : > { %1921 = vmatmul.mubr.bf16.vlgmr.msra.gmra.mrb[0].mxu1 %v3200_v16 }
  0x53   : > { %2085 = vmatmul.mubr.bf16.vlgmr.msra.gmra.mrb[0].mxu0 %v3203_v17  ;;  %1930 = vmatpush1.bf16.msra.mxu1 %v2754_v18  ;;  %v494_v18 = vcombine.high %v3169_v52, %v3169_v52  ;;  %v2845_v52 = vld [vmem:[%s3112_s19 + $0x1f0] ss:$8 sps:$4 sm:$0xff]  }
  0x54   : > { %2094 = vmatpush1.bf16.msra.mxu0 %v2758_v19  ;;  %1931 = vmatprep.subr.bf16.mxu1 %v2763_v20  ;;  %v543_v19 = vcombine.high %v3175_v56, %v3175_v56  ;;  %v2839_v20 = vld [vmem:[%s3112_s19 + $0x1e0] ss:$8 sps:$4 sm:$0xff]   ;;  %v2848_v56 = vld [vmem:[%s3112_s19 + $0x5f0] ss:$8 sps:$4 sm:$0xff]  }
  0x55   : > { %2095 = vmatprep.subr.bf16.mxu0 %v2766_v21  ;;  %1961 = vmatprep.mubr.bf16.mxu1 %v541_v22  ;;  %v2842_v21 = vld [vmem:[%s3112_s19 + $0x5e0] ss:$8 sps:$4 sm:$0xff]   ;;  %v2847_v22 = vld [vmem:[%s3112_s19 + $0x1f4] ss:$8 sps:$4 sm:$0xff]  }
  0x56   : > { %2125 = vmatprep.mubr.bf16.mxu0 %v590_v23  ;;  %v2850_v23 = vld [vmem:[%s3112_s19 + $0x5f4] ss:$8 sps:$4 sm:$0xff]  }
  0x57   : > { %1932 = vmatpush1.bf16.msra.mxu1 %v2761_v24  ;;  %v3272_v24 = vrot.slane %v494_v18, %v3165_v49  ;;  %v2917_v18 = vld [vmem:[%s3112_s19 + $0x2b0] ss:$8 sps:$4 sm:$0xff]  }
  0x58   : > { %2096 = vmatpush1.bf16.msra.mxu0 %v2764_v25  ;;  %1933 = vmatprep.subr.bf16.mxu1 %v2769_v26  ;;  %v3275_v25 = vrot.slane %v543_v19, %v3165_v49  ;;  %v2853_v26 = vld [vmem:[%s3112_s19 + $0x204] ss:$8 sps:$4 sm:$0xff]   ;;  %v2920_v19 = vld [vmem:[%s3112_s19 + $0x6b0] ss:$8 sps:$4 sm:$0xff]  }
  0x59   : > { %2097 = vmatprep.subr.bf16.mxu0 %v2772_v27  ;;  %v2856_v27 = vld [vmem:[%s3112_s19 + $0x604] ss:$8 sps:$4 sm:$0xff]  }
  0x5b   : > { %1934 = vmatpush1.bf16.msra.mxu1 %v2767_v28  ;;  %v510_v28 = vcombine.high %v3272_v24, %v3272_v24 }
  0x5c   : > { %2098 = vmatpush1.bf16.msra.mxu0 %v2770_v29  ;;  %1935 = vmatprep.subr.bf16.mxu1 %v2775_v30  ;;  %v559_v29 = vcombine.high %v3275_v25, %v3275_v25  ;;  %v539_v30 = vcombine.high %v3200_v16, %v3200_v16 }
  0x5d   : > { %2099 = vmatprep.subr.bf16.mxu0 %v2778_v31  ;;  %v588_v31 = vcombine.high %v3203_v17, %v3203_v17  ;;  %v2857_v17 = vld [vmem:[%s3112_s19 + $0x210] ss:$8 sps:$4 sm:$0xff]  }
  0x5e   : > { %v3297_v16 = vrot.slane %v559_v29, %v3165_v49  ;;  %v2940_v29 = vld [vmem:[%s3112_s19 + $0x6e4] ss:$8 sps:$4 sm:$0xff]  }
  0x5f   : > { %1936 = vmatpush1.bf16.msra.mxu1 %v2773_v32  ;;  %v2851_v32 = vld [vmem:[%s3112_s19 + $0x200] ss:$8 sps:$4 sm:$0xff]  }
  0x60   : > { %2100 = vmatpush1.bf16.msra.mxu0 %v2776_v33  ;;  %1937 = vmatprep.subr.bf16.mxu1 %v2781_v34  ;;  %v2854_v33 = vld [vmem:[%s3112_s19 + $0x600] ss:$8 sps:$4 sm:$0xff]   ;;  %v2859_v34 = vld [vmem:[%s3112_s19 + $0x214] ss:$8 sps:$4 sm:$0xff]  }
  0x61   : > { %2101 = vmatprep.subr.bf16.mxu0 %v2784_v35  ;;  %v2862_v35 = vld [vmem:[%s3112_s19 + $0x614] ss:$8 sps:$4 sm:$0xff]  }
  0x63   : > { %1938 = vmatpush1.bf16.msra.mxu1 %v2779_v36  ;;  %v3294_v36 = vrot.slane %v510_v28, %v3165_v49  ;;  %v2937_v28 = vld [vmem:[%s3112_s19 + $0x2e4] ss:$8 sps:$4 sm:$0xff]  }
  0x64   : > { %2102 = vmatpush1.bf16.msra.mxu0 %v2782_v37  ;;  %1939 = vmatprep.subr.bf16.mxu1 %v2787_v38  ;;  %v2860_v37 = vld [vmem:[%s3112_s19 + $0x610] ss:$8 sps:$4 sm:$0xff]   ;;  %v2865_v38 = vld [vmem:[%s3112_s19 + $0x224] ss:$8 sps:$4 sm:$0xff]  }
  0x65   : > { %2103 = vmatprep.subr.bf16.mxu0 %v2790_v39  ;;  %v2868_v39 = vld [vmem:[%s3112_s19 + $0x624] ss:$8 sps:$4 sm:$0xff]  }
  0x67   : > { %1940 = vmatpush1.bf16.msra.mxu1 %v2785_v40  ;;  %v2863_v40 = vld [vmem:[%s3112_s19 + $0x220] ss:$8 sps:$4 sm:$0xff]  }
  0x68   : > { %2104 = vmatpush1.bf16.msra.mxu0 %v2788_v41  ;;  %1941 = vmatprep.subr.bf16.mxu1 %v2793_v43  ;;  %v2866_v41 = vld [vmem:[%s3112_s19 + $0x620] ss:$8 sps:$4 sm:$0xff]   ;;  %v2871_v43 = vld [vmem:[%s3112_s19 + $0x234] ss:$8 sps:$4 sm:$0xff]  }
  0x69   : > { %2105 = vmatprep.subr.bf16.mxu0 %v2796_v44  ;;  %v2874_v44 = vld [vmem:[%s3112_s19 + $0x634] ss:$8 sps:$4 sm:$0xff]  }
  0x6b   : > { %1942 = vmatpush1.bf16.msra.mxu1 %v2791_v45  ;;  %v2869_v45 = vld [vmem:[%s3112_s19 + $0x230] ss:$8 sps:$4 sm:$0xff]  }
  0x6c   : > { %2106 = vmatpush1.bf16.msra.mxu0 %v2794_v46  ;;  %1943 = vmatprep.subr.bf16.mxu1 %v2799_v47  ;;  %v2872_v46 = vld [vmem:[%s3112_s19 + $0x630] ss:$8 sps:$4 sm:$0xff]   ;;  %v2877_v47 = vld [vmem:[%s3112_s19 + $0x244] ss:$8 sps:$4 sm:$0xff]  }
  0x6d   : > { %2107 = vmatprep.subr.bf16.mxu0 %v2802_v48  ;;  %v2880_v48 = vld [vmem:[%s3112_s19 + $0x644] ss:$8 sps:$4 sm:$0xff]  }
  0x6f   : > { %1944 = vmatpush1.bf16.msra.mxu1 %v2797_v50  ;;  %v2875_v50 = vld [vmem:[%s3112_s19 + $0x240] ss:$8 sps:$4 sm:$0xff]  }
  0x70   : > { %2108 = vmatpush1.bf16.msra.mxu0 %v2800_v51  ;;  %1945 = vmatprep.subr.bf16.mxu1 %v2805_v53  ;;  %v2878_v51 = vld [vmem:[%s3112_s19 + $0x640] ss:$8 sps:$4 sm:$0xff]   ;;  %v2883_v53 = vld [vmem:[%s3112_s19 + $0x254] ss:$8 sps:$4 sm:$0xff]  }
  0x71   : > { %2109 = vmatprep.subr.bf16.mxu0 %v2808_v54  ;;  %v2886_v54 = vld [vmem:[%s3112_s19 + $0x654] ss:$8 sps:$4 sm:$0xff]  }
  0x73   : > { %1946 = vmatpush1.bf16.msra.mxu1 %v2803_v55  ;;  %v2881_v55 = vld [vmem:[%s3112_s19 + $0x250] ss:$8 sps:$4 sm:$0xff]  }
  0x74   : > { %2110 = vmatpush1.bf16.msra.mxu0 %v2806_v57  ;;  %1947 = vmatprep.subr.bf16.mxu1 %v2811_v58  ;;  %v2884_v57 = vld [vmem:[%s3112_s19 + $0x650] ss:$8 sps:$4 sm:$0xff]   ;;  %v2889_v58 = vld [vmem:[%s3112_s19 + $0x264] ss:$8 sps:$4 sm:$0xff]  }
  0x75   : > { %2111 = vmatprep.subr.bf16.mxu0 %v2814_v59  ;;  %v2892_v59 = vld [vmem:[%s3112_s19 + $0x664] ss:$8 sps:$4 sm:$0xff]  }
  0x77   : > { %1948 = vmatpush1.bf16.msra.mxu1 %v2809_v60  ;;  %v2887_v60 = vld [vmem:[%s3112_s19 + $0x260] ss:$8 sps:$4 sm:$0xff]  }
  0x78   : > { %2112 = vmatpush1.bf16.msra.mxu0 %v2812_v61  ;;  %1949 = vmatprep.subr.bf16.mxu1 %v2817_v62  ;;  %v2890_v61 = vld [vmem:[%s3112_s19 + $0x660] ss:$8 sps:$4 sm:$0xff]   ;;  %v2895_v62 = vld [vmem:[%s3112_s19 + $0x274] ss:$8 sps:$4 sm:$0xff]  }
  0x79   : > { %2113 = vmatprep.subr.bf16.mxu0 %v2820_v63  ;;  %v2898_v63 = vld [vmem:[%s3112_s19 + $0x674] ss:$8 sps:$4 sm:$0xff]  }
  0x7b   : > { %1950 = vmatpush1.bf16.msra.mxu1 %v2815_v0  ;;  %v2893_v0 = vld [vmem:[%s3112_s19 + $0x270] ss:$8 sps:$4 sm:$0xff]  }
  0x7c   : > { %2114 = vmatpush1.bf16.msra.mxu0 %v2818_v1  ;;  %1951 = vmatprep.subr.bf16.mxu1 %v2823_v2  ;;  %v2896_v1 = vld [vmem:[%s3112_s19 + $0x670] ss:$8 sps:$4 sm:$0xff]   ;;  %v2901_v2 = vld [vmem:[%s3112_s19 + $0x284] ss:$8 sps:$4 sm:$0xff]  }
  0x7d   : > { %2115 = vmatprep.subr.bf16.mxu0 %v2826_v3  ;;  %v2904_v3 = vld [vmem:[%s3112_s19 + $0x684] ss:$8 sps:$4 sm:$0xff]  }
  0x7f   : > { %1952 = vmatpush1.bf16.msra.mxu1 %v2821_v4  ;;  %v2899_v4 = vld [vmem:[%s3112_s19 + $0x280] ss:$8 sps:$4 sm:$0xff]  }
  0x80   : > { %2116 = vmatpush1.bf16.msra.mxu0 %v2824_v5  ;;  %1953 = vmatprep.subr.bf16.mxu1 %v2829_v6  ;;  %v2902_v5 = vld [vmem:[%s3112_s19 + $0x680] ss:$8 sps:$4 sm:$0xff]   ;;  %v2907_v6 = vld [vmem:[%s3112_s19 + $0x294] ss:$8 sps:$4 sm:$0xff]  }
  0x81   : > { %2117 = vmatprep.subr.bf16.mxu0 %v2832_v7  ;;  %v2910_v7 = vld [vmem:[%s3112_s19 + $0x694] ss:$8 sps:$4 sm:$0xff]  }
  0x83   : > { %1954 = vmatpush1.bf16.msra.mxu1 %v2827_v8  ;;  %v2905_v8 = vld [vmem:[%s3112_s19 + $0x290] ss:$8 sps:$4 sm:$0xff]  }
  0x84   : > { %2118 = vmatpush1.bf16.msra.mxu0 %v2830_v9  ;;  %1955 = vmatprep.subr.bf16.mxu1 %v2835_v10  ;;  %v2908_v9 = vld [vmem:[%s3112_s19 + $0x690] ss:$8 sps:$4 sm:$0xff]   ;;  %v2913_v10 = vld [vmem:[%s3112_s19 + $0x2a4] ss:$8 sps:$4 sm:$0xff]  }
  0x85   : > { %2119 = vmatprep.subr.bf16.mxu0 %v2838_v11  ;;  %v2916_v11 = vld [vmem:[%s3112_s19 + $0x6a4] ss:$8 sps:$4 sm:$0xff]  }
  0x87   : > { %1956 = vmatpush1.bf16.msra.mxu1 %v2833_v12  ;;  %v2911_v12 = vld [vmem:[%s3112_s19 + $0x2a0] ss:$8 sps:$4 sm:$0xff]  }
  0x88   : > { %2120 = vmatpush1.bf16.msra.mxu0 %v2836_v13  ;;  %1957 = vmatprep.subr.bf16.mxu1 %v2841_v14  ;;  %v2914_v13 = vld [vmem:[%s3112_s19 + $0x6a0] ss:$8 sps:$4 sm:$0xff]   ;;  %v2919_v14 = vld [vmem:[%s3112_s19 + $0x2b4] ss:$8 sps:$4 sm:$0xff]  }
  0x89   : > { %2121 = vmatprep.subr.bf16.mxu0 %v2844_v15  ;;  %v2922_v15 = vld [vmem:[%s3112_s19 + $0x6b4] ss:$8 sps:$4 sm:$0xff]  }
  0x8b   : > { %1958 = vmatpush1.bf16.msra.mxu1 %v2839_v20  ;;  %v2925_v20 = vld [vmem:[%s3112_s19 + $0x2c4] ss:$8 sps:$4 sm:$0xff]  }
  0x8c   : > { %2122 = vmatpush1.bf16.msra.mxu0 %v2842_v21  ;;  %1959 = vmatprep.subr.bf16.mxu1 %v2847_v22  ;;  %v2928_v21 = vld [vmem:[%s3112_s19 + $0x6c4] ss:$8 sps:$4 sm:$0xff]   ;;  %v2923_v22 = vld [vmem:[%s3112_s19 + $0x2c0] ss:$8 sps:$4 sm:$0xff]  }
  0x8d   : > { %2123 = vmatprep.subr.bf16.mxu0 %v2850_v23  ;;  %v2926_v23 = vld [vmem:[%s3112_s19 + $0x6c0] ss:$8 sps:$4 sm:$0xff]  }
  0x8f   : > { %1960 = vmatpush1.bf16.msra.mxu1 %v2845_v52  ;;  %v2931_v52 = vld [vmem:[%s3112_s19 + $0x2d4] ss:$8 sps:$4 sm:$0xff]  }
  0x90   : > { %2124 = vmatpush1.bf16.msra.mxu0 %v2848_v56  ;;  %1970 = vmatprep.subr.bf16.mxu1 %v2853_v26  ;;  %v2934_v56 = vld [vmem:[%s3112_s19 + $0x6d4] ss:$8 sps:$4 sm:$0xff]   ;;  %v2929_v26 = vld [vmem:[%s3112_s19 + $0x2d0] ss:$8 sps:$4 sm:$0xff]  }
  0x91   : > { %2134 = vmatprep.subr.bf16.mxu0 %v2856_v27  ;;  %v2932_v27 = vld [vmem:[%s3112_s19 + $0x6d0] ss:$8 sps:$4 sm:$0xff]  }
  0x92   : > { %1962 = vmatmul.mubr.bf16.vlgmr.msra.gmra.mrb[0].mxu1 %v539_v30  ;;  %v2935_v30 = vld [vmem:[%s3112_s19 + $0x2e0] ss:$8 sps:$4 sm:$0xff]  }
  0x93   : > { %2126 = vmatmul.mubr.bf16.vlgmr.msra.gmra.mrb[0].mxu0 %v588_v31  ;;  %1971 = vmatpush1.bf16.msra.mxu1 %v2851_v32  ;;  %v2938_v31 = vld [vmem:[%s3112_s19 + $0x6e0] ss:$8 sps:$4 sm:$0xff]   ;;  %v2943_v32 = vld [vmem:[%s3112_s19 + $0x2f4] ss:$8 sps:$4 sm:$0xff]  }
  0x94   : > { %2135 = vmatpush1.bf16.msra.mxu0 %v2854_v33  ;;  %1972 = vmatprep.subr.bf16.mxu1 %v2859_v34  ;;  %v2946_v33 = vld [vmem:[%s3112_s19 + $0x6f4] ss:$8 sps:$4 sm:$0xff]   ;;  %v2941_v34 = vld [vmem:[%s3112_s19 + $0x2f0] ss:$8 sps:$4 sm:$0xff]  }
  0x95   : > { %2136 = vmatprep.subr.bf16.mxu0 %v2862_v35  ;;  %2002 = vmatprep.mubr.bf16.mxu1 %v3294_v36  ;;  %v2944_v35 = vld [vmem:[%s3112_s19 + $0x6f0] ss:$8 sps:$4 sm:$0xff]  }
  0x96   : > { %2166 = vmatprep.mubr.bf16.mxu0 %v3297_v16 }
  0x97   : > { %1973 = vmatpush1.bf16.msra.mxu1 %v2857_v17  ;;  %v2949_v17 = vld [vmem:[%s3112_s19 + $0x304] ss:$8 sps:$4 sm:$0xff]  }
  0x98   : > { %2137 = vmatpush1.bf16.msra.mxu0 %v2860_v37  ;;  %1974 = vmatprep.subr.bf16.mxu1 %v2865_v38  ;;  %v2952_v37 = vld [vmem:[%s3112_s19 + $0x704] ss:$8 sps:$4 sm:$0xff]   ;;  %v3363_v38 = vrot.slane %v3272_v24, %v3165_v49  ;;  %v542_v24 = vcombine.high %v3294_v36, %v3294_v36 }
  0x99   : > { %2138 = vmatprep.subr.bf16.mxu0 %v2868_v39  ;;  %v3367_v39 = vrot.slane %v3275_v25, %v3165_v49  ;;  %v2953_v25 = vld [vmem:[%s3112_s19 + $0x310] ss:$8 sps:$4 sm:$0xff]   ;;  %v2961_v36 = vld [vmem:[%s3112_s19 + $0x324] ss:$8 sps:$4 sm:$0xff]  }
  0x9b   : > { %1975 = vmatpush1.bf16.msra.mxu1 %v2863_v40  ;;  %v2947_v40 = vld [vmem:[%s3112_s19 + $0x300] ss:$8 sps:$4 sm:$0xff]  }
  0x9c   : > { %2139 = vmatpush1.bf16.msra.mxu0 %v2866_v41  ;;  %1976 = vmatprep.subr.bf16.mxu1 %v2871_v43  ;;  %v2950_v41 = vld [vmem:[%s3112_s19 + $0x700] ss:$8 sps:$4 sm:$0xff]   ;;  %v2955_v43 = vld [vmem:[%s3112_s19 + $0x314] ss:$8 sps:$4 sm:$0xff]  }
  0x9d   : > { %2140 = vmatprep.subr.bf16.mxu0 %v2874_v44  ;;  %v2958_v44 = vld [vmem:[%s3112_s19 + $0x714] ss:$8 sps:$4 sm:$0xff]  }
  0x9f   : > { %1977 = vmatpush1.bf16.msra.mxu1 %v2869_v45  ;;  %v591_v45 = vcombine.high %v3297_v16, %v3297_v16  ;;  %v2959_v16 = vld [vmem:[%s3112_s19 + $0x320] ss:$8 sps:$4 sm:$0xff]  }
  0xa0   : > { %2141 = vmatpush1.bf16.msra.mxu0 %v2872_v46  ;;  %1978 = vmatprep.subr.bf16.mxu1 %v2877_v47  ;;  %v2956_v46 = vld [vmem:[%s3112_s19 + $0x710] ss:$8 sps:$4 sm:$0xff]   ;;  %v2964_v47 = vld [vmem:[%s3112_s19 + $0x724] ss:$8 sps:$4 sm:$0xff]  }
  0xa1   : > { %2142 = vmatprep.subr.bf16.mxu0 %v2880_v48  ;;  %v2962_v48 = vld [vmem:[%s3112_s19 + $0x720] ss:$8 sps:$4 sm:$0xff]  }
  0xa3   : > { %1979 = vmatpush1.bf16.msra.mxu1 %v2875_v50  ;;  %v2967_v50 = vld [vmem:[%s3112_s19 + $0x334] ss:$8 sps:$4 sm:$0xff]  }
  0xa4   : > { %2143 = vmatpush1.bf16.msra.mxu0 %v2878_v51  ;;  %1980 = vmatprep.subr.bf16.mxu1 %v2883_v53  ;;  %v2970_v51 = vld [vmem:[%s3112_s19 + $0x734] ss:$8 sps:$4 sm:$0xff]   ;;  %v2965_v53 = vld [vmem:[%s3112_s19 + $0x330] ss:$8 sps:$4 sm:$0xff]  }
  0xa5   : > { %2144 = vmatprep.subr.bf16.mxu0 %v2886_v54  ;;  %v2968_v54 = vld [vmem:[%s3112_s19 + $0x730] ss:$8 sps:$4 sm:$0xff]  }
  0xa7   : > { %1981 = vmatpush1.bf16.msra.mxu1 %v2881_v55  ;;  %v2973_v55 = vld [vmem:[%s3112_s19 + $0x344] ss:$8 sps:$4 sm:$0xff]  }
  0xa8   : > { %2145 = vmatpush1.bf16.msra.mxu0 %v2884_v57  ;;  %1982 = vmatprep.subr.bf16.mxu1 %v2889_v58  ;;  %v2976_v57 = vld [vmem:[%s3112_s19 + $0x744] ss:$8 sps:$4 sm:$0xff]   ;;  %v2971_v58 = vld [vmem:[%s3112_s19 + $0x340] ss:$8 sps:$4 sm:$0xff]  }
  0xa9   : > { %2146 = vmatprep.subr.bf16.mxu0 %v2892_v59  ;;  %v2974_v59 = vld [vmem:[%s3112_s19 + $0x740] ss:$8 sps:$4 sm:$0xff]  }
  0xab   : > { %1983 = vmatpush1.bf16.msra.mxu1 %v2887_v60  ;;  %v2979_v60 = vld [vmem:[%s3112_s19 + $0x354] ss:$8 sps:$4 sm:$0xff]  }
  0xac   : > { %2147 = vmatpush1.bf16.msra.mxu0 %v2890_v61  ;;  %1984 = vmatprep.subr.bf16.mxu1 %v2895_v62  ;;  %v2982_v61 = vld [vmem:[%s3112_s19 + $0x754] ss:$8 sps:$4 sm:$0xff]   ;;  %v2977_v62 = vld [vmem:[%s3112_s19 + $0x350] ss:$8 sps:$4 sm:$0xff]  }
  0xad   : > { %2148 = vmatprep.subr.bf16.mxu0 %v2898_v63  ;;  %v2980_v63 = vld [vmem:[%s3112_s19 + $0x750] ss:$8 sps:$4 sm:$0xff]  }
  0xaf   : > { %1985 = vmatpush1.bf16.msra.mxu1 %v2893_v0  ;;  %v2985_v0 = vld [vmem:[%s3112_s19 + $0x364] ss:$8 sps:$4 sm:$0xff]  }
  0xb0   : > { %2149 = vmatpush1.bf16.msra.mxu0 %v2896_v1  ;;  %1986 = vmatprep.subr.bf16.mxu1 %v2901_v2  ;;  %v2988_v1 = vld [vmem:[%s3112_s19 + $0x764] ss:$8 sps:$4 sm:$0xff]   ;;  %v2983_v2 = vld [vmem:[%s3112_s19 + $0x360] ss:$8 sps:$4 sm:$0xff]  }
  0xb1   : > { %2150 = vmatprep.subr.bf16.mxu0 %v2904_v3  ;;  %v2986_v3 = vld [vmem:[%s3112_s19 + $0x760] ss:$8 sps:$4 sm:$0xff]  }
  0xb3   : > { %1987 = vmatpush1.bf16.msra.mxu1 %v2899_v4  ;;  %v2991_v4 = vld [vmem:[%s3112_s19 + $0x374] ss:$8 sps:$4 sm:$0xff]  }
  0xb4   : > { %2151 = vmatpush1.bf16.msra.mxu0 %v2902_v5  ;;  %1988 = vmatprep.subr.bf16.mxu1 %v2907_v6  ;;  %v2994_v5 = vld [vmem:[%s3112_s19 + $0x774] ss:$8 sps:$4 sm:$0xff]   ;;  %v2989_v6 = vld [vmem:[%s3112_s19 + $0x370] ss:$8 sps:$4 sm:$0xff]  }
  0xb5   : > { %2152 = vmatprep.subr.bf16.mxu0 %v2910_v7  ;;  %v2992_v7 = vld [vmem:[%s3112_s19 + $0x770] ss:$8 sps:$4 sm:$0xff]  }
  0xb7   : > { %1989 = vmatpush1.bf16.msra.mxu1 %v2905_v8  ;;  %v2997_v8 = vld [vmem:[%s3112_s19 + $0x384] ss:$8 sps:$4 sm:$0xff]  }
  0xb8   : > { %2153 = vmatpush1.bf16.msra.mxu0 %v2908_v9  ;;  %1990 = vmatprep.subr.bf16.mxu1 %v2913_v10  ;;  %v3000_v9 = vld [vmem:[%s3112_s19 + $0x784] ss:$8 sps:$4 sm:$0xff]   ;;  %v2995_v10 = vld [vmem:[%s3112_s19 + $0x380] ss:$8 sps:$4 sm:$0xff]  }
  0xb9   : > { %2154 = vmatprep.subr.bf16.mxu0 %v2916_v11  ;;  %v2998_v11 = vld [vmem:[%s3112_s19 + $0x780] ss:$8 sps:$4 sm:$0xff]  }
  0xbb   : > { %1991 = vmatpush1.bf16.msra.mxu1 %v2911_v12  ;;  %v3003_v12 = vld [vmem:[%s3112_s19 + $0x394] ss:$8 sps:$4 sm:$0xff]  }
  0xbc   : > { %2155 = vmatpush1.bf16.msra.mxu0 %v2914_v13  ;;  %1992 = vmatprep.subr.bf16.mxu1 %v2919_v14  ;;  %v3006_v13 = vld [vmem:[%s3112_s19 + $0x794] ss:$8 sps:$4 sm:$0xff]   ;;  %v3001_v14 = vld [vmem:[%s3112_s19 + $0x390] ss:$8 sps:$4 sm:$0xff]  }
  0xbd   : > { %2156 = vmatprep.subr.bf16.mxu0 %v2922_v15  ;;  %v3004_v15 = vld [vmem:[%s3112_s19 + $0x790] ss:$8 sps:$4 sm:$0xff]  }
  0xbf   : > { %1993 = vmatpush1.bf16.msra.mxu1 %v2917_v18  ;;  %v3009_v18 = vld [vmem:[%s3112_s19 + $0x3a4] ss:$8 sps:$4 sm:$0xff]  }
  0xc0   : > { %2157 = vmatpush1.bf16.msra.mxu0 %v2920_v19  ;;  %1994 = vmatprep.subr.bf16.mxu1 %v2925_v20  ;;  %v3012_v19 = vld [vmem:[%s3112_s19 + $0x7a4] ss:$8 sps:$4 sm:$0xff]   ;;  %v3007_v20 = vld [vmem:[%s3112_s19 + $0x3a0] ss:$8 sps:$4 sm:$0xff]  }
  0xc1   : > { %2158 = vmatprep.subr.bf16.mxu0 %v2928_v21  ;;  %v3010_v21 = vld [vmem:[%s3112_s19 + $0x7a0] ss:$8 sps:$4 sm:$0xff]  }
  0xc3   : > { %1995 = vmatpush1.bf16.msra.mxu1 %v2923_v22  ;;  %v3015_v22 = vld [vmem:[%s3112_s19 + $0x3b4] ss:$8 sps:$4 sm:$0xff]  }
  0xc4   : > { %2159 = vmatpush1.bf16.msra.mxu0 %v2926_v23  ;;  %1996 = vmatprep.subr.bf16.mxu1 %v2931_v52  ;;  %v3018_v23 = vld [vmem:[%s3112_s19 + $0x7b4] ss:$8 sps:$4 sm:$0xff]   ;;  %v3013_v52 = vld [vmem:[%s3112_s19 + $0x3b0] ss:$8 sps:$4 sm:$0xff]  }
  0xc5   : > { %2160 = vmatprep.subr.bf16.mxu0 %v2934_v56  ;;  %v3016_v56 = vld [vmem:[%s3112_s19 + $0x7b0] ss:$8 sps:$4 sm:$0xff]  }
  0xc7   : > { %1997 = vmatpush1.bf16.msra.mxu1 %v2929_v26  ;;  %v3021_v26 = vld [vmem:[%s3112_s19 + $0x3c4] ss:$8 sps:$4 sm:$0xff]  }
  0xc8   : > { %2161 = vmatpush1.bf16.msra.mxu0 %v2932_v27  ;;  %1998 = vmatprep.subr.bf16.mxu1 %v2937_v28  ;;  %v3024_v27 = vld [vmem:[%s3112_s19 + $0x7c4] ss:$8 sps:$4 sm:$0xff]   ;;  %v3019_v28 = vld [vmem:[%s3112_s19 + $0x3c0] ss:$8 sps:$4 sm:$0xff]  }
  0xc9   : > { %2162 = vmatprep.subr.bf16.mxu0 %v2940_v29  ;;  %v3022_v29 = vld [vmem:[%s3112_s19 + $0x7c0] ss:$8 sps:$4 sm:$0xff]  }
  0xcb   : > { %1999 = vmatpush1.bf16.msra.mxu1 %v2935_v30  ;;  %v3027_v30 = vld [vmem:[%s3112_s19 + $0x3d4] ss:$8 sps:$4 sm:$0xff]  }
  0xcc   : > { %2163 = vmatpush1.bf16.msra.mxu0 %v2938_v31  ;;  %2000 = vmatprep.subr.bf16.mxu1 %v2943_v32  ;;  %v3030_v31 = vld [vmem:[%s3112_s19 + $0x7d4] ss:$8 sps:$4 sm:$0xff]   ;;  %v3025_v32 = vld [vmem:[%s3112_s19 + $0x3d0] ss:$8 sps:$4 sm:$0xff]  }
  0xcd   : > { %2164 = vmatprep.subr.bf16.mxu0 %v2946_v33  ;;  %v3028_v33 = vld [vmem:[%s3112_s19 + $0x7d0] ss:$8 sps:$4 sm:$0xff]  }
  0xcf   : > { %2001 = vmatpush1.bf16.msra.mxu1 %v2941_v34  ;;  %v3033_v34 = vld [vmem:[%s3112_s19 + $0x3e4] ss:$8 sps:$4 sm:$0xff]  }
  0xd0   : > { %2165 = vmatpush1.bf16.msra.mxu0 %v2944_v35  ;;  %2011 = vmatprep.subr.bf16.mxu1 %v2949_v17  ;;  %v3036_v35 = vld [vmem:[%s3112_s19 + $0x7e4] ss:$8 sps:$4 sm:$0xff]   ;;  %v3031_v17 = vld [vmem:[%s3112_s19 + $0x3e0] ss:$8 sps:$4 sm:$0xff]  }
  0xd1   : > { %2175 = vmatprep.subr.bf16.mxu0 %v2952_v37  ;;  %v3034_v37 = vld [vmem:[%s3112_s19 + $0x7e0] ss:$8 sps:$4 sm:$0xff]  }
  0xd2   : > { %2003 = vmatmul.mubr.bf16.vlgmr.msra.gmra.mrb[0].mxu1 %v3363_v38 }
  0xd3   : > { %2167 = vmatmul.mubr.bf16.vlgmr.msra.gmra.mrb[0].mxu0 %v3367_v39  ;;  %2012 = vmatpush1.bf16.msra.mxu1 %v2947_v40  ;;  %v3039_v40 = vld [vmem:[%s3112_s19 + $0x3f4] ss:$8 sps:$4 sm:$0xff]  }
  0xd4   : > { %2176 = vmatpush1.bf16.msra.mxu0 %v2950_v41  ;;  %2013 = vmatprep.subr.bf16.mxu1 %v2955_v43  ;;  %v3042_v41 = vld [vmem:[%s3112_s19 + $0x7f4] ss:$8 sps:$4 sm:$0xff]   ;;  %v3037_v43 = vld [vmem:[%s3112_s19 + $0x3f0] ss:$8 sps:$4 sm:$0xff]  }
  0xd5   : > { %2177 = vmatprep.subr.bf16.mxu0 %v2958_v44  ;;  %2043 = vmatprep.mubr.bf16.mxu1 %v542_v24  ;;  %v3040_v44 = vld [vmem:[%s3112_s19 + $0x7f0] ss:$8 sps:$4 sm:$0xff]   ;;  %v540_v24 = vcombine.high %v3363_v38, %v3363_v38 }
  0xd6   : > { %2207 = vmatprep.mubr.bf16.mxu0 %v591_v45  ;;  %v589_v45 = vcombine.high %v3367_v39, %v3367_v39 }
  0xd7   : > { %2014 = vmatpush1.bf16.msra.mxu1 %v2953_v25  ;;  %v484_v25 = vsub.s32 0, %v3153_v42 }
  0xd8   : > { %2178 = vmatpush1.bf16.msra.mxu0 %v2956_v46  ;;  %2015 = vmatprep.subr.bf16.mxu1 %v2961_v36  ;;  %v480_v46 = vld [vmem:[%s3462_s2] sm:$0x3]  ;;  %v488_v36 = vsub.s32 1, %v3153_v42 }
  0xd9   : > { %2179 = vmatprep.subr.bf16.mxu0 %v2964_v47  ;;  %v485_v47 = vrot.slane %v480_v46, %v484_v25 }
  0xdb   : > { %2016 = vmatpush1.bf16.msra.mxu1 %v2959_v16  ;;  %v489_v16 = vrot.slane %v480_v46, %v488_v36 }
  0xdc   : > { %2180 = vmatpush1.bf16.msra.mxu0 %v2962_v48  ;;  %2017 = vmatprep.subr.bf16.mxu1 %v2967_v50 }
  0xdd   : > { %2181 = vmatprep.subr.bf16.mxu0 %v2970_v51 }
  0xdf   : > { %2018 = vmatpush1.bf16.msra.mxu1 %v2965_v53 }
  0xe0   : > { %2182 = vmatpush1.bf16.msra.mxu0 %v2968_v54  ;;  %2019 = vmatprep.subr.bf16.mxu1 %v2973_v55 }
  0xe1   : > { %2183 = vmatprep.subr.bf16.mxu0 %v2976_v57 }
  0xe3   : > { %2020 = vmatpush1.bf16.msra.mxu1 %v2971_v58 }
  0xe4   : > { %2184 = vmatpush1.bf16.msra.mxu0 %v2974_v59  ;;  %2021 = vmatprep.subr.bf16.mxu1 %v2979_v60 }
  0xe5   : > { %2185 = vmatprep.subr.bf16.mxu0 %v2982_v61 }
  0xe7   : > { %2022 = vmatpush1.bf16.msra.mxu1 %v2977_v62 }
  0xe8   : > { %2186 = vmatpush1.bf16.msra.mxu0 %v2980_v63  ;;  %2023 = vmatprep.subr.bf16.mxu1 %v2985_v0 }
  0xe9   : > { %2187 = vmatprep.subr.bf16.mxu0 %v2988_v1 }
  0xeb   : > { %2024 = vmatpush1.bf16.msra.mxu1 %v2983_v2 }
  0xec   : > { %2188 = vmatpush1.bf16.msra.mxu0 %v2986_v3  ;;  %2025 = vmatprep.subr.bf16.mxu1 %v2991_v4 }
  0xed   : > { %2189 = vmatprep.subr.bf16.mxu0 %v2994_v5 }
  0xef   : > { %2026 = vmatpush1.bf16.msra.mxu1 %v2989_v6 }
  0xf0   : > { %2190 = vmatpush1.bf16.msra.mxu0 %v2992_v7  ;;  %2027 = vmatprep.subr.bf16.mxu1 %v2997_v8 }
  0xf1   : > { %2191 = vmatprep.subr.bf16.mxu0 %v3000_v9 }
  0xf3   : > { %2028 = vmatpush1.bf16.msra.mxu1 %v2995_v10 }
  0xf4   : > { %2192 = vmatpush1.bf16.msra.mxu0 %v2998_v11  ;;  %2029 = vmatprep.subr.bf16.mxu1 %v3003_v12 }
  0xf5   : > { %2193 = vmatprep.subr.bf16.mxu0 %v3006_v13 }
  0xf7   : > { %2030 = vmatpush1.bf16.msra.mxu1 %v3001_v14 }
  0xf8   : > { %2194 = vmatpush1.bf16.msra.mxu0 %v3004_v15  ;;  %2031 = vmatprep.subr.bf16.mxu1 %v3009_v18 }
  0xf9   : > { %2195 = vmatprep.subr.bf16.mxu0 %v3012_v19 }
  0xfb   : > { %2032 = vmatpush1.bf16.msra.mxu1 %v3007_v20 }
  0xfc   : > { %2196 = vmatpush1.bf16.msra.mxu0 %v3010_v21  ;;  %2033 = vmatprep.subr.bf16.mxu1 %v3015_v22 }
  0xfd   : > { %2197 = vmatprep.subr.bf16.mxu0 %v3018_v23 }
  0xff   : > { %2034 = vmatpush1.bf16.msra.mxu1 %v3013_v52 }
 0x100   : > { %2198 = vmatpush1.bf16.msra.mxu0 %v3016_v56  ;;  %2035 = vmatprep.subr.bf16.mxu1 %v3021_v26 }
 0x101   : > { %2199 = vmatprep.subr.bf16.mxu0 %v3024_v27 }
 0x103   : > { %2036 = vmatpush1.bf16.msra.mxu1 %v3019_v28 }
 0x104   : > { %2200 = vmatpush1.bf16.msra.mxu0 %v3022_v29  ;;  %2037 = vmatprep.subr.bf16.mxu1 %v3027_v30 }
 0x105   : > { %2201 = vmatprep.subr.bf16.mxu0 %v3030_v31 }
 0x107   : > { %2038 = vmatpush1.bf16.msra.mxu1 %v3025_v32 }
 0x108   : > { %2202 = vmatpush1.bf16.msra.mxu0 %v3028_v33  ;;  %2039 = vmatprep.subr.bf16.mxu1 %v3033_v34 }
 0x109   : > { %2203 = vmatprep.subr.bf16.mxu0 %v3036_v35 }
 0x10b   : > { %2040 = vmatpush1.bf16.msra.mxu1 %v3031_v17 }
 0x10c   : > { %2204 = vmatpush1.bf16.msra.mxu0 %v3034_v37  ;;  %2041 = vmatprep.subr.bf16.mxu1 %v3039_v40 }
 0x10d   : > { %2205 = vmatprep.subr.bf16.mxu0 %v3042_v41 }
 0x10f   : > { %2042 = vmatpush1.bf16.msra.mxu1 %v3037_v43 }
 0x110   : > { %2206 = vmatpush1.bf16.msra.mxu0 %v3040_v44 }
 0x112   : > { %2044 = vmatmul.mubr.bf16.vlgmr.msra.gmra.mrb[0].mxu1 %v540_v24 }
 0x113   : > { %2208 = vmatmul.mubr.bf16.vlgmr.msra.gmra.mrb[0].mxu0 %v589_v45 }
 0x1e5   : > { %v2045_v48 = vpop.f32.mrb[0].mxu1 }
 0x1e6   : > { %v2209_v38 = vpop.f32.mrb[0].mxu0  ;;  %v2604_v50 = vadd.f32 %v2045_v48, %v485_v47  ;;  %v2047_v51 = vpop.f32.mrb[1].mxu1 }
 0x1e7   : > { %v2211_v39 = vpop.f32.mrb[1].mxu0  ;;  %v2606_v53 = vadd.f32 %v2047_v51, %v489_v16  ;;  %v2049_v54 = vpop.f32.mrb[2].mxu1 }
 0x1e8   : > { %v2213_v55 = vpop.f32.mrb[2].mxu0  ;;  %v2605_v57 = vadd.f32 %v2604_v50, %v2209_v38  ;;  %v2050_v58 = vpop.f32.mrb[3].mxu1 }
 0x1e9   : > { %v2214_v59 = vpop.f32.mrb[3].mxu0  ;;  %v2607_v60 = vadd.f32 %v2606_v53, %v2211_v39 }
 0x1ea   : > { %v2216_v61 = vmax.f32 %v2605_v57, 0.0 }
 0x1eb   : > { %v2217_v62 = vmax.f32 %v2607_v60, 0.0 }
 0x1ed   : > { %v2599_v63 = vpack.c.bf16 %v2217_v62, %v2216_v61 }
 0x1ef   : > { %v2229_v42 = vrot.slane %v2599_v63, %v3165_v49 }
 0x1f1   : > { %2600 = vst.sshfl [vmem:[%s221_s29] sm:$0x5 pattern:$0x73625140] %v2229_v42 }
 0x1f2 PF: > { %s13_s14 = sadd.s32 1, %s3065_s14   ;;  %s3464_s12 = smov %s3061_s13 }
 0x1f3   : > { %p10_p5 = scmp.ge.s32.totalorder %s13_s14, 6   ;;  %s3465_s13 = smov %s3467_s15 }
 0x1f5   :  { %12 = sbr.rel (!%p10_p5) target bundleno = 2 (0x2), region = 65 }

// kernel: autoencoder_forward.14
= control target key start
LH: loop header
LB: loop body
LE: loop exit
PB: predicated region body
PF: predicated region fallthrough
CT: control target
= control target key end

     0   :  { %s1013_s12 = smov 0   ;;  %s1015_s13 = smov 0   ;;  %s1091_s0 = inlined_call_operand.vmem [shape: bf16[4,32,512], index: 0, kind: input, shape index: {}]   ;;  %s1092_s1 = inlined_call_operand.vmem [shape: bf16[4,512,128], index: 1, kind: input, shape index: {}]   ;;  %s1093_s2 = inlined_call_operand.vmem [shape: f32[1,128], index: 2, kind: input, shape index: {}]   ;;  %s1094_s3 = inlined_call_operand.vmem [shape: bf16[4,32,128], index: 3, kind: output, shape index: {}]  }
   0x1   :  { %s1017_s14 = smov 0  }
   0x2 LB: > { %s25_s15 = sadd.s32 1, %s987_s13  ;;  %p773_p0 = scmp.ge.s32.totalorder %s991_s14, 1  ;;  %s991_s14 = sphi %s1017_s14, %s13_s14   ;;  %s987_s13 = sphi %s1015_s13, %s1096_s13   ;;  %s983_s12 = sphi %s1013_s12, %s1095_s12  }
   0x3   : > { %p27_p1 = scmp.ge.s32.totalorder %s25_s15, 4  ;;  %p169_p2 = scmp.lt.s32.totalorder %s991_s14, 5 }
   0x5   : > { %s1098_s15 = smov (%p27_p1, %s25_s15), 0  ;;  %p170_p3 = pnand %p773_p0, %p169_p2 }
   0x6   : > { %p208_p4 = scmp.lt.s32.totalorder (!%p170_p3), %s983_s12, 3  ;;  %v780_v42 = vld [vmem:[%s1093_s2] ss:$0 sm:$0xff] (!%p170_p3) }
   0x7   : > { %173 = sbr.rel (%p170_p3) target bundleno = 285 (0x11d), region = 32 }
   0xe   : > { %s1100_s12 = smov (!%p208_p4, %s983_s12), 3 }
   0xf   : > { %s828_s16 = sshll.u32 %s1100_s12, 8  ;;  %s827_s20 = sshll.u32 %s1100_s12, 6 }
  0x10   : > { %s1037_s19 = scalar_lea.vmem %s1092_s1, %s828_s16  ;;  %s216_s23 = scalar_lea.vmem %s1091_s0, %s827_s20 }
  0x11   : > { %v925_v0 = vld [vmem:[%s1037_s19 + $0x40] sm:$0xff]   ;;  %v929_v4 = vld [vmem:[%s1037_s19 + $0x48] sm:$0xff]   ;;  %v933_v8 = vld [vmem:[%s1037_s19 + $0x50] sm:$0xff]   ;;  %s829_s26 = sshll.u32 %s1100_s12, 4 }
  0x12   : > { %v926_v1 = vld [vmem:[%s1037_s19 + $0xc0] sm:$0xff]   ;;  %845 = vmatprep.subr.bf16.mxu0 %v925_v0  ;;  %v930_v5 = vld [vmem:[%s1037_s19 + $0xc8] sm:$0xff]   ;;  %v934_v9 = vld [vmem:[%s1037_s19 + $0xd0] sm:$0xff]   ;;  %s231_s29 = scalar_lea.vmem %s1094_s3, %s829_s26 }
  0x13   : > { %v927_v2 = vld [vmem:[%s1037_s19] sm:$0xff]   ;;  %873 = vmatprep.subr.bf16.mxu1 %v926_v1  ;;  %v931_v6 = vld [vmem:[%s1037_s19 + $0x8] sm:$0xff]   ;;  %v935_v10 = vld [vmem:[%s1037_s19 + $0x10] sm:$0xff]  }
  0x14   : > { %v928_v3 = vld [vmem:[%s1037_s19 + $0x80] sm:$0xff]   ;;  %846 = vmatpush3.bf16.msra.mxu0 %v927_v2  ;;  %v932_v7 = vld [vmem:[%s1037_s19 + $0x88] sm:$0xff]   ;;  %v936_v11 = vld [vmem:[%s1037_s19 + $0x90] sm:$0xff]  }
  0x15   : > { %874 = vmatpush3.bf16.msra.mxu1 %v928_v3  ;;  %847 = vmatprep.subr.bf16.mxu0 %v929_v4  ;;  %v937_v12 = vld [vmem:[%s1037_s19 + $0x58] sm:$0xff]   ;;  %v941_v16 = vld [vmem:[%s1037_s19 + $0x60] sm:$0xff]   ;;  %v945_v20 = vld [vmem:[%s1037_s19 + $0x68] sm:$0xff]  }
  0x16   : > { %875 = vmatprep.subr.bf16.mxu1 %v930_v5  ;;  %v938_v13 = vld [vmem:[%s1037_s19 + $0xd8] sm:$0xff]   ;;  %v942_v17 = vld [vmem:[%s1037_s19 + $0xe0] sm:$0xff]   ;;  %v946_v21 = vld [vmem:[%s1037_s19 + $0xe8] sm:$0xff]  }
  0x17   : > { %v939_v14 = vld [vmem:[%s1037_s19 + $0x18] sm:$0xff]   ;;  %v943_v18 = vld [vmem:[%s1037_s19 + $0x20] sm:$0xff]   ;;  %v947_v22 = vld [vmem:[%s1037_s19 + $0x28] sm:$0xff]  }
  0x18   : > { %848 = vmatpush3.bf16.msra.mxu0 %v931_v6  ;;  %v940_v15 = vld [vmem:[%s1037_s19 + $0x98] sm:$0xff]   ;;  %v944_v19 = vld [vmem:[%s1037_s19 + $0xa0] sm:$0xff]   ;;  %v948_v23 = vld [vmem:[%s1037_s19 + $0xa8] sm:$0xff]  }
  0x19   : > { %876 = vmatpush3.bf16.msra.mxu1 %v932_v7  ;;  %849 = vmatprep.subr.bf16.mxu0 %v933_v8  ;;  %v949_v24 = vld [vmem:[%s1037_s19 + $0x70] sm:$0xff]   ;;  %v953_v28 = vld [vmem:[%s1037_s19 + $0x78] sm:$0xff]  }
  0x1a   : > { %877 = vmatprep.subr.bf16.mxu1 %v934_v9  ;;  %v950_v25 = vld [vmem:[%s1037_s19 + $0xf0] sm:$0xff]   ;;  %v954_v29 = vld [vmem:[%s1037_s19 + $0xf8] sm:$0xff]  }
  0x1b   : > { %v951_v26 = vld [vmem:[%s1037_s19 + $0x30] sm:$0xff]   ;;  %v955_v30 = vld [vmem:[%s1037_s19 + $0x38] sm:$0xff]  }
  0x1c   : > { %850 = vmatpush3.bf16.msra.mxu0 %v935_v10  ;;  %v952_v27 = vld [vmem:[%s1037_s19 + $0xb0] sm:$0xff]   ;;  %v956_v31 = vld [vmem:[%s1037_s19 + $0xb8] sm:$0xff]  }
  0x1d   : > { %878 = vmatpush3.bf16.msra.mxu1 %v936_v11  ;;  %851 = vmatprep.subr.bf16.mxu0 %v937_v12  ;;  %v957_v32 = vld [vmem:[%s216_s23] ss:$16 sps:$4 sm:$0xff]   ;;  %v959_v33 = vld [vmem:[%s216_s23 + $0x4] ss:$16 sps:$4 sm:$0xff]   ;;  %v960_v34 = vld [vmem:[%s216_s23 + $0x8] ss:$16 sps:$4 sm:$0xff]  }
  0x1e   : > { %879 = vmatprep.subr.bf16.mxu1 %v938_v13  ;;  %v962_v35 = vld [vmem:[%s216_s23 + $0xc] ss:$16 sps:$4 sm:$0xff]   ;;  %577 = vmatprep.mubr.bf16.mxu0 %v959_v33  ;;  %v963_v36 = vld [vmem:[%s216_s23 + $0x24] ss:$16 sps:$4 sm:$0xff]   ;;  %v967_v38 = vld [vmem:[%s216_s23 + $0x20] ss:$16 sps:$4 sm:$0xff]  }
  0x1f   : > { %626 = vmatprep.mubr.bf16.mxu1 %v962_v35  ;;  %v965_v37 = vld [vmem:[%s216_s23 + $0x2c] ss:$16 sps:$4 sm:$0xff]   ;;  %v968_v39 = vld [vmem:[%s216_s23 + $0x28] ss:$16 sps:$4 sm:$0xff]  }
  0x20   : > { %852 = vmatpush3.bf16.msra.mxu0 %v939_v14 }
  0x21   : > { %880 = vmatpush3.bf16.msra.mxu1 %v940_v15  ;;  %853 = vmatprep.subr.bf16.mxu0 %v941_v16 }
  0x22   : > { %881 = vmatprep.subr.bf16.mxu1 %v942_v17 }
  0x24   : > { %854 = vmatpush3.bf16.msra.mxu0 %v943_v18 }
  0x25   : > { %882 = vmatpush3.bf16.msra.mxu1 %v944_v19  ;;  %855 = vmatprep.subr.bf16.mxu0 %v945_v20 }
  0x26   : > { %883 = vmatprep.subr.bf16.mxu1 %v946_v21 }
  0x28   : > { %856 = vmatpush3.bf16.msra.mxu0 %v947_v22 }
  0x29   : > { %884 = vmatpush3.bf16.msra.mxu1 %v948_v23  ;;  %857 = vmatprep.subr.bf16.mxu0 %v949_v24 }
  0x2a   : > { %885 = vmatprep.subr.bf16.mxu1 %v950_v25 }
  0x2c   : > { %858 = vmatpush3.bf16.msra.mxu0 %v951_v26 }
  0x2d   : > { %886 = vmatpush3.bf16.msra.mxu1 %v952_v27  ;;  %859 = vmatprep.subr.bf16.mxu0 %v953_v28 }
  0x2e   : > { %887 = vmatprep.subr.bf16.mxu1 %v954_v29 }
  0x30   : > { %860 = vmatpush3.bf16.msra.mxu0 %v955_v30 }
  0x31   : > { %888 = vmatpush3.bf16.msra.mxu1 %v956_v31 }
  0x33   : > { %578 = vmatmul.mubr.bf16.vlgmr.msra.gmra.mrb[0].mxu0 %v957_v32 }
  0x34   : > { %627 = vmatmul.mubr.bf16.vlgmr.msra.gmra.mrb[0].mxu1 %v960_v34  ;;  %585 = vmatprep.mubr.bf16.mxu0 %v963_v36 }
  0x35   : > { %634 = vmatprep.mubr.bf16.mxu1 %v965_v37 }
  0x3b   : > { %586 = vmatmul.mubr.bf16.gmra.mrb[4].mxu0 %v967_v38 }
  0x3c   : > { %635 = vmatmul.mubr.bf16.gmra.mrb[4].mxu1 %v968_v39 }
 0x106   : > { %v861_v40 = vpop.f32.mrb[0].mxu0 }
 0x107   : > { %v889_v41 = vpop.f32.mrb[0].mxu1  ;;  %v862_v43 = vpop.f32.mrb[1].mxu0 }
 0x108   : > { %v863_v44 = vadd.f32 %v862_v43, %v861_v40  ;;  %v890_v45 = vpop.f32.mrb[1].mxu1  ;;  %v864_v46 = vpop.f32.mrb[2].mxu0 }
 0x109   : > { %v891_v47 = vadd.f32 %v890_v45, %v889_v41  ;;  %v892_v48 = vpop.f32.mrb[2].mxu1  ;;  %v865_v49 = vpop.f32.mrb[3].mxu0 }
 0x10a   : > { %v580_v50 = vadd.f32 %v863_v44, %v780_v42  ;;  %v866_v51 = vadd.f32 %v865_v49, %v864_v46  ;;  %v893_v52 = vpop.f32.mrb[3].mxu1 }
 0x10b   : > { %v894_v53 = vadd.f32 %v893_v52, %v892_v48 }
 0x10c   : > { %v629_v54 = vadd.f32 %v891_v47, %v580_v50  ;;  %v583_v55 = vadd.f32 %v866_v51, %v780_v42 }
 0x10e   : > { %v632_v56 = vadd.f32 %v894_v53, %v583_v55  ;;  %v867_v57 = vpop.f32.mrb[4].mxu0  ;;  %v643_v60 = vmax.f32 %v629_v54, 0.0 }
 0x10f   : > { %v895_v58 = vpop.f32.mrb[4].mxu1  ;;  %v868_v59 = vpop.f32.mrb[5].mxu0 }
 0x110   : > { %v644_v61 = vmax.f32 %v632_v56, 0.0  ;;  %v869_v62 = vadd.f32 %v868_v59, %v867_v57  ;;  %v896_v63 = vpop.f32.mrb[5].mxu1  ;;  %v870_v0 = vpop.f32.mrb[6].mxu0 }
 0x111   : > { %v897_v1 = vadd.f32 %v896_v63, %v895_v58  ;;  %v898_v2 = vpop.f32.mrb[6].mxu1  ;;  %v871_v3 = vpop.f32.mrb[7].mxu0 }
 0x112   : > { %v837_v4 = vpack.c.bf16 %v644_v61, %v643_v60  ;;  %v588_v5 = vadd.f32 %v869_v62, %v780_v42  ;;  %v872_v6 = vadd.f32 %v871_v3, %v870_v0  ;;  %v899_v7 = vpop.f32.mrb[7].mxu1 }
 0x113   : > { %v900_v8 = vadd.f32 %v899_v7, %v898_v2 }
 0x114   : > { %838 = vst [vmem:[%s231_s29] sm:$0xff] %v837_v4   ;;  %v637_v9 = vadd.f32 %v897_v1, %v588_v5  ;;  %v591_v10 = vadd.f32 %v872_v6, %v780_v42 }
 0x116   : > { %v640_v11 = vadd.f32 %v900_v8, %v591_v10  ;;  %v645_v12 = vmax.f32 %v637_v9, 0.0 }
 0x118   : > { %v646_v13 = vmax.f32 %v640_v11, 0.0 }
 0x11a   : > { %v842_v14 = vpack.c.bf16 %v646_v13, %v645_v12 }
 0x11c   : > { %844 = vst [vmem:[%s231_s29 + $0x8] sm:$0xff] %v842_v14  }
 0x11d PF: > { %s13_s14 = sadd.s32 1, %s991_s14   ;;  %s1095_s12 = smov %s987_s13 }
 0x11e   : > { %p10_p5 = scmp.ge.s32.totalorder %s13_s14, 6   ;;  %s1096_s13 = smov %s1098_s15 }
 0x120   :  { %12 = sbr.rel (!%p10_p5) target bundleno = 2 (0x2), region = 65 }

// kernel: autoencoder_forward.15
= control target key start
LH: loop header
LB: loop body
LE: loop exit
PB: predicated region body
PF: predicated region fallthrough
CT: control target
= control target key end

     0   :  { %s1677_s12 = smov 0   ;;  %s1679_s13 = smov 0   ;;  %s1820_s0 = inlined_call_operand.vmem [shape: bf16[4,128,512], index: 0, kind: input, shape index: {}]   ;;  %s1821_s1 = inlined_call_operand.vmem [shape: bf16[4,512,128], index: 1, kind: input, shape index: {}]   ;;  %s1822_s2 = inlined_call_operand.vmem [shape: f32[1,128], index: 2, kind: input, shape index: {}]   ;;  %s1823_s3 = inlined_call_operand.vmem [shape: bf16[4,128,128], index: 3, kind: output, shape index: {}]  }
   0x1   :  { %s1681_s14 = smov 0  }
   0x2 LB: > { %s25_s15 = sadd.s32 1, %s1651_s13  ;;  %p1165_p0 = scmp.ge.s32.totalorder %s1655_s14, 1  ;;  %s1655_s14 = sphi %s1681_s14, %s13_s14   ;;  %s1651_s13 = sphi %s1679_s13, %s1825_s13   ;;  %s1647_s12 = sphi %s1677_s12, %s1824_s12  }
   0x3   : > { %p27_p1 = scmp.ge.s32.totalorder %s25_s15, 4  ;;  %p169_p2 = scmp.lt.s32.totalorder %s1655_s14, 5 }
   0x5   : > { %s1827_s15 = smov (%p27_p1, %s25_s15), 0  ;;  %p170_p3 = pnand %p1165_p0, %p169_p2 }
   0x6   : > { %p208_p4 = scmp.lt.s32.totalorder (!%p170_p3), %s1647_s12, 3 }
   0x7   : > { %173 = sbr.rel (%p170_p3) target bundleno = 358 (0x166), region = 32 }
   0xe   : > { %s1829_s12 = smov (!%p208_p4, %s1647_s12), 3 }
   0xf   : > { %s1271_s16 = sshll.u32 %s1829_s12, 8  ;;  %s1273_s25 = sshll.u32 %s1829_s12, 6 }
  0x10   : > { %s1703_s19 = scalar_lea.vmem %s1821_s1, %s1271_s16  ;;  %s1740_s22 = scalar_lea.vmem %s1820_s0, %s1271_s16 }
  0x11   : > { %v1489_v0 = vld [vmem:[%s1703_s19 + $0x40] sm:$0xff]   ;;  %v1493_v4 = vld [vmem:[%s1703_s19 + $0x48] sm:$0xff]   ;;  %v1497_v8 = vld [vmem:[%s1703_s19 + $0x50] sm:$0xff]   ;;  %s1793_s28 = scalar_lea.vmem %s1823_s3, %s1273_s25 }
  0x12   : > { %v1490_v1 = vld [vmem:[%s1703_s19 + $0xc0] sm:$0xff]   ;;  %1337 = vmatprep.subr.bf16.mxu0 %v1489_v0  ;;  %v1494_v5 = vld [vmem:[%s1703_s19 + $0xc8] sm:$0xff]   ;;  %v1498_v9 = vld [vmem:[%s1703_s19 + $0xd0] sm:$0xff]  }
  0x13   : > { %v1491_v2 = vld [vmem:[%s1703_s19] sm:$0xff]   ;;  %1401 = vmatprep.subr.bf16.mxu1 %v1490_v1  ;;  %v1495_v6 = vld [vmem:[%s1703_s19 + $0x8] sm:$0xff]   ;;  %v1499_v10 = vld [vmem:[%s1703_s19 + $0x10] sm:$0xff]  }
  0x14   : > { %v1492_v3 = vld [vmem:[%s1703_s19 + $0x80] sm:$0xff]   ;;  %1338 = vmatpush3.bf16.msra.mxu0 %v1491_v2  ;;  %v1496_v7 = vld [vmem:[%s1703_s19 + $0x88] sm:$0xff]   ;;  %v1500_v11 = vld [vmem:[%s1703_s19 + $0x90] sm:$0xff]  }
  0x15   : > { %1402 = vmatpush3.bf16.msra.mxu1 %v1492_v3  ;;  %1339 = vmatprep.subr.bf16.mxu0 %v1493_v4  ;;  %v1501_v12 = vld [vmem:[%s1703_s19 + $0x58] sm:$0xff]   ;;  %v1505_v16 = vld [vmem:[%s1703_s19 + $0x60] sm:$0xff]   ;;  %v1509_v20 = vld [vmem:[%s1703_s19 + $0x68] sm:$0xff]  }
  0x16   : > { %1403 = vmatprep.subr.bf16.mxu1 %v1494_v5  ;;  %v1502_v13 = vld [vmem:[%s1703_s19 + $0xd8] sm:$0xff]   ;;  %v1506_v17 = vld [vmem:[%s1703_s19 + $0xe0] sm:$0xff]   ;;  %v1510_v21 = vld [vmem:[%s1703_s19 + $0xe8] sm:$0xff]  }
  0x17   : > { %v1503_v14 = vld [vmem:[%s1703_s19 + $0x18] sm:$0xff]   ;;  %v1507_v18 = vld [vmem:[%s1703_s19 + $0x20] sm:$0xff]   ;;  %v1511_v22 = vld [vmem:[%s1703_s19 + $0x28] sm:$0xff]  }
  0x18   : > { %1340 = vmatpush3.bf16.msra.mxu0 %v1495_v6  ;;  %v1504_v15 = vld [vmem:[%s1703_s19 + $0x98] sm:$0xff]   ;;  %v1508_v19 = vld [vmem:[%s1703_s19 + $0xa0] sm:$0xff]   ;;  %v1512_v23 = vld [vmem:[%s1703_s19 + $0xa8] sm:$0xff]  }
  0x19   : > { %1404 = vmatpush3.bf16.msra.mxu1 %v1496_v7  ;;  %1341 = vmatprep.subr.bf16.mxu0 %v1497_v8  ;;  %v1513_v24 = vld [vmem:[%s1703_s19 + $0x70] sm:$0xff]   ;;  %v1517_v28 = vld [vmem:[%s1703_s19 + $0x78] sm:$0xff]   ;;  %v1779_v2 = vld [vmem:[%s1822_s2] ss:$0 sm:$0xff] }
  0x1a   : > { %1405 = vmatprep.subr.bf16.mxu1 %v1498_v9  ;;  %v1514_v25 = vld [vmem:[%s1703_s19 + $0xf0] sm:$0xff]   ;;  %v1518_v29 = vld [vmem:[%s1703_s19 + $0xf8] sm:$0xff]  }
  0x1b   : > { %v1515_v26 = vld [vmem:[%s1703_s19 + $0x30] sm:$0xff]   ;;  %v1519_v30 = vld [vmem:[%s1703_s19 + $0x38] sm:$0xff]  }
  0x1c   : > { %1342 = vmatpush3.bf16.msra.mxu0 %v1499_v10  ;;  %v1516_v27 = vld [vmem:[%s1703_s19 + $0xb0] sm:$0xff]   ;;  %v1520_v31 = vld [vmem:[%s1703_s19 + $0xb8] sm:$0xff]  }
  0x1d   : > { %1406 = vmatpush3.bf16.msra.mxu1 %v1500_v11  ;;  %1343 = vmatprep.subr.bf16.mxu0 %v1501_v12  ;;  %v1521_v32 = vld [vmem:[%s1740_s22] ss:$16 sps:$4 sm:$0xff]   ;;  %v1523_v33 = vld [vmem:[%s1740_s22 + $0x4] ss:$16 sps:$4 sm:$0xff]   ;;  %v1524_v34 = vld [vmem:[%s1740_s22 + $0x8] ss:$16 sps:$4 sm:$0xff]  }
  0x1e   : > { %1407 = vmatprep.subr.bf16.mxu1 %v1502_v13  ;;  %v1526_v35 = vld [vmem:[%s1740_s22 + $0xc] ss:$16 sps:$4 sm:$0xff]   ;;  %721 = vmatprep.mubr.bf16.mxu0 %v1523_v33  ;;  %v1527_v36 = vld [vmem:[%s1740_s22 + $0x24] ss:$16 sps:$4 sm:$0xff]   ;;  %v1531_v38 = vld [vmem:[%s1740_s22 + $0x20] ss:$16 sps:$4 sm:$0xff]  }
  0x1f   : > { %818 = vmatprep.mubr.bf16.mxu1 %v1526_v35  ;;  %v1529_v37 = vld [vmem:[%s1740_s22 + $0x2c] ss:$16 sps:$4 sm:$0xff]   ;;  %v1532_v39 = vld [vmem:[%s1740_s22 + $0x28] ss:$16 sps:$4 sm:$0xff]   ;;  %v1533_v40 = vld [vmem:[%s1740_s22 + $0x44] ss:$16 sps:$4 sm:$0xff]  }
  0x20   : > { %1344 = vmatpush3.bf16.msra.mxu0 %v1503_v14  ;;  %v1535_v41 = vld [vmem:[%s1740_s22 + $0x4c] ss:$16 sps:$4 sm:$0xff]   ;;  %v1537_v42 = vld [vmem:[%s1740_s22 + $0x40] ss:$16 sps:$4 sm:$0xff]   ;;  %v1538_v43 = vld [vmem:[%s1740_s22 + $0x48] ss:$16 sps:$4 sm:$0xff]  }
  0x21   : > { %1408 = vmatpush3.bf16.msra.mxu1 %v1504_v15  ;;  %1345 = vmatprep.subr.bf16.mxu0 %v1505_v16  ;;  %v1539_v44 = vld [vmem:[%s1740_s22 + $0x64] ss:$16 sps:$4 sm:$0xff]   ;;  %v1541_v45 = vld [vmem:[%s1740_s22 + $0x6c] ss:$16 sps:$4 sm:$0xff]   ;;  %v1543_v46 = vld [vmem:[%s1740_s22 + $0x60] ss:$16 sps:$4 sm:$0xff]  }
  0x22   : > { %1409 = vmatprep.subr.bf16.mxu1 %v1506_v17  ;;  %v1544_v47 = vld [vmem:[%s1740_s22 + $0x68] ss:$16 sps:$4 sm:$0xff]   ;;  %v1545_v48 = vld [vmem:[%s1740_s22 + $0x84] ss:$16 sps:$4 sm:$0xff]   ;;  %v1547_v49 = vld [vmem:[%s1740_s22 + $0x8c] ss:$16 sps:$4 sm:$0xff]  }
  0x23   : > { %v1549_v50 = vld [vmem:[%s1740_s22 + $0x80] ss:$16 sps:$4 sm:$0xff]   ;;  %v1550_v51 = vld [vmem:[%s1740_s22 + $0x88] ss:$16 sps:$4 sm:$0xff]   ;;  %v1551_v52 = vld [vmem:[%s1740_s22 + $0xa4] ss:$16 sps:$4 sm:$0xff]  }
  0x24   : > { %1346 = vmatpush3.bf16.msra.mxu0 %v1507_v18  ;;  %v1553_v53 = vld [vmem:[%s1740_s22 + $0xac] ss:$16 sps:$4 sm:$0xff]   ;;  %v1555_v54 = vld [vmem:[%s1740_s22 + $0xa0] ss:$16 sps:$4 sm:$0xff]   ;;  %v1556_v55 = vld [vmem:[%s1740_s22 + $0xa8] ss:$16 sps:$4 sm:$0xff]  }
  0x25   : > { %1410 = vmatpush3.bf16.msra.mxu1 %v1508_v19  ;;  %1347 = vmatprep.subr.bf16.mxu0 %v1509_v20  ;;  %v1557_v56 = vld [vmem:[%s1740_s22 + $0xc4] ss:$16 sps:$4 sm:$0xff]   ;;  %v1559_v57 = vld [vmem:[%s1740_s22 + $0xcc] ss:$16 sps:$4 sm:$0xff]   ;;  %v1561_v58 = vld [vmem:[%s1740_s22 + $0xc0] ss:$16 sps:$4 sm:$0xff]  }
  0x26   : > { %1411 = vmatprep.subr.bf16.mxu1 %v1510_v21  ;;  %v1562_v59 = vld [vmem:[%s1740_s22 + $0xc8] ss:$16 sps:$4 sm:$0xff]   ;;  %v1563_v60 = vld [vmem:[%s1740_s22 + $0xe4] ss:$16 sps:$4 sm:$0xff]   ;;  %v1565_v61 = vld [vmem:[%s1740_s22 + $0xec] ss:$16 sps:$4 sm:$0xff]  }
  0x27   : > { %v1567_v62 = vld [vmem:[%s1740_s22 + $0xe0] ss:$16 sps:$4 sm:$0xff]   ;;  %v1568_v63 = vld [vmem:[%s1740_s22 + $0xe8] ss:$16 sps:$4 sm:$0xff]  }
  0x28   : > { %1348 = vmatpush3.bf16.msra.mxu0 %v1511_v22 }
  0x29   : > { %1412 = vmatpush3.bf16.msra.mxu1 %v1512_v23  ;;  %1349 = vmatprep.subr.bf16.mxu0 %v1513_v24 }
  0x2a   : > { %1413 = vmatprep.subr.bf16.mxu1 %v1514_v25 }
  0x2c   : > { %1350 = vmatpush3.bf16.msra.mxu0 %v1515_v26 }
  0x2d   : > { %1414 = vmatpush3.bf16.msra.mxu1 %v1516_v27  ;;  %1351 = vmatprep.subr.bf16.mxu0 %v1517_v28 }
  0x2e   : > { %1415 = vmatprep.subr.bf16.mxu1 %v1518_v29 }
  0x30   : > { %1352 = vmatpush3.bf16.msra.mxu0 %v1519_v30 }
  0x31   : > { %1416 = vmatpush3.bf16.msra.mxu1 %v1520_v31 }
  0x33   : > { %722 = vmatmul.mubr.bf16.vlgmr.msra.gmra.mrb[0].mxu0 %v1521_v32 }
  0x34   : > { %819 = vmatmul.mubr.bf16.vlgmr.msra.gmra.mrb[0].mxu1 %v1524_v34  ;;  %729 = vmatprep.mubr.bf16.mxu0 %v1527_v36 }
  0x35   : > { %826 = vmatprep.mubr.bf16.mxu1 %v1529_v37 }
  0x3b   : > { %730 = vmatmul.mubr.bf16.gmra.mrb[4].mxu0 %v1531_v38 }
  0x3c   : > { %827 = vmatmul.mubr.bf16.gmra.mrb[4].mxu1 %v1532_v39  ;;  %737 = vmatprep.mubr.bf16.mxu0 %v1533_v40 }
  0x3d   : > { %834 = vmatprep.mubr.bf16.mxu1 %v1535_v41 }
  0x43   : > { %738 = vmatmul.mubr.bf16.gmra.mrb[8].mxu0 %v1537_v42 }
  0x44   : > { %835 = vmatmul.mubr.bf16.gmra.mrb[8].mxu1 %v1538_v43  ;;  %745 = vmatprep.mubr.bf16.mxu0 %v1539_v44 }
  0x45   : > { %842 = vmatprep.mubr.bf16.mxu1 %v1541_v45 }
  0x4b   : > { %746 = vmatmul.mubr.bf16.gmra.mrb[12].mxu0 %v1543_v46 }
  0x4c   : > { %843 = vmatmul.mubr.bf16.gmra.mrb[12].mxu1 %v1544_v47  ;;  %753 = vmatprep.mubr.bf16.mxu0 %v1545_v48 }
  0x4d   : > { %850 = vmatprep.mubr.bf16.mxu1 %v1547_v49 }
  0x53   : > { %754 = vmatmul.mubr.bf16.gmra.mrb[16].mxu0 %v1549_v50 }
  0x54   : > { %851 = vmatmul.mubr.bf16.gmra.mrb[16].mxu1 %v1550_v51  ;;  %761 = vmatprep.mubr.bf16.mxu0 %v1551_v52 }
  0x55   : > { %858 = vmatprep.mubr.bf16.mxu1 %v1553_v53 }
  0x5b   : > { %762 = vmatmul.mubr.bf16.gmra.mrb[20].mxu0 %v1555_v54 }
  0x5c   : > { %859 = vmatmul.mubr.bf16.gmra.mrb[20].mxu1 %v1556_v55  ;;  %769 = vmatprep.mubr.bf16.mxu0 %v1557_v56 }
  0x5d   : > { %866 = vmatprep.mubr.bf16.mxu1 %v1559_v57 }
  0x63   : > { %770 = vmatmul.mubr.bf16.gmra.mrb[24].mxu0 %v1561_v58 }
  0x64   : > { %867 = vmatmul.mubr.bf16.gmra.mrb[24].mxu1 %v1562_v59  ;;  %777 = vmatprep.mubr.bf16.mxu0 %v1563_v60 }
  0x65   : > { %874 = vmatprep.mubr.bf16.mxu1 %v1565_v61 }
  0x6b   : > { %778 = vmatmul.mubr.bf16.gmra.mrb[28].mxu0 %v1567_v62 }
  0x6c   : > { %875 = vmatmul.mubr.bf16.gmra.mrb[28].mxu1 %v1568_v63 }
 0x106   : > { %v1353_v0 = vpop.f32.mrb[0].mxu0 }
 0x107   : > { %v1417_v1 = vpop.f32.mrb[0].mxu1  ;;  %v1354_v3 = vpop.f32.mrb[1].mxu0 }
 0x108   : > { %v1355_v4 = vadd.f32 %v1354_v3, %v1353_v0  ;;  %v1418_v5 = vpop.f32.mrb[1].mxu1  ;;  %v1356_v6 = vpop.f32.mrb[2].mxu0 }
 0x109   : > { %v1419_v7 = vadd.f32 %v1418_v5, %v1417_v1  ;;  %v1420_v8 = vpop.f32.mrb[2].mxu1  ;;  %v1357_v9 = vpop.f32.mrb[3].mxu0 }
 0x10a   : > { %v724_v10 = vadd.f32 %v1355_v4, %v1779_v2  ;;  %v1358_v11 = vadd.f32 %v1357_v9, %v1356_v6  ;;  %v1421_v12 = vpop.f32.mrb[3].mxu1 }
 0x10b   : > { %v1422_v13 = vadd.f32 %v1421_v12, %v1420_v8 }
 0x10c   : > { %v821_v14 = vadd.f32 %v1419_v7, %v724_v10  ;;  %v727_v15 = vadd.f32 %v1358_v11, %v1779_v2 }
 0x10e   : > { %v1237_v16 = vmul.f32 -1.442695, %v821_v14  ;;  %v824_v17 = vadd.f32 %v1422_v13, %v727_v15  ;;  %v1359_v18 = vpop.f32.mrb[4].mxu0 }
 0x10f   : > { %v1423_v19 = vpop.f32.mrb[4].mxu1  ;;  %v1360_v20 = vpop.f32.mrb[5].mxu0 }
 0x110   : > { %1569 = vpow2.f32 %v1237_v16  ;;  %v1238_v21 = vmul.f32 -1.442695, %v824_v17  ;;  %v1361_v22 = vadd.f32 %v1360_v20, %v1359_v18  ;;  %v1424_v23 = vpop.f32.mrb[5].mxu1  ;;  %v1362_v24 = vpop.f32.mrb[6].mxu0 }
 0x111   : > { %v1425_v25 = vadd.f32 %v1424_v23, %v1423_v19  ;;  %v1426_v26 = vpop.f32.mrb[6].mxu1  ;;  %v1363_v27 = vpop.f32.mrb[7].mxu0 }
 0x112   : > { %1571 = vpow2.f32 %v1238_v21  ;;  %v732_v28 = vadd.f32 %v1361_v22, %v1779_v2  ;;  %v1364_v29 = vadd.f32 %v1363_v27, %v1362_v24  ;;  %v1427_v30 = vpop.f32.mrb[7].mxu1 }
 0x113   : > { %v1428_v31 = vadd.f32 %v1427_v30, %v1426_v26 }
 0x114   : > { %v829_v32 = vadd.f32 %v1425_v25, %v732_v28  ;;  %v735_v33 = vadd.f32 %v1364_v29, %v1779_v2 }
 0x116   : > { %v1239_v34 = vmul.f32 -1.442695, %v829_v32  ;;  %v832_v35 = vadd.f32 %v1428_v31, %v735_v33  ;;  %v1365_v36 = vpop.f32.mrb[8].mxu0 }
 0x117   : > { %v1429_v37 = vpop.f32.mrb[8].mxu1  ;;  %v1366_v38 = vpop.f32.mrb[9].mxu0 }
 0x118   : > { %1573 = vpow2.f32 %v1239_v34  ;;  %v1240_v39 = vmul.f32 -1.442695, %v832_v35  ;;  %v1367_v40 = vadd.f32 %v1366_v38, %v1365_v36  ;;  %v1430_v41 = vpop.f32.mrb[9].mxu1  ;;  %v1368_v42 = vpop.f32.mrb[10].mxu0 }
 0x119   : > { %v1431_v43 = vadd.f32 %v1430_v41, %v1429_v37  ;;  %v1432_v44 = vpop.f32.mrb[10].mxu1  ;;  %v1369_v45 = vpop.f32.mrb[11].mxu0 }
 0x11a   : > { %v1570_v46 = vpop.eup %1569  ;;  %1575 = vpow2.f32 %v1240_v39  ;;  %v740_v47 = vadd.f32 %v1367_v40, %v1779_v2  ;;  %v1370_v48 = vadd.f32 %v1369_v45, %v1368_v42  ;;  %v1433_v49 = vpop.f32.mrb[11].mxu1 }
 0x11b   : > { %v931_v50 = vadd.f32 1.0, %v1570_v46  ;;  %v1434_v51 = vadd.f32 %v1433_v49, %v1432_v44 }
 0x11c   : > { %v1572_v52 = vpop.eup %1571  ;;  %v837_v53 = vadd.f32 %v1431_v43, %v740_v47  ;;  %v743_v54 = vadd.f32 %v1370_v48, %v1779_v2 }
 0x11d   : > { %v932_v55 = vadd.f32 1.0, %v1572_v52  ;;  %1577 = vrcp.f32 %v931_v50 }
 0x11e   : > { %v1241_v56 = vmul.f32 -1.442695, %v837_v53  ;;  %v840_v57 = vadd.f32 %v1434_v51, %v743_v54  ;;  %v1371_v58 = vpop.f32.mrb[12].mxu0 }
 0x11f   : > { %1579 = vrcp.f32 %v932_v55  ;;  %v1435_v59 = vpop.f32.mrb[12].mxu1  ;;  %v1372_v60 = vpop.f32.mrb[13].mxu0 }
 0x120   : > { %1581 = vpow2.f32 %v1241_v56  ;;  %v1242_v61 = vmul.f32 -1.442695, %v840_v57  ;;  %v1373_v62 = vadd.f32 %v1372_v60, %v1371_v58  ;;  %v1436_v63 = vpop.f32.mrb[13].mxu1  ;;  %v1374_v0 = vpop.f32.mrb[14].mxu0 }
 0x121   : > { %v1437_v1 = vadd.f32 %v1436_v63, %v1435_v59  ;;  %v1438_v3 = vpop.f32.mrb[14].mxu1  ;;  %v1375_v4 = vpop.f32.mrb[15].mxu0 }
 0x122   : > { %v1574_v5 = vpop.eup %1573  ;;  %1583 = vpow2.f32 %v1242_v61  ;;  %v748_v6 = vadd.f32 %v1373_v62, %v1779_v2  ;;  %v1376_v7 = vadd.f32 %v1375_v4, %v1374_v0  ;;  %v1439_v8 = vpop.f32.mrb[15].mxu1 }
 0x123   : > { %v933_v9 = vadd.f32 1.0, %v1574_v5  ;;  %v1440_v10 = vadd.f32 %v1439_v8, %v1438_v3 }
 0x124   : > { %v1576_v11 = vpop.eup %1575  ;;  %v845_v12 = vadd.f32 %v1437_v1, %v748_v6  ;;  %v751_v13 = vadd.f32 %v1376_v7, %v1779_v2 }
 0x125   : > { %v934_v14 = vadd.f32 1.0, %v1576_v11  ;;  %1585 = vrcp.f32 %v933_v9 }
 0x126   : > { %v1243_v15 = vmul.f32 -1.442695, %v845_v12  ;;  %v848_v16 = vadd.f32 %v1440_v10, %v751_v13  ;;  %v1377_v17 = vpop.f32.mrb[16].mxu0 }
 0x127   : > { %1587 = vrcp.f32 %v934_v14  ;;  %v1441_v18 = vpop.f32.mrb[16].mxu1  ;;  %v1378_v19 = vpop.f32.mrb[17].mxu0 }
 0x128   : > { %v1578_v20 = vpop.eup %1577  ;;  %1589 = vpow2.f32 %v1243_v15  ;;  %v1244_v21 = vmul.f32 -1.442695, %v848_v16  ;;  %v1379_v22 = vadd.f32 %v1378_v19, %v1377_v17  ;;  %v1442_v23 = vpop.f32.mrb[17].mxu1 }
 0x129   : > { %v1380_v24 = vpop.f32.mrb[18].mxu0  ;;  %v1580_v25 = vpop.eup %1579  ;;  %v1443_v26 = vadd.f32 %v1442_v23, %v1441_v18 }
 0x12a   : > { %v1444_v27 = vpop.f32.mrb[18].mxu1  ;;  %v1381_v28 = vpop.f32.mrb[19].mxu0  ;;  %v1293_v30 = vpack.c.bf16 %v1580_v25, %v1578_v20  ;;  %1591 = vpow2.f32 %v1244_v21  ;;  %v756_v31 = vadd.f32 %v1379_v22, %v1779_v2 }
 0x12b   : > { %v1582_v29 = vpop.eup %1581  ;;  %v1382_v32 = vadd.f32 %v1381_v28, %v1380_v24  ;;  %v1445_v33 = vpop.f32.mrb[19].mxu1 }
 0x12c   : > { %v935_v34 = vadd.f32 1.0, %v1582_v29  ;;  %v1446_v35 = vadd.f32 %v1445_v33, %v1444_v27  ;;  %v1584_v36 = vpop.eup %1583  ;;  %1294 = vst [vmem:[%s1793_s28] sm:$0xff] %v1293_v30   ;;  %v853_v37 = vadd.f32 %v1443_v26, %v756_v31 }
 0x12d   : > { %v759_v38 = vadd.f32 %v1382_v32, %v1779_v2  ;;  %v936_v39 = vadd.f32 1.0, %v1584_v36 }
 0x12e   : > { %1593 = vrcp.f32 %v935_v34  ;;  %v1245_v40 = vmul.f32 -1.442695, %v853_v37  ;;  %v1383_v42 = vpop.f32.mrb[20].mxu0 }
 0x12f   : > { %v856_v41 = vadd.f32 %v1446_v35, %v759_v38  ;;  %1595 = vrcp.f32 %v936_v39  ;;  %v1447_v43 = vpop.f32.mrb[20].mxu1  ;;  %v1384_v44 = vpop.f32.mrb[21].mxu0 }
 0x130   : > { %v1586_v45 = vpop.eup %1585  ;;  %1597 = vpow2.f32 %v1245_v40  ;;  %v1385_v47 = vadd.f32 %v1384_v44, %v1383_v42  ;;  %v1448_v48 = vpop.f32.mrb[21].mxu1 }
 0x131   : > { %v1246_v46 = vmul.f32 -1.442695, %v856_v41  ;;  %v1386_v49 = vpop.f32.mrb[22].mxu0  ;;  %v1588_v50 = vpop.eup %1587  ;;  %v1449_v51 = vadd.f32 %v1448_v48, %v1447_v43 }
 0x132   : > { %v1450_v52 = vpop.f32.mrb[22].mxu1  ;;  %v1387_v53 = vpop.f32.mrb[23].mxu0  ;;  %v1298_v55 = vpack.c.bf16 %v1588_v50, %v1586_v45  ;;  %v764_v56 = vadd.f32 %v1385_v47, %v1779_v2 }
 0x133   : > { %v1590_v54 = vpop.eup %1589  ;;  %1599 = vpow2.f32 %v1246_v46  ;;  %v1388_v57 = vadd.f32 %v1387_v53, %v1386_v49  ;;  %v1451_v58 = vpop.f32.mrb[23].mxu1 }
 0x134   : > { %v937_v59 = vadd.f32 1.0, %v1590_v54  ;;  %v1452_v60 = vadd.f32 %v1451_v58, %v1450_v52  ;;  %v1592_v61 = vpop.eup %1591  ;;  %1330 = vst [vmem:[%s1793_s28 + $0x8] sm:$0xff] %v1298_v55   ;;  %v861_v62 = vadd.f32 %v1449_v51, %v764_v56 }
 0x135   : > { %v767_v63 = vadd.f32 %v1388_v57, %v1779_v2  ;;  %v938_v0 = vadd.f32 1.0, %v1592_v61 }
 0x136   : > { %1601 = vrcp.f32 %v937_v59  ;;  %v1247_v1 = vmul.f32 -1.442695, %v861_v62  ;;  %v1389_v4 = vpop.f32.mrb[24].mxu0 }
 0x137   : > { %v864_v3 = vadd.f32 %v1452_v60, %v767_v63  ;;  %1603 = vrcp.f32 %v938_v0  ;;  %v1453_v5 = vpop.f32.mrb[24].mxu1  ;;  %v1390_v6 = vpop.f32.mrb[25].mxu0 }
 0x138   : > { %v1594_v7 = vpop.eup %1593  ;;  %1605 = vpow2.f32 %v1247_v1  ;;  %v1391_v9 = vadd.f32 %v1390_v6, %v1389_v4  ;;  %v1454_v10 = vpop.f32.mrb[25].mxu1 }
 0x139   : > { %v1248_v8 = vmul.f32 -1.442695, %v864_v3  ;;  %v1392_v11 = vpop.f32.mrb[26].mxu0  ;;  %v1596_v12 = vpop.eup %1595  ;;  %v1455_v13 = vadd.f32 %v1454_v10, %v1453_v5 }
 0x13a   : > { %v1456_v14 = vpop.f32.mrb[26].mxu1  ;;  %v1393_v15 = vpop.f32.mrb[27].mxu0  ;;  %v1303_v17 = vpack.c.bf16 %v1596_v12, %v1594_v7  ;;  %v772_v18 = vadd.f32 %v1391_v9, %v1779_v2 }
 0x13b   : > { %v1598_v16 = vpop.eup %1597  ;;  %1607 = vpow2.f32 %v1248_v8  ;;  %v1394_v19 = vadd.f32 %v1393_v15, %v1392_v11  ;;  %v1457_v20 = vpop.f32.mrb[27].mxu1 }
 0x13c   : > { %v939_v21 = vadd.f32 1.0, %v1598_v16  ;;  %v1458_v22 = vadd.f32 %v1457_v20, %v1456_v14  ;;  %1331 = vst [vmem:[%s1793_s28 + $0x10] sm:$0xff] %v1303_v17   ;;  %v869_v24 = vadd.f32 %v1455_v13, %v772_v18 }
 0x13d   : > { %v1600_v23 = vpop.eup %1599  ;;  %v775_v25 = vadd.f32 %v1394_v19, %v1779_v2 }
 0x13e   : > { %v940_v26 = vadd.f32 1.0, %v1600_v23  ;;  %1609 = vrcp.f32 %v939_v21  ;;  %v1249_v27 = vmul.f32 -1.442695, %v869_v24  ;;  %v1395_v29 = vpop.f32.mrb[28].mxu0 }
 0x13f   : > { %v872_v28 = vadd.f32 %v1458_v22, %v775_v25  ;;  %v1459_v30 = vpop.f32.mrb[28].mxu1  ;;  %v1396_v31 = vpop.f32.mrb[29].mxu0 }
 0x140   : > { %1611 = vrcp.f32 %v940_v26  ;;  %v1602_v32 = vpop.eup %1601  ;;  %v1397_v34 = vadd.f32 %v1396_v31, %v1395_v29  ;;  %v1460_v35 = vpop.f32.mrb[29].mxu1 }
 0x141   : > { %1613 = vpow2.f32 %v1249_v27  ;;  %v1250_v33 = vmul.f32 -1.442695, %v872_v28  ;;  %v1398_v36 = vpop.f32.mrb[30].mxu0  ;;  %v1604_v37 = vpop.eup %1603  ;;  %v1461_v38 = vadd.f32 %v1460_v35, %v1459_v30 }
 0x142   : > { %v1462_v39 = vpop.f32.mrb[30].mxu1  ;;  %v1399_v40 = vpop.f32.mrb[31].mxu0  ;;  %v1308_v42 = vpack.c.bf16 %v1604_v37, %v1602_v32  ;;  %v780_v43 = vadd.f32 %v1397_v34, %v1779_v2 }
 0x143   : > { %v1606_v41 = vpop.eup %1605  ;;  %1615 = vpow2.f32 %v1250_v33  ;;  %v1400_v44 = vadd.f32 %v1399_v40, %v1398_v36  ;;  %v1463_v45 = vpop.f32.mrb[31].mxu1 }
 0x144   : > { %v941_v46 = vadd.f32 1.0, %v1606_v41  ;;  %v1464_v47 = vadd.f32 %v1463_v45, %v1462_v39  ;;  %1332 = vst [vmem:[%s1793_s28 + $0x18] sm:$0xff] %v1308_v42   ;;  %v877_v49 = vadd.f32 %v1461_v38, %v780_v43 }
 0x145   : > { %v1608_v48 = vpop.eup %1607  ;;  %v783_v50 = vadd.f32 %v1400_v44, %v1779_v2 }
 0x146   : > { %v942_v51 = vadd.f32 1.0, %v1608_v48  ;;  %1617 = vrcp.f32 %v941_v46  ;;  %v1251_v52 = vmul.f32 -1.442695, %v877_v49 }
 0x147   : > { %v880_v53 = vadd.f32 %v1464_v47, %v783_v50 }
 0x148   : > { %1619 = vrcp.f32 %v942_v51  ;;  %v1610_v54 = vpop.eup %1609 }
 0x149   : > { %1621 = vpow2.f32 %v1251_v52  ;;  %v1252_v55 = vmul.f32 -1.442695, %v880_v53 }
 0x14a   : > { %v1612_v56 = vpop.eup %1611 }
 0x14b   : > { %v1614_v57 = vpop.eup %1613  ;;  %v1313_v58 = vpack.c.bf16 %v1612_v56, %v1610_v54  ;;  %1623 = vpow2.f32 %v1252_v55 }
 0x14c   : > { %v943_v59 = vadd.f32 1.0, %v1614_v57 }
 0x14d   : > { %v1616_v60 = vpop.eup %1615  ;;  %1333 = vst [vmem:[%s1793_s28 + $0x20] sm:$0xff] %v1313_v58  }
 0x14e   : > { %v944_v61 = vadd.f32 1.0, %v1616_v60  ;;  %1625 = vrcp.f32 %v943_v59 }
 0x150   : > { %1627 = vrcp.f32 %v944_v61  ;;  %v1618_v2 = vpop.eup %1617 }
 0x152   : > { %v1620_v62 = vpop.eup %1619 }
 0x153   : > { %v1622_v63 = vpop.eup %1621  ;;  %v1318_v0 = vpack.c.bf16 %v1620_v62, %v1618_v2 }
 0x154   : > { %v945_v1 = vadd.f32 1.0, %v1622_v63 }
 0x155   : > { %v1624_v3 = vpop.eup %1623  ;;  %1334 = vst [vmem:[%s1793_s28 + $0x28] sm:$0xff] %v1318_v0  }
 0x156   : > { %v946_v4 = vadd.f32 1.0, %v1624_v3  ;;  %1629 = vrcp.f32 %v945_v1 }
 0x158   : > { %1631 = vrcp.f32 %v946_v4  ;;  %v1626_v5 = vpop.eup %1625 }
 0x15a   : > { %v1628_v6 = vpop.eup %1627 }
 0x15b   : > { %v1323_v7 = vpack.c.bf16 %v1628_v6, %v1626_v5 }
 0x15d   : > { %1335 = vst [vmem:[%s1793_s28 + $0x30] sm:$0xff] %v1323_v7  }
 0x160   : > { %v1630_v8 = vpop.eup %1629 }
 0x162   : > { %v1632_v9 = vpop.eup %1631 }
 0x163   : > { %v1328_v10 = vpack.c.bf16 %v1632_v9, %v1630_v8 }
 0x165   : > { %1336 = vst [vmem:[%s1793_s28 + $0x38] sm:$0xff] %v1328_v10  }
 0x166 PF: > { %s13_s14 = sadd.s32 1, %s1655_s14   ;;  %s1824_s12 = smov %s1651_s13 }
 0x167   : > { %p10_p5 = scmp.ge.s32.totalorder %s13_s14, 6   ;;  %s1825_s13 = smov %s1827_s15 }
 0x169   :  { %12 = sbr.rel (!%p10_p5) target bundleno = 2 (0x2), region = 65 }

// kernel: autoencoder_forward.11
= control target key start
LH: loop header
LB: loop body
LE: loop exit
PB: predicated region body
PF: predicated region fallthrough
CT: control target
= control target key end

     0   :  { %v1044_v36 = vlaneseq  ;;  %v10464_v37 = vmov 1966171168   ;;  %s13752_s1 = inlined_call_operand.vmem [shape: bf16[1,4096,512], index: 1, kind: input, shape index: {}]   ;;  %s13753_s0 = inlined_call_operand.vmem [shape: bf16[1,2,4096], index: 0, kind: input, shape index: {}]   ;;  %s13754_s2 = inlined_call_operand.vmem [shape: f32[1,512], index: 2, kind: input, shape index: {}]   ;;  %s13755_s3 = inlined_call_operand.vmem [shape: bf16[1,2,512], index: 3, kind: output, shape index: {}]  }
   0x1   :  { %v8922_v0 = vld [vmem:[%s13752_s1 + $0x4] ss:$16 sps:$4 sm:$0xff]   ;;  %v8924_v1 = vld [vmem:[%s13752_s1 + $0xc] ss:$16 sps:$4 sm:$0xff]   ;;  %v8926_v2 = vld [vmem:[%s13752_s1] ss:$16 sps:$4 sm:$0xff]   ;;  %v1070_v38 = vunpack.c.l.s4 %v10464_v37 }
   0x2   :  { %6416 = vmatprep.subr.bf16.mxu0 %v8922_v0  ;;  %v8927_v3 = vld [vmem:[%s13752_s1 + $0x8] ss:$16 sps:$4 sm:$0xff]   ;;  %7072 = vmatprep.subr.bf16.mxu1 %v8924_v1  ;;  %v8928_v4 = vld [vmem:[%s13752_s1 + $0x24] ss:$16 sps:$4 sm:$0xff]   ;;  %v8930_v5 = vld [vmem:[%s13752_s1 + $0x2c] ss:$16 sps:$4 sm:$0xff]  }
   0x3   :  { %6417 = vmatpush1.bf16.msra.mxu0 %v8926_v2  ;;  %7073 = vmatpush1.bf16.msra.mxu1 %v8927_v3  ;;  %v8932_v6 = vld [vmem:[%s13752_s1 + $0x20] ss:$16 sps:$4 sm:$0xff]   ;;  %v8933_v7 = vld [vmem:[%s13752_s1 + $0x28] ss:$16 sps:$4 sm:$0xff]   ;;  %v8934_v8 = vld [vmem:[%s13752_s1 + $0x44] ss:$16 sps:$4 sm:$0xff]   ;;  %v1071_v43 = vunpack.c.0.s8 %v1070_v38 }
   0x4   :  { %6418 = vmatprep.subr.bf16.mxu0 %v8928_v4  ;;  %7074 = vmatprep.subr.bf16.mxu1 %v8930_v5  ;;  %v8936_v9 = vld [vmem:[%s13752_s1 + $0x4c] ss:$16 sps:$4 sm:$0xff]   ;;  %v8938_v10 = vld [vmem:[%s13752_s1 + $0x40] ss:$16 sps:$4 sm:$0xff]   ;;  %v8939_v11 = vld [vmem:[%s13752_s1 + $0x48] ss:$16 sps:$4 sm:$0xff]  }
   0x5   :  { %v8940_v12 = vld [vmem:[%s13752_s1 + $0x64] ss:$16 sps:$4 sm:$0xff]   ;;  %v8942_v13 = vld [vmem:[%s13752_s1 + $0x6c] ss:$16 sps:$4 sm:$0xff]   ;;  %v8944_v14 = vld [vmem:[%s13752_s1 + $0x60] ss:$16 sps:$4 sm:$0xff]  }
   0x6   :  { %v8945_v15 = vld [vmem:[%s13752_s1 + $0x68] ss:$16 sps:$4 sm:$0xff]   ;;  %v8946_v16 = vld [vmem:[%s13752_s1 + $0x84] ss:$16 sps:$4 sm:$0xff]   ;;  %v8948_v17 = vld [vmem:[%s13752_s1 + $0x8c] ss:$16 sps:$4 sm:$0xff]  }
   0x7   :  { %6419 = vmatpush1.bf16.msra.mxu0 %v8932_v6  ;;  %7075 = vmatpush1.bf16.msra.mxu1 %v8933_v7  ;;  %v8950_v18 = vld [vmem:[%s13752_s1 + $0x80] ss:$16 sps:$4 sm:$0xff]   ;;  %v8951_v19 = vld [vmem:[%s13752_s1 + $0x88] ss:$16 sps:$4 sm:$0xff]   ;;  %v8952_v20 = vld [vmem:[%s13752_s1 + $0xa4] ss:$16 sps:$4 sm:$0xff]  }
   0x8   :  { %6420 = vmatprep.subr.bf16.mxu0 %v8934_v8  ;;  %7076 = vmatprep.subr.bf16.mxu1 %v8936_v9  ;;  %v8954_v21 = vld [vmem:[%s13752_s1 + $0xac] ss:$16 sps:$4 sm:$0xff]   ;;  %v8956_v22 = vld [vmem:[%s13752_s1 + $0xa0] ss:$16 sps:$4 sm:$0xff]   ;;  %v8957_v23 = vld [vmem:[%s13752_s1 + $0xa8] ss:$16 sps:$4 sm:$0xff]  }
   0x9   :  { %v8958_v24 = vld [vmem:[%s13752_s1 + $0xc4] ss:$16 sps:$4 sm:$0xff]   ;;  %v8960_v25 = vld [vmem:[%s13752_s1 + $0xcc] ss:$16 sps:$4 sm:$0xff]   ;;  %v8962_v26 = vld [vmem:[%s13752_s1 + $0xc0] ss:$16 sps:$4 sm:$0xff]  }
   0xa   :  { %v8963_v27 = vld [vmem:[%s13752_s1 + $0xc8] ss:$16 sps:$4 sm:$0xff]   ;;  %v8964_v28 = vld [vmem:[%s13752_s1 + $0xe4] ss:$16 sps:$4 sm:$0xff]   ;;  %v8966_v29 = vld [vmem:[%s13752_s1 + $0xec] ss:$16 sps:$4 sm:$0xff]  }
   0xb   :  { %6421 = vmatpush1.bf16.msra.mxu0 %v8938_v10  ;;  %7077 = vmatpush1.bf16.msra.mxu1 %v8939_v11  ;;  %v8968_v30 = vld [vmem:[%s13752_s1 + $0xe0] ss:$16 sps:$4 sm:$0xff]   ;;  %v8969_v31 = vld [vmem:[%s13752_s1 + $0xe8] ss:$16 sps:$4 sm:$0xff]   ;;  %v8970_v32 = vld [vmem:[%s13752_s1 + $0x104] ss:$16 sps:$4 sm:$0xff]  }
   0xc   :  { %6422 = vmatprep.subr.bf16.mxu0 %v8940_v12  ;;  %7078 = vmatprep.subr.bf16.mxu1 %v8942_v13  ;;  %v8972_v33 = vld [vmem:[%s13752_s1 + $0x10c] ss:$16 sps:$4 sm:$0xff]   ;;  %v8974_v34 = vld [vmem:[%s13752_s1 + $0x100] ss:$16 sps:$4 sm:$0xff]   ;;  %v8975_v35 = vld [vmem:[%s13752_s1 + $0x108] ss:$16 sps:$4 sm:$0xff]  }
   0xd   :  { %v8976_v39 = vld [vmem:[%s13752_s1 + $0x124] ss:$16 sps:$4 sm:$0xff]   ;;  %v8978_v40 = vld [vmem:[%s13752_s1 + $0x12c] ss:$16 sps:$4 sm:$0xff]   ;;  %v8980_v41 = vld [vmem:[%s13752_s1 + $0x120] ss:$16 sps:$4 sm:$0xff]  }
   0xe   :  { %v10602_v42 = vshrl.u32 %v1044_v36, 7  ;;  %v8981_v44 = vld [vmem:[%s13752_s1 + $0x128] ss:$16 sps:$4 sm:$0xff]   ;;  %v8982_v45 = vld [vmem:[%s13752_s1 + $0x144] ss:$16 sps:$4 sm:$0xff]  }
   0xf   :  { %6423 = vmatpush1.bf16.msra.mxu0 %v8944_v14  ;;  %7079 = vmatpush1.bf16.msra.mxu1 %v8945_v15  ;;  %v8984_v46 = vld [vmem:[%s13752_s1 + $0x14c] ss:$16 sps:$4 sm:$0xff]   ;;  %v8986_v47 = vld [vmem:[%s13752_s1 + $0x140] ss:$16 sps:$4 sm:$0xff]   ;;  %v8987_v48 = vld [vmem:[%s13752_s1 + $0x148] ss:$16 sps:$4 sm:$0xff]  }
  0x10   :  { %6424 = vmatprep.subr.bf16.mxu0 %v8946_v16  ;;  %7080 = vmatprep.subr.bf16.mxu1 %v8948_v17  ;;  %v10620_v49 = vsub.s32 %v1071_v43, %v10602_v42  ;;  %v8988_v50 = vld [vmem:[%s13752_s1 + $0x164] ss:$16 sps:$4 sm:$0xff]   ;;  %v8990_v51 = vld [vmem:[%s13752_s1 + $0x16c] ss:$16 sps:$4 sm:$0xff]   ;;  %v8992_v53 = vld [vmem:[%s13752_s1 + $0x160] ss:$16 sps:$4 sm:$0xff]  }
  0x11   :  { %v10631_v52 = vld [vmem:[%s13753_s0] sm:$0xff]  ;;  %v8993_v55 = vld [vmem:[%s13752_s1 + $0x168] ss:$16 sps:$4 sm:$0xff]   ;;  %v8996_v57 = vld [vmem:[%s13752_s1 + $0x18c] ss:$16 sps:$4 sm:$0xff]  }
  0x12   :  { %v1075_v54 = vrot.slane %v10631_v52, %v10620_v49  ;;  %v8994_v56 = vld [vmem:[%s13752_s1 + $0x184] ss:$16 sps:$4 sm:$0xff]   ;;  %v8998_v59 = vld [vmem:[%s13752_s1 + $0x180] ss:$16 sps:$4 sm:$0xff]   ;;  %v8999_v61 = vld [vmem:[%s13752_s1 + $0x188] ss:$16 sps:$4 sm:$0xff]  }
  0x13   :  { %6425 = vmatpush1.bf16.msra.mxu0 %v8950_v18  ;;  %7081 = vmatpush1.bf16.msra.mxu1 %v8951_v19  ;;  %v9000_v62 = vld [vmem:[%s13752_s1 + $0x1a4] ss:$16 sps:$4 sm:$0xff]   ;;  %v9002_v63 = vld [vmem:[%s13752_s1 + $0x1ac] ss:$16 sps:$4 sm:$0xff]   ;;  %v9004_v0 = vld [vmem:[%s13752_s1 + $0x1a0] ss:$16 sps:$4 sm:$0xff]  }
  0x14   :  { %6426 = vmatprep.subr.bf16.mxu0 %v8952_v20  ;;  %7082 = vmatprep.subr.bf16.mxu1 %v8954_v21  ;;  %v1083_v58 = vcombine.high %v1075_v54, %v1075_v54  ;;  %v9005_v1 = vld [vmem:[%s13752_s1 + $0x1a8] ss:$16 sps:$4 sm:$0xff]   ;;  %v9006_v2 = vld [vmem:[%s13752_s1 + $0x1c4] ss:$16 sps:$4 sm:$0xff]   ;;  %v9008_v3 = vld [vmem:[%s13752_s1 + $0x1cc] ss:$16 sps:$4 sm:$0xff]   ;;  %v10700_v13 = vrot.slane %v1075_v54, %v10620_v49 }
  0x15   :  { %v9010_v4 = vld [vmem:[%s13752_s1 + $0x1c0] ss:$16 sps:$4 sm:$0xff]   ;;  %v9011_v5 = vld [vmem:[%s13752_s1 + $0x1c8] ss:$16 sps:$4 sm:$0xff]   ;;  %v9012_v6 = vld [vmem:[%s13752_s1 + $0x1e4] ss:$16 sps:$4 sm:$0xff]  }
  0x16   :  { %v1105_v60 = vrot.slane %v1083_v58, %v10620_v49  ;;  %v9014_v7 = vld [vmem:[%s13752_s1 + $0x1ec] ss:$16 sps:$4 sm:$0xff]   ;;  %v9016_v8 = vld [vmem:[%s13752_s1 + $0x1e0] ss:$16 sps:$4 sm:$0xff]   ;;  %v9017_v9 = vld [vmem:[%s13752_s1 + $0x1e8] ss:$16 sps:$4 sm:$0xff]  }
  0x17   :  { %6427 = vmatpush1.bf16.msra.mxu0 %v8956_v22  ;;  %7083 = vmatpush1.bf16.msra.mxu1 %v8957_v23  ;;  %v9020_v10 = vld [vmem:[%s13752_s1 + $0x204] ss:$16 sps:$4 sm:$0xff]   ;;  %v9023_v11 = vld [vmem:[%s13752_s1 + $0x20c] ss:$16 sps:$4 sm:$0xff]   ;;  %v9018_v12 = vld [vmem:[%s13752_s1 + $0x200] ss:$16 sps:$4 sm:$0xff]  }
  0x18   :  { %6428 = vmatprep.subr.bf16.mxu0 %v8958_v24  ;;  %7084 = vmatprep.subr.bf16.mxu1 %v8960_v25  ;;  %v9021_v14 = vld [vmem:[%s13752_s1 + $0x208] ss:$16 sps:$4 sm:$0xff]   ;;  %v9026_v15 = vld [vmem:[%s13752_s1 + $0x224] ss:$16 sps:$4 sm:$0xff]   ;;  %v9029_v16 = vld [vmem:[%s13752_s1 + $0x22c] ss:$16 sps:$4 sm:$0xff]   ;;  %v1115_v17 = vcombine.high %v1105_v60, %v1105_v60 }
  0x19   :  { %6448 = vmatprep.mubr.bf16.mxu0 %v1105_v60  ;;  %7104 = vmatprep.mubr.bf16.mxu1 %v1105_v60  ;;  %v9024_v18 = vld [vmem:[%s13752_s1 + $0x220] ss:$16 sps:$4 sm:$0xff]   ;;  %v9027_v19 = vld [vmem:[%s13752_s1 + $0x228] ss:$16 sps:$4 sm:$0xff]   ;;  %v9032_v20 = vld [vmem:[%s13752_s1 + $0x244] ss:$16 sps:$4 sm:$0xff]  }
  0x1a   :  { %v9035_v21 = vld [vmem:[%s13752_s1 + $0x24c] ss:$16 sps:$4 sm:$0xff]   ;;  %v9030_v22 = vld [vmem:[%s13752_s1 + $0x240] ss:$16 sps:$4 sm:$0xff]   ;;  %v9033_v23 = vld [vmem:[%s13752_s1 + $0x248] ss:$16 sps:$4 sm:$0xff]  }
  0x1b   :  { %6429 = vmatpush1.bf16.msra.mxu0 %v8962_v26  ;;  %7085 = vmatpush1.bf16.msra.mxu1 %v8963_v27  ;;  %v9038_v24 = vld [vmem:[%s13752_s1 + $0x264] ss:$16 sps:$4 sm:$0xff]   ;;  %v9041_v25 = vld [vmem:[%s13752_s1 + $0x26c] ss:$16 sps:$4 sm:$0xff]   ;;  %v9036_v26 = vld [vmem:[%s13752_s1 + $0x260] ss:$16 sps:$4 sm:$0xff]  }
  0x1c   :  { %6430 = vmatprep.subr.bf16.mxu0 %v8964_v28  ;;  %7086 = vmatprep.subr.bf16.mxu1 %v8966_v29  ;;  %v9039_v27 = vld [vmem:[%s13752_s1 + $0x268] ss:$16 sps:$4 sm:$0xff]   ;;  %v9044_v28 = vld [vmem:[%s13752_s1 + $0x284] ss:$16 sps:$4 sm:$0xff]   ;;  %v9047_v29 = vld [vmem:[%s13752_s1 + $0x28c] ss:$16 sps:$4 sm:$0xff]  }
  0x1d   :  { %v9056_v36 = vld [vmem:[%s13752_s1 + $0x2c4] ss:$16 sps:$4 sm:$0xff]   ;;  %v9059_v37 = vld [vmem:[%s13752_s1 + $0x2cc] ss:$16 sps:$4 sm:$0xff]   ;;  %v9054_v38 = vld [vmem:[%s13752_s1 + $0x2c0] ss:$16 sps:$4 sm:$0xff]  }
  0x1e   :  { %v9060_v43 = vld [vmem:[%s13752_s1 + $0x2e0] ss:$16 sps:$4 sm:$0xff]   ;;  %v9075_v54 = vld [vmem:[%s13752_s1 + $0x328] ss:$16 sps:$4 sm:$0xff]   ;;  %v9089_v60 = vld [vmem:[%s13752_s1 + $0x36c] ss:$16 sps:$4 sm:$0xff]  }
  0x1f   :  { %6431 = vmatpush1.bf16.msra.mxu0 %v8968_v30  ;;  %7087 = vmatpush1.bf16.msra.mxu1 %v8969_v31  ;;  %v9042_v30 = vld [vmem:[%s13752_s1 + $0x280] ss:$16 sps:$4 sm:$0xff]   ;;  %v9045_v31 = vld [vmem:[%s13752_s1 + $0x288] ss:$16 sps:$4 sm:$0xff]  }
  0x20   :  { %6432 = vmatprep.subr.bf16.mxu0 %v8970_v32  ;;  %7088 = vmatprep.subr.bf16.mxu1 %v8972_v33  ;;  %v9050_v32 = vld [vmem:[%s13752_s1 + $0x2a4] ss:$16 sps:$4 sm:$0xff]   ;;  %v9053_v33 = vld [vmem:[%s13752_s1 + $0x2ac] ss:$16 sps:$4 sm:$0xff]   ;;  %v9081_v58 = vld [vmem:[%s13752_s1 + $0x348] ss:$16 sps:$4 sm:$0xff]  }
  0x23   :  { %6433 = vmatpush1.bf16.msra.mxu0 %v8974_v34  ;;  %7089 = vmatpush1.bf16.msra.mxu1 %v8975_v35  ;;  %v9048_v34 = vld [vmem:[%s13752_s1 + $0x2a0] ss:$16 sps:$4 sm:$0xff]   ;;  %v9051_v35 = vld [vmem:[%s13752_s1 + $0x2a8] ss:$16 sps:$4 sm:$0xff]  }
  0x24   :  { %6434 = vmatprep.subr.bf16.mxu0 %v8976_v39  ;;  %7090 = vmatprep.subr.bf16.mxu1 %v8978_v40  ;;  %v9057_v39 = vld [vmem:[%s13752_s1 + $0x2c8] ss:$16 sps:$4 sm:$0xff]   ;;  %v9062_v40 = vld [vmem:[%s13752_s1 + $0x2e4] ss:$16 sps:$4 sm:$0xff]  }
  0x27   :  { %6435 = vmatpush1.bf16.msra.mxu0 %v8980_v41  ;;  %7091 = vmatpush1.bf16.msra.mxu1 %v8981_v44  ;;  %v9065_v41 = vld [vmem:[%s13752_s1 + $0x2ec] ss:$16 sps:$4 sm:$0xff]   ;;  %v9063_v44 = vld [vmem:[%s13752_s1 + $0x2e8] ss:$16 sps:$4 sm:$0xff]  }
  0x28   :  { %6436 = vmatprep.subr.bf16.mxu0 %v8982_v45  ;;  %7092 = vmatprep.subr.bf16.mxu1 %v8984_v46  ;;  %v9068_v45 = vld [vmem:[%s13752_s1 + $0x304] ss:$16 sps:$4 sm:$0xff]   ;;  %v9071_v46 = vld [vmem:[%s13752_s1 + $0x30c] ss:$16 sps:$4 sm:$0xff]  }
  0x2b   :  { %6437 = vmatpush1.bf16.msra.mxu0 %v8986_v47  ;;  %7093 = vmatpush1.bf16.msra.mxu1 %v8987_v48  ;;  %v9066_v47 = vld [vmem:[%s13752_s1 + $0x300] ss:$16 sps:$4 sm:$0xff]   ;;  %v9069_v48 = vld [vmem:[%s13752_s1 + $0x308] ss:$16 sps:$4 sm:$0xff]  }
  0x2c   :  { %6438 = vmatprep.subr.bf16.mxu0 %v8988_v50  ;;  %7094 = vmatprep.subr.bf16.mxu1 %v8990_v51  ;;  %v9074_v50 = vld [vmem:[%s13752_s1 + $0x324] ss:$16 sps:$4 sm:$0xff]   ;;  %v9077_v51 = vld [vmem:[%s13752_s1 + $0x32c] ss:$16 sps:$4 sm:$0xff]  }
  0x2f   :  { %6439 = vmatpush1.bf16.msra.mxu0 %v8992_v53  ;;  %7095 = vmatpush1.bf16.msra.mxu1 %v8993_v55  ;;  %v9072_v53 = vld [vmem:[%s13752_s1 + $0x320] ss:$16 sps:$4 sm:$0xff]   ;;  %v9080_v55 = vld [vmem:[%s13752_s1 + $0x344] ss:$16 sps:$4 sm:$0xff]  }
  0x30   :  { %6440 = vmatprep.subr.bf16.mxu0 %v8994_v56  ;;  %7096 = vmatprep.subr.bf16.mxu1 %v8996_v57  ;;  %v9083_v56 = vld [vmem:[%s13752_s1 + $0x34c] ss:$16 sps:$4 sm:$0xff]   ;;  %v9078_v57 = vld [vmem:[%s13752_s1 + $0x340] ss:$16 sps:$4 sm:$0xff]  }
  0x33   :  { %6441 = vmatpush1.bf16.msra.mxu0 %v8998_v59  ;;  %7097 = vmatpush1.bf16.msra.mxu1 %v8999_v61  ;;  %v9086_v59 = vld [vmem:[%s13752_s1 + $0x364] ss:$16 sps:$4 sm:$0xff]   ;;  %v9084_v61 = vld [vmem:[%s13752_s1 + $0x360] ss:$16 sps:$4 sm:$0xff]  }
  0x34   :  { %6442 = vmatprep.subr.bf16.mxu0 %v9000_v62  ;;  %7098 = vmatprep.subr.bf16.mxu1 %v9002_v63  ;;  %v9087_v62 = vld [vmem:[%s13752_s1 + $0x368] ss:$16 sps:$4 sm:$0xff]   ;;  %v9092_v63 = vld [vmem:[%s13752_s1 + $0x384] ss:$16 sps:$4 sm:$0xff]  }
  0x37   :  { %6443 = vmatpush1.bf16.msra.mxu0 %v9004_v0  ;;  %7099 = vmatpush1.bf16.msra.mxu1 %v9005_v1  ;;  %v9095_v0 = vld [vmem:[%s13752_s1 + $0x38c] ss:$16 sps:$4 sm:$0xff]   ;;  %v9090_v1 = vld [vmem:[%s13752_s1 + $0x380] ss:$16 sps:$4 sm:$0xff]  }
  0x38   :  { %6444 = vmatprep.subr.bf16.mxu0 %v9006_v2  ;;  %7100 = vmatprep.subr.bf16.mxu1 %v9008_v3  ;;  %v9093_v2 = vld [vmem:[%s13752_s1 + $0x388] ss:$16 sps:$4 sm:$0xff]   ;;  %v9098_v3 = vld [vmem:[%s13752_s1 + $0x3a4] ss:$16 sps:$4 sm:$0xff]  }
  0x3b   :  { %6445 = vmatpush1.bf16.msra.mxu0 %v9010_v4  ;;  %7101 = vmatpush1.bf16.msra.mxu1 %v9011_v5  ;;  %v9101_v4 = vld [vmem:[%s13752_s1 + $0x3ac] ss:$16 sps:$4 sm:$0xff]   ;;  %v9096_v5 = vld [vmem:[%s13752_s1 + $0x3a0] ss:$16 sps:$4 sm:$0xff]  }
  0x3c   :  { %6446 = vmatprep.subr.bf16.mxu0 %v9012_v6  ;;  %7102 = vmatprep.subr.bf16.mxu1 %v9014_v7  ;;  %v9099_v6 = vld [vmem:[%s13752_s1 + $0x3a8] ss:$16 sps:$4 sm:$0xff]   ;;  %v9104_v7 = vld [vmem:[%s13752_s1 + $0x3c4] ss:$16 sps:$4 sm:$0xff]  }
  0x3f   :  { %6447 = vmatpush1.bf16.msra.mxu0 %v9016_v8  ;;  %7103 = vmatpush1.bf16.msra.mxu1 %v9017_v9  ;;  %v9107_v8 = vld [vmem:[%s13752_s1 + $0x3cc] ss:$16 sps:$4 sm:$0xff]   ;;  %v1068_v9 = vcombine.high %v10631_v52, %v10631_v52 }
  0x40   :  { %6457 = vmatprep.subr.bf16.mxu0 %v9020_v10  ;;  %7113 = vmatprep.subr.bf16.mxu1 %v9023_v11  ;;  %v9102_v10 = vld [vmem:[%s13752_s1 + $0x3c0] ss:$16 sps:$4 sm:$0xff]   ;;  %v9105_v11 = vld [vmem:[%s13752_s1 + $0x3c8] ss:$16 sps:$4 sm:$0xff]   ;;  %v9113_v52 = vld [vmem:[%s13752_s1 + $0x3ec] ss:$16 sps:$4 sm:$0xff]  }
  0x42   :  { %6449 = vmatmul.mubr.bf16.vlgmr.msra.gmra.mrb[0].mxu0 %v10700_v13  ;;  %7105 = vmatmul.mubr.bf16.vlgmr.msra.gmra.mrb[0].mxu1 %v10700_v13 }
  0x43   :  { %6458 = vmatpush1.bf16.msra.mxu0 %v9018_v12  ;;  %7114 = vmatpush1.bf16.msra.mxu1 %v9021_v14  ;;  %v9110_v12 = vld [vmem:[%s13752_s1 + $0x3e4] ss:$16 sps:$4 sm:$0xff]   ;;  %v10884_v14 = vrot.slane %v1068_v9, %v10620_v49  ;;  %v9189_v9 = vld [vmem:[%s13752_s1 + $0x588] ss:$16 sps:$4 sm:$0xff]  }
  0x44   :  { %6459 = vmatprep.subr.bf16.mxu0 %v9026_v15  ;;  %7115 = vmatprep.subr.bf16.mxu1 %v9029_v16  ;;  %v9108_v15 = vld [vmem:[%s13752_s1 + $0x3e0] ss:$16 sps:$4 sm:$0xff]   ;;  %v9111_v16 = vld [vmem:[%s13752_s1 + $0x3e8] ss:$16 sps:$4 sm:$0xff]  }
  0x45   :  { %6489 = vmatprep.mubr.bf16.mxu0 %v1115_v17  ;;  %7145 = vmatprep.mubr.bf16.mxu1 %v1115_v17  ;;  %v9116_v17 = vld [vmem:[%s13752_s1 + $0x404] ss:$16 sps:$4 sm:$0xff]  }
  0x47   :  { %6460 = vmatpush1.bf16.msra.mxu0 %v9024_v18  ;;  %7116 = vmatpush1.bf16.msra.mxu1 %v9027_v19  ;;  %v9119_v18 = vld [vmem:[%s13752_s1 + $0x40c] ss:$16 sps:$4 sm:$0xff]   ;;  %v1084_v19 = vcombine.high %v10884_v14, %v10884_v14 }
  0x48   :  { %6461 = vmatprep.subr.bf16.mxu0 %v9032_v20  ;;  %7117 = vmatprep.subr.bf16.mxu1 %v9035_v21  ;;  %v9114_v20 = vld [vmem:[%s13752_s1 + $0x400] ss:$16 sps:$4 sm:$0xff]   ;;  %v1113_v21 = vcombine.high %v10700_v13, %v10700_v13 }
  0x49   :  { %v9120_v13 = vld [vmem:[%s13752_s1 + $0x420] ss:$16 sps:$4 sm:$0xff]  }
  0x4b   :  { %6462 = vmatpush1.bf16.msra.mxu0 %v9030_v22  ;;  %7118 = vmatpush1.bf16.msra.mxu1 %v9033_v23  ;;  %v9117_v22 = vld [vmem:[%s13752_s1 + $0x408] ss:$16 sps:$4 sm:$0xff]   ;;  %v9122_v23 = vld [vmem:[%s13752_s1 + $0x424] ss:$16 sps:$4 sm:$0xff]  }
  0x4c   :  { %6463 = vmatprep.subr.bf16.mxu0 %v9038_v24  ;;  %7119 = vmatprep.subr.bf16.mxu1 %v9041_v25  ;;  %v9125_v24 = vld [vmem:[%s13752_s1 + $0x42c] ss:$16 sps:$4 sm:$0xff]   ;;  %v10915_v25 = vrot.slane %v1084_v19, %v10620_v49  ;;  %v9206_v19 = vld [vmem:[%s13752_s1 + $0x5e4] ss:$16 sps:$4 sm:$0xff]  }
  0x4f   :  { %6464 = vmatpush1.bf16.msra.mxu0 %v9036_v26  ;;  %7120 = vmatpush1.bf16.msra.mxu1 %v9039_v27  ;;  %v9123_v26 = vld [vmem:[%s13752_s1 + $0x428] ss:$16 sps:$4 sm:$0xff]   ;;  %v9128_v27 = vld [vmem:[%s13752_s1 + $0x444] ss:$16 sps:$4 sm:$0xff]  }
  0x50   :  { %6465 = vmatprep.subr.bf16.mxu0 %v9044_v28  ;;  %7121 = vmatprep.subr.bf16.mxu1 %v9047_v29  ;;  %v9131_v28 = vld [vmem:[%s13752_s1 + $0x44c] ss:$16 sps:$4 sm:$0xff]   ;;  %v9126_v29 = vld [vmem:[%s13752_s1 + $0x440] ss:$16 sps:$4 sm:$0xff]  }
  0x53   :  { %6466 = vmatpush1.bf16.msra.mxu0 %v9042_v30  ;;  %7122 = vmatpush1.bf16.msra.mxu1 %v9045_v31  ;;  %v9129_v30 = vld [vmem:[%s13752_s1 + $0x448] ss:$16 sps:$4 sm:$0xff]   ;;  %v9134_v31 = vld [vmem:[%s13752_s1 + $0x464] ss:$16 sps:$4 sm:$0xff]  }
  0x54   :  { %6467 = vmatprep.subr.bf16.mxu0 %v9050_v32  ;;  %7123 = vmatprep.subr.bf16.mxu1 %v9053_v33  ;;  %v9137_v32 = vld [vmem:[%s13752_s1 + $0x46c] ss:$16 sps:$4 sm:$0xff]   ;;  %v9132_v33 = vld [vmem:[%s13752_s1 + $0x460] ss:$16 sps:$4 sm:$0xff]  }
  0x57   :  { %6468 = vmatpush1.bf16.msra.mxu0 %v9048_v34  ;;  %7124 = vmatpush1.bf16.msra.mxu1 %v9051_v35  ;;  %v9135_v34 = vld [vmem:[%s13752_s1 + $0x468] ss:$16 sps:$4 sm:$0xff]   ;;  %v9140_v35 = vld [vmem:[%s13752_s1 + $0x484] ss:$16 sps:$4 sm:$0xff]  }
  0x58   :  { %6469 = vmatprep.subr.bf16.mxu0 %v9056_v36  ;;  %7125 = vmatprep.subr.bf16.mxu1 %v9059_v37  ;;  %v9143_v36 = vld [vmem:[%s13752_s1 + $0x48c] ss:$16 sps:$4 sm:$0xff]   ;;  %v9138_v37 = vld [vmem:[%s13752_s1 + $0x480] ss:$16 sps:$4 sm:$0xff]  }
  0x5b   :  { %6470 = vmatpush1.bf16.msra.mxu0 %v9054_v38  ;;  %7126 = vmatpush1.bf16.msra.mxu1 %v9057_v39  ;;  %v9141_v38 = vld [vmem:[%s13752_s1 + $0x488] ss:$16 sps:$4 sm:$0xff]   ;;  %v9146_v39 = vld [vmem:[%s13752_s1 + $0x4a4] ss:$16 sps:$4 sm:$0xff]  }
  0x5c   :  { %6471 = vmatprep.subr.bf16.mxu0 %v9062_v40  ;;  %7127 = vmatprep.subr.bf16.mxu1 %v9065_v41  ;;  %v9149_v40 = vld [vmem:[%s13752_s1 + $0x4ac] ss:$16 sps:$4 sm:$0xff]   ;;  %v9144_v41 = vld [vmem:[%s13752_s1 + $0x4a0] ss:$16 sps:$4 sm:$0xff]  }
  0x5f   :  { %6472 = vmatpush1.bf16.msra.mxu0 %v9060_v43  ;;  %7128 = vmatpush1.bf16.msra.mxu1 %v9063_v44  ;;  %v9147_v43 = vld [vmem:[%s13752_s1 + $0x4a8] ss:$16 sps:$4 sm:$0xff]   ;;  %v9152_v44 = vld [vmem:[%s13752_s1 + $0x4c4] ss:$16 sps:$4 sm:$0xff]  }
  0x60   :  { %6473 = vmatprep.subr.bf16.mxu0 %v9068_v45  ;;  %7129 = vmatprep.subr.bf16.mxu1 %v9071_v46  ;;  %v9155_v45 = vld [vmem:[%s13752_s1 + $0x4cc] ss:$16 sps:$4 sm:$0xff]   ;;  %v9150_v46 = vld [vmem:[%s13752_s1 + $0x4c0] ss:$16 sps:$4 sm:$0xff]  }
  0x63   :  { %6474 = vmatpush1.bf16.msra.mxu0 %v9066_v47  ;;  %7130 = vmatpush1.bf16.msra.mxu1 %v9069_v48  ;;  %v9153_v47 = vld [vmem:[%s13752_s1 + $0x4c8] ss:$16 sps:$4 sm:$0xff]   ;;  %v9158_v48 = vld [vmem:[%s13752_s1 + $0x4e4] ss:$16 sps:$4 sm:$0xff]  }
  0x64   :  { %6475 = vmatprep.subr.bf16.mxu0 %v9074_v50  ;;  %7131 = vmatprep.subr.bf16.mxu1 %v9077_v51  ;;  %v9161_v50 = vld [vmem:[%s13752_s1 + $0x4ec] ss:$16 sps:$4 sm:$0xff]   ;;  %v9156_v51 = vld [vmem:[%s13752_s1 + $0x4e0] ss:$16 sps:$4 sm:$0xff]  }
  0x67   :  { %6476 = vmatpush1.bf16.msra.mxu0 %v9072_v53  ;;  %7132 = vmatpush1.bf16.msra.mxu1 %v9075_v54  ;;  %v9159_v53 = vld [vmem:[%s13752_s1 + $0x4e8] ss:$16 sps:$4 sm:$0xff]   ;;  %v9164_v54 = vld [vmem:[%s13752_s1 + $0x504] ss:$16 sps:$4 sm:$0xff]  }
  0x68   :  { %6477 = vmatprep.subr.bf16.mxu0 %v9080_v55  ;;  %7133 = vmatprep.subr.bf16.mxu1 %v9083_v56  ;;  %v9167_v55 = vld [vmem:[%s13752_s1 + $0x50c] ss:$16 sps:$4 sm:$0xff]   ;;  %v9162_v56 = vld [vmem:[%s13752_s1 + $0x500] ss:$16 sps:$4 sm:$0xff]  }
  0x6b   :  { %6478 = vmatpush1.bf16.msra.mxu0 %v9078_v57  ;;  %7134 = vmatpush1.bf16.msra.mxu1 %v9081_v58  ;;  %v9165_v57 = vld [vmem:[%s13752_s1 + $0x508] ss:$16 sps:$4 sm:$0xff]   ;;  %v9170_v58 = vld [vmem:[%s13752_s1 + $0x524] ss:$16 sps:$4 sm:$0xff]  }
  0x6c   :  { %6479 = vmatprep.subr.bf16.mxu0 %v9086_v59  ;;  %7135 = vmatprep.subr.bf16.mxu1 %v9089_v60  ;;  %v9173_v59 = vld [vmem:[%s13752_s1 + $0x52c] ss:$16 sps:$4 sm:$0xff]   ;;  %v9168_v60 = vld [vmem:[%s13752_s1 + $0x520] ss:$16 sps:$4 sm:$0xff]  }
  0x6f   :  { %6480 = vmatpush1.bf16.msra.mxu0 %v9084_v61  ;;  %7136 = vmatpush1.bf16.msra.mxu1 %v9087_v62  ;;  %v9171_v61 = vld [vmem:[%s13752_s1 + $0x528] ss:$16 sps:$4 sm:$0xff]   ;;  %v9176_v62 = vld [vmem:[%s13752_s1 + $0x544] ss:$16 sps:$4 sm:$0xff]  }
  0x70   :  { %6481 = vmatprep.subr.bf16.mxu0 %v9092_v63  ;;  %7137 = vmatprep.subr.bf16.mxu1 %v9095_v0  ;;  %v9179_v63 = vld [vmem:[%s13752_s1 + $0x54c] ss:$16 sps:$4 sm:$0xff]   ;;  %v9174_v0 = vld [vmem:[%s13752_s1 + $0x540] ss:$16 sps:$4 sm:$0xff]  }
  0x73   :  { %6482 = vmatpush1.bf16.msra.mxu0 %v9090_v1  ;;  %7138 = vmatpush1.bf16.msra.mxu1 %v9093_v2  ;;  %v9177_v1 = vld [vmem:[%s13752_s1 + $0x548] ss:$16 sps:$4 sm:$0xff]   ;;  %v9182_v2 = vld [vmem:[%s13752_s1 + $0x564] ss:$16 sps:$4 sm:$0xff]  }
  0x74   :  { %6483 = vmatprep.subr.bf16.mxu0 %v9098_v3  ;;  %7139 = vmatprep.subr.bf16.mxu1 %v9101_v4  ;;  %v9185_v3 = vld [vmem:[%s13752_s1 + $0x56c] ss:$16 sps:$4 sm:$0xff]   ;;  %v9180_v4 = vld [vmem:[%s13752_s1 + $0x560] ss:$16 sps:$4 sm:$0xff]  }
  0x77   :  { %6484 = vmatpush1.bf16.msra.mxu0 %v9096_v5  ;;  %7140 = vmatpush1.bf16.msra.mxu1 %v9099_v6  ;;  %v9183_v5 = vld [vmem:[%s13752_s1 + $0x568] ss:$16 sps:$4 sm:$0xff]   ;;  %v9188_v6 = vld [vmem:[%s13752_s1 + $0x584] ss:$16 sps:$4 sm:$0xff]  }
  0x78   :  { %6485 = vmatprep.subr.bf16.mxu0 %v9104_v7  ;;  %7141 = vmatprep.subr.bf16.mxu1 %v9107_v8  ;;  %v9191_v7 = vld [vmem:[%s13752_s1 + $0x58c] ss:$16 sps:$4 sm:$0xff]   ;;  %v9186_v8 = vld [vmem:[%s13752_s1 + $0x580] ss:$16 sps:$4 sm:$0xff]  }
  0x7b   :  { %6486 = vmatpush1.bf16.msra.mxu0 %v9102_v10  ;;  %7142 = vmatpush1.bf16.msra.mxu1 %v9105_v11  ;;  %v9194_v10 = vld [vmem:[%s13752_s1 + $0x5a4] ss:$16 sps:$4 sm:$0xff]   ;;  %v9197_v11 = vld [vmem:[%s13752_s1 + $0x5ac] ss:$16 sps:$4 sm:$0xff]  }
  0x7c   :  { %6487 = vmatprep.subr.bf16.mxu0 %v9110_v12  ;;  %7143 = vmatprep.subr.bf16.mxu1 %v9113_v52  ;;  %v9192_v12 = vld [vmem:[%s13752_s1 + $0x5a0] ss:$16 sps:$4 sm:$0xff]   ;;  %v9195_v52 = vld [vmem:[%s13752_s1 + $0x5a8] ss:$16 sps:$4 sm:$0xff]  }
  0x7f   :  { %6488 = vmatpush1.bf16.msra.mxu0 %v9108_v15  ;;  %7144 = vmatpush1.bf16.msra.mxu1 %v9111_v16  ;;  %v9200_v15 = vld [vmem:[%s13752_s1 + $0x5c4] ss:$16 sps:$4 sm:$0xff]   ;;  %v9203_v16 = vld [vmem:[%s13752_s1 + $0x5cc] ss:$16 sps:$4 sm:$0xff]  }
  0x80   :  { %6498 = vmatprep.subr.bf16.mxu0 %v9116_v17  ;;  %7154 = vmatprep.subr.bf16.mxu1 %v9119_v18  ;;  %v9198_v17 = vld [vmem:[%s13752_s1 + $0x5c0] ss:$16 sps:$4 sm:$0xff]   ;;  %v9201_v18 = vld [vmem:[%s13752_s1 + $0x5c8] ss:$16 sps:$4 sm:$0xff]  }
  0x82   :  { %6490 = vmatmul.mubr.bf16.vlgmr.msra.gmra.mrb[0].mxu0 %v1113_v21  ;;  %7146 = vmatmul.mubr.bf16.vlgmr.msra.gmra.mrb[0].mxu1 %v1113_v21  ;;  %v9204_v21 = vld [vmem:[%s13752_s1 + $0x5e0] ss:$16 sps:$4 sm:$0xff]  }
  0x83   :  { %6499 = vmatpush1.bf16.msra.mxu0 %v9114_v20  ;;  %7155 = vmatpush1.bf16.msra.mxu1 %v9117_v22  ;;  %v9209_v20 = vld [vmem:[%s13752_s1 + $0x5ec] ss:$16 sps:$4 sm:$0xff]   ;;  %v9207_v22 = vld [vmem:[%s13752_s1 + $0x5e8] ss:$16 sps:$4 sm:$0xff]  }
  0x84   :  { %6500 = vmatprep.subr.bf16.mxu0 %v9122_v23  ;;  %7156 = vmatprep.subr.bf16.mxu1 %v9125_v24  ;;  %v9213_v23 = vld [vmem:[%s13752_s1 + $0x604] ss:$16 sps:$4 sm:$0xff]   ;;  %v9216_v24 = vld [vmem:[%s13752_s1 + $0x60c] ss:$16 sps:$4 sm:$0xff]  }
  0x85   :  { %6530 = vmatprep.mubr.bf16.mxu0 %v10915_v25  ;;  %7186 = vmatprep.mubr.bf16.mxu1 %v10915_v25 }
  0x87   :  { %6501 = vmatpush1.bf16.msra.mxu0 %v9120_v13  ;;  %7157 = vmatpush1.bf16.msra.mxu1 %v9123_v26  ;;  %v9211_v13 = vld [vmem:[%s13752_s1 + $0x600] ss:$16 sps:$4 sm:$0xff]   ;;  %v11104_v26 = vrot.slane %v10884_v14, %v10620_v49  ;;  %v1116_v14 = vcombine.high %v10915_v25, %v10915_v25  ;;  %v9225_v25 = vld [vmem:[%s13752_s1 + $0x644] ss:$16 sps:$4 sm:$0xff]  }
  0x88   :  { %6502 = vmatprep.subr.bf16.mxu0 %v9128_v27  ;;  %7158 = vmatprep.subr.bf16.mxu1 %v9131_v28  ;;  %v9214_v27 = vld [vmem:[%s13752_s1 + $0x608] ss:$16 sps:$4 sm:$0xff]   ;;  %v9219_v28 = vld [vmem:[%s13752_s1 + $0x624] ss:$16 sps:$4 sm:$0xff]  }
  0x8b   :  { %6503 = vmatpush1.bf16.msra.mxu0 %v9126_v29  ;;  %7159 = vmatpush1.bf16.msra.mxu1 %v9129_v30  ;;  %v9222_v29 = vld [vmem:[%s13752_s1 + $0x62c] ss:$16 sps:$4 sm:$0xff]   ;;  %v9217_v30 = vld [vmem:[%s13752_s1 + $0x620] ss:$16 sps:$4 sm:$0xff]  }
  0x8c   :  { %6504 = vmatprep.subr.bf16.mxu0 %v9134_v31  ;;  %7160 = vmatprep.subr.bf16.mxu1 %v9137_v32  ;;  %v9220_v31 = vld [vmem:[%s13752_s1 + $0x628] ss:$16 sps:$4 sm:$0xff]   ;;  %v9228_v32 = vld [vmem:[%s13752_s1 + $0x64c] ss:$16 sps:$4 sm:$0xff]  }
  0x8f   :  { %6505 = vmatpush1.bf16.msra.mxu0 %v9132_v33  ;;  %7161 = vmatpush1.bf16.msra.mxu1 %v9135_v34  ;;  %v9223_v33 = vld [vmem:[%s13752_s1 + $0x640] ss:$16 sps:$4 sm:$0xff]   ;;  %v9226_v34 = vld [vmem:[%s13752_s1 + $0x648] ss:$16 sps:$4 sm:$0xff]  }
  0x90   :  { %6506 = vmatprep.subr.bf16.mxu0 %v9140_v35  ;;  %7162 = vmatprep.subr.bf16.mxu1 %v9143_v36  ;;  %v9231_v35 = vld [vmem:[%s13752_s1 + $0x664] ss:$16 sps:$4 sm:$0xff]   ;;  %v9234_v36 = vld [vmem:[%s13752_s1 + $0x66c] ss:$16 sps:$4 sm:$0xff]  }
  0x93   :  { %6507 = vmatpush1.bf16.msra.mxu0 %v9138_v37  ;;  %7163 = vmatpush1.bf16.msra.mxu1 %v9141_v38  ;;  %v9229_v37 = vld [vmem:[%s13752_s1 + $0x660] ss:$16 sps:$4 sm:$0xff]   ;;  %v9232_v38 = vld [vmem:[%s13752_s1 + $0x668] ss:$16 sps:$4 sm:$0xff]  }
  0x94   :  { %6508 = vmatprep.subr.bf16.mxu0 %v9146_v39  ;;  %7164 = vmatprep.subr.bf16.mxu1 %v9149_v40  ;;  %v9237_v39 = vld [vmem:[%s13752_s1 + $0x684] ss:$16 sps:$4 sm:$0xff]   ;;  %v9240_v40 = vld [vmem:[%s13752_s1 + $0x68c] ss:$16 sps:$4 sm:$0xff]  }
  0x97   :  { %6509 = vmatpush1.bf16.msra.mxu0 %v9144_v41  ;;  %7165 = vmatpush1.bf16.msra.mxu1 %v9147_v43  ;;  %v9235_v41 = vld [vmem:[%s13752_s1 + $0x680] ss:$16 sps:$4 sm:$0xff]   ;;  %v9238_v43 = vld [vmem:[%s13752_s1 + $0x688] ss:$16 sps:$4 sm:$0xff]  }
  0x98   :  { %6510 = vmatprep.subr.bf16.mxu0 %v9152_v44  ;;  %7166 = vmatprep.subr.bf16.mxu1 %v9155_v45  ;;  %v9243_v44 = vld [vmem:[%s13752_s1 + $0x6a4] ss:$16 sps:$4 sm:$0xff]   ;;  %v9246_v45 = vld [vmem:[%s13752_s1 + $0x6ac] ss:$16 sps:$4 sm:$0xff]  }
  0x9b   :  { %6511 = vmatpush1.bf16.msra.mxu0 %v9150_v46  ;;  %7167 = vmatpush1.bf16.msra.mxu1 %v9153_v47  ;;  %v9241_v46 = vld [vmem:[%s13752_s1 + $0x6a0] ss:$16 sps:$4 sm:$0xff]   ;;  %v9244_v47 = vld [vmem:[%s13752_s1 + $0x6a8] ss:$16 sps:$4 sm:$0xff]  }
  0x9c   :  { %6512 = vmatprep.subr.bf16.mxu0 %v9158_v48  ;;  %7168 = vmatprep.subr.bf16.mxu1 %v9161_v50  ;;  %v9249_v48 = vld [vmem:[%s13752_s1 + $0x6c4] ss:$16 sps:$4 sm:$0xff]   ;;  %v9252_v50 = vld [vmem:[%s13752_s1 + $0x6cc] ss:$16 sps:$4 sm:$0xff]  }
  0x9f   :  { %6513 = vmatpush1.bf16.msra.mxu0 %v9156_v51  ;;  %7169 = vmatpush1.bf16.msra.mxu1 %v9159_v53  ;;  %v9247_v51 = vld [vmem:[%s13752_s1 + $0x6c0] ss:$16 sps:$4 sm:$0xff]   ;;  %v9250_v53 = vld [vmem:[%s13752_s1 + $0x6c8] ss:$16 sps:$4 sm:$0xff]  }
  0xa0   :  { %6514 = vmatprep.subr.bf16.mxu0 %v9164_v54  ;;  %7170 = vmatprep.subr.bf16.mxu1 %v9167_v55  ;;  %v9255_v54 = vld [vmem:[%s13752_s1 + $0x6e4] ss:$16 sps:$4 sm:$0xff]   ;;  %v9258_v55 = vld [vmem:[%s13752_s1 + $0x6ec] ss:$16 sps:$4 sm:$0xff]  }
  0xa3   :  { %6515 = vmatpush1.bf16.msra.mxu0 %v9162_v56  ;;  %7171 = vmatpush1.bf16.msra.mxu1 %v9165_v57  ;;  %v9253_v56 = vld [vmem:[%s13752_s1 + $0x6e0] ss:$16 sps:$4 sm:$0xff]   ;;  %v9256_v57 = vld [vmem:[%s13752_s1 + $0x6e8] ss:$16 sps:$4 sm:$0xff]  }
  0xa4   :  { %6516 = vmatprep.subr.bf16.mxu0 %v9170_v58  ;;  %7172 = vmatprep.subr.bf16.mxu1 %v9173_v59  ;;  %v9261_v58 = vld [vmem:[%s13752_s1 + $0x704] ss:$16 sps:$4 sm:$0xff]   ;;  %v9264_v59 = vld [vmem:[%s13752_s1 + $0x70c] ss:$16 sps:$4 sm:$0xff]  }
  0xa7   :  { %6517 = vmatpush1.bf16.msra.mxu0 %v9168_v60  ;;  %7173 = vmatpush1.bf16.msra.mxu1 %v9171_v61  ;;  %v9259_v60 = vld [vmem:[%s13752_s1 + $0x700] ss:$16 sps:$4 sm:$0xff]   ;;  %v9262_v61 = vld [vmem:[%s13752_s1 + $0x708] ss:$16 sps:$4 sm:$0xff]  }
  0xa8   :  { %6518 = vmatprep.subr.bf16.mxu0 %v9176_v62  ;;  %7174 = vmatprep.subr.bf16.mxu1 %v9179_v63  ;;  %v9267_v62 = vld [vmem:[%s13752_s1 + $0x724] ss:$16 sps:$4 sm:$0xff]   ;;  %v9270_v63 = vld [vmem:[%s13752_s1 + $0x72c] ss:$16 sps:$4 sm:$0xff]  }
  0xab   :  { %6519 = vmatpush1.bf16.msra.mxu0 %v9174_v0  ;;  %7175 = vmatpush1.bf16.msra.mxu1 %v9177_v1  ;;  %v9265_v0 = vld [vmem:[%s13752_s1 + $0x720] ss:$16 sps:$4 sm:$0xff]   ;;  %v9268_v1 = vld [vmem:[%s13752_s1 + $0x728] ss:$16 sps:$4 sm:$0xff]  }
  0xac   :  { %6520 = vmatprep.subr.bf16.mxu0 %v9182_v2  ;;  %7176 = vmatprep.subr.bf16.mxu1 %v9185_v3  ;;  %v9273_v2 = vld [vmem:[%s13752_s1 + $0x744] ss:$16 sps:$4 sm:$0xff]   ;;  %v9276_v3 = vld [vmem:[%s13752_s1 + $0x74c] ss:$16 sps:$4 sm:$0xff]  }
  0xaf   :  { %6521 = vmatpush1.bf16.msra.mxu0 %v9180_v4  ;;  %7177 = vmatpush1.bf16.msra.mxu1 %v9183_v5  ;;  %v9271_v4 = vld [vmem:[%s13752_s1 + $0x740] ss:$16 sps:$4 sm:$0xff]   ;;  %v9274_v5 = vld [vmem:[%s13752_s1 + $0x748] ss:$16 sps:$4 sm:$0xff]  }
  0xb0   :  { %6522 = vmatprep.subr.bf16.mxu0 %v9188_v6  ;;  %7178 = vmatprep.subr.bf16.mxu1 %v9191_v7  ;;  %v9279_v6 = vld [vmem:[%s13752_s1 + $0x764] ss:$16 sps:$4 sm:$0xff]   ;;  %v9282_v7 = vld [vmem:[%s13752_s1 + $0x76c] ss:$16 sps:$4 sm:$0xff]  }
  0xb3   :  { %6523 = vmatpush1.bf16.msra.mxu0 %v9186_v8  ;;  %7179 = vmatpush1.bf16.msra.mxu1 %v9189_v9  ;;  %v9277_v8 = vld [vmem:[%s13752_s1 + $0x760] ss:$16 sps:$4 sm:$0xff]   ;;  %v9280_v9 = vld [vmem:[%s13752_s1 + $0x768] ss:$16 sps:$4 sm:$0xff]  }
  0xb4   :  { %6524 = vmatprep.subr.bf16.mxu0 %v9194_v10  ;;  %7180 = vmatprep.subr.bf16.mxu1 %v9197_v11  ;;  %v9285_v10 = vld [vmem:[%s13752_s1 + $0x784] ss:$16 sps:$4 sm:$0xff]   ;;  %v9288_v11 = vld [vmem:[%s13752_s1 + $0x78c] ss:$16 sps:$4 sm:$0xff]  }
  0xb7   :  { %6525 = vmatpush1.bf16.msra.mxu0 %v9192_v12  ;;  %7181 = vmatpush1.bf16.msra.mxu1 %v9195_v52  ;;  %v9283_v12 = vld [vmem:[%s13752_s1 + $0x780] ss:$16 sps:$4 sm:$0xff]   ;;  %v9286_v52 = vld [vmem:[%s13752_s1 + $0x788] ss:$16 sps:$4 sm:$0xff]  }
  0xb8   :  { %6526 = vmatprep.subr.bf16.mxu0 %v9200_v15  ;;  %7182 = vmatprep.subr.bf16.mxu1 %v9203_v16  ;;  %v9291_v15 = vld [vmem:[%s13752_s1 + $0x7a4] ss:$16 sps:$4 sm:$0xff]   ;;  %v9294_v16 = vld [vmem:[%s13752_s1 + $0x7ac] ss:$16 sps:$4 sm:$0xff]  }
  0xbb   :  { %6527 = vmatpush1.bf16.msra.mxu0 %v9198_v17  ;;  %7183 = vmatpush1.bf16.msra.mxu1 %v9201_v18  ;;  %v9289_v17 = vld [vmem:[%s13752_s1 + $0x7a0] ss:$16 sps:$4 sm:$0xff]   ;;  %v9292_v18 = vld [vmem:[%s13752_s1 + $0x7a8] ss:$16 sps:$4 sm:$0xff]  }
  0xbc   :  { %6528 = vmatprep.subr.bf16.mxu0 %v9206_v19  ;;  %7184 = vmatprep.subr.bf16.mxu1 %v9209_v20  ;;  %v9297_v19 = vld [vmem:[%s13752_s1 + $0x7c4] ss:$16 sps:$4 sm:$0xff]   ;;  %v9300_v20 = vld [vmem:[%s13752_s1 + $0x7cc] ss:$16 sps:$4 sm:$0xff]  }
  0xbf   :  { %6529 = vmatpush1.bf16.msra.mxu0 %v9204_v21  ;;  %7185 = vmatpush1.bf16.msra.mxu1 %v9207_v22  ;;  %v11278_v21 = vld.sshfl [vmem:[%s13753_s0 + $0x8] sm:$0xff pattern:$0x75316420]  ;;  %v9295_v22 = vld [vmem:[%s13752_s1 + $0x7c0] ss:$16 sps:$4 sm:$0xff]  }
  0xc0   :  { %6539 = vmatprep.subr.bf16.mxu0 %v9213_v23  ;;  %7195 = vmatprep.subr.bf16.mxu1 %v9216_v24  ;;  %v9298_v23 = vld [vmem:[%s13752_s1 + $0x7c8] ss:$16 sps:$4 sm:$0xff]   ;;  %v9303_v24 = vld [vmem:[%s13752_s1 + $0x7e4] ss:$16 sps:$4 sm:$0xff]  }
  0xc2   :  { %6531 = vmatmul.mubr.bf16.vlgmr.msra.gmra.mrb[0].mxu0 %v11104_v26  ;;  %7187 = vmatmul.mubr.bf16.vlgmr.msra.gmra.mrb[0].mxu1 %v11104_v26 }
  0xc3   :  { %6540 = vmatpush1.bf16.msra.mxu0 %v9211_v13  ;;  %7196 = vmatpush1.bf16.msra.mxu1 %v9214_v27  ;;  %v9306_v13 = vld [vmem:[%s13752_s1 + $0x7ec] ss:$16 sps:$4 sm:$0xff]   ;;  %v9301_v27 = vld [vmem:[%s13752_s1 + $0x7e0] ss:$16 sps:$4 sm:$0xff]  }
  0xc4   :  { %6541 = vmatprep.subr.bf16.mxu0 %v9219_v28  ;;  %7197 = vmatprep.subr.bf16.mxu1 %v9222_v29  ;;  %v9304_v28 = vld [vmem:[%s13752_s1 + $0x7e8] ss:$16 sps:$4 sm:$0xff]   ;;  %v9309_v29 = vld [vmem:[%s13752_s1 + $0x804] ss:$16 sps:$4 sm:$0xff]  }
  0xc5   :  { %6571 = vmatprep.mubr.bf16.mxu0 %v1116_v14  ;;  %7227 = vmatprep.mubr.bf16.mxu1 %v1116_v14  ;;  %v9312_v14 = vld [vmem:[%s13752_s1 + $0x80c] ss:$16 sps:$4 sm:$0xff]  }
  0xc7   :  { %6542 = vmatpush1.bf16.msra.mxu0 %v9217_v30  ;;  %7198 = vmatpush1.bf16.msra.mxu1 %v9220_v31  ;;  %v1132_v30 = vcombine.high %v11278_v21, %v11278_v21  ;;  %v1114_v31 = vcombine.high %v11104_v26, %v11104_v26  ;;  %v9318_v26 = vld [vmem:[%s13752_s1 + $0x82c] ss:$16 sps:$4 sm:$0xff]  }
  0xc8   :  { %6543 = vmatprep.subr.bf16.mxu0 %v9225_v25  ;;  %7199 = vmatprep.subr.bf16.mxu1 %v9228_v32  ;;  %v9307_v25 = vld [vmem:[%s13752_s1 + $0x800] ss:$16 sps:$4 sm:$0xff]   ;;  %v9310_v32 = vld [vmem:[%s13752_s1 + $0x808] ss:$16 sps:$4 sm:$0xff]  }
  0xcb   :  { %6544 = vmatpush1.bf16.msra.mxu0 %v9223_v33  ;;  %7200 = vmatpush1.bf16.msra.mxu1 %v9226_v34  ;;  %v9315_v33 = vld [vmem:[%s13752_s1 + $0x824] ss:$16 sps:$4 sm:$0xff]   ;;  %v11321_v34 = vrot.slane %v1132_v30, %v10620_v49 }
  0xcc   :  { %6545 = vmatprep.subr.bf16.mxu0 %v9231_v35  ;;  %7201 = vmatprep.subr.bf16.mxu1 %v9234_v36  ;;  %v9313_v35 = vld [vmem:[%s13752_s1 + $0x820] ss:$16 sps:$4 sm:$0xff]   ;;  %v9316_v36 = vld [vmem:[%s13752_s1 + $0x828] ss:$16 sps:$4 sm:$0xff]   ;;  %v9399_v30 = vld [vmem:[%s13752_s1 + $0x9e4] ss:$16 sps:$4 sm:$0xff]  }
  0xcf   :  { %6546 = vmatpush1.bf16.msra.mxu0 %v9229_v37  ;;  %7202 = vmatpush1.bf16.msra.mxu1 %v9232_v38  ;;  %v9321_v37 = vld [vmem:[%s13752_s1 + $0x844] ss:$16 sps:$4 sm:$0xff]   ;;  %v9324_v38 = vld [vmem:[%s13752_s1 + $0x84c] ss:$16 sps:$4 sm:$0xff]  }
  0xd0   :  { %6547 = vmatprep.subr.bf16.mxu0 %v9237_v39  ;;  %7203 = vmatprep.subr.bf16.mxu1 %v9240_v40  ;;  %v9319_v39 = vld [vmem:[%s13752_s1 + $0x840] ss:$16 sps:$4 sm:$0xff]   ;;  %v9322_v40 = vld [vmem:[%s13752_s1 + $0x848] ss:$16 sps:$4 sm:$0xff]  }
  0xd3   :  { %6548 = vmatpush1.bf16.msra.mxu0 %v9235_v41  ;;  %7204 = vmatpush1.bf16.msra.mxu1 %v9238_v43  ;;  %v9327_v41 = vld [vmem:[%s13752_s1 + $0x864] ss:$16 sps:$4 sm:$0xff]   ;;  %v9330_v43 = vld [vmem:[%s13752_s1 + $0x86c] ss:$16 sps:$4 sm:$0xff]  }
  0xd4   :  { %6549 = vmatprep.subr.bf16.mxu0 %v9243_v44  ;;  %7205 = vmatprep.subr.bf16.mxu1 %v9246_v45  ;;  %v9325_v44 = vld [vmem:[%s13752_s1 + $0x860] ss:$16 sps:$4 sm:$0xff]   ;;  %v9328_v45 = vld [vmem:[%s13752_s1 + $0x868] ss:$16 sps:$4 sm:$0xff]  }
  0xd7   :  { %6550 = vmatpush1.bf16.msra.mxu0 %v9241_v46  ;;  %7206 = vmatpush1.bf16.msra.mxu1 %v9244_v47  ;;  %v9333_v46 = vld [vmem:[%s13752_s1 + $0x884] ss:$16 sps:$4 sm:$0xff]   ;;  %v9336_v47 = vld [vmem:[%s13752_s1 + $0x88c] ss:$16 sps:$4 sm:$0xff]  }
  0xd8   :  { %6551 = vmatprep.subr.bf16.mxu0 %v9249_v48  ;;  %7207 = vmatprep.subr.bf16.mxu1 %v9252_v50  ;;  %v9331_v48 = vld [vmem:[%s13752_s1 + $0x880] ss:$16 sps:$4 sm:$0xff]   ;;  %v9334_v50 = vld [vmem:[%s13752_s1 + $0x888] ss:$16 sps:$4 sm:$0xff]  }
  0xdb   :  { %6552 = vmatpush1.bf16.msra.mxu0 %v9247_v51  ;;  %7208 = vmatpush1.bf16.msra.mxu1 %v9250_v53  ;;  %v9339_v51 = vld [vmem:[%s13752_s1 + $0x8a4] ss:$16 sps:$4 sm:$0xff]   ;;  %v9342_v53 = vld [vmem:[%s13752_s1 + $0x8ac] ss:$16 sps:$4 sm:$0xff]  }
  0xdc   :  { %6553 = vmatprep.subr.bf16.mxu0 %v9255_v54  ;;  %7209 = vmatprep.subr.bf16.mxu1 %v9258_v55  ;;  %v9337_v54 = vld [vmem:[%s13752_s1 + $0x8a0] ss:$16 sps:$4 sm:$0xff]   ;;  %v9340_v55 = vld [vmem:[%s13752_s1 + $0x8a8] ss:$16 sps:$4 sm:$0xff]  }
  0xdf   :  { %6554 = vmatpush1.bf16.msra.mxu0 %v9253_v56  ;;  %7210 = vmatpush1.bf16.msra.mxu1 %v9256_v57  ;;  %v9345_v56 = vld [vmem:[%s13752_s1 + $0x8c4] ss:$16 sps:$4 sm:$0xff]   ;;  %v9348_v57 = vld [vmem:[%s13752_s1 + $0x8cc] ss:$16 sps:$4 sm:$0xff]  }
  0xe0   :  { %6555 = vmatprep.subr.bf16.mxu0 %v9261_v58  ;;  %7211 = vmatprep.subr.bf16.mxu1 %v9264_v59  ;;  %v9343_v58 = vld [vmem:[%s13752_s1 + $0x8c0] ss:$16 sps:$4 sm:$0xff]   ;;  %v9346_v59 = vld [vmem:[%s13752_s1 + $0x8c8] ss:$16 sps:$4 sm:$0xff]  }
  0xe3   :  { %6556 = vmatpush1.bf16.msra.mxu0 %v9259_v60  ;;  %7212 = vmatpush1.bf16.msra.mxu1 %v9262_v61  ;;  %v9351_v60 = vld [vmem:[%s13752_s1 + $0x8e4] ss:$16 sps:$4 sm:$0xff]   ;;  %v9354_v61 = vld [vmem:[%s13752_s1 + $0x8ec] ss:$16 sps:$4 sm:$0xff]  }
  0xe4   :  { %6557 = vmatprep.subr.bf16.mxu0 %v9267_v62  ;;  %7213 = vmatprep.subr.bf16.mxu1 %v9270_v63  ;;  %v9349_v62 = vld [vmem:[%s13752_s1 + $0x8e0] ss:$16 sps:$4 sm:$0xff]   ;;  %v9352_v63 = vld [vmem:[%s13752_s1 + $0x8e8] ss:$16 sps:$4 sm:$0xff]  }
  0xe7   :  { %6558 = vmatpush1.bf16.msra.mxu0 %v9265_v0  ;;  %7214 = vmatpush1.bf16.msra.mxu1 %v9268_v1  ;;  %v9357_v0 = vld [vmem:[%s13752_s1 + $0x904] ss:$16 sps:$4 sm:$0xff]   ;;  %v9360_v1 = vld [vmem:[%s13752_s1 + $0x90c] ss:$16 sps:$4 sm:$0xff]  }
  0xe8   :  { %6559 = vmatprep.subr.bf16.mxu0 %v9273_v2  ;;  %7215 = vmatprep.subr.bf16.mxu1 %v9276_v3  ;;  %v9355_v2 = vld [vmem:[%s13752_s1 + $0x900] ss:$16 sps:$4 sm:$0xff]   ;;  %v9358_v3 = vld [vmem:[%s13752_s1 + $0x908] ss:$16 sps:$4 sm:$0xff]  }
  0xeb   :  { %6560 = vmatpush1.bf16.msra.mxu0 %v9271_v4  ;;  %7216 = vmatpush1.bf16.msra.mxu1 %v9274_v5  ;;  %v9363_v4 = vld [vmem:[%s13752_s1 + $0x924] ss:$16 sps:$4 sm:$0xff]   ;;  %v9366_v5 = vld [vmem:[%s13752_s1 + $0x92c] ss:$16 sps:$4 sm:$0xff]  }
  0xec   :  { %6561 = vmatprep.subr.bf16.mxu0 %v9279_v6  ;;  %7217 = vmatprep.subr.bf16.mxu1 %v9282_v7  ;;  %v9361_v6 = vld [vmem:[%s13752_s1 + $0x920] ss:$16 sps:$4 sm:$0xff]   ;;  %v9364_v7 = vld [vmem:[%s13752_s1 + $0x928] ss:$16 sps:$4 sm:$0xff]  }
  0xef   :  { %6562 = vmatpush1.bf16.msra.mxu0 %v9277_v8  ;;  %7218 = vmatpush1.bf16.msra.mxu1 %v9280_v9  ;;  %v9369_v8 = vld [vmem:[%s13752_s1 + $0x944] ss:$16 sps:$4 sm:$0xff]   ;;  %v9372_v9 = vld [vmem:[%s13752_s1 + $0x94c] ss:$16 sps:$4 sm:$0xff]  }
  0xf0   :  { %6563 = vmatprep.subr.bf16.mxu0 %v9285_v10  ;;  %7219 = vmatprep.subr.bf16.mxu1 %v9288_v11  ;;  %v9367_v10 = vld [vmem:[%s13752_s1 + $0x940] ss:$16 sps:$4 sm:$0xff]   ;;  %v9370_v11 = vld [vmem:[%s13752_s1 + $0x948] ss:$16 sps:$4 sm:$0xff]  }
  0xf3   :  { %6564 = vmatpush1.bf16.msra.mxu0 %v9283_v12  ;;  %7220 = vmatpush1.bf16.msra.mxu1 %v9286_v52  ;;  %v9375_v12 = vld [vmem:[%s13752_s1 + $0x964] ss:$16 sps:$4 sm:$0xff]   ;;  %v9378_v52 = vld [vmem:[%s13752_s1 + $0x96c] ss:$16 sps:$4 sm:$0xff]  }
  0xf4   :  { %6565 = vmatprep.subr.bf16.mxu0 %v9291_v15  ;;  %7221 = vmatprep.subr.bf16.mxu1 %v9294_v16  ;;  %v9373_v15 = vld [vmem:[%s13752_s1 + $0x960] ss:$16 sps:$4 sm:$0xff]   ;;  %v9376_v16 = vld [vmem:[%s13752_s1 + $0x968] ss:$16 sps:$4 sm:$0xff]  }
  0xf7   :  { %6566 = vmatpush1.bf16.msra.mxu0 %v9289_v17  ;;  %7222 = vmatpush1.bf16.msra.mxu1 %v9292_v18  ;;  %v9381_v17 = vld [vmem:[%s13752_s1 + $0x984] ss:$16 sps:$4 sm:$0xff]   ;;  %v9384_v18 = vld [vmem:[%s13752_s1 + $0x98c] ss:$16 sps:$4 sm:$0xff]  }
  0xf8   :  { %6567 = vmatprep.subr.bf16.mxu0 %v9297_v19  ;;  %7223 = vmatprep.subr.bf16.mxu1 %v9300_v20  ;;  %v9379_v19 = vld [vmem:[%s13752_s1 + $0x980] ss:$16 sps:$4 sm:$0xff]   ;;  %v9382_v20 = vld [vmem:[%s13752_s1 + $0x988] ss:$16 sps:$4 sm:$0xff]  }
  0xfb   :  { %6568 = vmatpush1.bf16.msra.mxu0 %v9295_v22  ;;  %7224 = vmatpush1.bf16.msra.mxu1 %v9298_v23  ;;  %v9387_v22 = vld [vmem:[%s13752_s1 + $0x9a4] ss:$16 sps:$4 sm:$0xff]   ;;  %v9390_v23 = vld [vmem:[%s13752_s1 + $0x9ac] ss:$16 sps:$4 sm:$0xff]  }
  0xfc   :  { %6569 = vmatprep.subr.bf16.mxu0 %v9303_v24  ;;  %7225 = vmatprep.subr.bf16.mxu1 %v9306_v13  ;;  %v9385_v24 = vld [vmem:[%s13752_s1 + $0x9a0] ss:$16 sps:$4 sm:$0xff]   ;;  %v9388_v13 = vld [vmem:[%s13752_s1 + $0x9a8] ss:$16 sps:$4 sm:$0xff]  }
  0xff   :  { %6570 = vmatpush1.bf16.msra.mxu0 %v9301_v27  ;;  %7226 = vmatpush1.bf16.msra.mxu1 %v9304_v28  ;;  %v9393_v27 = vld [vmem:[%s13752_s1 + $0x9c4] ss:$16 sps:$4 sm:$0xff]   ;;  %v9396_v28 = vld [vmem:[%s13752_s1 + $0x9cc] ss:$16 sps:$4 sm:$0xff]  }
 0x100   :  { %6580 = vmatprep.subr.bf16.mxu0 %v9309_v29  ;;  %7236 = vmatprep.subr.bf16.mxu1 %v9312_v14  ;;  %v9391_v29 = vld [vmem:[%s13752_s1 + $0x9c0] ss:$16 sps:$4 sm:$0xff]   ;;  %v9394_v14 = vld [vmem:[%s13752_s1 + $0x9c8] ss:$16 sps:$4 sm:$0xff]  }
 0x102   :  { %6572 = vmatmul.mubr.bf16.vlgmr.msra.gmra.mrb[0].mxu0 %v1114_v31  ;;  %7228 = vmatmul.mubr.bf16.vlgmr.msra.gmra.mrb[0].mxu1 %v1114_v31  ;;  %v9402_v31 = vld [vmem:[%s13752_s1 + $0x9ec] ss:$16 sps:$4 sm:$0xff]  }
 0x103   :  { %6581 = vmatpush1.bf16.msra.mxu0 %v9307_v25  ;;  %7237 = vmatpush1.bf16.msra.mxu1 %v9310_v32  ;;  %v9397_v25 = vld [vmem:[%s13752_s1 + $0x9e0] ss:$16 sps:$4 sm:$0xff]   ;;  %v9400_v32 = vld [vmem:[%s13752_s1 + $0x9e8] ss:$16 sps:$4 sm:$0xff]  }
 0x104   :  { %6582 = vmatprep.subr.bf16.mxu0 %v9315_v33  ;;  %7238 = vmatprep.subr.bf16.mxu1 %v9318_v26  ;;  %v9405_v33 = vld [vmem:[%s13752_s1 + $0xa04] ss:$16 sps:$4 sm:$0xff]   ;;  %v9408_v26 = vld [vmem:[%s13752_s1 + $0xa0c] ss:$16 sps:$4 sm:$0xff]  }
 0x105   :  { %6612 = vmatprep.mubr.bf16.mxu0 %v11321_v34  ;;  %7268 = vmatprep.mubr.bf16.mxu1 %v11321_v34 }
 0x107   :  { %6583 = vmatpush1.bf16.msra.mxu0 %v9313_v35  ;;  %7239 = vmatpush1.bf16.msra.mxu1 %v9316_v36  ;;  %v11507_v35 = vrot.slane %v11278_v21, %v10620_v49  ;;  %v9403_v36 = vld [vmem:[%s13752_s1 + $0xa00] ss:$16 sps:$4 sm:$0xff]   ;;  %v9414_v21 = vld [vmem:[%s13752_s1 + $0xa2c] ss:$16 sps:$4 sm:$0xff]  }
 0x108   :  { %6584 = vmatprep.subr.bf16.mxu0 %v9321_v37  ;;  %7240 = vmatprep.subr.bf16.mxu1 %v9324_v38  ;;  %v9406_v37 = vld [vmem:[%s13752_s1 + $0xa08] ss:$16 sps:$4 sm:$0xff]   ;;  %v9411_v38 = vld [vmem:[%s13752_s1 + $0xa24] ss:$16 sps:$4 sm:$0xff]  }
 0x10b   :  { %6585 = vmatpush1.bf16.msra.mxu0 %v9319_v39  ;;  %7241 = vmatpush1.bf16.msra.mxu1 %v9322_v40  ;;  %v1164_v39 = vcombine.high %v11321_v34, %v11321_v34  ;;  %v9409_v40 = vld [vmem:[%s13752_s1 + $0xa20] ss:$16 sps:$4 sm:$0xff]   ;;  %v9417_v34 = vld [vmem:[%s13752_s1 + $0xa44] ss:$16 sps:$4 sm:$0xff]  }
 0x10c   :  { %6586 = vmatprep.subr.bf16.mxu0 %v9327_v41  ;;  %7242 = vmatprep.subr.bf16.mxu1 %v9330_v43  ;;  %v9412_v41 = vld [vmem:[%s13752_s1 + $0xa28] ss:$16 sps:$4 sm:$0xff]   ;;  %v9420_v43 = vld [vmem:[%s13752_s1 + $0xa4c] ss:$16 sps:$4 sm:$0xff]  }
 0x10f   :  { %6587 = vmatpush1.bf16.msra.mxu0 %v9325_v44  ;;  %7243 = vmatpush1.bf16.msra.mxu1 %v9328_v45  ;;  %v9415_v44 = vld [vmem:[%s13752_s1 + $0xa40] ss:$16 sps:$4 sm:$0xff]   ;;  %v9418_v45 = vld [vmem:[%s13752_s1 + $0xa48] ss:$16 sps:$4 sm:$0xff]  }
 0x110   :  { %6588 = vmatprep.subr.bf16.mxu0 %v9333_v46  ;;  %7244 = vmatprep.subr.bf16.mxu1 %v9336_v47  ;;  %v9423_v46 = vld [vmem:[%s13752_s1 + $0xa64] ss:$16 sps:$4 sm:$0xff]   ;;  %v9426_v47 = vld [vmem:[%s13752_s1 + $0xa6c] ss:$16 sps:$4 sm:$0xff]  }
 0x113   :  { %6589 = vmatpush1.bf16.msra.mxu0 %v9331_v48  ;;  %7245 = vmatpush1.bf16.msra.mxu1 %v9334_v50  ;;  %v9421_v48 = vld [vmem:[%s13752_s1 + $0xa60] ss:$16 sps:$4 sm:$0xff]   ;;  %v9424_v50 = vld [vmem:[%s13752_s1 + $0xa68] ss:$16 sps:$4 sm:$0xff]  }
 0x114   :  { %6590 = vmatprep.subr.bf16.mxu0 %v9339_v51  ;;  %7246 = vmatprep.subr.bf16.mxu1 %v9342_v53  ;;  %v9429_v51 = vld [vmem:[%s13752_s1 + $0xa84] ss:$16 sps:$4 sm:$0xff]   ;;  %v9432_v53 = vld [vmem:[%s13752_s1 + $0xa8c] ss:$16 sps:$4 sm:$0xff]  }
 0x117   :  { %6591 = vmatpush1.bf16.msra.mxu0 %v9337_v54  ;;  %7247 = vmatpush1.bf16.msra.mxu1 %v9340_v55  ;;  %v9427_v54 = vld [vmem:[%s13752_s1 + $0xa80] ss:$16 sps:$4 sm:$0xff]   ;;  %v9430_v55 = vld [vmem:[%s13752_s1 + $0xa88] ss:$16 sps:$4 sm:$0xff]  }
 0x118   :  { %6592 = vmatprep.subr.bf16.mxu0 %v9345_v56  ;;  %7248 = vmatprep.subr.bf16.mxu1 %v9348_v57  ;;  %v9435_v56 = vld [vmem:[%s13752_s1 + $0xaa4] ss:$16 sps:$4 sm:$0xff]   ;;  %v9438_v57 = vld [vmem:[%s13752_s1 + $0xaac] ss:$16 sps:$4 sm:$0xff]  }
 0x11b   :  { %6593 = vmatpush1.bf16.msra.mxu0 %v9343_v58  ;;  %7249 = vmatpush1.bf16.msra.mxu1 %v9346_v59  ;;  %v9433_v58 = vld [vmem:[%s13752_s1 + $0xaa0] ss:$16 sps:$4 sm:$0xff]   ;;  %v9436_v59 = vld [vmem:[%s13752_s1 + $0xaa8] ss:$16 sps:$4 sm:$0xff]  }
 0x11c   :  { %6594 = vmatprep.subr.bf16.mxu0 %v9351_v60  ;;  %7250 = vmatprep.subr.bf16.mxu1 %v9354_v61  ;;  %v9441_v60 = vld [vmem:[%s13752_s1 + $0xac4] ss:$16 sps:$4 sm:$0xff]   ;;  %v9444_v61 = vld [vmem:[%s13752_s1 + $0xacc] ss:$16 sps:$4 sm:$0xff]  }
 0x11f   :  { %6595 = vmatpush1.bf16.msra.mxu0 %v9349_v62  ;;  %7251 = vmatpush1.bf16.msra.mxu1 %v9352_v63  ;;  %v9439_v62 = vld [vmem:[%s13752_s1 + $0xac0] ss:$16 sps:$4 sm:$0xff]   ;;  %v9442_v63 = vld [vmem:[%s13752_s1 + $0xac8] ss:$16 sps:$4 sm:$0xff]  }
 0x120   :  { %6596 = vmatprep.subr.bf16.mxu0 %v9357_v0  ;;  %7252 = vmatprep.subr.bf16.mxu1 %v9360_v1  ;;  %v9447_v0 = vld [vmem:[%s13752_s1 + $0xae4] ss:$16 sps:$4 sm:$0xff]   ;;  %v9450_v1 = vld [vmem:[%s13752_s1 + $0xaec] ss:$16 sps:$4 sm:$0xff]  }
 0x123   :  { %6597 = vmatpush1.bf16.msra.mxu0 %v9355_v2  ;;  %7253 = vmatpush1.bf16.msra.mxu1 %v9358_v3  ;;  %v9445_v2 = vld [vmem:[%s13752_s1 + $0xae0] ss:$16 sps:$4 sm:$0xff]   ;;  %v9448_v3 = vld [vmem:[%s13752_s1 + $0xae8] ss:$16 sps:$4 sm:$0xff]  }
 0x124   :  { %6598 = vmatprep.subr.bf16.mxu0 %v9363_v4  ;;  %7254 = vmatprep.subr.bf16.mxu1 %v9366_v5  ;;  %v9453_v4 = vld [vmem:[%s13752_s1 + $0xb04] ss:$16 sps:$4 sm:$0xff]   ;;  %v9456_v5 = vld [vmem:[%s13752_s1 + $0xb0c] ss:$16 sps:$4 sm:$0xff]  }
 0x127   :  { %6599 = vmatpush1.bf16.msra.mxu0 %v9361_v6  ;;  %7255 = vmatpush1.bf16.msra.mxu1 %v9364_v7  ;;  %v9451_v6 = vld [vmem:[%s13752_s1 + $0xb00] ss:$16 sps:$4 sm:$0xff]   ;;  %v9454_v7 = vld [vmem:[%s13752_s1 + $0xb08] ss:$16 sps:$4 sm:$0xff]  }
 0x128   :  { %6600 = vmatprep.subr.bf16.mxu0 %v9369_v8  ;;  %7256 = vmatprep.subr.bf16.mxu1 %v9372_v9  ;;  %v9459_v8 = vld [vmem:[%s13752_s1 + $0xb24] ss:$16 sps:$4 sm:$0xff]   ;;  %v9462_v9 = vld [vmem:[%s13752_s1 + $0xb2c] ss:$16 sps:$4 sm:$0xff]  }
 0x12b   :  { %6601 = vmatpush1.bf16.msra.mxu0 %v9367_v10  ;;  %7257 = vmatpush1.bf16.msra.mxu1 %v9370_v11  ;;  %v9457_v10 = vld [vmem:[%s13752_s1 + $0xb20] ss:$16 sps:$4 sm:$0xff]   ;;  %v9460_v11 = vld [vmem:[%s13752_s1 + $0xb28] ss:$16 sps:$4 sm:$0xff]  }
 0x12c   :  { %6602 = vmatprep.subr.bf16.mxu0 %v9375_v12  ;;  %7258 = vmatprep.subr.bf16.mxu1 %v9378_v52  ;;  %v9465_v12 = vld [vmem:[%s13752_s1 + $0xb44] ss:$16 sps:$4 sm:$0xff]   ;;  %v9468_v52 = vld [vmem:[%s13752_s1 + $0xb4c] ss:$16 sps:$4 sm:$0xff]  }
 0x12f   :  { %6603 = vmatpush1.bf16.msra.mxu0 %v9373_v15  ;;  %7259 = vmatpush1.bf16.msra.mxu1 %v9376_v16  ;;  %v9463_v15 = vld [vmem:[%s13752_s1 + $0xb40] ss:$16 sps:$4 sm:$0xff]   ;;  %v9466_v16 = vld [vmem:[%s13752_s1 + $0xb48] ss:$16 sps:$4 sm:$0xff]  }
 0x130   :  { %6604 = vmatprep.subr.bf16.mxu0 %v9381_v17  ;;  %7260 = vmatprep.subr.bf16.mxu1 %v9384_v18  ;;  %v9471_v17 = vld [vmem:[%s13752_s1 + $0xb64] ss:$16 sps:$4 sm:$0xff]   ;;  %v9474_v18 = vld [vmem:[%s13752_s1 + $0xb6c] ss:$16 sps:$4 sm:$0xff]  }
 0x133   :  { %6605 = vmatpush1.bf16.msra.mxu0 %v9379_v19  ;;  %7261 = vmatpush1.bf16.msra.mxu1 %v9382_v20  ;;  %v9469_v19 = vld [vmem:[%s13752_s1 + $0xb60] ss:$16 sps:$4 sm:$0xff]   ;;  %v9472_v20 = vld [vmem:[%s13752_s1 + $0xb68] ss:$16 sps:$4 sm:$0xff]  }
 0x134   :  { %6606 = vmatprep.subr.bf16.mxu0 %v9387_v22  ;;  %7262 = vmatprep.subr.bf16.mxu1 %v9390_v23  ;;  %v9477_v22 = vld [vmem:[%s13752_s1 + $0xb84] ss:$16 sps:$4 sm:$0xff]   ;;  %v9480_v23 = vld [vmem:[%s13752_s1 + $0xb8c] ss:$16 sps:$4 sm:$0xff]  }
 0x137   :  { %6607 = vmatpush1.bf16.msra.mxu0 %v9385_v24  ;;  %7263 = vmatpush1.bf16.msra.mxu1 %v9388_v13  ;;  %v9475_v24 = vld [vmem:[%s13752_s1 + $0xb80] ss:$16 sps:$4 sm:$0xff]   ;;  %v9478_v13 = vld [vmem:[%s13752_s1 + $0xb88] ss:$16 sps:$4 sm:$0xff]  }
 0x138   :  { %6608 = vmatprep.subr.bf16.mxu0 %v9393_v27  ;;  %7264 = vmatprep.subr.bf16.mxu1 %v9396_v28  ;;  %v9483_v27 = vld [vmem:[%s13752_s1 + $0xba4] ss:$16 sps:$4 sm:$0xff]   ;;  %v9486_v28 = vld [vmem:[%s13752_s1 + $0xbac] ss:$16 sps:$4 sm:$0xff]  }
 0x13b   :  { %6609 = vmatpush1.bf16.msra.mxu0 %v9391_v29  ;;  %7265 = vmatpush1.bf16.msra.mxu1 %v9394_v14  ;;  %v9481_v29 = vld [vmem:[%s13752_s1 + $0xba0] ss:$16 sps:$4 sm:$0xff]   ;;  %v9484_v14 = vld [vmem:[%s13752_s1 + $0xba8] ss:$16 sps:$4 sm:$0xff]  }
 0x13c   :  { %6610 = vmatprep.subr.bf16.mxu0 %v9399_v30  ;;  %7266 = vmatprep.subr.bf16.mxu1 %v9402_v31  ;;  %v9489_v30 = vld [vmem:[%s13752_s1 + $0xbc4] ss:$16 sps:$4 sm:$0xff]   ;;  %v9492_v31 = vld [vmem:[%s13752_s1 + $0xbcc] ss:$16 sps:$4 sm:$0xff]  }
 0x13f   :  { %6611 = vmatpush1.bf16.msra.mxu0 %v9397_v25  ;;  %7267 = vmatpush1.bf16.msra.mxu1 %v9400_v32  ;;  %v10462_v25 = vld [vmem:[%s13753_s0 + $0x8] sm:$0xff] }
 0x140   :  { %6621 = vmatprep.subr.bf16.mxu0 %v9405_v33  ;;  %7277 = vmatprep.subr.bf16.mxu1 %v9408_v26  ;;  %v1117_v32 = vcombine.high %v10462_v25, %v10462_v25  ;;  %v9487_v33 = vld [vmem:[%s13752_s1 + $0xbc0] ss:$16 sps:$4 sm:$0xff]   ;;  %v9490_v26 = vld [vmem:[%s13752_s1 + $0xbc8] ss:$16 sps:$4 sm:$0xff]  }
 0x141   :  { %v9571_v25 = vld [vmem:[%s13752_s1 + $0xd80] ss:$16 sps:$4 sm:$0xff]  }
 0x142   :  { %6613 = vmatmul.mubr.bf16.vlgmr.msra.gmra.mrb[0].mxu0 %v11507_v35  ;;  %7269 = vmatmul.mubr.bf16.vlgmr.msra.gmra.mrb[0].mxu1 %v11507_v35 }
 0x143   :  { %6622 = vmatpush1.bf16.msra.mxu0 %v9403_v36  ;;  %7278 = vmatpush1.bf16.msra.mxu1 %v9406_v37  ;;  %v9495_v36 = vld [vmem:[%s13752_s1 + $0xbe4] ss:$16 sps:$4 sm:$0xff]   ;;  %v9498_v37 = vld [vmem:[%s13752_s1 + $0xbec] ss:$16 sps:$4 sm:$0xff]  }
 0x144   :  { %6623 = vmatprep.subr.bf16.mxu0 %v9411_v38  ;;  %7279 = vmatprep.subr.bf16.mxu1 %v9414_v21  ;;  %v11697_v38 = vrot.slane %v1117_v32, %v10620_v49  ;;  %v9493_v21 = vld [vmem:[%s13752_s1 + $0xbe0] ss:$16 sps:$4 sm:$0xff]   ;;  %v9574_v32 = vld [vmem:[%s13752_s1 + $0xd88] ss:$16 sps:$4 sm:$0xff]  }
 0x145   :  { %6653 = vmatprep.mubr.bf16.mxu0 %v1164_v39  ;;  %7309 = vmatprep.mubr.bf16.mxu1 %v1164_v39  ;;  %v9496_v39 = vld [vmem:[%s13752_s1 + $0xbe8] ss:$16 sps:$4 sm:$0xff]  }
 0x147   :  { %6624 = vmatpush1.bf16.msra.mxu0 %v9409_v40  ;;  %7280 = vmatpush1.bf16.msra.mxu1 %v9412_v41  ;;  %v9501_v40 = vld [vmem:[%s13752_s1 + $0xc04] ss:$16 sps:$4 sm:$0xff]   ;;  %v9504_v41 = vld [vmem:[%s13752_s1 + $0xc0c] ss:$16 sps:$4 sm:$0xff]  }
 0x148   :  { %6625 = vmatprep.subr.bf16.mxu0 %v9417_v34  ;;  %7281 = vmatprep.subr.bf16.mxu1 %v9420_v43  ;;  %v1133_v34 = vcombine.high %v11697_v38, %v11697_v38  ;;  %v1162_v43 = vcombine.high %v11507_v35, %v11507_v35  ;;  %v9510_v35 = vld [vmem:[%s13752_s1 + $0xc2c] ss:$16 sps:$4 sm:$0xff]  }
 0x14b   :  { %6626 = vmatpush1.bf16.msra.mxu0 %v9415_v44  ;;  %7282 = vmatpush1.bf16.msra.mxu1 %v9418_v45  ;;  %v9499_v44 = vld [vmem:[%s13752_s1 + $0xc00] ss:$16 sps:$4 sm:$0xff]   ;;  %v9502_v45 = vld [vmem:[%s13752_s1 + $0xc08] ss:$16 sps:$4 sm:$0xff]  }
 0x14c   :  { %6627 = vmatprep.subr.bf16.mxu0 %v9423_v46  ;;  %7283 = vmatprep.subr.bf16.mxu1 %v9426_v47  ;;  %v9507_v46 = vld [vmem:[%s13752_s1 + $0xc24] ss:$16 sps:$4 sm:$0xff]   ;;  %v11728_v47 = vrot.slane %v1133_v34, %v10620_v49 }
 0x14d   :  { %v9591_v34 = vld [vmem:[%s13752_s1 + $0xde4] ss:$16 sps:$4 sm:$0xff]  }
 0x14f   :  { %6628 = vmatpush1.bf16.msra.mxu0 %v9421_v48  ;;  %7284 = vmatpush1.bf16.msra.mxu1 %v9424_v50  ;;  %v9505_v48 = vld [vmem:[%s13752_s1 + $0xc20] ss:$16 sps:$4 sm:$0xff]   ;;  %v9508_v50 = vld [vmem:[%s13752_s1 + $0xc28] ss:$16 sps:$4 sm:$0xff]  }
 0x150   :  { %6629 = vmatprep.subr.bf16.mxu0 %v9429_v51  ;;  %7285 = vmatprep.subr.bf16.mxu1 %v9432_v53  ;;  %v9513_v51 = vld [vmem:[%s13752_s1 + $0xc44] ss:$16 sps:$4 sm:$0xff]   ;;  %v9516_v53 = vld [vmem:[%s13752_s1 + $0xc4c] ss:$16 sps:$4 sm:$0xff]  }
 0x153   :  { %6630 = vmatpush1.bf16.msra.mxu0 %v9427_v54  ;;  %7286 = vmatpush1.bf16.msra.mxu1 %v9430_v55  ;;  %v9511_v54 = vld [vmem:[%s13752_s1 + $0xc40] ss:$16 sps:$4 sm:$0xff]   ;;  %v9514_v55 = vld [vmem:[%s13752_s1 + $0xc48] ss:$16 sps:$4 sm:$0xff]  }
 0x154   :  { %6631 = vmatprep.subr.bf16.mxu0 %v9435_v56  ;;  %7287 = vmatprep.subr.bf16.mxu1 %v9438_v57  ;;  %v9519_v56 = vld [vmem:[%s13752_s1 + $0xc64] ss:$16 sps:$4 sm:$0xff]   ;;  %v9522_v57 = vld [vmem:[%s13752_s1 + $0xc6c] ss:$16 sps:$4 sm:$0xff]  }
 0x157   :  { %6632 = vmatpush1.bf16.msra.mxu0 %v9433_v58  ;;  %7288 = vmatpush1.bf16.msra.mxu1 %v9436_v59  ;;  %v9517_v58 = vld [vmem:[%s13752_s1 + $0xc60] ss:$16 sps:$4 sm:$0xff]   ;;  %v9520_v59 = vld [vmem:[%s13752_s1 + $0xc68] ss:$16 sps:$4 sm:$0xff]  }
 0x158   :  { %6633 = vmatprep.subr.bf16.mxu0 %v9441_v60  ;;  %7289 = vmatprep.subr.bf16.mxu1 %v9444_v61  ;;  %v9525_v60 = vld [vmem:[%s13752_s1 + $0xc84] ss:$16 sps:$4 sm:$0xff]   ;;  %v9528_v61 = vld [vmem:[%s13752_s1 + $0xc8c] ss:$16 sps:$4 sm:$0xff]  }
 0x15b   :  { %6634 = vmatpush1.bf16.msra.mxu0 %v9439_v62  ;;  %7290 = vmatpush1.bf16.msra.mxu1 %v9442_v63  ;;  %v9523_v62 = vld [vmem:[%s13752_s1 + $0xc80] ss:$16 sps:$4 sm:$0xff]   ;;  %v9526_v63 = vld [vmem:[%s13752_s1 + $0xc88] ss:$16 sps:$4 sm:$0xff]  }
 0x15c   :  { %6635 = vmatprep.subr.bf16.mxu0 %v9447_v0  ;;  %7291 = vmatprep.subr.bf16.mxu1 %v9450_v1  ;;  %v9531_v0 = vld [vmem:[%s13752_s1 + $0xca4] ss:$16 sps:$4 sm:$0xff]   ;;  %v9534_v1 = vld [vmem:[%s13752_s1 + $0xcac] ss:$16 sps:$4 sm:$0xff]  }
 0x15f   :  { %6636 = vmatpush1.bf16.msra.mxu0 %v9445_v2  ;;  %7292 = vmatpush1.bf16.msra.mxu1 %v9448_v3  ;;  %v9529_v2 = vld [vmem:[%s13752_s1 + $0xca0] ss:$16 sps:$4 sm:$0xff]   ;;  %v9532_v3 = vld [vmem:[%s13752_s1 + $0xca8] ss:$16 sps:$4 sm:$0xff]  }
 0x160   :  { %6637 = vmatprep.subr.bf16.mxu0 %v9453_v4  ;;  %7293 = vmatprep.subr.bf16.mxu1 %v9456_v5  ;;  %v9537_v4 = vld [vmem:[%s13752_s1 + $0xcc4] ss:$16 sps:$4 sm:$0xff]   ;;  %v9540_v5 = vld [vmem:[%s13752_s1 + $0xccc] ss:$16 sps:$4 sm:$0xff]  }
 0x163   :  { %6638 = vmatpush1.bf16.msra.mxu0 %v9451_v6  ;;  %7294 = vmatpush1.bf16.msra.mxu1 %v9454_v7  ;;  %v9535_v6 = vld [vmem:[%s13752_s1 + $0xcc0] ss:$16 sps:$4 sm:$0xff]   ;;  %v9538_v7 = vld [vmem:[%s13752_s1 + $0xcc8] ss:$16 sps:$4 sm:$0xff]  }
 0x164   :  { %6639 = vmatprep.subr.bf16.mxu0 %v9459_v8  ;;  %7295 = vmatprep.subr.bf16.mxu1 %v9462_v9  ;;  %v9543_v8 = vld [vmem:[%s13752_s1 + $0xce4] ss:$16 sps:$4 sm:$0xff]   ;;  %v9546_v9 = vld [vmem:[%s13752_s1 + $0xcec] ss:$16 sps:$4 sm:$0xff]  }
 0x167   :  { %6640 = vmatpush1.bf16.msra.mxu0 %v9457_v10  ;;  %7296 = vmatpush1.bf16.msra.mxu1 %v9460_v11  ;;  %v9541_v10 = vld [vmem:[%s13752_s1 + $0xce0] ss:$16 sps:$4 sm:$0xff]   ;;  %v9544_v11 = vld [vmem:[%s13752_s1 + $0xce8] ss:$16 sps:$4 sm:$0xff]  }
 0x168   :  { %6641 = vmatprep.subr.bf16.mxu0 %v9465_v12  ;;  %7297 = vmatprep.subr.bf16.mxu1 %v9468_v52  ;;  %v9549_v12 = vld [vmem:[%s13752_s1 + $0xd04] ss:$16 sps:$4 sm:$0xff]   ;;  %v9552_v52 = vld [vmem:[%s13752_s1 + $0xd0c] ss:$16 sps:$4 sm:$0xff]  }
 0x16b   :  { %6642 = vmatpush1.bf16.msra.mxu0 %v9463_v15  ;;  %7298 = vmatpush1.bf16.msra.mxu1 %v9466_v16  ;;  %v9547_v15 = vld [vmem:[%s13752_s1 + $0xd00] ss:$16 sps:$4 sm:$0xff]   ;;  %v9550_v16 = vld [vmem:[%s13752_s1 + $0xd08] ss:$16 sps:$4 sm:$0xff]  }
 0x16c   :  { %6643 = vmatprep.subr.bf16.mxu0 %v9471_v17  ;;  %7299 = vmatprep.subr.bf16.mxu1 %v9474_v18  ;;  %v9555_v17 = vld [vmem:[%s13752_s1 + $0xd24] ss:$16 sps:$4 sm:$0xff]   ;;  %v9558_v18 = vld [vmem:[%s13752_s1 + $0xd2c] ss:$16 sps:$4 sm:$0xff]  }
 0x16f   :  { %6644 = vmatpush1.bf16.msra.mxu0 %v9469_v19  ;;  %7300 = vmatpush1.bf16.msra.mxu1 %v9472_v20  ;;  %v9553_v19 = vld [vmem:[%s13752_s1 + $0xd20] ss:$16 sps:$4 sm:$0xff]   ;;  %v9556_v20 = vld [vmem:[%s13752_s1 + $0xd28] ss:$16 sps:$4 sm:$0xff]  }
 0x170   :  { %6645 = vmatprep.subr.bf16.mxu0 %v9477_v22  ;;  %7301 = vmatprep.subr.bf16.mxu1 %v9480_v23  ;;  %v9561_v22 = vld [vmem:[%s13752_s1 + $0xd44] ss:$16 sps:$4 sm:$0xff]   ;;  %v9564_v23 = vld [vmem:[%s13752_s1 + $0xd4c] ss:$16 sps:$4 sm:$0xff]  }
 0x173   :  { %6646 = vmatpush1.bf16.msra.mxu0 %v9475_v24  ;;  %7302 = vmatpush1.bf16.msra.mxu1 %v9478_v13  ;;  %v9559_v24 = vld [vmem:[%s13752_s1 + $0xd40] ss:$16 sps:$4 sm:$0xff]   ;;  %v9562_v13 = vld [vmem:[%s13752_s1 + $0xd48] ss:$16 sps:$4 sm:$0xff]  }
 0x174   :  { %6647 = vmatprep.subr.bf16.mxu0 %v9483_v27  ;;  %7303 = vmatprep.subr.bf16.mxu1 %v9486_v28  ;;  %v9567_v27 = vld [vmem:[%s13752_s1 + $0xd64] ss:$16 sps:$4 sm:$0xff]   ;;  %v9570_v28 = vld [vmem:[%s13752_s1 + $0xd6c] ss:$16 sps:$4 sm:$0xff]  }
 0x177   :  { %6648 = vmatpush1.bf16.msra.mxu0 %v9481_v29  ;;  %7304 = vmatpush1.bf16.msra.mxu1 %v9484_v14  ;;  %v9565_v29 = vld [vmem:[%s13752_s1 + $0xd60] ss:$16 sps:$4 sm:$0xff]   ;;  %v9568_v14 = vld [vmem:[%s13752_s1 + $0xd68] ss:$16 sps:$4 sm:$0xff]  }
 0x178   :  { %6649 = vmatprep.subr.bf16.mxu0 %v9489_v30  ;;  %7305 = vmatprep.subr.bf16.mxu1 %v9492_v31  ;;  %v9573_v30 = vld [vmem:[%s13752_s1 + $0xd84] ss:$16 sps:$4 sm:$0xff]   ;;  %v9576_v31 = vld [vmem:[%s13752_s1 + $0xd8c] ss:$16 sps:$4 sm:$0xff]  }
 0x17b   :  { %6650 = vmatpush1.bf16.msra.mxu0 %v9487_v33  ;;  %7306 = vmatpush1.bf16.msra.mxu1 %v9490_v26  ;;  %v9579_v33 = vld [vmem:[%s13752_s1 + $0xda4] ss:$16 sps:$4 sm:$0xff]   ;;  %v9582_v26 = vld [vmem:[%s13752_s1 + $0xdac] ss:$16 sps:$4 sm:$0xff]  }
 0x17c   :  { %6651 = vmatprep.subr.bf16.mxu0 %v9495_v36  ;;  %7307 = vmatprep.subr.bf16.mxu1 %v9498_v37  ;;  %v9577_v36 = vld [vmem:[%s13752_s1 + $0xda0] ss:$16 sps:$4 sm:$0xff]   ;;  %v9580_v37 = vld [vmem:[%s13752_s1 + $0xda8] ss:$16 sps:$4 sm:$0xff]  }
 0x17f   :  { %6652 = vmatpush1.bf16.msra.mxu0 %v9493_v21  ;;  %7308 = vmatpush1.bf16.msra.mxu1 %v9496_v39  ;;  %v9585_v21 = vld [vmem:[%s13752_s1 + $0xdc4] ss:$16 sps:$4 sm:$0xff]   ;;  %v9588_v39 = vld [vmem:[%s13752_s1 + $0xdcc] ss:$16 sps:$4 sm:$0xff]  }
 0x180   :  { %6662 = vmatprep.subr.bf16.mxu0 %v9501_v40  ;;  %7318 = vmatprep.subr.bf16.mxu1 %v9504_v41  ;;  %v9583_v40 = vld [vmem:[%s13752_s1 + $0xdc0] ss:$16 sps:$4 sm:$0xff]   ;;  %v9586_v41 = vld [vmem:[%s13752_s1 + $0xdc8] ss:$16 sps:$4 sm:$0xff]  }
 0x182   :  { %6654 = vmatmul.mubr.bf16.vlgmr.msra.gmra.mrb[0].mxu0 %v1162_v43  ;;  %7310 = vmatmul.mubr.bf16.vlgmr.msra.gmra.mrb[0].mxu1 %v1162_v43  ;;  %v9594_v43 = vld [vmem:[%s13752_s1 + $0xdec] ss:$16 sps:$4 sm:$0xff]  }
 0x183   :  { %6663 = vmatpush1.bf16.msra.mxu0 %v9499_v44  ;;  %7319 = vmatpush1.bf16.msra.mxu1 %v9502_v45  ;;  %v9589_v44 = vld [vmem:[%s13752_s1 + $0xde0] ss:$16 sps:$4 sm:$0xff]   ;;  %v9592_v45 = vld [vmem:[%s13752_s1 + $0xde8] ss:$16 sps:$4 sm:$0xff]  }
 0x184   :  { %6664 = vmatprep.subr.bf16.mxu0 %v9507_v46  ;;  %7320 = vmatprep.subr.bf16.mxu1 %v9510_v35  ;;  %v9598_v46 = vld [vmem:[%s13752_s1 + $0xe04] ss:$16 sps:$4 sm:$0xff]   ;;  %v9601_v35 = vld [vmem:[%s13752_s1 + $0xe0c] ss:$16 sps:$4 sm:$0xff]  }
 0x185   :  { %6694 = vmatprep.mubr.bf16.mxu0 %v11728_v47  ;;  %7350 = vmatprep.mubr.bf16.mxu1 %v11728_v47 }
 0x187   :  { %6665 = vmatpush1.bf16.msra.mxu0 %v9505_v48  ;;  %7321 = vmatpush1.bf16.msra.mxu1 %v9508_v50  ;;  %v11914_v48 = vrot.slane %v11697_v38, %v10620_v49  ;;  %v9596_v50 = vld [vmem:[%s13752_s1 + $0xe00] ss:$16 sps:$4 sm:$0xff]   ;;  %v9607_v38 = vld [vmem:[%s13752_s1 + $0xe2c] ss:$16 sps:$4 sm:$0xff]  }
 0x188   :  { %6666 = vmatprep.subr.bf16.mxu0 %v9513_v51  ;;  %7322 = vmatprep.subr.bf16.mxu1 %v9516_v53  ;;  %v9599_v51 = vld [vmem:[%s13752_s1 + $0xe08] ss:$16 sps:$4 sm:$0xff]   ;;  %v9604_v53 = vld [vmem:[%s13752_s1 + $0xe24] ss:$16 sps:$4 sm:$0xff]  }
 0x18b   :  { %6667 = vmatpush1.bf16.msra.mxu0 %v9511_v54  ;;  %7323 = vmatpush1.bf16.msra.mxu1 %v9514_v55  ;;  %v1165_v54 = vcombine.high %v11728_v47, %v11728_v47  ;;  %v9602_v55 = vld [vmem:[%s13752_s1 + $0xe20] ss:$16 sps:$4 sm:$0xff]   ;;  %v9610_v47 = vld [vmem:[%s13752_s1 + $0xe44] ss:$16 sps:$4 sm:$0xff]  }
 0x18c   :  { %6668 = vmatprep.subr.bf16.mxu0 %v9519_v56  ;;  %7324 = vmatprep.subr.bf16.mxu1 %v9522_v57  ;;  %v9605_v56 = vld [vmem:[%s13752_s1 + $0xe28] ss:$16 sps:$4 sm:$0xff]   ;;  %v9613_v57 = vld [vmem:[%s13752_s1 + $0xe4c] ss:$16 sps:$4 sm:$0xff]  }
 0x18f   :  { %6669 = vmatpush1.bf16.msra.mxu0 %v9517_v58  ;;  %7325 = vmatpush1.bf16.msra.mxu1 %v9520_v59  ;;  %v9608_v58 = vld [vmem:[%s13752_s1 + $0xe40] ss:$16 sps:$4 sm:$0xff]   ;;  %v9611_v59 = vld [vmem:[%s13752_s1 + $0xe48] ss:$16 sps:$4 sm:$0xff]  }
 0x190   :  { %6670 = vmatprep.subr.bf16.mxu0 %v9525_v60  ;;  %7326 = vmatprep.subr.bf16.mxu1 %v9528_v61  ;;  %v9616_v60 = vld [vmem:[%s13752_s1 + $0xe64] ss:$16 sps:$4 sm:$0xff]   ;;  %v9619_v61 = vld [vmem:[%s13752_s1 + $0xe6c] ss:$16 sps:$4 sm:$0xff]  }
 0x193   :  { %6671 = vmatpush1.bf16.msra.mxu0 %v9523_v62  ;;  %7327 = vmatpush1.bf16.msra.mxu1 %v9526_v63  ;;  %v9614_v62 = vld [vmem:[%s13752_s1 + $0xe60] ss:$16 sps:$4 sm:$0xff]   ;;  %v9617_v63 = vld [vmem:[%s13752_s1 + $0xe68] ss:$16 sps:$4 sm:$0xff]  }
 0x194   :  { %6672 = vmatprep.subr.bf16.mxu0 %v9531_v0  ;;  %7328 = vmatprep.subr.bf16.mxu1 %v9534_v1  ;;  %v9622_v0 = vld [vmem:[%s13752_s1 + $0xe84] ss:$16 sps:$4 sm:$0xff]   ;;  %v9625_v1 = vld [vmem:[%s13752_s1 + $0xe8c] ss:$16 sps:$4 sm:$0xff]  }
 0x197   :  { %6673 = vmatpush1.bf16.msra.mxu0 %v9529_v2  ;;  %7329 = vmatpush1.bf16.msra.mxu1 %v9532_v3  ;;  %v9620_v2 = vld [vmem:[%s13752_s1 + $0xe80] ss:$16 sps:$4 sm:$0xff]   ;;  %v9623_v3 = vld [vmem:[%s13752_s1 + $0xe88] ss:$16 sps:$4 sm:$0xff]  }
 0x198   :  { %6674 = vmatprep.subr.bf16.mxu0 %v9537_v4  ;;  %7330 = vmatprep.subr.bf16.mxu1 %v9540_v5  ;;  %v9628_v4 = vld [vmem:[%s13752_s1 + $0xea4] ss:$16 sps:$4 sm:$0xff]   ;;  %v9631_v5 = vld [vmem:[%s13752_s1 + $0xeac] ss:$16 sps:$4 sm:$0xff]  }
 0x19b   :  { %6675 = vmatpush1.bf16.msra.mxu0 %v9535_v6  ;;  %7331 = vmatpush1.bf16.msra.mxu1 %v9538_v7  ;;  %v9626_v6 = vld [vmem:[%s13752_s1 + $0xea0] ss:$16 sps:$4 sm:$0xff]   ;;  %v9629_v7 = vld [vmem:[%s13752_s1 + $0xea8] ss:$16 sps:$4 sm:$0xff]  }
 0x19c   :  { %6676 = vmatprep.subr.bf16.mxu0 %v9543_v8  ;;  %7332 = vmatprep.subr.bf16.mxu1 %v9546_v9  ;;  %v9634_v8 = vld [vmem:[%s13752_s1 + $0xec4] ss:$16 sps:$4 sm:$0xff]   ;;  %v9637_v9 = vld [vmem:[%s13752_s1 + $0xecc] ss:$16 sps:$4 sm:$0xff]  }
 0x19f   :  { %6677 = vmatpush1.bf16.msra.mxu0 %v9541_v10  ;;  %7333 = vmatpush1.bf16.msra.mxu1 %v9544_v11  ;;  %v9632_v10 = vld [vmem:[%s13752_s1 + $0xec0] ss:$16 sps:$4 sm:$0xff]   ;;  %v9635_v11 = vld [vmem:[%s13752_s1 + $0xec8] ss:$16 sps:$4 sm:$0xff]  }
 0x1a0   :  { %6678 = vmatprep.subr.bf16.mxu0 %v9549_v12  ;;  %7334 = vmatprep.subr.bf16.mxu1 %v9552_v52  ;;  %v9640_v12 = vld [vmem:[%s13752_s1 + $0xee4] ss:$16 sps:$4 sm:$0xff]   ;;  %v9643_v52 = vld [vmem:[%s13752_s1 + $0xeec] ss:$16 sps:$4 sm:$0xff]  }
 0x1a3   :  { %6679 = vmatpush1.bf16.msra.mxu0 %v9547_v15  ;;  %7335 = vmatpush1.bf16.msra.mxu1 %v9550_v16  ;;  %v9638_v15 = vld [vmem:[%s13752_s1 + $0xee0] ss:$16 sps:$4 sm:$0xff]   ;;  %v9641_v16 = vld [vmem:[%s13752_s1 + $0xee8] ss:$16 sps:$4 sm:$0xff]  }
 0x1a4   :  { %6680 = vmatprep.subr.bf16.mxu0 %v9555_v17  ;;  %7336 = vmatprep.subr.bf16.mxu1 %v9558_v18  ;;  %v9646_v17 = vld [vmem:[%s13752_s1 + $0xf04] ss:$16 sps:$4 sm:$0xff]   ;;  %v9649_v18 = vld [vmem:[%s13752_s1 + $0xf0c] ss:$16 sps:$4 sm:$0xff]  }
 0x1a7   :  { %6681 = vmatpush1.bf16.msra.mxu0 %v9553_v19  ;;  %7337 = vmatpush1.bf16.msra.mxu1 %v9556_v20  ;;  %v9644_v19 = vld [vmem:[%s13752_s1 + $0xf00] ss:$16 sps:$4 sm:$0xff]   ;;  %v9647_v20 = vld [vmem:[%s13752_s1 + $0xf08] ss:$16 sps:$4 sm:$0xff]  }
 0x1a8   :  { %6682 = vmatprep.subr.bf16.mxu0 %v9561_v22  ;;  %7338 = vmatprep.subr.bf16.mxu1 %v9564_v23  ;;  %v9652_v22 = vld [vmem:[%s13752_s1 + $0xf24] ss:$16 sps:$4 sm:$0xff]   ;;  %v9655_v23 = vld [vmem:[%s13752_s1 + $0xf2c] ss:$16 sps:$4 sm:$0xff]  }
 0x1ab   :  { %6683 = vmatpush1.bf16.msra.mxu0 %v9559_v24  ;;  %7339 = vmatpush1.bf16.msra.mxu1 %v9562_v13  ;;  %v9650_v24 = vld [vmem:[%s13752_s1 + $0xf20] ss:$16 sps:$4 sm:$0xff]   ;;  %v9653_v13 = vld [vmem:[%s13752_s1 + $0xf28] ss:$16 sps:$4 sm:$0xff]  }
 0x1ac   :  { %6684 = vmatprep.subr.bf16.mxu0 %v9567_v27  ;;  %7340 = vmatprep.subr.bf16.mxu1 %v9570_v28  ;;  %v9658_v27 = vld [vmem:[%s13752_s1 + $0xf44] ss:$16 sps:$4 sm:$0xff]   ;;  %v9661_v28 = vld [vmem:[%s13752_s1 + $0xf4c] ss:$16 sps:$4 sm:$0xff]  }
 0x1af   :  { %6685 = vmatpush1.bf16.msra.mxu0 %v9565_v29  ;;  %7341 = vmatpush1.bf16.msra.mxu1 %v9568_v14  ;;  %v9656_v29 = vld [vmem:[%s13752_s1 + $0xf40] ss:$16 sps:$4 sm:$0xff]   ;;  %v9659_v14 = vld [vmem:[%s13752_s1 + $0xf48] ss:$16 sps:$4 sm:$0xff]  }
 0x1b0   :  { %6686 = vmatprep.subr.bf16.mxu0 %v9573_v30  ;;  %7342 = vmatprep.subr.bf16.mxu1 %v9576_v31  ;;  %v9664_v30 = vld [vmem:[%s13752_s1 + $0xf64] ss:$16 sps:$4 sm:$0xff]   ;;  %v9667_v31 = vld [vmem:[%s13752_s1 + $0xf6c] ss:$16 sps:$4 sm:$0xff]  }
 0x1b3   :  { %6687 = vmatpush1.bf16.msra.mxu0 %v9571_v25  ;;  %7343 = vmatpush1.bf16.msra.mxu1 %v9574_v32  ;;  %v9662_v25 = vld [vmem:[%s13752_s1 + $0xf60] ss:$16 sps:$4 sm:$0xff]   ;;  %v9665_v32 = vld [vmem:[%s13752_s1 + $0xf68] ss:$16 sps:$4 sm:$0xff]  }
 0x1b4   :  { %6688 = vmatprep.subr.bf16.mxu0 %v9579_v33  ;;  %7344 = vmatprep.subr.bf16.mxu1 %v9582_v26  ;;  %v9670_v33 = vld [vmem:[%s13752_s1 + $0xf84] ss:$16 sps:$4 sm:$0xff]   ;;  %v9673_v26 = vld [vmem:[%s13752_s1 + $0xf8c] ss:$16 sps:$4 sm:$0xff]  }
 0x1b7   :  { %6689 = vmatpush1.bf16.msra.mxu0 %v9577_v36  ;;  %7345 = vmatpush1.bf16.msra.mxu1 %v9580_v37  ;;  %v9668_v36 = vld [vmem:[%s13752_s1 + $0xf80] ss:$16 sps:$4 sm:$0xff]   ;;  %v9671_v37 = vld [vmem:[%s13752_s1 + $0xf88] ss:$16 sps:$4 sm:$0xff]  }
 0x1b8   :  { %6690 = vmatprep.subr.bf16.mxu0 %v9585_v21  ;;  %7346 = vmatprep.subr.bf16.mxu1 %v9588_v39  ;;  %v9676_v21 = vld [vmem:[%s13752_s1 + $0xfa4] ss:$16 sps:$4 sm:$0xff]   ;;  %v9679_v39 = vld [vmem:[%s13752_s1 + $0xfac] ss:$16 sps:$4 sm:$0xff]  }
 0x1bb   :  { %6691 = vmatpush1.bf16.msra.mxu0 %v9583_v40  ;;  %7347 = vmatpush1.bf16.msra.mxu1 %v9586_v41  ;;  %v9674_v40 = vld [vmem:[%s13752_s1 + $0xfa0] ss:$16 sps:$4 sm:$0xff]   ;;  %v9677_v41 = vld [vmem:[%s13752_s1 + $0xfa8] ss:$16 sps:$4 sm:$0xff]  }
 0x1bc   :  { %6692 = vmatprep.subr.bf16.mxu0 %v9591_v34  ;;  %7348 = vmatprep.subr.bf16.mxu1 %v9594_v43  ;;  %v9682_v34 = vld [vmem:[%s13752_s1 + $0xfc4] ss:$16 sps:$4 sm:$0xff]   ;;  %v9685_v43 = vld [vmem:[%s13752_s1 + $0xfcc] ss:$16 sps:$4 sm:$0xff]  }
 0x1bf   :  { %6693 = vmatpush1.bf16.msra.mxu0 %v9589_v44  ;;  %7349 = vmatpush1.bf16.msra.mxu1 %v9592_v45  ;;  %v12091_v44 = vld [vmem:[%s13753_s0 + $0x10] sm:$0xff] }
 0x1c0   :  { %6703 = vmatprep.subr.bf16.mxu0 %v9598_v46  ;;  %7359 = vmatprep.subr.bf16.mxu1 %v9601_v35  ;;  %v9680_v45 = vld [vmem:[%s13752_s1 + $0xfc0] ss:$16 sps:$4 sm:$0xff]   ;;  %v9683_v46 = vld [vmem:[%s13752_s1 + $0xfc8] ss:$16 sps:$4 sm:$0xff]   ;;  %v9688_v35 = vld [vmem:[%s13752_s1 + $0xfe4] ss:$16 sps:$4 sm:$0xff]  }
 0x1c2   :  { %6695 = vmatmul.mubr.bf16.vlgmr.msra.gmra.mrb[0].mxu0 %v11914_v48  ;;  %7351 = vmatmul.mubr.bf16.vlgmr.msra.gmra.mrb[0].mxu1 %v11914_v48 }
 0x1c3   :  { %6704 = vmatpush1.bf16.msra.mxu0 %v9596_v50  ;;  %7360 = vmatpush1.bf16.msra.mxu1 %v9599_v51  ;;  %v9691_v50 = vld [vmem:[%s13752_s1 + $0xfec] ss:$16 sps:$4 sm:$0xff]   ;;  %v12107_v51 = vrot.slane %v12091_v44, %v10620_v49 }
 0x1c4   :  { %6705 = vmatprep.subr.bf16.mxu0 %v9604_v53  ;;  %7361 = vmatprep.subr.bf16.mxu1 %v9607_v38  ;;  %v9686_v53 = vld [vmem:[%s13752_s1 + $0xfe0] ss:$16 sps:$4 sm:$0xff]   ;;  %v9689_v38 = vld [vmem:[%s13752_s1 + $0xfe8] ss:$16 sps:$4 sm:$0xff]  }
 0x1c5   :  { %6735 = vmatprep.mubr.bf16.mxu0 %v1165_v54  ;;  %7391 = vmatprep.mubr.bf16.mxu1 %v1165_v54  ;;  %v9694_v54 = vld [vmem:[%s13752_s1 + $0x1004] ss:$16 sps:$4 sm:$0xff]  }
 0x1c7   :  { %6706 = vmatpush1.bf16.msra.mxu0 %v9602_v55  ;;  %7362 = vmatpush1.bf16.msra.mxu1 %v9605_v56  ;;  %v9697_v55 = vld [vmem:[%s13752_s1 + $0x100c] ss:$16 sps:$4 sm:$0xff]   ;;  %v1181_v56 = vcombine.high %v12107_v51, %v12107_v51 }
 0x1c8   :  { %6707 = vmatprep.subr.bf16.mxu0 %v9610_v47  ;;  %7363 = vmatprep.subr.bf16.mxu1 %v9613_v57  ;;  %v1163_v47 = vcombine.high %v11914_v48, %v11914_v48  ;;  %v9692_v57 = vld [vmem:[%s13752_s1 + $0x1000] ss:$16 sps:$4 sm:$0xff]   ;;  %v9703_v48 = vld [vmem:[%s13752_s1 + $0x102c] ss:$16 sps:$4 sm:$0xff]  }
 0x1cb   :  { %6708 = vmatpush1.bf16.msra.mxu0 %v9608_v58  ;;  %7364 = vmatpush1.bf16.msra.mxu1 %v9611_v59  ;;  %v9695_v58 = vld [vmem:[%s13752_s1 + $0x1008] ss:$16 sps:$4 sm:$0xff]   ;;  %v9700_v59 = vld [vmem:[%s13752_s1 + $0x1024] ss:$16 sps:$4 sm:$0xff]  }
 0x1cc   :  { %6709 = vmatprep.subr.bf16.mxu0 %v9616_v60  ;;  %7365 = vmatprep.subr.bf16.mxu1 %v9619_v61  ;;  %v12138_v60 = vrot.slane %v1181_v56, %v10620_v49  ;;  %v9698_v61 = vld [vmem:[%s13752_s1 + $0x1020] ss:$16 sps:$4 sm:$0xff]   ;;  %v9779_v56 = vld [vmem:[%s13752_s1 + $0x11c8] ss:$16 sps:$4 sm:$0xff]  }
 0x1cf   :  { %6710 = vmatpush1.bf16.msra.mxu0 %v9614_v62  ;;  %7366 = vmatpush1.bf16.msra.mxu1 %v9617_v63  ;;  %v9701_v62 = vld [vmem:[%s13752_s1 + $0x1028] ss:$16 sps:$4 sm:$0xff]   ;;  %v9706_v63 = vld [vmem:[%s13752_s1 + $0x1044] ss:$16 sps:$4 sm:$0xff]  }
 0x1d0   :  { %6711 = vmatprep.subr.bf16.mxu0 %v9622_v0  ;;  %7367 = vmatprep.subr.bf16.mxu1 %v9625_v1  ;;  %v9709_v0 = vld [vmem:[%s13752_s1 + $0x104c] ss:$16 sps:$4 sm:$0xff]   ;;  %v9704_v1 = vld [vmem:[%s13752_s1 + $0x1040] ss:$16 sps:$4 sm:$0xff]  }
 0x1d3   :  { %6712 = vmatpush1.bf16.msra.mxu0 %v9620_v2  ;;  %7368 = vmatpush1.bf16.msra.mxu1 %v9623_v3  ;;  %v9707_v2 = vld [vmem:[%s13752_s1 + $0x1048] ss:$16 sps:$4 sm:$0xff]   ;;  %v9712_v3 = vld [vmem:[%s13752_s1 + $0x1064] ss:$16 sps:$4 sm:$0xff]  }
 0x1d4   :  { %6713 = vmatprep.subr.bf16.mxu0 %v9628_v4  ;;  %7369 = vmatprep.subr.bf16.mxu1 %v9631_v5  ;;  %v9715_v4 = vld [vmem:[%s13752_s1 + $0x106c] ss:$16 sps:$4 sm:$0xff]   ;;  %v9710_v5 = vld [vmem:[%s13752_s1 + $0x1060] ss:$16 sps:$4 sm:$0xff]  }
 0x1d7   :  { %6714 = vmatpush1.bf16.msra.mxu0 %v9626_v6  ;;  %7370 = vmatpush1.bf16.msra.mxu1 %v9629_v7  ;;  %v9713_v6 = vld [vmem:[%s13752_s1 + $0x1068] ss:$16 sps:$4 sm:$0xff]   ;;  %v9718_v7 = vld [vmem:[%s13752_s1 + $0x1084] ss:$16 sps:$4 sm:$0xff]  }
 0x1d8   :  { %6715 = vmatprep.subr.bf16.mxu0 %v9634_v8  ;;  %7371 = vmatprep.subr.bf16.mxu1 %v9637_v9  ;;  %v9721_v8 = vld [vmem:[%s13752_s1 + $0x108c] ss:$16 sps:$4 sm:$0xff]   ;;  %v9716_v9 = vld [vmem:[%s13752_s1 + $0x1080] ss:$16 sps:$4 sm:$0xff]  }
 0x1db   :  { %6716 = vmatpush1.bf16.msra.mxu0 %v9632_v10  ;;  %7372 = vmatpush1.bf16.msra.mxu1 %v9635_v11  ;;  %v9719_v10 = vld [vmem:[%s13752_s1 + $0x1088] ss:$16 sps:$4 sm:$0xff]   ;;  %v9724_v11 = vld [vmem:[%s13752_s1 + $0x10a4] ss:$16 sps:$4 sm:$0xff]  }
 0x1dc   :  { %6717 = vmatprep.subr.bf16.mxu0 %v9640_v12  ;;  %7373 = vmatprep.subr.bf16.mxu1 %v9643_v52  ;;  %v9727_v12 = vld [vmem:[%s13752_s1 + $0x10ac] ss:$16 sps:$4 sm:$0xff]   ;;  %v9722_v52 = vld [vmem:[%s13752_s1 + $0x10a0] ss:$16 sps:$4 sm:$0xff]  }
 0x1df   :  { %6718 = vmatpush1.bf16.msra.mxu0 %v9638_v15  ;;  %7374 = vmatpush1.bf16.msra.mxu1 %v9641_v16  ;;  %v9725_v15 = vld [vmem:[%s13752_s1 + $0x10a8] ss:$16 sps:$4 sm:$0xff]   ;;  %v9730_v16 = vld [vmem:[%s13752_s1 + $0x10c4] ss:$16 sps:$4 sm:$0xff]  }
 0x1e0   :  { %6719 = vmatprep.subr.bf16.mxu0 %v9646_v17  ;;  %7375 = vmatprep.subr.bf16.mxu1 %v9649_v18  ;;  %v9733_v17 = vld [vmem:[%s13752_s1 + $0x10cc] ss:$16 sps:$4 sm:$0xff]   ;;  %v9728_v18 = vld [vmem:[%s13752_s1 + $0x10c0] ss:$16 sps:$4 sm:$0xff]  }
 0x1e3   :  { %6720 = vmatpush1.bf16.msra.mxu0 %v9644_v19  ;;  %7376 = vmatpush1.bf16.msra.mxu1 %v9647_v20  ;;  %v9731_v19 = vld [vmem:[%s13752_s1 + $0x10c8] ss:$16 sps:$4 sm:$0xff]   ;;  %v9736_v20 = vld [vmem:[%s13752_s1 + $0x10e4] ss:$16 sps:$4 sm:$0xff]  }
 0x1e4   :  { %6721 = vmatprep.subr.bf16.mxu0 %v9652_v22  ;;  %7377 = vmatprep.subr.bf16.mxu1 %v9655_v23  ;;  %v9739_v22 = vld [vmem:[%s13752_s1 + $0x10ec] ss:$16 sps:$4 sm:$0xff]   ;;  %v9734_v23 = vld [vmem:[%s13752_s1 + $0x10e0] ss:$16 sps:$4 sm:$0xff]  }
 0x1e7   :  { %6722 = vmatpush1.bf16.msra.mxu0 %v9650_v24  ;;  %7378 = vmatpush1.bf16.msra.mxu1 %v9653_v13  ;;  %v9737_v24 = vld [vmem:[%s13752_s1 + $0x10e8] ss:$16 sps:$4 sm:$0xff]   ;;  %v9742_v13 = vld [vmem:[%s13752_s1 + $0x1104] ss:$16 sps:$4 sm:$0xff]  }
 0x1e8   :  { %6723 = vmatprep.subr.bf16.mxu0 %v9658_v27  ;;  %7379 = vmatprep.subr.bf16.mxu1 %v9661_v28  ;;  %v9745_v27 = vld [vmem:[%s13752_s1 + $0x110c] ss:$16 sps:$4 sm:$0xff]   ;;  %v9740_v28 = vld [vmem:[%s13752_s1 + $0x1100] ss:$16 sps:$4 sm:$0xff]  }
 0x1eb   :  { %6724 = vmatpush1.bf16.msra.mxu0 %v9656_v29  ;;  %7380 = vmatpush1.bf16.msra.mxu1 %v9659_v14  ;;  %v9743_v29 = vld [vmem:[%s13752_s1 + $0x1108] ss:$16 sps:$4 sm:$0xff]   ;;  %v9748_v14 = vld [vmem:[%s13752_s1 + $0x1124] ss:$16 sps:$4 sm:$0xff]  }
 0x1ec   :  { %6725 = vmatprep.subr.bf16.mxu0 %v9664_v30  ;;  %7381 = vmatprep.subr.bf16.mxu1 %v9667_v31  ;;  %v9751_v30 = vld [vmem:[%s13752_s1 + $0x112c] ss:$16 sps:$4 sm:$0xff]   ;;  %v9746_v31 = vld [vmem:[%s13752_s1 + $0x1120] ss:$16 sps:$4 sm:$0xff]  }
 0x1ef   :  { %6726 = vmatpush1.bf16.msra.mxu0 %v9662_v25  ;;  %7382 = vmatpush1.bf16.msra.mxu1 %v9665_v32  ;;  %v9749_v25 = vld [vmem:[%s13752_s1 + $0x1128] ss:$16 sps:$4 sm:$0xff]   ;;  %v9754_v32 = vld [vmem:[%s13752_s1 + $0x1144] ss:$16 sps:$4 sm:$0xff]  }
 0x1f0   :  { %6727 = vmatprep.subr.bf16.mxu0 %v9670_v33  ;;  %7383 = vmatprep.subr.bf16.mxu1 %v9673_v26  ;;  %v9757_v33 = vld [vmem:[%s13752_s1 + $0x114c] ss:$16 sps:$4 sm:$0xff]   ;;  %v9752_v26 = vld [vmem:[%s13752_s1 + $0x1140] ss:$16 sps:$4 sm:$0xff]  }
 0x1f3   :  { %6728 = vmatpush1.bf16.msra.mxu0 %v9668_v36  ;;  %7384 = vmatpush1.bf16.msra.mxu1 %v9671_v37  ;;  %v9755_v36 = vld [vmem:[%s13752_s1 + $0x1148] ss:$16 sps:$4 sm:$0xff]   ;;  %v9760_v37 = vld [vmem:[%s13752_s1 + $0x1164] ss:$16 sps:$4 sm:$0xff]  }
 0x1f4   :  { %6729 = vmatprep.subr.bf16.mxu0 %v9676_v21  ;;  %7385 = vmatprep.subr.bf16.mxu1 %v9679_v39  ;;  %v9763_v21 = vld [vmem:[%s13752_s1 + $0x116c] ss:$16 sps:$4 sm:$0xff]   ;;  %v9758_v39 = vld [vmem:[%s13752_s1 + $0x1160] ss:$16 sps:$4 sm:$0xff]  }
 0x1f7   :  { %6730 = vmatpush1.bf16.msra.mxu0 %v9674_v40  ;;  %7386 = vmatpush1.bf16.msra.mxu1 %v9677_v41  ;;  %v9761_v40 = vld [vmem:[%s13752_s1 + $0x1168] ss:$16 sps:$4 sm:$0xff]   ;;  %v9766_v41 = vld [vmem:[%s13752_s1 + $0x1184] ss:$16 sps:$4 sm:$0xff]  }
 0x1f8   :  { %6731 = vmatprep.subr.bf16.mxu0 %v9682_v34  ;;  %7387 = vmatprep.subr.bf16.mxu1 %v9685_v43  ;;  %v9769_v34 = vld [vmem:[%s13752_s1 + $0x118c] ss:$16 sps:$4 sm:$0xff]   ;;  %v9764_v43 = vld [vmem:[%s13752_s1 + $0x1180] ss:$16 sps:$4 sm:$0xff]  }
 0x1fb   :  { %6732 = vmatpush1.bf16.msra.mxu0 %v9680_v45  ;;  %7388 = vmatpush1.bf16.msra.mxu1 %v9683_v46  ;;  %v9767_v45 = vld [vmem:[%s13752_s1 + $0x1188] ss:$16 sps:$4 sm:$0xff]   ;;  %v9772_v46 = vld [vmem:[%s13752_s1 + $0x11a4] ss:$16 sps:$4 sm:$0xff]  }
 0x1fc   :  { %6733 = vmatprep.subr.bf16.mxu0 %v9688_v35  ;;  %7389 = vmatprep.subr.bf16.mxu1 %v9691_v50  ;;  %v9775_v35 = vld [vmem:[%s13752_s1 + $0x11ac] ss:$16 sps:$4 sm:$0xff]   ;;  %v9770_v50 = vld [vmem:[%s13752_s1 + $0x11a0] ss:$16 sps:$4 sm:$0xff]  }
 0x1ff   :  { %6734 = vmatpush1.bf16.msra.mxu0 %v9686_v53  ;;  %7390 = vmatpush1.bf16.msra.mxu1 %v9689_v38  ;;  %v9773_v53 = vld [vmem:[%s13752_s1 + $0x11a8] ss:$16 sps:$4 sm:$0xff]   ;;  %v9778_v38 = vld [vmem:[%s13752_s1 + $0x11c4] ss:$16 sps:$4 sm:$0xff]  }
 0x200   :  { %6744 = vmatprep.subr.bf16.mxu0 %v9694_v54  ;;  %7400 = vmatprep.subr.bf16.mxu1 %v9697_v55  ;;  %v9781_v54 = vld [vmem:[%s13752_s1 + $0x11cc] ss:$16 sps:$4 sm:$0xff]   ;;  %v9776_v55 = vld [vmem:[%s13752_s1 + $0x11c0] ss:$16 sps:$4 sm:$0xff]  }
 0x202   :  { %6736 = vmatmul.mubr.bf16.vlgmr.msra.gmra.mrb[0].mxu0 %v1163_v47  ;;  %7392 = vmatmul.mubr.bf16.vlgmr.msra.gmra.mrb[0].mxu1 %v1163_v47  ;;  %v9784_v47 = vld [vmem:[%s13752_s1 + $0x11e4] ss:$16 sps:$4 sm:$0xff]  }
 0x203   :  { %6745 = vmatpush1.bf16.msra.mxu0 %v9692_v57  ;;  %7401 = vmatpush1.bf16.msra.mxu1 %v9695_v58  ;;  %v9787_v57 = vld [vmem:[%s13752_s1 + $0x11ec] ss:$16 sps:$4 sm:$0xff]   ;;  %v9782_v58 = vld [vmem:[%s13752_s1 + $0x11e0] ss:$16 sps:$4 sm:$0xff]  }
 0x204   :  { %6746 = vmatprep.subr.bf16.mxu0 %v9700_v59  ;;  %7402 = vmatprep.subr.bf16.mxu1 %v9703_v48  ;;  %v9785_v59 = vld [vmem:[%s13752_s1 + $0x11e8] ss:$16 sps:$4 sm:$0xff]   ;;  %v9790_v48 = vld [vmem:[%s13752_s1 + $0x1204] ss:$16 sps:$4 sm:$0xff]  }
 0x205   :  { %6776 = vmatprep.mubr.bf16.mxu0 %v12138_v60  ;;  %7432 = vmatprep.mubr.bf16.mxu1 %v12138_v60 }
 0x207   :  { %6747 = vmatpush1.bf16.msra.mxu0 %v9698_v61  ;;  %7403 = vmatpush1.bf16.msra.mxu1 %v9701_v62  ;;  %v9793_v61 = vld [vmem:[%s13752_s1 + $0x120c] ss:$16 sps:$4 sm:$0xff]   ;;  %v12324_v62 = vrot.slane %v12107_v51, %v10620_v49 }
 0x208   :  { %6748 = vmatprep.subr.bf16.mxu0 %v9706_v63  ;;  %7404 = vmatprep.subr.bf16.mxu1 %v9709_v0  ;;  %v9788_v63 = vld [vmem:[%s13752_s1 + $0x1200] ss:$16 sps:$4 sm:$0xff]   ;;  %v9791_v0 = vld [vmem:[%s13752_s1 + $0x1208] ss:$16 sps:$4 sm:$0xff]   ;;  %v9799_v51 = vld [vmem:[%s13752_s1 + $0x122c] ss:$16 sps:$4 sm:$0xff]  }
 0x20b   :  { %6749 = vmatpush1.bf16.msra.mxu0 %v9704_v1  ;;  %7405 = vmatpush1.bf16.msra.mxu1 %v9707_v2  ;;  %v9796_v1 = vld [vmem:[%s13752_s1 + $0x1224] ss:$16 sps:$4 sm:$0xff]   ;;  %v1213_v2 = vcombine.high %v12138_v60, %v12138_v60 }
 0x20c   :  { %6750 = vmatprep.subr.bf16.mxu0 %v9712_v3  ;;  %7406 = vmatprep.subr.bf16.mxu1 %v9715_v4  ;;  %v9794_v3 = vld [vmem:[%s13752_s1 + $0x1220] ss:$16 sps:$4 sm:$0xff]   ;;  %v9797_v4 = vld [vmem:[%s13752_s1 + $0x1228] ss:$16 sps:$4 sm:$0xff]   ;;  %v9802_v60 = vld [vmem:[%s13752_s1 + $0x1244] ss:$16 sps:$4 sm:$0xff]  }
 0x20f   :  { %6751 = vmatpush1.bf16.msra.mxu0 %v9710_v5  ;;  %7407 = vmatpush1.bf16.msra.mxu1 %v9713_v6  ;;  %v9805_v5 = vld [vmem:[%s13752_s1 + $0x124c] ss:$16 sps:$4 sm:$0xff]   ;;  %v9800_v6 = vld [vmem:[%s13752_s1 + $0x1240] ss:$16 sps:$4 sm:$0xff]  }
 0x210   :  { %6752 = vmatprep.subr.bf16.mxu0 %v9718_v7  ;;  %7408 = vmatprep.subr.bf16.mxu1 %v9721_v8  ;;  %v9803_v7 = vld [vmem:[%s13752_s1 + $0x1248] ss:$16 sps:$4 sm:$0xff]   ;;  %v9808_v8 = vld [vmem:[%s13752_s1 + $0x1264] ss:$16 sps:$4 sm:$0xff]  }
 0x213   :  { %6753 = vmatpush1.bf16.msra.mxu0 %v9716_v9  ;;  %7409 = vmatpush1.bf16.msra.mxu1 %v9719_v10  ;;  %v9811_v9 = vld [vmem:[%s13752_s1 + $0x126c] ss:$16 sps:$4 sm:$0xff]   ;;  %v9806_v10 = vld [vmem:[%s13752_s1 + $0x1260] ss:$16 sps:$4 sm:$0xff]  }
 0x214   :  { %6754 = vmatprep.subr.bf16.mxu0 %v9724_v11  ;;  %7410 = vmatprep.subr.bf16.mxu1 %v9727_v12  ;;  %v9809_v11 = vld [vmem:[%s13752_s1 + $0x1268] ss:$16 sps:$4 sm:$0xff]   ;;  %v9814_v12 = vld [vmem:[%s13752_s1 + $0x1284] ss:$16 sps:$4 sm:$0xff]  }
 0x217   :  { %6755 = vmatpush1.bf16.msra.mxu0 %v9722_v52  ;;  %7411 = vmatpush1.bf16.msra.mxu1 %v9725_v15  ;;  %v9817_v52 = vld [vmem:[%s13752_s1 + $0x128c] ss:$16 sps:$4 sm:$0xff]   ;;  %v9812_v15 = vld [vmem:[%s13752_s1 + $0x1280] ss:$16 sps:$4 sm:$0xff]  }
 0x218   :  { %6756 = vmatprep.subr.bf16.mxu0 %v9730_v16  ;;  %7412 = vmatprep.subr.bf16.mxu1 %v9733_v17  ;;  %v9815_v16 = vld [vmem:[%s13752_s1 + $0x1288] ss:$16 sps:$4 sm:$0xff]   ;;  %v9820_v17 = vld [vmem:[%s13752_s1 + $0x12a4] ss:$16 sps:$4 sm:$0xff]  }
 0x21b   :  { %6757 = vmatpush1.bf16.msra.mxu0 %v9728_v18  ;;  %7413 = vmatpush1.bf16.msra.mxu1 %v9731_v19  ;;  %v9823_v18 = vld [vmem:[%s13752_s1 + $0x12ac] ss:$16 sps:$4 sm:$0xff]   ;;  %v9818_v19 = vld [vmem:[%s13752_s1 + $0x12a0] ss:$16 sps:$4 sm:$0xff]  }
 0x21c   :  { %6758 = vmatprep.subr.bf16.mxu0 %v9736_v20  ;;  %7414 = vmatprep.subr.bf16.mxu1 %v9739_v22  ;;  %v9821_v20 = vld [vmem:[%s13752_s1 + $0x12a8] ss:$16 sps:$4 sm:$0xff]   ;;  %v9826_v22 = vld [vmem:[%s13752_s1 + $0x12c4] ss:$16 sps:$4 sm:$0xff]  }
 0x21f   :  { %6759 = vmatpush1.bf16.msra.mxu0 %v9734_v23  ;;  %7415 = vmatpush1.bf16.msra.mxu1 %v9737_v24  ;;  %v9829_v23 = vld [vmem:[%s13752_s1 + $0x12cc] ss:$16 sps:$4 sm:$0xff]   ;;  %v9824_v24 = vld [vmem:[%s13752_s1 + $0x12c0] ss:$16 sps:$4 sm:$0xff]  }
 0x220   :  { %6760 = vmatprep.subr.bf16.mxu0 %v9742_v13  ;;  %7416 = vmatprep.subr.bf16.mxu1 %v9745_v27  ;;  %v9827_v13 = vld [vmem:[%s13752_s1 + $0x12c8] ss:$16 sps:$4 sm:$0xff]   ;;  %v9832_v27 = vld [vmem:[%s13752_s1 + $0x12e4] ss:$16 sps:$4 sm:$0xff]  }
 0x223   :  { %6761 = vmatpush1.bf16.msra.mxu0 %v9740_v28  ;;  %7417 = vmatpush1.bf16.msra.mxu1 %v9743_v29  ;;  %v9835_v28 = vld [vmem:[%s13752_s1 + $0x12ec] ss:$16 sps:$4 sm:$0xff]   ;;  %v9830_v29 = vld [vmem:[%s13752_s1 + $0x12e0] ss:$16 sps:$4 sm:$0xff]  }
 0x224   :  { %6762 = vmatprep.subr.bf16.mxu0 %v9748_v14  ;;  %7418 = vmatprep.subr.bf16.mxu1 %v9751_v30  ;;  %v9833_v14 = vld [vmem:[%s13752_s1 + $0x12e8] ss:$16 sps:$4 sm:$0xff]   ;;  %v9838_v30 = vld [vmem:[%s13752_s1 + $0x1304] ss:$16 sps:$4 sm:$0xff]  }
 0x227   :  { %6763 = vmatpush1.bf16.msra.mxu0 %v9746_v31  ;;  %7419 = vmatpush1.bf16.msra.mxu1 %v9749_v25  ;;  %v9841_v31 = vld [vmem:[%s13752_s1 + $0x130c] ss:$16 sps:$4 sm:$0xff]   ;;  %v9836_v25 = vld [vmem:[%s13752_s1 + $0x1300] ss:$16 sps:$4 sm:$0xff]  }
 0x228   :  { %6764 = vmatprep.subr.bf16.mxu0 %v9754_v32  ;;  %7420 = vmatprep.subr.bf16.mxu1 %v9757_v33  ;;  %v9839_v32 = vld [vmem:[%s13752_s1 + $0x1308] ss:$16 sps:$4 sm:$0xff]   ;;  %v9844_v33 = vld [vmem:[%s13752_s1 + $0x1324] ss:$16 sps:$4 sm:$0xff]  }
 0x22b   :  { %6765 = vmatpush1.bf16.msra.mxu0 %v9752_v26  ;;  %7421 = vmatpush1.bf16.msra.mxu1 %v9755_v36  ;;  %v9847_v26 = vld [vmem:[%s13752_s1 + $0x132c] ss:$16 sps:$4 sm:$0xff]   ;;  %v9842_v36 = vld [vmem:[%s13752_s1 + $0x1320] ss:$16 sps:$4 sm:$0xff]  }
 0x22c   :  { %6766 = vmatprep.subr.bf16.mxu0 %v9760_v37  ;;  %7422 = vmatprep.subr.bf16.mxu1 %v9763_v21  ;;  %v9845_v37 = vld [vmem:[%s13752_s1 + $0x1328] ss:$16 sps:$4 sm:$0xff]   ;;  %v9850_v21 = vld [vmem:[%s13752_s1 + $0x1344] ss:$16 sps:$4 sm:$0xff]  }
 0x22f   :  { %6767 = vmatpush1.bf16.msra.mxu0 %v9758_v39  ;;  %7423 = vmatpush1.bf16.msra.mxu1 %v9761_v40  ;;  %v9853_v39 = vld [vmem:[%s13752_s1 + $0x134c] ss:$16 sps:$4 sm:$0xff]   ;;  %v9848_v40 = vld [vmem:[%s13752_s1 + $0x1340] ss:$16 sps:$4 sm:$0xff]  }
 0x230   :  { %6768 = vmatprep.subr.bf16.mxu0 %v9766_v41  ;;  %7424 = vmatprep.subr.bf16.mxu1 %v9769_v34  ;;  %v9851_v41 = vld [vmem:[%s13752_s1 + $0x1348] ss:$16 sps:$4 sm:$0xff]   ;;  %v9856_v34 = vld [vmem:[%s13752_s1 + $0x1364] ss:$16 sps:$4 sm:$0xff]  }
 0x233   :  { %6769 = vmatpush1.bf16.msra.mxu0 %v9764_v43  ;;  %7425 = vmatpush1.bf16.msra.mxu1 %v9767_v45  ;;  %v9859_v43 = vld [vmem:[%s13752_s1 + $0x136c] ss:$16 sps:$4 sm:$0xff]   ;;  %v9854_v45 = vld [vmem:[%s13752_s1 + $0x1360] ss:$16 sps:$4 sm:$0xff]  }
 0x234   :  { %6770 = vmatprep.subr.bf16.mxu0 %v9772_v46  ;;  %7426 = vmatprep.subr.bf16.mxu1 %v9775_v35  ;;  %v9857_v46 = vld [vmem:[%s13752_s1 + $0x1368] ss:$16 sps:$4 sm:$0xff]   ;;  %v9862_v35 = vld [vmem:[%s13752_s1 + $0x1384] ss:$16 sps:$4 sm:$0xff]  }
 0x237   :  { %6771 = vmatpush1.bf16.msra.mxu0 %v9770_v50  ;;  %7427 = vmatpush1.bf16.msra.mxu1 %v9773_v53  ;;  %v9865_v50 = vld [vmem:[%s13752_s1 + $0x138c] ss:$16 sps:$4 sm:$0xff]   ;;  %v9860_v53 = vld [vmem:[%s13752_s1 + $0x1380] ss:$16 sps:$4 sm:$0xff]  }
 0x238   :  { %6772 = vmatprep.subr.bf16.mxu0 %v9778_v38  ;;  %7428 = vmatprep.subr.bf16.mxu1 %v9781_v54  ;;  %v9863_v38 = vld [vmem:[%s13752_s1 + $0x1388] ss:$16 sps:$4 sm:$0xff]   ;;  %v9868_v54 = vld [vmem:[%s13752_s1 + $0x13a4] ss:$16 sps:$4 sm:$0xff]  }
 0x23b   :  { %6773 = vmatpush1.bf16.msra.mxu0 %v9776_v55  ;;  %7429 = vmatpush1.bf16.msra.mxu1 %v9779_v56  ;;  %v9871_v55 = vld [vmem:[%s13752_s1 + $0x13ac] ss:$16 sps:$4 sm:$0xff]   ;;  %v9866_v56 = vld [vmem:[%s13752_s1 + $0x13a0] ss:$16 sps:$4 sm:$0xff]  }
 0x23c   :  { %6774 = vmatprep.subr.bf16.mxu0 %v9784_v47  ;;  %7430 = vmatprep.subr.bf16.mxu1 %v9787_v57  ;;  %v9869_v47 = vld [vmem:[%s13752_s1 + $0x13a8] ss:$16 sps:$4 sm:$0xff]   ;;  %v9874_v57 = vld [vmem:[%s13752_s1 + $0x13c4] ss:$16 sps:$4 sm:$0xff]  }
 0x23f   :  { %6775 = vmatpush1.bf16.msra.mxu0 %v9782_v58  ;;  %7431 = vmatpush1.bf16.msra.mxu1 %v9785_v59  ;;  %v9877_v58 = vld [vmem:[%s13752_s1 + $0x13cc] ss:$16 sps:$4 sm:$0xff]   ;;  %v1166_v59 = vcombine.high %v12091_v44, %v12091_v44 }
 0x240   :  { %6785 = vmatprep.subr.bf16.mxu0 %v9790_v48  ;;  %7441 = vmatprep.subr.bf16.mxu1 %v9793_v61  ;;  %v9872_v48 = vld [vmem:[%s13752_s1 + $0x13c0] ss:$16 sps:$4 sm:$0xff]   ;;  %v9875_v61 = vld [vmem:[%s13752_s1 + $0x13c8] ss:$16 sps:$4 sm:$0xff]   ;;  %v9883_v44 = vld [vmem:[%s13752_s1 + $0x13ec] ss:$16 sps:$4 sm:$0xff]  }
 0x242   :  { %6777 = vmatmul.mubr.bf16.vlgmr.msra.gmra.mrb[0].mxu0 %v12324_v62  ;;  %7433 = vmatmul.mubr.bf16.vlgmr.msra.gmra.mrb[0].mxu1 %v12324_v62 }
 0x243   :  { %6786 = vmatpush1.bf16.msra.mxu0 %v9788_v63  ;;  %7442 = vmatpush1.bf16.msra.mxu1 %v9791_v0  ;;  %v9880_v63 = vld [vmem:[%s13752_s1 + $0x13e4] ss:$16 sps:$4 sm:$0xff]   ;;  %v12513_v0 = vrot.slane %v1166_v59, %v10620_v49  ;;  %v9959_v59 = vld [vmem:[%s13752_s1 + $0x1588] ss:$16 sps:$4 sm:$0xff]  }
 0x244   :  { %6787 = vmatprep.subr.bf16.mxu0 %v9796_v1  ;;  %7443 = vmatprep.subr.bf16.mxu1 %v9799_v51  ;;  %v9878_v1 = vld [vmem:[%s13752_s1 + $0x13e0] ss:$16 sps:$4 sm:$0xff]   ;;  %v9881_v51 = vld [vmem:[%s13752_s1 + $0x13e8] ss:$16 sps:$4 sm:$0xff]  }
 0x245   :  { %6817 = vmatprep.mubr.bf16.mxu0 %v1213_v2  ;;  %7473 = vmatprep.mubr.bf16.mxu1 %v1213_v2  ;;  %v9886_v2 = vld [vmem:[%s13752_s1 + $0x1404] ss:$16 sps:$4 sm:$0xff]  }
 0x247   :  { %6788 = vmatpush1.bf16.msra.mxu0 %v9794_v3  ;;  %7444 = vmatpush1.bf16.msra.mxu1 %v9797_v4  ;;  %v9889_v3 = vld [vmem:[%s13752_s1 + $0x140c] ss:$16 sps:$4 sm:$0xff]   ;;  %v1182_v4 = vcombine.high %v12513_v0, %v12513_v0 }
 0x248   :  { %6789 = vmatprep.subr.bf16.mxu0 %v9802_v60  ;;  %7445 = vmatprep.subr.bf16.mxu1 %v9805_v5  ;;  %v1211_v60 = vcombine.high %v12324_v62, %v12324_v62  ;;  %v9884_v5 = vld [vmem:[%s13752_s1 + $0x1400] ss:$16 sps:$4 sm:$0xff]   ;;  %v9895_v62 = vld [vmem:[%s13752_s1 + $0x142c] ss:$16 sps:$4 sm:$0xff]  }
 0x24b   :  { %6790 = vmatpush1.bf16.msra.mxu0 %v9800_v6  ;;  %7446 = vmatpush1.bf16.msra.mxu1 %v9803_v7  ;;  %v9887_v6 = vld [vmem:[%s13752_s1 + $0x1408] ss:$16 sps:$4 sm:$0xff]   ;;  %v9892_v7 = vld [vmem:[%s13752_s1 + $0x1424] ss:$16 sps:$4 sm:$0xff]  }
 0x24c   :  { %6791 = vmatprep.subr.bf16.mxu0 %v9808_v8  ;;  %7447 = vmatprep.subr.bf16.mxu1 %v9811_v9  ;;  %v12544_v8 = vrot.slane %v1182_v4, %v10620_v49  ;;  %v9890_v9 = vld [vmem:[%s13752_s1 + $0x1420] ss:$16 sps:$4 sm:$0xff]   ;;  %v9976_v4 = vld [vmem:[%s13752_s1 + $0x15e4] ss:$16 sps:$4 sm:$0xff]  }
 0x24f   :  { %6792 = vmatpush1.bf16.msra.mxu0 %v9806_v10  ;;  %7448 = vmatpush1.bf16.msra.mxu1 %v9809_v11  ;;  %v9893_v10 = vld [vmem:[%s13752_s1 + $0x1428] ss:$16 sps:$4 sm:$0xff]   ;;  %v9898_v11 = vld [vmem:[%s13752_s1 + $0x1444] ss:$16 sps:$4 sm:$0xff]  }
 0x250   :  { %6793 = vmatprep.subr.bf16.mxu0 %v9814_v12  ;;  %7449 = vmatprep.subr.bf16.mxu1 %v9817_v52  ;;  %v9901_v12 = vld [vmem:[%s13752_s1 + $0x144c] ss:$16 sps:$4 sm:$0xff]   ;;  %v9896_v52 = vld [vmem:[%s13752_s1 + $0x1440] ss:$16 sps:$4 sm:$0xff]  }
 0x253   :  { %6794 = vmatpush1.bf16.msra.mxu0 %v9812_v15  ;;  %7450 = vmatpush1.bf16.msra.mxu1 %v9815_v16  ;;  %v9899_v15 = vld [vmem:[%s13752_s1 + $0x1448] ss:$16 sps:$4 sm:$0xff]   ;;  %v9904_v16 = vld [vmem:[%s13752_s1 + $0x1464] ss:$16 sps:$4 sm:$0xff]  }
 0x254   :  { %6795 = vmatprep.subr.bf16.mxu0 %v9820_v17  ;;  %7451 = vmatprep.subr.bf16.mxu1 %v9823_v18  ;;  %v9907_v17 = vld [vmem:[%s13752_s1 + $0x146c] ss:$16 sps:$4 sm:$0xff]   ;;  %v9902_v18 = vld [vmem:[%s13752_s1 + $0x1460] ss:$16 sps:$4 sm:$0xff]  }
 0x257   :  { %6796 = vmatpush1.bf16.msra.mxu0 %v9818_v19  ;;  %7452 = vmatpush1.bf16.msra.mxu1 %v9821_v20  ;;  %v9905_v19 = vld [vmem:[%s13752_s1 + $0x1468] ss:$16 sps:$4 sm:$0xff]   ;;  %v9910_v20 = vld [vmem:[%s13752_s1 + $0x1484] ss:$16 sps:$4 sm:$0xff]  }
 0x258   :  { %6797 = vmatprep.subr.bf16.mxu0 %v9826_v22  ;;  %7453 = vmatprep.subr.bf16.mxu1 %v9829_v23  ;;  %v9913_v22 = vld [vmem:[%s13752_s1 + $0x148c] ss:$16 sps:$4 sm:$0xff]   ;;  %v9908_v23 = vld [vmem:[%s13752_s1 + $0x1480] ss:$16 sps:$4 sm:$0xff]  }
 0x25b   :  { %6798 = vmatpush1.bf16.msra.mxu0 %v9824_v24  ;;  %7454 = vmatpush1.bf16.msra.mxu1 %v9827_v13  ;;  %v9911_v24 = vld [vmem:[%s13752_s1 + $0x1488] ss:$16 sps:$4 sm:$0xff]   ;;  %v9916_v13 = vld [vmem:[%s13752_s1 + $0x14a4] ss:$16 sps:$4 sm:$0xff]  }
 0x25c   :  { %6799 = vmatprep.subr.bf16.mxu0 %v9832_v27  ;;  %7455 = vmatprep.subr.bf16.mxu1 %v9835_v28  ;;  %v9919_v27 = vld [vmem:[%s13752_s1 + $0x14ac] ss:$16 sps:$4 sm:$0xff]   ;;  %v9914_v28 = vld [vmem:[%s13752_s1 + $0x14a0] ss:$16 sps:$4 sm:$0xff]  }
 0x25f   :  { %6800 = vmatpush1.bf16.msra.mxu0 %v9830_v29  ;;  %7456 = vmatpush1.bf16.msra.mxu1 %v9833_v14  ;;  %v9917_v29 = vld [vmem:[%s13752_s1 + $0x14a8] ss:$16 sps:$4 sm:$0xff]   ;;  %v9922_v14 = vld [vmem:[%s13752_s1 + $0x14c4] ss:$16 sps:$4 sm:$0xff]  }
 0x260   :  { %6801 = vmatprep.subr.bf16.mxu0 %v9838_v30  ;;  %7457 = vmatprep.subr.bf16.mxu1 %v9841_v31  ;;  %v9925_v30 = vld [vmem:[%s13752_s1 + $0x14cc] ss:$16 sps:$4 sm:$0xff]   ;;  %v9920_v31 = vld [vmem:[%s13752_s1 + $0x14c0] ss:$16 sps:$4 sm:$0xff]  }
 0x263   :  { %6802 = vmatpush1.bf16.msra.mxu0 %v9836_v25  ;;  %7458 = vmatpush1.bf16.msra.mxu1 %v9839_v32  ;;  %v9923_v25 = vld [vmem:[%s13752_s1 + $0x14c8] ss:$16 sps:$4 sm:$0xff]   ;;  %v9928_v32 = vld [vmem:[%s13752_s1 + $0x14e4] ss:$16 sps:$4 sm:$0xff]  }
 0x264   :  { %6803 = vmatprep.subr.bf16.mxu0 %v9844_v33  ;;  %7459 = vmatprep.subr.bf16.mxu1 %v9847_v26  ;;  %v9931_v33 = vld [vmem:[%s13752_s1 + $0x14ec] ss:$16 sps:$4 sm:$0xff]   ;;  %v9926_v26 = vld [vmem:[%s13752_s1 + $0x14e0] ss:$16 sps:$4 sm:$0xff]  }
 0x267   :  { %6804 = vmatpush1.bf16.msra.mxu0 %v9842_v36  ;;  %7460 = vmatpush1.bf16.msra.mxu1 %v9845_v37  ;;  %v9929_v36 = vld [vmem:[%s13752_s1 + $0x14e8] ss:$16 sps:$4 sm:$0xff]   ;;  %v9934_v37 = vld [vmem:[%s13752_s1 + $0x1504] ss:$16 sps:$4 sm:$0xff]  }
 0x268   :  { %6805 = vmatprep.subr.bf16.mxu0 %v9850_v21  ;;  %7461 = vmatprep.subr.bf16.mxu1 %v9853_v39  ;;  %v9937_v21 = vld [vmem:[%s13752_s1 + $0x150c] ss:$16 sps:$4 sm:$0xff]   ;;  %v9932_v39 = vld [vmem:[%s13752_s1 + $0x1500] ss:$16 sps:$4 sm:$0xff]  }
 0x26b   :  { %6806 = vmatpush1.bf16.msra.mxu0 %v9848_v40  ;;  %7462 = vmatpush1.bf16.msra.mxu1 %v9851_v41  ;;  %v9935_v40 = vld [vmem:[%s13752_s1 + $0x1508] ss:$16 sps:$4 sm:$0xff]   ;;  %v9940_v41 = vld [vmem:[%s13752_s1 + $0x1524] ss:$16 sps:$4 sm:$0xff]  }
 0x26c   :  { %6807 = vmatprep.subr.bf16.mxu0 %v9856_v34  ;;  %7463 = vmatprep.subr.bf16.mxu1 %v9859_v43  ;;  %v9943_v34 = vld [vmem:[%s13752_s1 + $0x152c] ss:$16 sps:$4 sm:$0xff]   ;;  %v9938_v43 = vld [vmem:[%s13752_s1 + $0x1520] ss:$16 sps:$4 sm:$0xff]  }
 0x26f   :  { %6808 = vmatpush1.bf16.msra.mxu0 %v9854_v45  ;;  %7464 = vmatpush1.bf16.msra.mxu1 %v9857_v46  ;;  %v9941_v45 = vld [vmem:[%s13752_s1 + $0x1528] ss:$16 sps:$4 sm:$0xff]   ;;  %v9946_v46 = vld [vmem:[%s13752_s1 + $0x1544] ss:$16 sps:$4 sm:$0xff]  }
 0x270   :  { %6809 = vmatprep.subr.bf16.mxu0 %v9862_v35  ;;  %7465 = vmatprep.subr.bf16.mxu1 %v9865_v50  ;;  %v9949_v35 = vld [vmem:[%s13752_s1 + $0x154c] ss:$16 sps:$4 sm:$0xff]   ;;  %v9944_v50 = vld [vmem:[%s13752_s1 + $0x1540] ss:$16 sps:$4 sm:$0xff]  }
 0x273   :  { %6810 = vmatpush1.bf16.msra.mxu0 %v9860_v53  ;;  %7466 = vmatpush1.bf16.msra.mxu1 %v9863_v38  ;;  %v9947_v53 = vld [vmem:[%s13752_s1 + $0x1548] ss:$16 sps:$4 sm:$0xff]   ;;  %v9952_v38 = vld [vmem:[%s13752_s1 + $0x1564] ss:$16 sps:$4 sm:$0xff]  }
 0x274   :  { %6811 = vmatprep.subr.bf16.mxu0 %v9868_v54  ;;  %7467 = vmatprep.subr.bf16.mxu1 %v9871_v55  ;;  %v9955_v54 = vld [vmem:[%s13752_s1 + $0x156c] ss:$16 sps:$4 sm:$0xff]   ;;  %v9950_v55 = vld [vmem:[%s13752_s1 + $0x1560] ss:$16 sps:$4 sm:$0xff]  }
 0x277   :  { %6812 = vmatpush1.bf16.msra.mxu0 %v9866_v56  ;;  %7468 = vmatpush1.bf16.msra.mxu1 %v9869_v47  ;;  %v9953_v56 = vld [vmem:[%s13752_s1 + $0x1568] ss:$16 sps:$4 sm:$0xff]   ;;  %v9958_v47 = vld [vmem:[%s13752_s1 + $0x1584] ss:$16 sps:$4 sm:$0xff]  }
 0x278   :  { %6813 = vmatprep.subr.bf16.mxu0 %v9874_v57  ;;  %7469 = vmatprep.subr.bf16.mxu1 %v9877_v58  ;;  %v9961_v57 = vld [vmem:[%s13752_s1 + $0x158c] ss:$16 sps:$4 sm:$0xff]   ;;  %v9956_v58 = vld [vmem:[%s13752_s1 + $0x1580] ss:$16 sps:$4 sm:$0xff]  }
 0x27b   :  { %6814 = vmatpush1.bf16.msra.mxu0 %v9872_v48  ;;  %7470 = vmatpush1.bf16.msra.mxu1 %v9875_v61  ;;  %v9964_v48 = vld [vmem:[%s13752_s1 + $0x15a4] ss:$16 sps:$4 sm:$0xff]   ;;  %v9967_v61 = vld [vmem:[%s13752_s1 + $0x15ac] ss:$16 sps:$4 sm:$0xff]  }
 0x27c   :  { %6815 = vmatprep.subr.bf16.mxu0 %v9880_v63  ;;  %7471 = vmatprep.subr.bf16.mxu1 %v9883_v44  ;;  %v9962_v63 = vld [vmem:[%s13752_s1 + $0x15a0] ss:$16 sps:$4 sm:$0xff]   ;;  %v9965_v44 = vld [vmem:[%s13752_s1 + $0x15a8] ss:$16 sps:$4 sm:$0xff]  }
 0x27f   :  { %6816 = vmatpush1.bf16.msra.mxu0 %v9878_v1  ;;  %7472 = vmatpush1.bf16.msra.mxu1 %v9881_v51  ;;  %v9970_v1 = vld [vmem:[%s13752_s1 + $0x15c4] ss:$16 sps:$4 sm:$0xff]   ;;  %v9973_v51 = vld [vmem:[%s13752_s1 + $0x15cc] ss:$16 sps:$4 sm:$0xff]  }
 0x280   :  { %6826 = vmatprep.subr.bf16.mxu0 %v9886_v2  ;;  %7482 = vmatprep.subr.bf16.mxu1 %v9889_v3  ;;  %v9968_v2 = vld [vmem:[%s13752_s1 + $0x15c0] ss:$16 sps:$4 sm:$0xff]   ;;  %v9971_v3 = vld [vmem:[%s13752_s1 + $0x15c8] ss:$16 sps:$4 sm:$0xff]  }
 0x282   :  { %6818 = vmatmul.mubr.bf16.vlgmr.msra.gmra.mrb[0].mxu0 %v1211_v60  ;;  %7474 = vmatmul.mubr.bf16.vlgmr.msra.gmra.mrb[0].mxu1 %v1211_v60  ;;  %v9979_v60 = vld [vmem:[%s13752_s1 + $0x15ec] ss:$16 sps:$4 sm:$0xff]  }
 0x283   :  { %6827 = vmatpush1.bf16.msra.mxu0 %v9884_v5  ;;  %7483 = vmatpush1.bf16.msra.mxu1 %v9887_v6  ;;  %v9974_v5 = vld [vmem:[%s13752_s1 + $0x15e0] ss:$16 sps:$4 sm:$0xff]   ;;  %v9977_v6 = vld [vmem:[%s13752_s1 + $0x15e8] ss:$16 sps:$4 sm:$0xff]  }
 0x284   :  { %6828 = vmatprep.subr.bf16.mxu0 %v9892_v7  ;;  %7484 = vmatprep.subr.bf16.mxu1 %v9895_v62  ;;  %v9983_v7 = vld [vmem:[%s13752_s1 + $0x1604] ss:$16 sps:$4 sm:$0xff]   ;;  %v9986_v62 = vld [vmem:[%s13752_s1 + $0x160c] ss:$16 sps:$4 sm:$0xff]  }
 0x285   :  { %6858 = vmatprep.mubr.bf16.mxu0 %v12544_v8  ;;  %7514 = vmatprep.mubr.bf16.mxu1 %v12544_v8 }
 0x287   :  { %6829 = vmatpush1.bf16.msra.mxu0 %v9890_v9  ;;  %7485 = vmatpush1.bf16.msra.mxu1 %v9893_v10  ;;  %v12730_v9 = vrot.slane %v12513_v0, %v10620_v49  ;;  %v9981_v10 = vld [vmem:[%s13752_s1 + $0x1600] ss:$16 sps:$4 sm:$0xff]   ;;  %v9992_v0 = vld [vmem:[%s13752_s1 + $0x162c] ss:$16 sps:$4 sm:$0xff]  }
 0x288   :  { %6830 = vmatprep.subr.bf16.mxu0 %v9898_v11  ;;  %7486 = vmatprep.subr.bf16.mxu1 %v9901_v12  ;;  %v9984_v11 = vld [vmem:[%s13752_s1 + $0x1608] ss:$16 sps:$4 sm:$0xff]   ;;  %v9989_v12 = vld [vmem:[%s13752_s1 + $0x1624] ss:$16 sps:$4 sm:$0xff]  }
 0x28b   :  { %6831 = vmatpush1.bf16.msra.mxu0 %v9896_v52  ;;  %7487 = vmatpush1.bf16.msra.mxu1 %v9899_v15  ;;  %v1214_v52 = vcombine.high %v12544_v8, %v12544_v8  ;;  %v9987_v15 = vld [vmem:[%s13752_s1 + $0x1620] ss:$16 sps:$4 sm:$0xff]   ;;  %v9995_v8 = vld [vmem:[%s13752_s1 + $0x1644] ss:$16 sps:$4 sm:$0xff]  }
 0x28c   :  { %6832 = vmatprep.subr.bf16.mxu0 %v9904_v16  ;;  %7488 = vmatprep.subr.bf16.mxu1 %v9907_v17  ;;  %v9990_v16 = vld [vmem:[%s13752_s1 + $0x1628] ss:$16 sps:$4 sm:$0xff]   ;;  %v9998_v17 = vld [vmem:[%s13752_s1 + $0x164c] ss:$16 sps:$4 sm:$0xff]  }
 0x28f   :  { %6833 = vmatpush1.bf16.msra.mxu0 %v9902_v18  ;;  %7489 = vmatpush1.bf16.msra.mxu1 %v9905_v19  ;;  %v9993_v18 = vld [vmem:[%s13752_s1 + $0x1640] ss:$16 sps:$4 sm:$0xff]   ;;  %v9996_v19 = vld [vmem:[%s13752_s1 + $0x1648] ss:$16 sps:$4 sm:$0xff]  }
 0x290   :  { %6834 = vmatprep.subr.bf16.mxu0 %v9910_v20  ;;  %7490 = vmatprep.subr.bf16.mxu1 %v9913_v22  ;;  %v10001_v20 = vld [vmem:[%s13752_s1 + $0x1664] ss:$16 sps:$4 sm:$0xff]   ;;  %v10004_v22 = vld [vmem:[%s13752_s1 + $0x166c] ss:$16 sps:$4 sm:$0xff]  }
 0x293   :  { %6835 = vmatpush1.bf16.msra.mxu0 %v9908_v23  ;;  %7491 = vmatpush1.bf16.msra.mxu1 %v9911_v24  ;;  %v9999_v23 = vld [vmem:[%s13752_s1 + $0x1660] ss:$16 sps:$4 sm:$0xff]   ;;  %v10002_v24 = vld [vmem:[%s13752_s1 + $0x1668] ss:$16 sps:$4 sm:$0xff]  }
 0x294   :  { %6836 = vmatprep.subr.bf16.mxu0 %v9916_v13  ;;  %7492 = vmatprep.subr.bf16.mxu1 %v9919_v27  ;;  %v10007_v13 = vld [vmem:[%s13752_s1 + $0x1684] ss:$16 sps:$4 sm:$0xff]   ;;  %v10010_v27 = vld [vmem:[%s13752_s1 + $0x168c] ss:$16 sps:$4 sm:$0xff]  }
 0x297   :  { %6837 = vmatpush1.bf16.msra.mxu0 %v9914_v28  ;;  %7493 = vmatpush1.bf16.msra.mxu1 %v9917_v29  ;;  %v10005_v28 = vld [vmem:[%s13752_s1 + $0x1680] ss:$16 sps:$4 sm:$0xff]   ;;  %v10008_v29 = vld [vmem:[%s13752_s1 + $0x1688] ss:$16 sps:$4 sm:$0xff]  }
 0x298   :  { %6838 = vmatprep.subr.bf16.mxu0 %v9922_v14  ;;  %7494 = vmatprep.subr.bf16.mxu1 %v9925_v30  ;;  %v10013_v14 = vld [vmem:[%s13752_s1 + $0x16a4] ss:$16 sps:$4 sm:$0xff]   ;;  %v10016_v30 = vld [vmem:[%s13752_s1 + $0x16ac] ss:$16 sps:$4 sm:$0xff]  }
 0x29b   :  { %6839 = vmatpush1.bf16.msra.mxu0 %v9920_v31  ;;  %7495 = vmatpush1.bf16.msra.mxu1 %v9923_v25  ;;  %v10011_v31 = vld [vmem:[%s13752_s1 + $0x16a0] ss:$16 sps:$4 sm:$0xff]   ;;  %v10014_v25 = vld [vmem:[%s13752_s1 + $0x16a8] ss:$16 sps:$4 sm:$0xff]  }
 0x29c   :  { %6840 = vmatprep.subr.bf16.mxu0 %v9928_v32  ;;  %7496 = vmatprep.subr.bf16.mxu1 %v9931_v33  ;;  %v10019_v32 = vld [vmem:[%s13752_s1 + $0x16c4] ss:$16 sps:$4 sm:$0xff]   ;;  %v10022_v33 = vld [vmem:[%s13752_s1 + $0x16cc] ss:$16 sps:$4 sm:$0xff]  }
 0x29f   :  { %6841 = vmatpush1.bf16.msra.mxu0 %v9926_v26  ;;  %7497 = vmatpush1.bf16.msra.mxu1 %v9929_v36  ;;  %v10017_v26 = vld [vmem:[%s13752_s1 + $0x16c0] ss:$16 sps:$4 sm:$0xff]   ;;  %v10020_v36 = vld [vmem:[%s13752_s1 + $0x16c8] ss:$16 sps:$4 sm:$0xff]  }
 0x2a0   :  { %6842 = vmatprep.subr.bf16.mxu0 %v9934_v37  ;;  %7498 = vmatprep.subr.bf16.mxu1 %v9937_v21  ;;  %v10025_v37 = vld [vmem:[%s13752_s1 + $0x16e4] ss:$16 sps:$4 sm:$0xff]   ;;  %v10028_v21 = vld [vmem:[%s13752_s1 + $0x16ec] ss:$16 sps:$4 sm:$0xff]  }
 0x2a3   :  { %6843 = vmatpush1.bf16.msra.mxu0 %v9932_v39  ;;  %7499 = vmatpush1.bf16.msra.mxu1 %v9935_v40  ;;  %v10023_v39 = vld [vmem:[%s13752_s1 + $0x16e0] ss:$16 sps:$4 sm:$0xff]   ;;  %v10026_v40 = vld [vmem:[%s13752_s1 + $0x16e8] ss:$16 sps:$4 sm:$0xff]  }
 0x2a4   :  { %6844 = vmatprep.subr.bf16.mxu0 %v9940_v41  ;;  %7500 = vmatprep.subr.bf16.mxu1 %v9943_v34  ;;  %v10031_v41 = vld [vmem:[%s13752_s1 + $0x1704] ss:$16 sps:$4 sm:$0xff]   ;;  %v10034_v34 = vld [vmem:[%s13752_s1 + $0x170c] ss:$16 sps:$4 sm:$0xff]  }
 0x2a7   :  { %6845 = vmatpush1.bf16.msra.mxu0 %v9938_v43  ;;  %7501 = vmatpush1.bf16.msra.mxu1 %v9941_v45  ;;  %v10029_v43 = vld [vmem:[%s13752_s1 + $0x1700] ss:$16 sps:$4 sm:$0xff]   ;;  %v10032_v45 = vld [vmem:[%s13752_s1 + $0x1708] ss:$16 sps:$4 sm:$0xff]  }
 0x2a8   :  { %6846 = vmatprep.subr.bf16.mxu0 %v9946_v46  ;;  %7502 = vmatprep.subr.bf16.mxu1 %v9949_v35  ;;  %v10037_v46 = vld [vmem:[%s13752_s1 + $0x1724] ss:$16 sps:$4 sm:$0xff]   ;;  %v10040_v35 = vld [vmem:[%s13752_s1 + $0x172c] ss:$16 sps:$4 sm:$0xff]  }
 0x2ab   :  { %6847 = vmatpush1.bf16.msra.mxu0 %v9944_v50  ;;  %7503 = vmatpush1.bf16.msra.mxu1 %v9947_v53  ;;  %v10035_v50 = vld [vmem:[%s13752_s1 + $0x1720] ss:$16 sps:$4 sm:$0xff]   ;;  %v10038_v53 = vld [vmem:[%s13752_s1 + $0x1728] ss:$16 sps:$4 sm:$0xff]  }
 0x2ac   :  { %6848 = vmatprep.subr.bf16.mxu0 %v9952_v38  ;;  %7504 = vmatprep.subr.bf16.mxu1 %v9955_v54  ;;  %v10043_v38 = vld [vmem:[%s13752_s1 + $0x1744] ss:$16 sps:$4 sm:$0xff]   ;;  %v10046_v54 = vld [vmem:[%s13752_s1 + $0x174c] ss:$16 sps:$4 sm:$0xff]  }
 0x2af   :  { %6849 = vmatpush1.bf16.msra.mxu0 %v9950_v55  ;;  %7505 = vmatpush1.bf16.msra.mxu1 %v9953_v56  ;;  %v10041_v55 = vld [vmem:[%s13752_s1 + $0x1740] ss:$16 sps:$4 sm:$0xff]   ;;  %v10044_v56 = vld [vmem:[%s13752_s1 + $0x1748] ss:$16 sps:$4 sm:$0xff]  }
 0x2b0   :  { %6850 = vmatprep.subr.bf16.mxu0 %v9958_v47  ;;  %7506 = vmatprep.subr.bf16.mxu1 %v9961_v57  ;;  %v10049_v47 = vld [vmem:[%s13752_s1 + $0x1764] ss:$16 sps:$4 sm:$0xff]   ;;  %v10052_v57 = vld [vmem:[%s13752_s1 + $0x176c] ss:$16 sps:$4 sm:$0xff]  }
 0x2b3   :  { %6851 = vmatpush1.bf16.msra.mxu0 %v9956_v58  ;;  %7507 = vmatpush1.bf16.msra.mxu1 %v9959_v59  ;;  %v10047_v58 = vld [vmem:[%s13752_s1 + $0x1760] ss:$16 sps:$4 sm:$0xff]   ;;  %v10050_v59 = vld [vmem:[%s13752_s1 + $0x1768] ss:$16 sps:$4 sm:$0xff]  }
 0x2b4   :  { %6852 = vmatprep.subr.bf16.mxu0 %v9964_v48  ;;  %7508 = vmatprep.subr.bf16.mxu1 %v9967_v61  ;;  %v10055_v48 = vld [vmem:[%s13752_s1 + $0x1784] ss:$16 sps:$4 sm:$0xff]   ;;  %v10058_v61 = vld [vmem:[%s13752_s1 + $0x178c] ss:$16 sps:$4 sm:$0xff]  }
 0x2b7   :  { %6853 = vmatpush1.bf16.msra.mxu0 %v9962_v63  ;;  %7509 = vmatpush1.bf16.msra.mxu1 %v9965_v44  ;;  %v10053_v63 = vld [vmem:[%s13752_s1 + $0x1780] ss:$16 sps:$4 sm:$0xff]   ;;  %v10056_v44 = vld [vmem:[%s13752_s1 + $0x1788] ss:$16 sps:$4 sm:$0xff]  }
 0x2b8   :  { %6854 = vmatprep.subr.bf16.mxu0 %v9970_v1  ;;  %7510 = vmatprep.subr.bf16.mxu1 %v9973_v51  ;;  %v10061_v1 = vld [vmem:[%s13752_s1 + $0x17a4] ss:$16 sps:$4 sm:$0xff]   ;;  %v10064_v51 = vld [vmem:[%s13752_s1 + $0x17ac] ss:$16 sps:$4 sm:$0xff]  }
 0x2bb   :  { %6855 = vmatpush1.bf16.msra.mxu0 %v9968_v2  ;;  %7511 = vmatpush1.bf16.msra.mxu1 %v9971_v3  ;;  %v10059_v2 = vld [vmem:[%s13752_s1 + $0x17a0] ss:$16 sps:$4 sm:$0xff]   ;;  %v10062_v3 = vld [vmem:[%s13752_s1 + $0x17a8] ss:$16 sps:$4 sm:$0xff]  }
 0x2bc   :  { %6856 = vmatprep.subr.bf16.mxu0 %v9976_v4  ;;  %7512 = vmatprep.subr.bf16.mxu1 %v9979_v60  ;;  %v10067_v4 = vld [vmem:[%s13752_s1 + $0x17c4] ss:$16 sps:$4 sm:$0xff]   ;;  %v10070_v60 = vld [vmem:[%s13752_s1 + $0x17cc] ss:$16 sps:$4 sm:$0xff]  }
 0x2bf   :  { %6857 = vmatpush1.bf16.msra.mxu0 %v9974_v5  ;;  %7513 = vmatpush1.bf16.msra.mxu1 %v9977_v6  ;;  %v12907_v5 = vld [vmem:[%s13753_s0 + $0x18] sm:$0xff]  ;;  %v10065_v6 = vld [vmem:[%s13752_s1 + $0x17c0] ss:$16 sps:$4 sm:$0xff]  }
 0x2c0   :  { %6867 = vmatprep.subr.bf16.mxu0 %v9983_v7  ;;  %7523 = vmatprep.subr.bf16.mxu1 %v9986_v62  ;;  %v10068_v7 = vld [vmem:[%s13752_s1 + $0x17c8] ss:$16 sps:$4 sm:$0xff]   ;;  %v10073_v62 = vld [vmem:[%s13752_s1 + $0x17e4] ss:$16 sps:$4 sm:$0xff]  }
 0x2c2   :  { %6859 = vmatmul.mubr.bf16.vlgmr.msra.gmra.mrb[0].mxu0 %v12730_v9  ;;  %7515 = vmatmul.mubr.bf16.vlgmr.msra.gmra.mrb[0].mxu1 %v12730_v9 }
 0x2c3   :  { %6868 = vmatpush1.bf16.msra.mxu0 %v9981_v10  ;;  %7524 = vmatpush1.bf16.msra.mxu1 %v9984_v11  ;;  %v10076_v10 = vld [vmem:[%s13752_s1 + $0x17ec] ss:$16 sps:$4 sm:$0xff]   ;;  %v12923_v11 = vrot.slane %v12907_v5, %v10620_v49 }
 0x2c4   :  { %6869 = vmatprep.subr.bf16.mxu0 %v9989_v12  ;;  %7525 = vmatprep.subr.bf16.mxu1 %v9992_v0  ;;  %v10071_v12 = vld [vmem:[%s13752_s1 + $0x17e0] ss:$16 sps:$4 sm:$0xff]   ;;  %v10074_v0 = vld [vmem:[%s13752_s1 + $0x17e8] ss:$16 sps:$4 sm:$0xff]  }
 0x2c5   :  { %6899 = vmatprep.mubr.bf16.mxu0 %v1214_v52  ;;  %7555 = vmatprep.mubr.bf16.mxu1 %v1214_v52  ;;  %v10079_v52 = vld [vmem:[%s13752_s1 + $0x1804] ss:$16 sps:$4 sm:$0xff]  }
 0x2c7   :  { %6870 = vmatpush1.bf16.msra.mxu0 %v9987_v15  ;;  %7526 = vmatpush1.bf16.msra.mxu1 %v9990_v16  ;;  %v10082_v15 = vld [vmem:[%s13752_s1 + $0x180c] ss:$16 sps:$4 sm:$0xff]   ;;  %v1230_v16 = vcombine.high %v12923_v11, %v12923_v11 }
 0x2c8   :  { %6871 = vmatprep.subr.bf16.mxu0 %v9995_v8  ;;  %7527 = vmatprep.subr.bf16.mxu1 %v9998_v17  ;;  %v1212_v8 = vcombine.high %v12730_v9, %v12730_v9  ;;  %v10077_v17 = vld [vmem:[%s13752_s1 + $0x1800] ss:$16 sps:$4 sm:$0xff]   ;;  %v10088_v9 = vld [vmem:[%s13752_s1 + $0x182c] ss:$16 sps:$4 sm:$0xff]  }
 0x2cb   :  { %6872 = vmatpush1.bf16.msra.mxu0 %v9993_v18  ;;  %7528 = vmatpush1.bf16.msra.mxu1 %v9996_v19  ;;  %v10080_v18 = vld [vmem:[%s13752_s1 + $0x1808] ss:$16 sps:$4 sm:$0xff]   ;;  %v10085_v19 = vld [vmem:[%s13752_s1 + $0x1824] ss:$16 sps:$4 sm:$0xff]  }
 0x2cc   :  { %6873 = vmatprep.subr.bf16.mxu0 %v10001_v20  ;;  %7529 = vmatprep.subr.bf16.mxu1 %v10004_v22  ;;  %v12954_v20 = vrot.slane %v1230_v16, %v10620_v49  ;;  %v10083_v22 = vld [vmem:[%s13752_s1 + $0x1820] ss:$16 sps:$4 sm:$0xff]   ;;  %v10164_v16 = vld [vmem:[%s13752_s1 + $0x19c8] ss:$16 sps:$4 sm:$0xff]  }
 0x2cf   :  { %6874 = vmatpush1.bf16.msra.mxu0 %v9999_v23  ;;  %7530 = vmatpush1.bf16.msra.mxu1 %v10002_v24  ;;  %v10086_v23 = vld [vmem:[%s13752_s1 + $0x1828] ss:$16 sps:$4 sm:$0xff]   ;;  %v10091_v24 = vld [vmem:[%s13752_s1 + $0x1844] ss:$16 sps:$4 sm:$0xff]  }
 0x2d0   :  { %6875 = vmatprep.subr.bf16.mxu0 %v10007_v13  ;;  %7531 = vmatprep.subr.bf16.mxu1 %v10010_v27  ;;  %v10094_v13 = vld [vmem:[%s13752_s1 + $0x184c] ss:$16 sps:$4 sm:$0xff]   ;;  %v10089_v27 = vld [vmem:[%s13752_s1 + $0x1840] ss:$16 sps:$4 sm:$0xff]  }
 0x2d3   :  { %6876 = vmatpush1.bf16.msra.mxu0 %v10005_v28  ;;  %7532 = vmatpush1.bf16.msra.mxu1 %v10008_v29  ;;  %v10092_v28 = vld [vmem:[%s13752_s1 + $0x1848] ss:$16 sps:$4 sm:$0xff]   ;;  %v10097_v29 = vld [vmem:[%s13752_s1 + $0x1864] ss:$16 sps:$4 sm:$0xff]  }
 0x2d4   :  { %6877 = vmatprep.subr.bf16.mxu0 %v10013_v14  ;;  %7533 = vmatprep.subr.bf16.mxu1 %v10016_v30  ;;  %v10100_v14 = vld [vmem:[%s13752_s1 + $0x186c] ss:$16 sps:$4 sm:$0xff]   ;;  %v10095_v30 = vld [vmem:[%s13752_s1 + $0x1860] ss:$16 sps:$4 sm:$0xff]  }
 0x2d7   :  { %6878 = vmatpush1.bf16.msra.mxu0 %v10011_v31  ;;  %7534 = vmatpush1.bf16.msra.mxu1 %v10014_v25  ;;  %v10098_v31 = vld [vmem:[%s13752_s1 + $0x1868] ss:$16 sps:$4 sm:$0xff]   ;;  %v10103_v25 = vld [vmem:[%s13752_s1 + $0x1884] ss:$16 sps:$4 sm:$0xff]  }
 0x2d8   :  { %6879 = vmatprep.subr.bf16.mxu0 %v10019_v32  ;;  %7535 = vmatprep.subr.bf16.mxu1 %v10022_v33  ;;  %v10106_v32 = vld [vmem:[%s13752_s1 + $0x188c] ss:$16 sps:$4 sm:$0xff]   ;;  %v10101_v33 = vld [vmem:[%s13752_s1 + $0x1880] ss:$16 sps:$4 sm:$0xff]  }
 0x2db   :  { %6880 = vmatpush1.bf16.msra.mxu0 %v10017_v26  ;;  %7536 = vmatpush1.bf16.msra.mxu1 %v10020_v36  ;;  %v10104_v26 = vld [vmem:[%s13752_s1 + $0x1888] ss:$16 sps:$4 sm:$0xff]   ;;  %v10109_v36 = vld [vmem:[%s13752_s1 + $0x18a4] ss:$16 sps:$4 sm:$0xff]  }
 0x2dc   :  { %6881 = vmatprep.subr.bf16.mxu0 %v10025_v37  ;;  %7537 = vmatprep.subr.bf16.mxu1 %v10028_v21  ;;  %v10112_v37 = vld [vmem:[%s13752_s1 + $0x18ac] ss:$16 sps:$4 sm:$0xff]   ;;  %v10107_v21 = vld [vmem:[%s13752_s1 + $0x18a0] ss:$16 sps:$4 sm:$0xff]  }
 0x2df   :  { %6882 = vmatpush1.bf16.msra.mxu0 %v10023_v39  ;;  %7538 = vmatpush1.bf16.msra.mxu1 %v10026_v40  ;;  %v10110_v39 = vld [vmem:[%s13752_s1 + $0x18a8] ss:$16 sps:$4 sm:$0xff]   ;;  %v10115_v40 = vld [vmem:[%s13752_s1 + $0x18c4] ss:$16 sps:$4 sm:$0xff]  }
 0x2e0   :  { %6883 = vmatprep.subr.bf16.mxu0 %v10031_v41  ;;  %7539 = vmatprep.subr.bf16.mxu1 %v10034_v34  ;;  %v10118_v41 = vld [vmem:[%s13752_s1 + $0x18cc] ss:$16 sps:$4 sm:$0xff]   ;;  %v10113_v34 = vld [vmem:[%s13752_s1 + $0x18c0] ss:$16 sps:$4 sm:$0xff]  }
 0x2e3   :  { %6884 = vmatpush1.bf16.msra.mxu0 %v10029_v43  ;;  %7540 = vmatpush1.bf16.msra.mxu1 %v10032_v45  ;;  %v10116_v43 = vld [vmem:[%s13752_s1 + $0x18c8] ss:$16 sps:$4 sm:$0xff]   ;;  %v10121_v45 = vld [vmem:[%s13752_s1 + $0x18e4] ss:$16 sps:$4 sm:$0xff]  }
 0x2e4   :  { %6885 = vmatprep.subr.bf16.mxu0 %v10037_v46  ;;  %7541 = vmatprep.subr.bf16.mxu1 %v10040_v35  ;;  %v10124_v46 = vld [vmem:[%s13752_s1 + $0x18ec] ss:$16 sps:$4 sm:$0xff]   ;;  %v10119_v35 = vld [vmem:[%s13752_s1 + $0x18e0] ss:$16 sps:$4 sm:$0xff]  }
 0x2e7   :  { %6886 = vmatpush1.bf16.msra.mxu0 %v10035_v50  ;;  %7542 = vmatpush1.bf16.msra.mxu1 %v10038_v53  ;;  %v10122_v50 = vld [vmem:[%s13752_s1 + $0x18e8] ss:$16 sps:$4 sm:$0xff]   ;;  %v10127_v53 = vld [vmem:[%s13752_s1 + $0x1904] ss:$16 sps:$4 sm:$0xff]  }
 0x2e8   :  { %6887 = vmatprep.subr.bf16.mxu0 %v10043_v38  ;;  %7543 = vmatprep.subr.bf16.mxu1 %v10046_v54  ;;  %v10130_v38 = vld [vmem:[%s13752_s1 + $0x190c] ss:$16 sps:$4 sm:$0xff]   ;;  %v10125_v54 = vld [vmem:[%s13752_s1 + $0x1900] ss:$16 sps:$4 sm:$0xff]  }
 0x2eb   :  { %6888 = vmatpush1.bf16.msra.mxu0 %v10041_v55  ;;  %7544 = vmatpush1.bf16.msra.mxu1 %v10044_v56  ;;  %v10128_v55 = vld [vmem:[%s13752_s1 + $0x1908] ss:$16 sps:$4 sm:$0xff]   ;;  %v10133_v56 = vld [vmem:[%s13752_s1 + $0x1924] ss:$16 sps:$4 sm:$0xff]  }
 0x2ec   :  { %6889 = vmatprep.subr.bf16.mxu0 %v10049_v47  ;;  %7545 = vmatprep.subr.bf16.mxu1 %v10052_v57  ;;  %v10136_v47 = vld [vmem:[%s13752_s1 + $0x192c] ss:$16 sps:$4 sm:$0xff]   ;;  %v10131_v57 = vld [vmem:[%s13752_s1 + $0x1920] ss:$16 sps:$4 sm:$0xff]  }
 0x2ef   :  { %6890 = vmatpush1.bf16.msra.mxu0 %v10047_v58  ;;  %7546 = vmatpush1.bf16.msra.mxu1 %v10050_v59  ;;  %v10134_v58 = vld [vmem:[%s13752_s1 + $0x1928] ss:$16 sps:$4 sm:$0xff]   ;;  %v10139_v59 = vld [vmem:[%s13752_s1 + $0x1944] ss:$16 sps:$4 sm:$0xff]  }
 0x2f0   :  { %6891 = vmatprep.subr.bf16.mxu0 %v10055_v48  ;;  %7547 = vmatprep.subr.bf16.mxu1 %v10058_v61  ;;  %v10142_v48 = vld [vmem:[%s13752_s1 + $0x194c] ss:$16 sps:$4 sm:$0xff]   ;;  %v10137_v61 = vld [vmem:[%s13752_s1 + $0x1940] ss:$16 sps:$4 sm:$0xff]  }
 0x2f3   :  { %6892 = vmatpush1.bf16.msra.mxu0 %v10053_v63  ;;  %7548 = vmatpush1.bf16.msra.mxu1 %v10056_v44  ;;  %v10140_v63 = vld [vmem:[%s13752_s1 + $0x1948] ss:$16 sps:$4 sm:$0xff]   ;;  %v10145_v44 = vld [vmem:[%s13752_s1 + $0x1964] ss:$16 sps:$4 sm:$0xff]  }
 0x2f4   :  { %6893 = vmatprep.subr.bf16.mxu0 %v10061_v1  ;;  %7549 = vmatprep.subr.bf16.mxu1 %v10064_v51  ;;  %v10148_v1 = vld [vmem:[%s13752_s1 + $0x196c] ss:$16 sps:$4 sm:$0xff]   ;;  %v10143_v51 = vld [vmem:[%s13752_s1 + $0x1960] ss:$16 sps:$4 sm:$0xff]  }
 0x2f7   :  { %6894 = vmatpush1.bf16.msra.mxu0 %v10059_v2  ;;  %7550 = vmatpush1.bf16.msra.mxu1 %v10062_v3  ;;  %v10146_v2 = vld [vmem:[%s13752_s1 + $0x1968] ss:$16 sps:$4 sm:$0xff]   ;;  %v10151_v3 = vld [vmem:[%s13752_s1 + $0x1984] ss:$16 sps:$4 sm:$0xff]  }
 0x2f8   :  { %6895 = vmatprep.subr.bf16.mxu0 %v10067_v4  ;;  %7551 = vmatprep.subr.bf16.mxu1 %v10070_v60  ;;  %v10154_v4 = vld [vmem:[%s13752_s1 + $0x198c] ss:$16 sps:$4 sm:$0xff]   ;;  %v10149_v60 = vld [vmem:[%s13752_s1 + $0x1980] ss:$16 sps:$4 sm:$0xff]  }
 0x2fb   :  { %6896 = vmatpush1.bf16.msra.mxu0 %v10065_v6  ;;  %7552 = vmatpush1.bf16.msra.mxu1 %v10068_v7  ;;  %v10152_v6 = vld [vmem:[%s13752_s1 + $0x1988] ss:$16 sps:$4 sm:$0xff]   ;;  %v10157_v7 = vld [vmem:[%s13752_s1 + $0x19a4] ss:$16 sps:$4 sm:$0xff]  }
 0x2fc   :  { %6897 = vmatprep.subr.bf16.mxu0 %v10073_v62  ;;  %7553 = vmatprep.subr.bf16.mxu1 %v10076_v10  ;;  %v10160_v62 = vld [vmem:[%s13752_s1 + $0x19ac] ss:$16 sps:$4 sm:$0xff]   ;;  %v10155_v10 = vld [vmem:[%s13752_s1 + $0x19a0] ss:$16 sps:$4 sm:$0xff]  }
 0x2ff   :  { %6898 = vmatpush1.bf16.msra.mxu0 %v10071_v12  ;;  %7554 = vmatpush1.bf16.msra.mxu1 %v10074_v0  ;;  %v10158_v12 = vld [vmem:[%s13752_s1 + $0x19a8] ss:$16 sps:$4 sm:$0xff]   ;;  %v10163_v0 = vld [vmem:[%s13752_s1 + $0x19c4] ss:$16 sps:$4 sm:$0xff]  }
 0x300   :  { %6908 = vmatprep.subr.bf16.mxu0 %v10079_v52  ;;  %7564 = vmatprep.subr.bf16.mxu1 %v10082_v15  ;;  %v10166_v52 = vld [vmem:[%s13752_s1 + $0x19cc] ss:$16 sps:$4 sm:$0xff]   ;;  %v10161_v15 = vld [vmem:[%s13752_s1 + $0x19c0] ss:$16 sps:$4 sm:$0xff]  }
 0x302   :  { %6900 = vmatmul.mubr.bf16.vlgmr.msra.gmra.mrb[0].mxu0 %v1212_v8  ;;  %7556 = vmatmul.mubr.bf16.vlgmr.msra.gmra.mrb[0].mxu1 %v1212_v8  ;;  %v10169_v8 = vld [vmem:[%s13752_s1 + $0x19e4] ss:$16 sps:$4 sm:$0xff]  }
 0x303   :  { %6909 = vmatpush1.bf16.msra.mxu0 %v10077_v17  ;;  %7565 = vmatpush1.bf16.msra.mxu1 %v10080_v18  ;;  %v10172_v17 = vld [vmem:[%s13752_s1 + $0x19ec] ss:$16 sps:$4 sm:$0xff]   ;;  %v10167_v18 = vld [vmem:[%s13752_s1 + $0x19e0] ss:$16 sps:$4 sm:$0xff]  }
 0x304   :  { %6910 = vmatprep.subr.bf16.mxu0 %v10085_v19  ;;  %7566 = vmatprep.subr.bf16.mxu1 %v10088_v9  ;;  %v10170_v19 = vld [vmem:[%s13752_s1 + $0x19e8] ss:$16 sps:$4 sm:$0xff]   ;;  %v10175_v9 = vld [vmem:[%s13752_s1 + $0x1a04] ss:$16 sps:$4 sm:$0xff]  }
 0x305   :  { %6940 = vmatprep.mubr.bf16.mxu0 %v12954_v20  ;;  %7596 = vmatprep.mubr.bf16.mxu1 %v12954_v20 }
 0x307   :  { %6911 = vmatpush1.bf16.msra.mxu0 %v10083_v22  ;;  %7567 = vmatpush1.bf16.msra.mxu1 %v10086_v23  ;;  %v10178_v22 = vld [vmem:[%s13752_s1 + $0x1a0c] ss:$16 sps:$4 sm:$0xff]   ;;  %v13140_v23 = vrot.slane %v12923_v11, %v10620_v49 }
 0x308   :  { %6912 = vmatprep.subr.bf16.mxu0 %v10091_v24  ;;  %7568 = vmatprep.subr.bf16.mxu1 %v10094_v13  ;;  %v10173_v24 = vld [vmem:[%s13752_s1 + $0x1a00] ss:$16 sps:$4 sm:$0xff]   ;;  %v10176_v13 = vld [vmem:[%s13752_s1 + $0x1a08] ss:$16 sps:$4 sm:$0xff]   ;;  %v10184_v11 = vld [vmem:[%s13752_s1 + $0x1a2c] ss:$16 sps:$4 sm:$0xff]  }
 0x30b   :  { %6913 = vmatpush1.bf16.msra.mxu0 %v10089_v27  ;;  %7569 = vmatpush1.bf16.msra.mxu1 %v10092_v28  ;;  %v10181_v27 = vld [vmem:[%s13752_s1 + $0x1a24] ss:$16 sps:$4 sm:$0xff]   ;;  %v1262_v28 = vcombine.high %v12954_v20, %v12954_v20 }
 0x30c   :  { %6914 = vmatprep.subr.bf16.mxu0 %v10097_v29  ;;  %7570 = vmatprep.subr.bf16.mxu1 %v10100_v14  ;;  %v10179_v29 = vld [vmem:[%s13752_s1 + $0x1a20] ss:$16 sps:$4 sm:$0xff]   ;;  %v10182_v14 = vld [vmem:[%s13752_s1 + $0x1a28] ss:$16 sps:$4 sm:$0xff]   ;;  %v10187_v20 = vld [vmem:[%s13752_s1 + $0x1a44] ss:$16 sps:$4 sm:$0xff]  }
 0x30f   :  { %6915 = vmatpush1.bf16.msra.mxu0 %v10095_v30  ;;  %7571 = vmatpush1.bf16.msra.mxu1 %v10098_v31  ;;  %v10190_v30 = vld [vmem:[%s13752_s1 + $0x1a4c] ss:$16 sps:$4 sm:$0xff]   ;;  %v10185_v31 = vld [vmem:[%s13752_s1 + $0x1a40] ss:$16 sps:$4 sm:$0xff]  }
 0x310   :  { %6916 = vmatprep.subr.bf16.mxu0 %v10103_v25  ;;  %7572 = vmatprep.subr.bf16.mxu1 %v10106_v32  ;;  %v10188_v25 = vld [vmem:[%s13752_s1 + $0x1a48] ss:$16 sps:$4 sm:$0xff]   ;;  %v10193_v32 = vld [vmem:[%s13752_s1 + $0x1a64] ss:$16 sps:$4 sm:$0xff]  }
 0x313   :  { %6917 = vmatpush1.bf16.msra.mxu0 %v10101_v33  ;;  %7573 = vmatpush1.bf16.msra.mxu1 %v10104_v26  ;;  %v10196_v33 = vld [vmem:[%s13752_s1 + $0x1a6c] ss:$16 sps:$4 sm:$0xff]   ;;  %v10191_v26 = vld [vmem:[%s13752_s1 + $0x1a60] ss:$16 sps:$4 sm:$0xff]  }
 0x314   :  { %6918 = vmatprep.subr.bf16.mxu0 %v10109_v36  ;;  %7574 = vmatprep.subr.bf16.mxu1 %v10112_v37  ;;  %v10194_v36 = vld [vmem:[%s13752_s1 + $0x1a68] ss:$16 sps:$4 sm:$0xff]   ;;  %v10199_v37 = vld [vmem:[%s13752_s1 + $0x1a84] ss:$16 sps:$4 sm:$0xff]  }
 0x317   :  { %6919 = vmatpush1.bf16.msra.mxu0 %v10107_v21  ;;  %7575 = vmatpush1.bf16.msra.mxu1 %v10110_v39  ;;  %v10202_v21 = vld [vmem:[%s13752_s1 + $0x1a8c] ss:$16 sps:$4 sm:$0xff]   ;;  %v10197_v39 = vld [vmem:[%s13752_s1 + $0x1a80] ss:$16 sps:$4 sm:$0xff]  }
 0x318   :  { %6920 = vmatprep.subr.bf16.mxu0 %v10115_v40  ;;  %7576 = vmatprep.subr.bf16.mxu1 %v10118_v41  ;;  %v10200_v40 = vld [vmem:[%s13752_s1 + $0x1a88] ss:$16 sps:$4 sm:$0xff]   ;;  %v10205_v41 = vld [vmem:[%s13752_s1 + $0x1aa4] ss:$16 sps:$4 sm:$0xff]  }
 0x31b   :  { %6921 = vmatpush1.bf16.msra.mxu0 %v10113_v34  ;;  %7577 = vmatpush1.bf16.msra.mxu1 %v10116_v43  ;;  %v10208_v34 = vld [vmem:[%s13752_s1 + $0x1aac] ss:$16 sps:$4 sm:$0xff]   ;;  %v10203_v43 = vld [vmem:[%s13752_s1 + $0x1aa0] ss:$16 sps:$4 sm:$0xff]  }
 0x31c   :  { %6922 = vmatprep.subr.bf16.mxu0 %v10121_v45  ;;  %7578 = vmatprep.subr.bf16.mxu1 %v10124_v46  ;;  %v10206_v45 = vld [vmem:[%s13752_s1 + $0x1aa8] ss:$16 sps:$4 sm:$0xff]   ;;  %v10211_v46 = vld [vmem:[%s13752_s1 + $0x1ac4] ss:$16 sps:$4 sm:$0xff]  }
 0x31f   :  { %6923 = vmatpush1.bf16.msra.mxu0 %v10119_v35  ;;  %7579 = vmatpush1.bf16.msra.mxu1 %v10122_v50  ;;  %v10214_v35 = vld [vmem:[%s13752_s1 + $0x1acc] ss:$16 sps:$4 sm:$0xff]   ;;  %v10209_v50 = vld [vmem:[%s13752_s1 + $0x1ac0] ss:$16 sps:$4 sm:$0xff]  }
 0x320   :  { %6924 = vmatprep.subr.bf16.mxu0 %v10127_v53  ;;  %7580 = vmatprep.subr.bf16.mxu1 %v10130_v38  ;;  %v10212_v53 = vld [vmem:[%s13752_s1 + $0x1ac8] ss:$16 sps:$4 sm:$0xff]   ;;  %v10217_v38 = vld [vmem:[%s13752_s1 + $0x1ae4] ss:$16 sps:$4 sm:$0xff]  }
 0x323   :  { %6925 = vmatpush1.bf16.msra.mxu0 %v10125_v54  ;;  %7581 = vmatpush1.bf16.msra.mxu1 %v10128_v55  ;;  %v10220_v54 = vld [vmem:[%s13752_s1 + $0x1aec] ss:$16 sps:$4 sm:$0xff]   ;;  %v10215_v55 = vld [vmem:[%s13752_s1 + $0x1ae0] ss:$16 sps:$4 sm:$0xff]  }
 0x324   :  { %6926 = vmatprep.subr.bf16.mxu0 %v10133_v56  ;;  %7582 = vmatprep.subr.bf16.mxu1 %v10136_v47  ;;  %v10218_v56 = vld [vmem:[%s13752_s1 + $0x1ae8] ss:$16 sps:$4 sm:$0xff]   ;;  %v10223_v47 = vld [vmem:[%s13752_s1 + $0x1b04] ss:$16 sps:$4 sm:$0xff]  }
 0x327   :  { %6927 = vmatpush1.bf16.msra.mxu0 %v10131_v57  ;;  %7583 = vmatpush1.bf16.msra.mxu1 %v10134_v58  ;;  %v10226_v57 = vld [vmem:[%s13752_s1 + $0x1b0c] ss:$16 sps:$4 sm:$0xff]   ;;  %v10221_v58 = vld [vmem:[%s13752_s1 + $0x1b00] ss:$16 sps:$4 sm:$0xff]  }
 0x328   :  { %6928 = vmatprep.subr.bf16.mxu0 %v10139_v59  ;;  %7584 = vmatprep.subr.bf16.mxu1 %v10142_v48  ;;  %v10224_v59 = vld [vmem:[%s13752_s1 + $0x1b08] ss:$16 sps:$4 sm:$0xff]   ;;  %v10229_v48 = vld [vmem:[%s13752_s1 + $0x1b24] ss:$16 sps:$4 sm:$0xff]  }
 0x32b   :  { %6929 = vmatpush1.bf16.msra.mxu0 %v10137_v61  ;;  %7585 = vmatpush1.bf16.msra.mxu1 %v10140_v63  ;;  %v10232_v61 = vld [vmem:[%s13752_s1 + $0x1b2c] ss:$16 sps:$4 sm:$0xff]   ;;  %v10227_v63 = vld [vmem:[%s13752_s1 + $0x1b20] ss:$16 sps:$4 sm:$0xff]  }
 0x32c   :  { %6930 = vmatprep.subr.bf16.mxu0 %v10145_v44  ;;  %7586 = vmatprep.subr.bf16.mxu1 %v10148_v1  ;;  %v10230_v44 = vld [vmem:[%s13752_s1 + $0x1b28] ss:$16 sps:$4 sm:$0xff]   ;;  %v10235_v1 = vld [vmem:[%s13752_s1 + $0x1b44] ss:$16 sps:$4 sm:$0xff]  }
 0x32f   :  { %6931 = vmatpush1.bf16.msra.mxu0 %v10143_v51  ;;  %7587 = vmatpush1.bf16.msra.mxu1 %v10146_v2  ;;  %v10238_v51 = vld [vmem:[%s13752_s1 + $0x1b4c] ss:$16 sps:$4 sm:$0xff]   ;;  %v10233_v2 = vld [vmem:[%s13752_s1 + $0x1b40] ss:$16 sps:$4 sm:$0xff]  }
 0x330   :  { %6932 = vmatprep.subr.bf16.mxu0 %v10151_v3  ;;  %7588 = vmatprep.subr.bf16.mxu1 %v10154_v4  ;;  %v10236_v3 = vld [vmem:[%s13752_s1 + $0x1b48] ss:$16 sps:$4 sm:$0xff]   ;;  %v10241_v4 = vld [vmem:[%s13752_s1 + $0x1b64] ss:$16 sps:$4 sm:$0xff]  }
 0x333   :  { %6933 = vmatpush1.bf16.msra.mxu0 %v10149_v60  ;;  %7589 = vmatpush1.bf16.msra.mxu1 %v10152_v6  ;;  %v10244_v60 = vld [vmem:[%s13752_s1 + $0x1b6c] ss:$16 sps:$4 sm:$0xff]   ;;  %v10239_v6 = vld [vmem:[%s13752_s1 + $0x1b60] ss:$16 sps:$4 sm:$0xff]  }
 0x334   :  { %6934 = vmatprep.subr.bf16.mxu0 %v10157_v7  ;;  %7590 = vmatprep.subr.bf16.mxu1 %v10160_v62  ;;  %v10242_v7 = vld [vmem:[%s13752_s1 + $0x1b68] ss:$16 sps:$4 sm:$0xff]   ;;  %v10247_v62 = vld [vmem:[%s13752_s1 + $0x1b84] ss:$16 sps:$4 sm:$0xff]  }
 0x337   :  { %6935 = vmatpush1.bf16.msra.mxu0 %v10155_v10  ;;  %7591 = vmatpush1.bf16.msra.mxu1 %v10158_v12  ;;  %v10250_v10 = vld [vmem:[%s13752_s1 + $0x1b8c] ss:$16 sps:$4 sm:$0xff]   ;;  %v10245_v12 = vld [vmem:[%s13752_s1 + $0x1b80] ss:$16 sps:$4 sm:$0xff]  }
 0x338   :  { %6936 = vmatprep.subr.bf16.mxu0 %v10163_v0  ;;  %7592 = vmatprep.subr.bf16.mxu1 %v10166_v52  ;;  %v10248_v0 = vld [vmem:[%s13752_s1 + $0x1b88] ss:$16 sps:$4 sm:$0xff]   ;;  %v10253_v52 = vld [vmem:[%s13752_s1 + $0x1ba4] ss:$16 sps:$4 sm:$0xff]  }
 0x33b   :  { %6937 = vmatpush1.bf16.msra.mxu0 %v10161_v15  ;;  %7593 = vmatpush1.bf16.msra.mxu1 %v10164_v16  ;;  %v10256_v15 = vld [vmem:[%s13752_s1 + $0x1bac] ss:$16 sps:$4 sm:$0xff]   ;;  %v10251_v16 = vld [vmem:[%s13752_s1 + $0x1ba0] ss:$16 sps:$4 sm:$0xff]  }
 0x33c   :  { %6938 = vmatprep.subr.bf16.mxu0 %v10169_v8  ;;  %7594 = vmatprep.subr.bf16.mxu1 %v10172_v17  ;;  %v10254_v8 = vld [vmem:[%s13752_s1 + $0x1ba8] ss:$16 sps:$4 sm:$0xff]   ;;  %v10259_v17 = vld [vmem:[%s13752_s1 + $0x1bc4] ss:$16 sps:$4 sm:$0xff]  }
 0x33f   :  { %6939 = vmatpush1.bf16.msra.mxu0 %v10167_v18  ;;  %7595 = vmatpush1.bf16.msra.mxu1 %v10170_v19  ;;  %v10262_v18 = vld [vmem:[%s13752_s1 + $0x1bcc] ss:$16 sps:$4 sm:$0xff]   ;;  %v1215_v19 = vcombine.high %v12907_v5, %v12907_v5 }
 0x340   :  { %6949 = vmatprep.subr.bf16.mxu0 %v10175_v9  ;;  %7605 = vmatprep.subr.bf16.mxu1 %v10178_v22  ;;  %v10257_v9 = vld [vmem:[%s13752_s1 + $0x1bc0] ss:$16 sps:$4 sm:$0xff]   ;;  %v10260_v22 = vld [vmem:[%s13752_s1 + $0x1bc8] ss:$16 sps:$4 sm:$0xff]   ;;  %v10268_v5 = vld [vmem:[%s13752_s1 + $0x1bec] ss:$16 sps:$4 sm:$0xff]  }
 0x342   :  { %6941 = vmatmul.mubr.bf16.vlgmr.msra.gmra.mrb[0].mxu0 %v13140_v23  ;;  %7597 = vmatmul.mubr.bf16.vlgmr.msra.gmra.mrb[0].mxu1 %v13140_v23 }
 0x343   :  { %6950 = vmatpush1.bf16.msra.mxu0 %v10173_v24  ;;  %7606 = vmatpush1.bf16.msra.mxu1 %v10176_v13  ;;  %v10265_v24 = vld [vmem:[%s13752_s1 + $0x1be4] ss:$16 sps:$4 sm:$0xff]   ;;  %v13329_v13 = vrot.slane %v1215_v19, %v10620_v49  ;;  %v10344_v19 = vld [vmem:[%s13752_s1 + $0x1d88] ss:$16 sps:$4 sm:$0xff]  }
 0x344   :  { %6951 = vmatprep.subr.bf16.mxu0 %v10181_v27  ;;  %7607 = vmatprep.subr.bf16.mxu1 %v10184_v11  ;;  %v10263_v27 = vld [vmem:[%s13752_s1 + $0x1be0] ss:$16 sps:$4 sm:$0xff]   ;;  %v10266_v11 = vld [vmem:[%s13752_s1 + $0x1be8] ss:$16 sps:$4 sm:$0xff]  }
 0x345   :  { %6981 = vmatprep.mubr.bf16.mxu0 %v1262_v28  ;;  %7637 = vmatprep.mubr.bf16.mxu1 %v1262_v28  ;;  %v10271_v28 = vld [vmem:[%s13752_s1 + $0x1c04] ss:$16 sps:$4 sm:$0xff]  }
 0x347   :  { %6952 = vmatpush1.bf16.msra.mxu0 %v10179_v29  ;;  %7608 = vmatpush1.bf16.msra.mxu1 %v10182_v14  ;;  %v10274_v29 = vld [vmem:[%s13752_s1 + $0x1c0c] ss:$16 sps:$4 sm:$0xff]   ;;  %v1231_v14 = vcombine.high %v13329_v13, %v13329_v13 }
 0x348   :  { %6953 = vmatprep.subr.bf16.mxu0 %v10187_v20  ;;  %7609 = vmatprep.subr.bf16.mxu1 %v10190_v30  ;;  %v1260_v20 = vcombine.high %v13140_v23, %v13140_v23  ;;  %v10269_v30 = vld [vmem:[%s13752_s1 + $0x1c00] ss:$16 sps:$4 sm:$0xff]   ;;  %v10280_v23 = vld [vmem:[%s13752_s1 + $0x1c2c] ss:$16 sps:$4 sm:$0xff]  }
 0x34b   :  { %6954 = vmatpush1.bf16.msra.mxu0 %v10185_v31  ;;  %7610 = vmatpush1.bf16.msra.mxu1 %v10188_v25  ;;  %v10272_v31 = vld [vmem:[%s13752_s1 + $0x1c08] ss:$16 sps:$4 sm:$0xff]   ;;  %v10277_v25 = vld [vmem:[%s13752_s1 + $0x1c24] ss:$16 sps:$4 sm:$0xff]  }
 0x34c   :  { %6955 = vmatprep.subr.bf16.mxu0 %v10193_v32  ;;  %7611 = vmatprep.subr.bf16.mxu1 %v10196_v33  ;;  %v13360_v32 = vrot.slane %v1231_v14, %v10620_v49  ;;  %v10275_v33 = vld [vmem:[%s13752_s1 + $0x1c20] ss:$16 sps:$4 sm:$0xff]   ;;  %v10361_v14 = vld [vmem:[%s13752_s1 + $0x1de4] ss:$16 sps:$4 sm:$0xff]  }
 0x34f   :  { %6956 = vmatpush1.bf16.msra.mxu0 %v10191_v26  ;;  %7612 = vmatpush1.bf16.msra.mxu1 %v10194_v36  ;;  %v10278_v26 = vld [vmem:[%s13752_s1 + $0x1c28] ss:$16 sps:$4 sm:$0xff]   ;;  %v10283_v36 = vld [vmem:[%s13752_s1 + $0x1c44] ss:$16 sps:$4 sm:$0xff]  }
 0x350   :  { %6957 = vmatprep.subr.bf16.mxu0 %v10199_v37  ;;  %7613 = vmatprep.subr.bf16.mxu1 %v10202_v21  ;;  %v10286_v37 = vld [vmem:[%s13752_s1 + $0x1c4c] ss:$16 sps:$4 sm:$0xff]   ;;  %v10281_v21 = vld [vmem:[%s13752_s1 + $0x1c40] ss:$16 sps:$4 sm:$0xff]  }
 0x353   :  { %6958 = vmatpush1.bf16.msra.mxu0 %v10197_v39  ;;  %7614 = vmatpush1.bf16.msra.mxu1 %v10200_v40  ;;  %v10284_v39 = vld [vmem:[%s13752_s1 + $0x1c48] ss:$16 sps:$4 sm:$0xff]   ;;  %v10289_v40 = vld [vmem:[%s13752_s1 + $0x1c64] ss:$16 sps:$4 sm:$0xff]  }
 0x354   :  { %6959 = vmatprep.subr.bf16.mxu0 %v10205_v41  ;;  %7615 = vmatprep.subr.bf16.mxu1 %v10208_v34  ;;  %v10292_v41 = vld [vmem:[%s13752_s1 + $0x1c6c] ss:$16 sps:$4 sm:$0xff]   ;;  %v10287_v34 = vld [vmem:[%s13752_s1 + $0x1c60] ss:$16 sps:$4 sm:$0xff]  }
 0x357   :  { %6960 = vmatpush1.bf16.msra.mxu0 %v10203_v43  ;;  %7616 = vmatpush1.bf16.msra.mxu1 %v10206_v45  ;;  %v10290_v43 = vld [vmem:[%s13752_s1 + $0x1c68] ss:$16 sps:$4 sm:$0xff]   ;;  %v10295_v45 = vld [vmem:[%s13752_s1 + $0x1c84] ss:$16 sps:$4 sm:$0xff]  }
 0x358   :  { %6961 = vmatprep.subr.bf16.mxu0 %v10211_v46  ;;  %7617 = vmatprep.subr.bf16.mxu1 %v10214_v35  ;;  %v10298_v46 = vld [vmem:[%s13752_s1 + $0x1c8c] ss:$16 sps:$4 sm:$0xff]   ;;  %v10293_v35 = vld [vmem:[%s13752_s1 + $0x1c80] ss:$16 sps:$4 sm:$0xff]  }
 0x35b   :  { %6962 = vmatpush1.bf16.msra.mxu0 %v10209_v50  ;;  %7618 = vmatpush1.bf16.msra.mxu1 %v10212_v53  ;;  %v10296_v50 = vld [vmem:[%s13752_s1 + $0x1c88] ss:$16 sps:$4 sm:$0xff]   ;;  %v10301_v53 = vld [vmem:[%s13752_s1 + $0x1ca4] ss:$16 sps:$4 sm:$0xff]  }
 0x35c   :  { %6963 = vmatprep.subr.bf16.mxu0 %v10217_v38  ;;  %7619 = vmatprep.subr.bf16.mxu1 %v10220_v54  ;;  %v10304_v38 = vld [vmem:[%s13752_s1 + $0x1cac] ss:$16 sps:$4 sm:$0xff]   ;;  %v10299_v54 = vld [vmem:[%s13752_s1 + $0x1ca0] ss:$16 sps:$4 sm:$0xff]  }
 0x35f   :  { %6964 = vmatpush1.bf16.msra.mxu0 %v10215_v55  ;;  %7620 = vmatpush1.bf16.msra.mxu1 %v10218_v56  ;;  %v10302_v55 = vld [vmem:[%s13752_s1 + $0x1ca8] ss:$16 sps:$4 sm:$0xff]   ;;  %v10307_v56 = vld [vmem:[%s13752_s1 + $0x1cc4] ss:$16 sps:$4 sm:$0xff]  }
 0x360   :  { %6965 = vmatprep.subr.bf16.mxu0 %v10223_v47  ;;  %7621 = vmatprep.subr.bf16.mxu1 %v10226_v57  ;;  %v10310_v47 = vld [vmem:[%s13752_s1 + $0x1ccc] ss:$16 sps:$4 sm:$0xff]   ;;  %v10305_v57 = vld [vmem:[%s13752_s1 + $0x1cc0] ss:$16 sps:$4 sm:$0xff]  }
 0x363   :  { %6966 = vmatpush1.bf16.msra.mxu0 %v10221_v58  ;;  %7622 = vmatpush1.bf16.msra.mxu1 %v10224_v59  ;;  %v10308_v58 = vld [vmem:[%s13752_s1 + $0x1cc8] ss:$16 sps:$4 sm:$0xff]   ;;  %v10313_v59 = vld [vmem:[%s13752_s1 + $0x1ce4] ss:$16 sps:$4 sm:$0xff]  }
 0x364   :  { %6967 = vmatprep.subr.bf16.mxu0 %v10229_v48  ;;  %7623 = vmatprep.subr.bf16.mxu1 %v10232_v61  ;;  %v10316_v48 = vld [vmem:[%s13752_s1 + $0x1cec] ss:$16 sps:$4 sm:$0xff]   ;;  %v10311_v61 = vld [vmem:[%s13752_s1 + $0x1ce0] ss:$16 sps:$4 sm:$0xff]  }
 0x367   :  { %6968 = vmatpush1.bf16.msra.mxu0 %v10227_v63  ;;  %7624 = vmatpush1.bf16.msra.mxu1 %v10230_v44  ;;  %v10314_v63 = vld [vmem:[%s13752_s1 + $0x1ce8] ss:$16 sps:$4 sm:$0xff]   ;;  %v10319_v44 = vld [vmem:[%s13752_s1 + $0x1d04] ss:$16 sps:$4 sm:$0xff]  }
 0x368   :  { %6969 = vmatprep.subr.bf16.mxu0 %v10235_v1  ;;  %7625 = vmatprep.subr.bf16.mxu1 %v10238_v51  ;;  %v10322_v1 = vld [vmem:[%s13752_s1 + $0x1d0c] ss:$16 sps:$4 sm:$0xff]   ;;  %v10317_v51 = vld [vmem:[%s13752_s1 + $0x1d00] ss:$16 sps:$4 sm:$0xff]  }
 0x36b   :  { %6970 = vmatpush1.bf16.msra.mxu0 %v10233_v2  ;;  %7626 = vmatpush1.bf16.msra.mxu1 %v10236_v3  ;;  %v10320_v2 = vld [vmem:[%s13752_s1 + $0x1d08] ss:$16 sps:$4 sm:$0xff]   ;;  %v10325_v3 = vld [vmem:[%s13752_s1 + $0x1d24] ss:$16 sps:$4 sm:$0xff]  }
 0x36c   :  { %6971 = vmatprep.subr.bf16.mxu0 %v10241_v4  ;;  %7627 = vmatprep.subr.bf16.mxu1 %v10244_v60  ;;  %v10328_v4 = vld [vmem:[%s13752_s1 + $0x1d2c] ss:$16 sps:$4 sm:$0xff]   ;;  %v10323_v60 = vld [vmem:[%s13752_s1 + $0x1d20] ss:$16 sps:$4 sm:$0xff]  }
 0x36f   :  { %6972 = vmatpush1.bf16.msra.mxu0 %v10239_v6  ;;  %7628 = vmatpush1.bf16.msra.mxu1 %v10242_v7  ;;  %v10326_v6 = vld [vmem:[%s13752_s1 + $0x1d28] ss:$16 sps:$4 sm:$0xff]   ;;  %v10331_v7 = vld [vmem:[%s13752_s1 + $0x1d44] ss:$16 sps:$4 sm:$0xff]  }
 0x370   :  { %6973 = vmatprep.subr.bf16.mxu0 %v10247_v62  ;;  %7629 = vmatprep.subr.bf16.mxu1 %v10250_v10  ;;  %v10334_v62 = vld [vmem:[%s13752_s1 + $0x1d4c] ss:$16 sps:$4 sm:$0xff]   ;;  %v10329_v10 = vld [vmem:[%s13752_s1 + $0x1d40] ss:$16 sps:$4 sm:$0xff]  }
 0x373   :  { %6974 = vmatpush1.bf16.msra.mxu0 %v10245_v12  ;;  %7630 = vmatpush1.bf16.msra.mxu1 %v10248_v0  ;;  %v10332_v12 = vld [vmem:[%s13752_s1 + $0x1d48] ss:$16 sps:$4 sm:$0xff]   ;;  %v10337_v0 = vld [vmem:[%s13752_s1 + $0x1d64] ss:$16 sps:$4 sm:$0xff]  }
 0x374   :  { %6975 = vmatprep.subr.bf16.mxu0 %v10253_v52  ;;  %7631 = vmatprep.subr.bf16.mxu1 %v10256_v15  ;;  %v10340_v52 = vld [vmem:[%s13752_s1 + $0x1d6c] ss:$16 sps:$4 sm:$0xff]   ;;  %v10335_v15 = vld [vmem:[%s13752_s1 + $0x1d60] ss:$16 sps:$4 sm:$0xff]  }
 0x377   :  { %6976 = vmatpush1.bf16.msra.mxu0 %v10251_v16  ;;  %7632 = vmatpush1.bf16.msra.mxu1 %v10254_v8  ;;  %v10338_v16 = vld [vmem:[%s13752_s1 + $0x1d68] ss:$16 sps:$4 sm:$0xff]   ;;  %v10343_v8 = vld [vmem:[%s13752_s1 + $0x1d84] ss:$16 sps:$4 sm:$0xff]  }
 0x378   :  { %6977 = vmatprep.subr.bf16.mxu0 %v10259_v17  ;;  %7633 = vmatprep.subr.bf16.mxu1 %v10262_v18  ;;  %v10346_v17 = vld [vmem:[%s13752_s1 + $0x1d8c] ss:$16 sps:$4 sm:$0xff]   ;;  %v10341_v18 = vld [vmem:[%s13752_s1 + $0x1d80] ss:$16 sps:$4 sm:$0xff]  }
 0x37b   :  { %6978 = vmatpush1.bf16.msra.mxu0 %v10257_v9  ;;  %7634 = vmatpush1.bf16.msra.mxu1 %v10260_v22  ;;  %v10349_v9 = vld [vmem:[%s13752_s1 + $0x1da4] ss:$16 sps:$4 sm:$0xff]   ;;  %v10352_v22 = vld [vmem:[%s13752_s1 + $0x1dac] ss:$16 sps:$4 sm:$0xff]  }
 0x37c   :  { %6979 = vmatprep.subr.bf16.mxu0 %v10265_v24  ;;  %7635 = vmatprep.subr.bf16.mxu1 %v10268_v5  ;;  %v10347_v24 = vld [vmem:[%s13752_s1 + $0x1da0] ss:$16 sps:$4 sm:$0xff]   ;;  %v10350_v5 = vld [vmem:[%s13752_s1 + $0x1da8] ss:$16 sps:$4 sm:$0xff]  }
 0x37f   :  { %6980 = vmatpush1.bf16.msra.mxu0 %v10263_v27  ;;  %7636 = vmatpush1.bf16.msra.mxu1 %v10266_v11  ;;  %v10355_v27 = vld [vmem:[%s13752_s1 + $0x1dc4] ss:$16 sps:$4 sm:$0xff]   ;;  %v10358_v11 = vld [vmem:[%s13752_s1 + $0x1dcc] ss:$16 sps:$4 sm:$0xff]  }
 0x380   :  { %6990 = vmatprep.subr.bf16.mxu0 %v10271_v28  ;;  %7646 = vmatprep.subr.bf16.mxu1 %v10274_v29  ;;  %v10353_v28 = vld [vmem:[%s13752_s1 + $0x1dc0] ss:$16 sps:$4 sm:$0xff]   ;;  %v10356_v29 = vld [vmem:[%s13752_s1 + $0x1dc8] ss:$16 sps:$4 sm:$0xff]  }
 0x382   :  { %6982 = vmatmul.mubr.bf16.vlgmr.msra.gmra.mrb[0].mxu0 %v1260_v20  ;;  %7638 = vmatmul.mubr.bf16.vlgmr.msra.gmra.mrb[0].mxu1 %v1260_v20  ;;  %v10364_v20 = vld [vmem:[%s13752_s1 + $0x1dec] ss:$16 sps:$4 sm:$0xff]  }
 0x383   :  { %6991 = vmatpush1.bf16.msra.mxu0 %v10269_v30  ;;  %7647 = vmatpush1.bf16.msra.mxu1 %v10272_v31  ;;  %v10359_v30 = vld [vmem:[%s13752_s1 + $0x1de0] ss:$16 sps:$4 sm:$0xff]   ;;  %v10362_v31 = vld [vmem:[%s13752_s1 + $0x1de8] ss:$16 sps:$4 sm:$0xff]  }
 0x384   :  { %6992 = vmatprep.subr.bf16.mxu0 %v10277_v25  ;;  %7648 = vmatprep.subr.bf16.mxu1 %v10280_v23  ;;  %v10368_v25 = vld [vmem:[%s13752_s1 + $0x1e04] ss:$16 sps:$4 sm:$0xff]   ;;  %v10371_v23 = vld [vmem:[%s13752_s1 + $0x1e0c] ss:$16 sps:$4 sm:$0xff]  }
 0x385   :  { %7022 = vmatprep.mubr.bf16.mxu0 %v13360_v32  ;;  %7678 = vmatprep.mubr.bf16.mxu1 %v13360_v32 }
 0x387   :  { %6993 = vmatpush1.bf16.msra.mxu0 %v10275_v33  ;;  %7649 = vmatpush1.bf16.msra.mxu1 %v10278_v26  ;;  %v13546_v33 = vrot.slane %v13329_v13, %v10620_v49  ;;  %v10366_v26 = vld [vmem:[%s13752_s1 + $0x1e00] ss:$16 sps:$4 sm:$0xff]   ;;  %v10377_v13 = vld [vmem:[%s13752_s1 + $0x1e2c] ss:$16 sps:$4 sm:$0xff]  }
 0x388   :  { %6994 = vmatprep.subr.bf16.mxu0 %v10283_v36  ;;  %7650 = vmatprep.subr.bf16.mxu1 %v10286_v37  ;;  %v10369_v36 = vld [vmem:[%s13752_s1 + $0x1e08] ss:$16 sps:$4 sm:$0xff]   ;;  %v10374_v37 = vld [vmem:[%s13752_s1 + $0x1e24] ss:$16 sps:$4 sm:$0xff]  }
 0x38b   :  { %6995 = vmatpush1.bf16.msra.mxu0 %v10281_v21  ;;  %7651 = vmatpush1.bf16.msra.mxu1 %v10284_v39  ;;  %v1263_v21 = vcombine.high %v13360_v32, %v13360_v32  ;;  %v10372_v39 = vld [vmem:[%s13752_s1 + $0x1e20] ss:$16 sps:$4 sm:$0xff]   ;;  %v10380_v32 = vld [vmem:[%s13752_s1 + $0x1e44] ss:$16 sps:$4 sm:$0xff]  }
 0x38c   :  { %6996 = vmatprep.subr.bf16.mxu0 %v10289_v40  ;;  %7652 = vmatprep.subr.bf16.mxu1 %v10292_v41  ;;  %v10375_v40 = vld [vmem:[%s13752_s1 + $0x1e28] ss:$16 sps:$4 sm:$0xff]   ;;  %v10383_v41 = vld [vmem:[%s13752_s1 + $0x1e4c] ss:$16 sps:$4 sm:$0xff]  }
 0x38f   :  { %6997 = vmatpush1.bf16.msra.mxu0 %v10287_v34  ;;  %7653 = vmatpush1.bf16.msra.mxu1 %v10290_v43  ;;  %v10378_v34 = vld [vmem:[%s13752_s1 + $0x1e40] ss:$16 sps:$4 sm:$0xff]   ;;  %v10381_v43 = vld [vmem:[%s13752_s1 + $0x1e48] ss:$16 sps:$4 sm:$0xff]  }
 0x390   :  { %6998 = vmatprep.subr.bf16.mxu0 %v10295_v45  ;;  %7654 = vmatprep.subr.bf16.mxu1 %v10298_v46  ;;  %v10386_v45 = vld [vmem:[%s13752_s1 + $0x1e64] ss:$16 sps:$4 sm:$0xff]   ;;  %v10389_v46 = vld [vmem:[%s13752_s1 + $0x1e6c] ss:$16 sps:$4 sm:$0xff]  }
 0x393   :  { %6999 = vmatpush1.bf16.msra.mxu0 %v10293_v35  ;;  %7655 = vmatpush1.bf16.msra.mxu1 %v10296_v50  ;;  %v10384_v35 = vld [vmem:[%s13752_s1 + $0x1e60] ss:$16 sps:$4 sm:$0xff]   ;;  %v10387_v50 = vld [vmem:[%s13752_s1 + $0x1e68] ss:$16 sps:$4 sm:$0xff]  }
 0x394   :  { %7000 = vmatprep.subr.bf16.mxu0 %v10301_v53  ;;  %7656 = vmatprep.subr.bf16.mxu1 %v10304_v38  ;;  %v10392_v53 = vld [vmem:[%s13752_s1 + $0x1e84] ss:$16 sps:$4 sm:$0xff]   ;;  %v10395_v38 = vld [vmem:[%s13752_s1 + $0x1e8c] ss:$16 sps:$4 sm:$0xff]  }
 0x397   :  { %7001 = vmatpush1.bf16.msra.mxu0 %v10299_v54  ;;  %7657 = vmatpush1.bf16.msra.mxu1 %v10302_v55  ;;  %v10390_v54 = vld [vmem:[%s13752_s1 + $0x1e80] ss:$16 sps:$4 sm:$0xff]   ;;  %v10393_v55 = vld [vmem:[%s13752_s1 + $0x1e88] ss:$16 sps:$4 sm:$0xff]  }
 0x398   :  { %7002 = vmatprep.subr.bf16.mxu0 %v10307_v56  ;;  %7658 = vmatprep.subr.bf16.mxu1 %v10310_v47  ;;  %v10398_v56 = vld [vmem:[%s13752_s1 + $0x1ea4] ss:$16 sps:$4 sm:$0xff]   ;;  %v10401_v47 = vld [vmem:[%s13752_s1 + $0x1eac] ss:$16 sps:$4 sm:$0xff]  }
 0x39b   :  { %7003 = vmatpush1.bf16.msra.mxu0 %v10305_v57  ;;  %7659 = vmatpush1.bf16.msra.mxu1 %v10308_v58  ;;  %v10396_v57 = vld [vmem:[%s13752_s1 + $0x1ea0] ss:$16 sps:$4 sm:$0xff]   ;;  %v10399_v58 = vld [vmem:[%s13752_s1 + $0x1ea8] ss:$16 sps:$4 sm:$0xff]  }
 0x39c   :  { %7004 = vmatprep.subr.bf16.mxu0 %v10313_v59  ;;  %7660 = vmatprep.subr.bf16.mxu1 %v10316_v48  ;;  %v10404_v59 = vld [vmem:[%s13752_s1 + $0x1ec4] ss:$16 sps:$4 sm:$0xff]   ;;  %v10407_v48 = vld [vmem:[%s13752_s1 + $0x1ecc] ss:$16 sps:$4 sm:$0xff]  }
 0x39f   :  { %7005 = vmatpush1.bf16.msra.mxu0 %v10311_v61  ;;  %7661 = vmatpush1.bf16.msra.mxu1 %v10314_v63  ;;  %v10402_v61 = vld [vmem:[%s13752_s1 + $0x1ec0] ss:$16 sps:$4 sm:$0xff]   ;;  %v10405_v63 = vld [vmem:[%s13752_s1 + $0x1ec8] ss:$16 sps:$4 sm:$0xff]  }
 0x3a0   :  { %7006 = vmatprep.subr.bf16.mxu0 %v10319_v44  ;;  %7662 = vmatprep.subr.bf16.mxu1 %v10322_v1  ;;  %v10410_v44 = vld [vmem:[%s13752_s1 + $0x1ee4] ss:$16 sps:$4 sm:$0xff]   ;;  %v10413_v1 = vld [vmem:[%s13752_s1 + $0x1eec] ss:$16 sps:$4 sm:$0xff]  }
 0x3a3   :  { %7007 = vmatpush1.bf16.msra.mxu0 %v10317_v51  ;;  %7663 = vmatpush1.bf16.msra.mxu1 %v10320_v2  ;;  %v10408_v51 = vld [vmem:[%s13752_s1 + $0x1ee0] ss:$16 sps:$4 sm:$0xff]   ;;  %v10411_v2 = vld [vmem:[%s13752_s1 + $0x1ee8] ss:$16 sps:$4 sm:$0xff]  }
 0x3a4   :  { %7008 = vmatprep.subr.bf16.mxu0 %v10325_v3  ;;  %7664 = vmatprep.subr.bf16.mxu1 %v10328_v4  ;;  %v10416_v3 = vld [vmem:[%s13752_s1 + $0x1f04] ss:$16 sps:$4 sm:$0xff]   ;;  %v10419_v4 = vld [vmem:[%s13752_s1 + $0x1f0c] ss:$16 sps:$4 sm:$0xff]  }
 0x3a7   :  { %7009 = vmatpush1.bf16.msra.mxu0 %v10323_v60  ;;  %7665 = vmatpush1.bf16.msra.mxu1 %v10326_v6  ;;  %v10414_v60 = vld [vmem:[%s13752_s1 + $0x1f00] ss:$16 sps:$4 sm:$0xff]   ;;  %v10417_v6 = vld [vmem:[%s13752_s1 + $0x1f08] ss:$16 sps:$4 sm:$0xff]  }
 0x3a8   :  { %7010 = vmatprep.subr.bf16.mxu0 %v10331_v7  ;;  %7666 = vmatprep.subr.bf16.mxu1 %v10334_v62  ;;  %v10422_v7 = vld [vmem:[%s13752_s1 + $0x1f24] ss:$16 sps:$4 sm:$0xff]   ;;  %v10425_v62 = vld [vmem:[%s13752_s1 + $0x1f2c] ss:$16 sps:$4 sm:$0xff]  }
 0x3ab   :  { %7011 = vmatpush1.bf16.msra.mxu0 %v10329_v10  ;;  %7667 = vmatpush1.bf16.msra.mxu1 %v10332_v12  ;;  %v10420_v10 = vld [vmem:[%s13752_s1 + $0x1f20] ss:$16 sps:$4 sm:$0xff]   ;;  %v10423_v12 = vld [vmem:[%s13752_s1 + $0x1f28] ss:$16 sps:$4 sm:$0xff]  }
 0x3ac   :  { %7012 = vmatprep.subr.bf16.mxu0 %v10337_v0  ;;  %7668 = vmatprep.subr.bf16.mxu1 %v10340_v52  ;;  %v10428_v0 = vld [vmem:[%s13752_s1 + $0x1f44] ss:$16 sps:$4 sm:$0xff]   ;;  %v10431_v52 = vld [vmem:[%s13752_s1 + $0x1f4c] ss:$16 sps:$4 sm:$0xff]  }
 0x3af   :  { %7013 = vmatpush1.bf16.msra.mxu0 %v10335_v15  ;;  %7669 = vmatpush1.bf16.msra.mxu1 %v10338_v16  ;;  %v10426_v15 = vld [vmem:[%s13752_s1 + $0x1f40] ss:$16 sps:$4 sm:$0xff]   ;;  %v10429_v16 = vld [vmem:[%s13752_s1 + $0x1f48] ss:$16 sps:$4 sm:$0xff]  }
 0x3b0   :  { %7014 = vmatprep.subr.bf16.mxu0 %v10343_v8  ;;  %7670 = vmatprep.subr.bf16.mxu1 %v10346_v17  ;;  %v10434_v8 = vld [vmem:[%s13752_s1 + $0x1f64] ss:$16 sps:$4 sm:$0xff]   ;;  %v10437_v17 = vld [vmem:[%s13752_s1 + $0x1f6c] ss:$16 sps:$4 sm:$0xff]  }
 0x3b3   :  { %7015 = vmatpush1.bf16.msra.mxu0 %v10341_v18  ;;  %7671 = vmatpush1.bf16.msra.mxu1 %v10344_v19  ;;  %v10432_v18 = vld [vmem:[%s13752_s1 + $0x1f60] ss:$16 sps:$4 sm:$0xff]   ;;  %v10435_v19 = vld [vmem:[%s13752_s1 + $0x1f68] ss:$16 sps:$4 sm:$0xff]  }
 0x3b4   :  { %7016 = vmatprep.subr.bf16.mxu0 %v10349_v9  ;;  %7672 = vmatprep.subr.bf16.mxu1 %v10352_v22  ;;  %v10440_v9 = vld [vmem:[%s13752_s1 + $0x1f84] ss:$16 sps:$4 sm:$0xff]   ;;  %v10443_v22 = vld [vmem:[%s13752_s1 + $0x1f8c] ss:$16 sps:$4 sm:$0xff]  }
 0x3b7   :  { %7017 = vmatpush1.bf16.msra.mxu0 %v10347_v24  ;;  %7673 = vmatpush1.bf16.msra.mxu1 %v10350_v5  ;;  %v10438_v24 = vld [vmem:[%s13752_s1 + $0x1f80] ss:$16 sps:$4 sm:$0xff]   ;;  %v10441_v5 = vld [vmem:[%s13752_s1 + $0x1f88] ss:$16 sps:$4 sm:$0xff]  }
 0x3b8   :  { %7018 = vmatprep.subr.bf16.mxu0 %v10355_v27  ;;  %7674 = vmatprep.subr.bf16.mxu1 %v10358_v11  ;;  %v10446_v27 = vld [vmem:[%s13752_s1 + $0x1fa4] ss:$16 sps:$4 sm:$0xff]   ;;  %v10449_v11 = vld [vmem:[%s13752_s1 + $0x1fac] ss:$16 sps:$4 sm:$0xff]  }
 0x3bb   :  { %7019 = vmatpush1.bf16.msra.mxu0 %v10353_v28  ;;  %7675 = vmatpush1.bf16.msra.mxu1 %v10356_v29  ;;  %v10444_v28 = vld [vmem:[%s13752_s1 + $0x1fa0] ss:$16 sps:$4 sm:$0xff]   ;;  %v10447_v29 = vld [vmem:[%s13752_s1 + $0x1fa8] ss:$16 sps:$4 sm:$0xff]  }
 0x3bc   :  { %7020 = vmatprep.subr.bf16.mxu0 %v10361_v14  ;;  %7676 = vmatprep.subr.bf16.mxu1 %v10364_v20  ;;  %v10452_v14 = vld [vmem:[%s13752_s1 + $0x1fc4] ss:$16 sps:$4 sm:$0xff]   ;;  %v10455_v20 = vld [vmem:[%s13752_s1 + $0x1fcc] ss:$16 sps:$4 sm:$0xff]  }
 0x3bf   :  { %7021 = vmatpush1.bf16.msra.mxu0 %v10359_v30  ;;  %7677 = vmatpush1.bf16.msra.mxu1 %v10362_v31  ;;  %v10450_v30 = vld [vmem:[%s13752_s1 + $0x1fc0] ss:$16 sps:$4 sm:$0xff]   ;;  %v10453_v31 = vld [vmem:[%s13752_s1 + $0x1fc8] ss:$16 sps:$4 sm:$0xff]  }
 0x3c0   :  { %7031 = vmatprep.subr.bf16.mxu0 %v10368_v25  ;;  %7687 = vmatprep.subr.bf16.mxu1 %v10371_v23  ;;  %v10458_v25 = vld [vmem:[%s13752_s1 + $0x1fe4] ss:$16 sps:$4 sm:$0xff]   ;;  %v10461_v23 = vld [vmem:[%s13752_s1 + $0x1fec] ss:$16 sps:$4 sm:$0xff]  }
 0x3c2   :  { %7023 = vmatmul.mubr.bf16.vlgmr.msra.gmra.mrb[0].mxu0 %v13546_v33  ;;  %7679 = vmatmul.mubr.bf16.vlgmr.msra.gmra.mrb[0].mxu1 %v13546_v33 }
 0x3c3   :  { %7032 = vmatpush1.bf16.msra.mxu0 %v10366_v26  ;;  %7688 = vmatpush1.bf16.msra.mxu1 %v10369_v36  ;;  %v10456_v26 = vld [vmem:[%s13752_s1 + $0x1fe0] ss:$16 sps:$4 sm:$0xff]   ;;  %v10459_v36 = vld [vmem:[%s13752_s1 + $0x1fe8] ss:$16 sps:$4 sm:$0xff]  }
 0x3c4   :  { %7033 = vmatprep.subr.bf16.mxu0 %v10374_v37  ;;  %7689 = vmatprep.subr.bf16.mxu1 %v10377_v13  ;;  %v1261_v37 = vcombine.high %v13546_v33, %v13546_v33  ;;  %v1046_v13 = vsub.s32 0, %v10602_v42 }
 0x3c5   :  { %7063 = vmatprep.mubr.bf16.mxu0 %v1263_v21  ;;  %7719 = vmatprep.mubr.bf16.mxu1 %v1263_v21  ;;  %v1054_v21 = vsub.s32 2, %v10602_v42 }
 0x3c7   :  { %7034 = vmatpush1.bf16.msra.mxu0 %v10372_v39  ;;  %7690 = vmatpush1.bf16.msra.mxu1 %v10375_v40  ;;  %v1042_v39 = vld [vmem:[%s13754_s2] sm:$0xf]  ;;  %v1050_v40 = vsub.s32 1, %v10602_v42 }
 0x3c8   :  { %7035 = vmatprep.subr.bf16.mxu0 %v10380_v32  ;;  %7691 = vmatprep.subr.bf16.mxu1 %v10383_v41  ;;  %v1058_v32 = vsub.s32 3, %v10602_v42  ;;  %v1047_v41 = vrot.slane %v1042_v39, %v1046_v13 }
 0x3ca   :  { %v1059_v33 = vrot.slane %v1042_v39, %v1058_v32 }
 0x3cb   :  { %7036 = vmatpush1.bf16.msra.mxu0 %v10378_v34  ;;  %7692 = vmatpush1.bf16.msra.mxu1 %v10381_v43  ;;  %v1055_v34 = vrot.slane %v1042_v39, %v1054_v21  ;;  %v1051_v43 = vrot.slane %v1042_v39, %v1050_v40 }
 0x3cc   :  { %7037 = vmatprep.subr.bf16.mxu0 %v10386_v45  ;;  %7693 = vmatprep.subr.bf16.mxu1 %v10389_v46 }
 0x3cf   :  { %7038 = vmatpush1.bf16.msra.mxu0 %v10384_v35  ;;  %7694 = vmatpush1.bf16.msra.mxu1 %v10387_v50 }
 0x3d0   :  { %7039 = vmatprep.subr.bf16.mxu0 %v10392_v53  ;;  %7695 = vmatprep.subr.bf16.mxu1 %v10395_v38 }
 0x3d3   :  { %7040 = vmatpush1.bf16.msra.mxu0 %v10390_v54  ;;  %7696 = vmatpush1.bf16.msra.mxu1 %v10393_v55 }
 0x3d4   :  { %7041 = vmatprep.subr.bf16.mxu0 %v10398_v56  ;;  %7697 = vmatprep.subr.bf16.mxu1 %v10401_v47 }
 0x3d7   :  { %7042 = vmatpush1.bf16.msra.mxu0 %v10396_v57  ;;  %7698 = vmatpush1.bf16.msra.mxu1 %v10399_v58 }
 0x3d8   :  { %7043 = vmatprep.subr.bf16.mxu0 %v10404_v59  ;;  %7699 = vmatprep.subr.bf16.mxu1 %v10407_v48 }
 0x3db   :  { %7044 = vmatpush1.bf16.msra.mxu0 %v10402_v61  ;;  %7700 = vmatpush1.bf16.msra.mxu1 %v10405_v63 }
 0x3dc   :  { %7045 = vmatprep.subr.bf16.mxu0 %v10410_v44  ;;  %7701 = vmatprep.subr.bf16.mxu1 %v10413_v1 }
 0x3df   :  { %7046 = vmatpush1.bf16.msra.mxu0 %v10408_v51  ;;  %7702 = vmatpush1.bf16.msra.mxu1 %v10411_v2 }
 0x3e0   :  { %7047 = vmatprep.subr.bf16.mxu0 %v10416_v3  ;;  %7703 = vmatprep.subr.bf16.mxu1 %v10419_v4 }
 0x3e3   :  { %7048 = vmatpush1.bf16.msra.mxu0 %v10414_v60  ;;  %7704 = vmatpush1.bf16.msra.mxu1 %v10417_v6 }
 0x3e4   :  { %7049 = vmatprep.subr.bf16.mxu0 %v10422_v7  ;;  %7705 = vmatprep.subr.bf16.mxu1 %v10425_v62 }
 0x3e7   :  { %7050 = vmatpush1.bf16.msra.mxu0 %v10420_v10  ;;  %7706 = vmatpush1.bf16.msra.mxu1 %v10423_v12 }
 0x3e8   :  { %7051 = vmatprep.subr.bf16.mxu0 %v10428_v0  ;;  %7707 = vmatprep.subr.bf16.mxu1 %v10431_v52 }
 0x3eb   :  { %7052 = vmatpush1.bf16.msra.mxu0 %v10426_v15  ;;  %7708 = vmatpush1.bf16.msra.mxu1 %v10429_v16 }
 0x3ec   :  { %7053 = vmatprep.subr.bf16.mxu0 %v10434_v8  ;;  %7709 = vmatprep.subr.bf16.mxu1 %v10437_v17 }
 0x3ef   :  { %7054 = vmatpush1.bf16.msra.mxu0 %v10432_v18  ;;  %7710 = vmatpush1.bf16.msra.mxu1 %v10435_v19 }
 0x3f0   :  { %7055 = vmatprep.subr.bf16.mxu0 %v10440_v9  ;;  %7711 = vmatprep.subr.bf16.mxu1 %v10443_v22 }
 0x3f3   :  { %7056 = vmatpush1.bf16.msra.mxu0 %v10438_v24  ;;  %7712 = vmatpush1.bf16.msra.mxu1 %v10441_v5 }
 0x3f4   :  { %7057 = vmatprep.subr.bf16.mxu0 %v10446_v27  ;;  %7713 = vmatprep.subr.bf16.mxu1 %v10449_v11 }
 0x3f7   :  { %7058 = vmatpush1.bf16.msra.mxu0 %v10444_v28  ;;  %7714 = vmatpush1.bf16.msra.mxu1 %v10447_v29 }
 0x3f8   :  { %7059 = vmatprep.subr.bf16.mxu0 %v10452_v14  ;;  %7715 = vmatprep.subr.bf16.mxu1 %v10455_v20 }
 0x3fb   :  { %7060 = vmatpush1.bf16.msra.mxu0 %v10450_v30  ;;  %7716 = vmatpush1.bf16.msra.mxu1 %v10453_v31 }
 0x3fc   :  { %7061 = vmatprep.subr.bf16.mxu0 %v10458_v25  ;;  %7717 = vmatprep.subr.bf16.mxu1 %v10461_v23 }
 0x3ff   :  { %7062 = vmatpush1.bf16.msra.mxu0 %v10456_v26  ;;  %7718 = vmatpush1.bf16.msra.mxu1 %v10459_v36 }
 0x402   :  { %7064 = vmatmul.mubr.bf16.vlgmr.msra.gmra.mrb[0].mxu0 %v1261_v37  ;;  %7720 = vmatmul.mubr.bf16.vlgmr.msra.gmra.mrb[0].mxu1 %v1261_v37 }
 0x4d5   :  { %v7065_v45 = vpop.f32.mrb[0].mxu0  ;;  %v7721_v46 = vpop.f32.mrb[0].mxu1 }
 0x4d6   :  { %v8797_v35 = vadd.f32 %v7065_v45, %v1047_v41  ;;  %v8799_v50 = vadd.f32 %v7721_v46, %v1055_v34  ;;  %v7067_v53 = vpop.f32.mrb[1].mxu0  ;;  %v7723_v38 = vpop.f32.mrb[1].mxu1 }
 0x4d7   :  { %v8798_v54 = vadd.f32 %v7067_v53, %v1051_v43  ;;  %v8800_v55 = vadd.f32 %v7723_v38, %v1059_v33  ;;  %v7069_v56 = vpop.f32.mrb[2].mxu0  ;;  %v7725_v47 = vpop.f32.mrb[2].mxu1 }
 0x4d8   :  { %v7728_v57 = vmax.f32 %v8797_v35, 0.0  ;;  %v7730_v58 = vmax.f32 %v8799_v50, 0.0  ;;  %v7070_v59 = vpop.f32.mrb[3].mxu0  ;;  %v7726_v48 = vpop.f32.mrb[3].mxu1 }
 0x4d9   :  { %v7729_v61 = vmax.f32 %v8798_v54, 0.0  ;;  %v7731_v42 = vmax.f32 %v8800_v55, 0.0 }
 0x4db   :  { %v8794_v63 = vpack.c.bf16 %v7729_v61, %v7728_v57  ;;  %v8795_v44 = vpack.c.bf16 %v7731_v42, %v7730_v58 }
 0x4dd   :  { %v7748_v1 = vrot.slane %v8794_v63, %v10620_v49  ;;  %v7755_v51 = vrot.slane %v8795_v44, %v10620_v49 }
 0x4df   :  { %v7756_v2 = vcombine.low %v7748_v1, %v7755_v51 }
 0x4e1   :  { %8796 = vst.sshfl [vmem:[%s13755_s3] sm:$0x55 pattern:$0x73625140] %v7756_v2 }

</bundles_post_ra>
